<compile_context>
chip_gen: v7x
topology: tpu7x:2x2x1
jax: 0.10.0
libtpu: 0.0.40
codegen_flags: <defaults>
</compile_context>

<pallas_src>
import functools

import jax
import jax.numpy as jnp
from jax.experimental import pallas as pl
from jax.experimental.pallas import tpu as pltpu

LANE = 128
STEM_CH = 16
STAGE_CHANNELS = [16, 24, 40, 112, 320]
STAGE_STRIDES = [1, 2, 2, 2, 2]


def _cpad(c):
    return ((c + LANE - 1) // LANE) * LANE


def _tap(stride, dh, dw):
    """Map a 3x3 tap (dh, dw) to (phase index, row offset, col offset)."""
    if stride == 1:
        return 0, dh, dw
    return (dh % 2) * 2 + (dw % 2), dh // 2, dw // 2


# ----------------------------------------------------------------------------
# Pallas kernels
# ----------------------------------------------------------------------------
def _matmul_bn_silu_kernel(x_ref, w_ref, scale_ref, bias_ref, o_ref):
    """Stem: o[0] = silu((x[0] @ w) * scale + bias).

    x:(1,M,K) bf16, w:(K,Cout) bf16, scale/bias:(1,Cout) f32, o:(1,M,Cout) bf16.
    f32 accumulation + f32 epilogue; bf16 only on the store (lane-dense Cout).
    """
    acc = jnp.dot(x_ref[0], w_ref[...], preferred_element_type=jnp.float32)
    y = acc * scale_ref[...] + bias_ref[...]
    o_ref[0] = (y * jax.nn.sigmoid(y)).astype(o_ref.dtype)


def _stage_kernel(x_ref, dww_ref, dws_ref, dwb_ref, pww_ref, pws_ref, pwb_ref,
                  o_ref, *, stride, ho, wo):
    """Fused depthwise3x3 + BN + SiLU -> pointwise1x1 + BN + SiLU (one image).

    x_ref : (1, Hph, Wph, P*Cp) bf16 - halo-padded input (P=1, stride 1) or its
            stride-2 phase decomposition concatenated on the channel axis (P=4),
            so every tap is a contiguous, 128-aligned-lane slice.
    dww_ref: (9, Cp) f32 depthwise taps; dws/dwb: (1, Cp) folded BN.
    pww_ref: (Cp, Cout) bf16; pws/pwb: (1, Cout) folded BN.
    o_ref : (1, Ho*Wo, Cout) bf16 (Cout is a multiple of 128 -> lane-dense).
    """
    cp = dww_ref.shape[1]
    m = ho * wo
    dww = dww_ref[...]                                    # load taps once
    acc = jnp.zeros((m, cp), jnp.float32)
    for dh in range(3):                                   # unrolled at trace time
        for dw in range(3):
            p, a, b = _tap(stride, dh, dw)
            tap = x_ref[0, a:a + ho, b:b + wo, p * cp:(p + 1) * cp]
            acc = acc + tap.reshape(m, cp).astype(jnp.float32) * \
                dww[dh * 3 + dw:dh * 3 + dw + 1, :]
    y = acc * dws_ref[...] + dwb_ref[...]                 # f32 epilogue (v5e-safe)
    h = (y * jax.nn.sigmoid(y)).astype(jnp.bfloat16)      # (m, Cp)

    # Pad the pixel axis up to a sublane multiple before the MXU matmul
    # (late stages have as few as 1-4 output pixels per image).
    mp = max(8, ((m + 7) // 8) * 8)
    if mp != m:
        h = jnp.concatenate([h, jnp.zeros((mp - m, cp), jnp.bfloat16)], axis=0)
    z = jnp.dot(h, pww_ref[...], preferred_element_type=jnp.float32)
    z = z * pws_ref[...] + pwb_ref[...]
    o_ref[0] = (z * jax.nn.sigmoid(z)).astype(o_ref.dtype)[:m]


# ----------------------------------------------------------------------------
# Wrappers
# ----------------------------------------------------------------------------
def _pad_and_phase_concat(x, stride):
    """Halo-pad by 1; for stride 2 also split into the 4 spatial phases and
    concatenate them on the channel axis (single pass over the activation)."""
    xp = jnp.pad(x, ((0, 0), (1, 1), (1, 1), (0, 0)))
    if stride == 1:
        return xp
    _, hp, wp, _ = xp.shape
    if hp % 2 or wp % 2:
        xp = jnp.pad(xp, ((0, 0), (0, hp % 2), (0, wp % 2), (0, 0)))
    phases = [xp[:, a::2, b::2, :] for a in range(2) for b in range(2)]
    return jnp.concatenate(phases, axis=-1)               # (N, Hp/2, Wp/2, 4*C)


def _fused_stem(x, w, scale, bias):
    """3x3/s2 conv + folded BN + SiLU.  Cin=3, so the im2col here is ~50 KB
    total and intentionally kept; the wide depthwise inputs are handled
    halo-style inside _stage_kernel."""
    n, h, wd, c = x.shape
    ho = (h - 1) // 2 + 1
    wo = (wd - 1) // 2 + 1
    xp = jnp.pad(x, ((0, 0), (1, 1), (1, 1), (0, 0)))
    taps = [xp[:, dh:dh + 2 * (ho - 1) + 1:2, dw:dw + 2 * (wo - 1) + 1:2, :]
            for dh in range(3) for dw in range(3)]
    pat = jnp.concatenate(taps, axis=-1).reshape(n, ho * wo, 9 * c)
    k_pad = w.shape[0]
    if k_pad != 9 * c:
        pat = jnp.pad(pat, ((0, 0), (0, 0), (0, k_pad - 9 * c)))
    cout = w.shape[1]
    m = ho * wo
    out = pl.pallas_call(
        _matmul_bn_silu_kernel,
        out_shape=jax.ShapeDtypeStruct((n, m, cout), jnp.bfloat16),
        grid=(n,),
        in_specs=[
            pl.BlockSpec((1, m, k_pad), lambda i: (i, 0, 0)),
            pl.BlockSpec((k_pad, cout), lambda i: (0, 0)),
            pl.BlockSpec((1, cout), lambda i: (0, 0)),
            pl.BlockSpec((1, cout), lambda i: (0, 0)),
        ],
        out_specs=pl.BlockSpec((1, m, cout), lambda i: (i, 0, 0)),
        compiler_params=pltpu.CompilerParams(dimension_semantics=("parallel",)),
    )(pat, w, scale.reshape(1, cout), bias.reshape(1, cout))
    return out.reshape(n, ho, wo, cout)


def _fused_stage(x, stride, dw_w, dw_scale, dw_bias, pw_w, pw_scale, pw_bias):
    """One fused pallas_call per stage (grid over the batch)."""
    n, h, w, cp = x.shape
    ho = (h - 1) // stride + 1
    wo = (w - 1) // stride + 1
    ph = _pad_and_phase_concat(x, stride)                 # (N, Hph, Wph, P*Cp)
    _, hph, wph, ctot = ph.shape
    cout = pw_w.shape[1]
    m = ho * wo
    kern = functools.partial(_stage_kernel, stride=stride, ho=ho, wo=wo)
    out = pl.pallas_call(
        kern,
        out_shape=jax.ShapeDtypeStruct((n, m, cout), jnp.bfloat16),
        grid=(n,),
        in_specs=[
            pl.BlockSpec((1, hph, wph, ctot), lambda i: (i, 0, 0, 0)),
            pl.BlockSpec((9, cp), lambda i: (0, 0)),
            pl.BlockSpec((1, cp), lambda i: (0, 0)),
            pl.BlockSpec((1, cp), lambda i: (0, 0)),
            pl.BlockSpec((cp, cout), lambda i: (0, 0)),
            pl.BlockSpec((1, cout), lambda i: (0, 0)),
            pl.BlockSpec((1, cout), lambda i: (0, 0)),
        ],
        out_specs=pl.BlockSpec((1, m, cout), lambda i: (i, 0, 0)),
        compiler_params=pltpu.CompilerParams(dimension_semantics=("parallel",)),
    )(ph, dw_w, dw_scale.reshape(1, cp), dw_bias.reshape(1, cp),
      pw_w, pw_scale.reshape(1, cout), pw_bias.reshape(1, cout))
    return out.reshape(n, ho, wo, cout)


# ----------------------------------------------------------------------------
# Parameters (folded BN, padded/kernel-ready layouts)
# ----------------------------------------------------------------------------
def fold_bn(gamma, beta, mean, var, eps=1e-5):
    scale = gamma / jnp.sqrt(var + eps)
    return scale, beta - mean * scale


def _bn_params(key, c, c_pad):
    k1, k2, k3 = jax.random.split(key, 3)
    gamma = 1.0 + 0.1 * jax.random.normal(k1, (c,), jnp.float32)
    beta = 0.1 * jax.random.normal(k2, (c,), jnp.float32)
    mean = 0.1 * jax.random.normal(k3, (c,), jnp.float32)
    var = jnp.ones((c,), jnp.float32)
    s, b = fold_bn(gamma, beta, mean, var)
    scale = jnp.zeros((c_pad,), jnp.float32).at[:c].set(s)
    bias = jnp.zeros((c_pad,), jnp.float32).at[:c].set(b)
    return scale, bias


def init_params(key, in_ch=3):
    params = {}
    stem_cp = _cpad(STEM_CH)
    stem_k = ((9 * in_ch + 7) // 8) * 8
    key, kw, kb = jax.random.split(key, 3)
    w = 0.1 * jax.random.normal(kw, (3, 3, in_ch, STEM_CH), jnp.float32)
    wk = jnp.zeros((stem_k, stem_cp), jnp.float32)
    wk = wk.at[:9 * in_ch, :STEM_CH].set(w.reshape(9 * in_ch, STEM_CH))
    params["stem_w"] = wk.astype(jnp.bfloat16)
    params["stem_scale"], params["stem_bias"] = _bn_params(kb, STEM_CH, stem_cp)

    cin, cin_p = STEM_CH, stem_cp
    for i, cout in enumerate(STAGE_CHANNELS):
        cout_p = _cpad(cout)
        key, k1, k2, k3, k4 = jax.random.split(key, 5)
        dw = 0.1 * jax.random.normal(k1, (3, 3, cin), jnp.float32)
        dw_k = jnp.zeros((9, cin_p), jnp.float32).at[:, :cin].set(dw.reshape(9, cin))
        dws, dwb = _bn_params(k2, cin, cin_p)
        pw = 0.1 * jax.random.normal(k3, (cin, cout), jnp.float32)
        pw_k = jnp.zeros((cin_p, cout_p), jnp.float32).at[:cin, :cout].set(pw)
        pws, pwb = _bn_params(k4, cout, cout_p)
        params[f"stage{i}"] = dict(
            dw_w=dw_k, dw_scale=dws, dw_bias=dwb,
            pw_w=pw_k.astype(jnp.bfloat16), pw_scale=pws, pw_bias=pwb)
        cin, cin_p = cout, cout_p
    return params


# ----------------------------------------------------------------------------
# Forward passes
# ----------------------------------------------------------------------------
@jax.jit
def encoder_forward(x_nchw, params):
    """Returns a list of multi-scale features (NCHW), like Encoder.forward."""
    x = jnp.transpose(x_nchw, (0, 2, 3, 1)).astype(jnp.bfloat16)   # NHWC bf16
    x = _fused_stem(x, params["stem_w"], params["stem_scale"], params["stem_bias"])
    feats = []
    for i, stride in enumerate(STAGE_STRIDES):
        p = params[f"stage{i}"]
        x = _fused_stage(x, stride, p["dw_w"], p["dw_scale"], p["dw_bias"],
                         p["pw_w"], p["pw_scale"], p["pw_bias"])
        # Only the returned features leave the padded NHWC/bf16 internal format.
        f = x[..., :STAGE_CHANNELS[i]].astype(jnp.float32)
        feats.append(jnp.transpose(f, (0, 3, 1, 2)))
    return feats


@jax.jit
def reference_forward(x_nchw, params):
    """Pure-XLA f32 reference of the same (simplified) encoder, for validation."""
    x = jnp.transpose(x_nchw, (0, 2, 3, 1)).astype(jnp.float32)
    n, h, w, c = x.shape
    xp = jnp.pad(x, ((0, 0), (1, 1), (1, 1), (0, 0)))
    ho, wo = (h - 1) // 2 + 1, (w - 1) // 2 + 1
    taps = [xp[:, dh:dh + 2 * (ho - 1) + 1:2, dw:dw + 2 * (wo - 1) + 1:2, :]
            for dh in range(3) for dw in range(3)]
    pat = jnp.concatenate(taps, axis=-1).reshape(n, ho * wo, 9 * c)
    pat = jnp.pad(pat, ((0, 0), (0, 0), (0, params["stem_w"].shape[0] - 9 * c)))
    y = pat @ params["stem_w"].astype(jnp.float32)
    y = y * params["stem_scale"] + params["stem_bias"]
    x = (y * jax.nn.sigmoid(y)).reshape(n, ho, wo, -1)
    feats = []
    for i, stride in enumerate(STAGE_STRIDES):
        p = params[f"stage{i}"]
        n, h, w, cp = x.shape
        xp = jnp.pad(x, ((0, 0), (1, 1), (1, 1), (0, 0)))
        ho, wo = (h - 1) // stride + 1, (w - 1) // stride + 1
        acc = jnp.zeros((n, ho, wo, cp), jnp.float32)
        for dh in range(3):
            for dw in range(3):
                tap = xp[:, dh:dh + stride * (ho - 1) + 1:stride,
                         dw:dw + stride * (wo - 1) + 1:stride, :]
                acc = acc + tap * p["dw_w"][dh * 3 + dw]
        y = acc * p["dw_scale"] + p["dw_bias"]
        hdw = y * jax.nn.sigmoid(y)
        z = hdw.reshape(n, ho * wo, cp) @ p["pw_w"].astype(jnp.float32)
        z = z * p["pw_scale"] + p["pw_bias"]
        x = (z * jax.nn.sigmoid(z)).reshape(n, ho, wo, -1)
        feats.append(jnp.transpose(x[..., :STAGE_CHANNELS[i]], (0, 3, 1, 2)))
    return feats


if __name__ == "__main__":
    key = jax.random.PRNGKey(0)
    k_x, k_p = jax.random.split(key)
    x = jax.random.normal(k_x, (2, 3, 32, 32), jnp.float32)   # NCHW image batch
    params = init_params(k_p, in_ch=3)

    feats = encoder_forward(x, params)
    for f in feats:
        jax.block_until_ready(f)

    expected_shapes = [(2, 16, 16, 16), (2, 24, 8, 8), (2, 40, 4, 4),
                       (2, 112, 2, 2), (2, 320, 1, 1)]
    assert [tuple(f.shape) for f in feats] == expected_shapes, \
        [tuple(f.shape) for f in feats]
    assert all(bool(jnp.all(jnp.isfinite(f))) for f in feats)

    # Validate against a pure-XLA f32 reference (bf16 activations -> loose tol).
    refs = reference_forward(x, params)
    for f, r in zip(feats, refs):
        err = float(jnp.max(jnp.abs(f - r)))
        assert err < 0.25, f"mismatch vs reference: max abs err {err}"

    print("KERNEL_OK")
</pallas_src>

<mosaic_0001>
module attributes {stable_mosaic.version = 11 : i64} {
  func.func @_matmul_bn_silu_kernel(%arg0: i32, %arg1: memref<1x256x32xbf16, #tpu.memory_space<vmem>>, %arg2: memref<32x128xbf16, #tpu.memory_space<vmem>>, %arg3: memref<1x128xf32, #tpu.memory_space<vmem>>, %arg4: memref<1x128xf32, #tpu.memory_space<vmem>>, %arg5: memref<1x256x128xbf16, #tpu.memory_space<vmem>>) attributes {dimension_semantics = [#tpu.dimension_semantics<parallel>], iteration_bounds = array<i64: 2>, scalar_prefetch = 0 : i64, scratch_operands = 0 : i64, tpu.core_type = #tpu.core_type<tc>, window_params = [{transform_indices = @transform_0, window_bounds = array<i64: 1, 256, 32>}, {pipeline_mode = #tpu.pipeline_mode<synchronous>, transform_indices = @transform_1, window_bounds = array<i64: 32, 128>}, {pipeline_mode = #tpu.pipeline_mode<synchronous>, transform_indices = @transform_2, window_bounds = array<i64: 1, 128>}, {pipeline_mode = #tpu.pipeline_mode<synchronous>, transform_indices = @transform_3, window_bounds = array<i64: 1, 128>}, {transform_indices = @transform_4, window_bounds = array<i64: 1, 256, 128>}]} {
    %c0 = arith.constant 0 : index
    %c0_0 = arith.constant 0 : index
    %c0_1 = arith.constant 0 : index
    %0 = vector.load %arg1[%c0, %c0_0, %c0_1] : memref<1x256x32xbf16, #tpu.memory_space<vmem>>, vector<1x256x32xbf16>
    %1 = vector.shape_cast %0 : vector<1x256x32xbf16> to vector<256x32xbf16>
    %c0_2 = arith.constant 0 : index
    %c0_3 = arith.constant 0 : index
    %2 = vector.load %arg2[%c0_2, %c0_3] : memref<32x128xbf16, #tpu.memory_space<vmem>>, vector<32x128xbf16>
    %cst = arith.constant dense<0.000000e+00> : vector<256x128xf32>
    %3 = tpu.matmul %1, %2, %cst {dimension_numbers = #tpu.dot_dimension_numbers<[1], [0], [0], [1], [0, 0, 1, 1], [], []>} : vector<256x32xbf16>, vector<32x128xbf16>, vector<256x128xf32> -> vector<256x128xf32>
    %c0_4 = arith.constant 0 : index
    %c0_5 = arith.constant 0 : index
    %4 = vector.load %arg3[%c0_4, %c0_5] : memref<1x128xf32, #tpu.memory_space<vmem>>, vector<1x128xf32>
    %5 = vector.broadcast %4 : vector<1x128xf32> to vector<256x128xf32>
    %6 = arith.mulf %3, %5 : vector<256x128xf32>
    %c0_6 = arith.constant 0 : index
    %c0_7 = arith.constant 0 : index
    %7 = vector.load %arg4[%c0_6, %c0_7] : memref<1x128xf32, #tpu.memory_space<vmem>>, vector<1x128xf32>
    %8 = vector.broadcast %7 : vector<1x128xf32> to vector<256x128xf32>
    %9 = arith.addf %6, %8 : vector<256x128xf32>
    %10 = arith.negf %9 : vector<256x128xf32>
    %11 = math.exp %10 : vector<256x128xf32>
    %cst_8 = arith.constant 1.000000e+00 : f32
    %12 = vector.broadcast %cst_8 : f32 to vector<256x128xf32>
    %13 = arith.addf %12, %11 : vector<256x128xf32>
    %14 = arith.divf %12, %13 : vector<256x128xf32>
    %15 = arith.mulf %9, %14 : vector<256x128xf32>
    %16 = arith.truncf %15 : vector<256x128xf32> to vector<256x128xbf16>
    %c0_9 = arith.constant 0 : index
    %c0_10 = arith.constant 0 : index
    %c0_11 = arith.constant 0 : index
    %17 = vector.load %arg5[%c0_9, %c0_10, %c0_11] : memref<1x256x128xbf16, #tpu.memory_space<vmem>>, vector<1x256x128xbf16>
    %18 = vector.shape_cast %17 : vector<1x256x128xbf16> to vector<256x128xbf16>
    %19 = vector.shape_cast %16 : vector<256x128xbf16> to vector<1x256x128xbf16>
    tpu.vector_store %arg5[%c0_9, %c0_10, %c0_11], %19 {strides = array<i32>} : memref<1x256x128xbf16, #tpu.memory_space<vmem>>, vector<1x256x128xbf16>,
    return
  }
  func.func @transform_0(%arg0: i32) -> (i32, i32, i32) {
    %c0_i32 = arith.constant 0 : i32
    %c0_i32_0 = arith.constant 0 : i32
    %c0_i32_1 = arith.constant 0 : i32
    return %arg0, %c0_i32, %c0_i32_0 : i32, i32, i32
  }
  func.func @transform_1(%arg0: i32) -> (i32, i32) {
    %c0_i32 = arith.constant 0 : i32
    %c0_i32_0 = arith.constant 0 : i32
    %c0_i32_1 = arith.constant 0 : i32
    return %c0_i32, %c0_i32_0 : i32, i32
  }
  func.func @transform_2(%arg0: i32) -> (i32, i32) {
    %c0_i32 = arith.constant 0 : i32
    %c0_i32_0 = arith.constant 0 : i32
    %c0_i32_1 = arith.constant 0 : i32
    return %c0_i32, %c0_i32_0 : i32, i32
  }
  func.func @transform_3(%arg0: i32) -> (i32, i32) {
    %c0_i32 = arith.constant 0 : i32
    %c0_i32_0 = arith.constant 0 : i32
    %c0_i32_1 = arith.constant 0 : i32
    return %c0_i32, %c0_i32_0 : i32, i32
  }
  func.func @transform_4(%arg0: i32) -> (i32, i32, i32) {
    %c0_i32 = arith.constant 0 : i32
    %c0_i32_0 = arith.constant 0 : i32
    %c0_i32_1 = arith.constant 0 : i32
    return %arg0, %c0_i32, %c0_i32_0 : i32, i32, i32
  }
}

module attributes {stable_mosaic.version = 11 : i64} {
  func.func @_stage_kernel(%arg0: i32, %arg1: memref<1x18x18x128xbf16, #tpu.memory_space<vmem>>, %arg2: memref<9x128xf32, #tpu.memory_space<vmem>>, %arg3: memref<1x128xf32, #tpu.memory_space<vmem>>, %arg4: memref<1x128xf32, #tpu.memory_space<vmem>>, %arg5: memref<128x128xbf16, #tpu.memory_space<vmem>>, %arg6: memref<1x128xf32, #tpu.memory_space<vmem>>, %arg7: memref<1x128xf32, #tpu.memory_space<vmem>>, %arg8: memref<1x256x128xbf16, #tpu.memory_space<vmem>>) attributes {dimension_semantics = [#tpu.dimension_semantics<parallel>], iteration_bounds = array<i64: 2>, scalar_prefetch = 0 : i64, scratch_operands = 0 : i64, tpu.core_type = #tpu.core_type<tc>, window_params = [{transform_indices = @transform_0, window_bounds = array<i64: 1, 18, 18, 128>}, {pipeline_mode = #tpu.pipeline_mode<synchronous>, transform_indices = @transform_1, window_bounds = array<i64: 9, 128>}, {pipeline_mode = #tpu.pipeline_mode<synchronous>, transform_indices = @transform_2, window_bounds = array<i64: 1, 128>}, {pipeline_mode = #tpu.pipeline_mode<synchronous>, transform_indices = @transform_3, window_bounds = array<i64: 1, 128>}, {pipeline_mode = #tpu.pipeline_mode<synchronous>, transform_indices = @transform_4, window_bounds = array<i64: 128, 128>}, {pipeline_mode = #tpu.pipeline_mode<synchronous>, transform_indices = @transform_5, window_bounds = array<i64: 1, 128>}, {pipeline_mode = #tpu.pipeline_mode<synchronous>, transform_indices = @transform_6, window_bounds = array<i64: 1, 128>}, {transform_indices = @transform_7, window_bounds = array<i64: 1, 256, 128>}]} {
    %c0 = arith.constant 0 : index
    %c0_0 = arith.constant 0 : index
    %0 = vector.load %arg2[%c0, %c0_0] : memref<9x128xf32, #tpu.memory_space<vmem>>, vector<9x128xf32>
    %cst = arith.constant 0.000000e+00 : f32
    %1 = vector.broadcast %cst : f32 to vector<256x128xf32>
    %c0_1 = arith.constant 0 : index
    %c0_2 = arith.constant 0 : index
    %c0_3 = arith.constant 0 : index
    %c0_4 = arith.constant 0 : index
    %2 = vector.load %arg1[%c0_1, %c0_2, %c0_3, %c0_4] : memref<1x18x18x128xbf16, #tpu.memory_space<vmem>>, vector<1x16x16x128xbf16>
    %3 = vector.shape_cast %2 : vector<1x16x16x128xbf16> to vector<16x16x128xbf16>
    %4 = vector.shape_cast %3 : vector<16x16x128xbf16> to vector<256x128xbf16>
    %5 = arith.extf %4 : vector<256x128xbf16> to vector<256x128xf32>
    %6 = vector.extract_strided_slice %0 {offsets = [0, 0], sizes = [1, 128], strides = [1, 1]} : vector<9x128xf32> to vector<1x128xf32>
    %7 = vector.broadcast %6 : vector<1x128xf32> to vector<256x128xf32>
    %8 = arith.mulf %5, %7 : vector<256x128xf32>
    %9 = arith.addf %1, %8 : vector<256x128xf32>
    %c0_5 = arith.constant 0 : index
    %c0_6 = arith.constant 0 : index
    %c1 = arith.constant 1 : index
    %c0_7 = arith.constant 0 : index
    %10 = vector.load %arg1[%c0_5, %c0_6, %c1, %c0_7] : memref<1x18x18x128xbf16, #tpu.memory_space<vmem>>, vector<1x16x16x128xbf16>
    %11 = vector.shape_cast %10 : vector<1x16x16x128xbf16> to vector<16x16x128xbf16>
    %12 = vector.shape_cast %11 : vector<16x16x128xbf16> to vector<256x128xbf16>
    %13 = arith.extf %12 : vector<256x128xbf16> to vector<256x128xf32>
    %14 = vector.extract_strided_slice %0 {offsets = [1, 0], sizes = [1, 128], strides = [1, 1]} : vector<9x128xf32> to vector<1x128xf32>
    %15 = vector.broadcast %14 : vector<1x128xf32> to vector<256x128xf32>
    %16 = arith.mulf %13, %15 : vector<256x128xf32>
    %17 = arith.addf %9, %16 : vector<256x128xf32>
    %c0_8 = arith.constant 0 : index
    %c0_9 = arith.constant 0 : index
    %c2 = arith.constant 2 : index
    %c0_10 = arith.constant 0 : index
    %18 = vector.load %arg1[%c0_8, %c0_9, %c2, %c0_10] : memref<1x18x18x128xbf16, #tpu.memory_space<vmem>>, vector<1x16x16x128xbf16>
    %19 = vector.shape_cast %18 : vector<1x16x16x128xbf16> to vector<16x16x128xbf16>
    %20 = vector.shape_cast %19 : vector<16x16x128xbf16> to vector<256x128xbf16>
    %21 = arith.extf %20 : vector<256x128xbf16> to vector<256x128xf32>
    %22 = vector.extract_strided_slice %0 {offsets = [2, 0], sizes = [1, 128], strides = [1, 1]} : vector<9x128xf32> to vector<1x128xf32>
    %23 = vector.broadcast %22 : vector<1x128xf32> to vector<256x128xf32>
    %24 = arith.mulf %21, %23 : vector<256x128xf32>
    %25 = arith.addf %17, %24 : vector<256x128xf32>
    %c0_11 = arith.constant 0 : index
    %c1_12 = arith.constant 1 : index
    %c0_13 = arith.constant 0 : index
    %c0_14 = arith.constant 0 : index
    %26 = vector.load %arg1[%c0_11, %c1_12, %c0_13, %c0_14] : memref<1x18x18x128xbf16, #tpu.memory_space<vmem>>, vector<1x16x16x128xbf16>
    %27 = vector.shape_cast %26 : vector<1x16x16x128xbf16> to vector<16x16x128xbf16>
    %28 = vector.shape_cast %27 : vector<16x16x128xbf16> to vector<256x128xbf16>
    %29 = arith.extf %28 : vector<256x128xbf16> to vector<256x128xf32>
    %30 = vector.extract_strided_slice %0 {offsets = [3, 0], sizes = [1, 128], strides = [1, 1]} : vector<9x128xf32> to vector<1x128xf32>
    %31 = vector.broadcast %30 : vector<1x128xf32> to vector<256x128xf32>
    %32 = arith.mulf %29, %31 : vector<256x128xf32>
    %33 = arith.addf %25, %32 : vector<256x128xf32>
    %c0_15 = arith.constant 0 : index
    %c1_16 = arith.constant 1 : index
    %c1_17 = arith.constant 1 : index
    %c0_18 = arith.constant 0 : index
    %34 = vector.load %arg1[%c0_15, %c1_16, %c1_17, %c0_18] : memref<1x18x18x128xbf16, #tpu.memory_space<vmem>>, vector<1x16x16x128xbf16>
    %35 = vector.shape_cast %34 : vector<1x16x16x128xbf16> to vector<16x16x128xbf16>
    %36 = vector.shape_cast %35 : vector<16x16x128xbf16> to vector<256x128xbf16>
    %37 = arith.extf %36 : vector<256x128xbf16> to vector<256x128xf32>
    %38 = vector.extract_strided_slice %0 {offsets = [4, 0], sizes = [1, 128], strides = [1, 1]} : vector<9x128xf32> to vector<1x128xf32>
    %39 = vector.broadcast %38 : vector<1x128xf32> to vector<256x128xf32>
    %40 = arith.mulf %37, %39 : vector<256x128xf32>
    %41 = arith.addf %33, %40 : vector<256x128xf32>
    %c0_19 = arith.constant 0 : index
    %c1_20 = arith.constant 1 : index
    %c2_21 = arith.constant 2 : index
    %c0_22 = arith.constant 0 : index
    %42 = vector.load %arg1[%c0_19, %c1_20, %c2_21, %c0_22] : memref<1x18x18x128xbf16, #tpu.memory_space<vmem>>, vector<1x16x16x128xbf16>
    %43 = vector.shape_cast %42 : vector<1x16x16x128xbf16> to vector<16x16x128xbf16>
    %44 = vector.shape_cast %43 : vector<16x16x128xbf16> to vector<256x128xbf16>
    %45 = arith.extf %44 : vector<256x128xbf16> to vector<256x128xf32>
    %46 = vector.extract_strided_slice %0 {offsets = [5, 0], sizes = [1, 128], strides = [1, 1]} : vector<9x128xf32> to vector<1x128xf32>
    %47 = vector.broadcast %46 : vector<1x128xf32> to vector<256x128xf32>
    %48 = arith.mulf %45, %47 : vector<256x128xf32>
    %49 = arith.addf %41, %48 : vector<256x128xf32>
    %c0_23 = arith.constant 0 : index
    %c2_24 = arith.constant 2 : index
    %c0_25 = arith.constant 0 : index
    %c0_26 = arith.constant 0 : index
    %50 = vector.load %arg1[%c0_23, %c2_24, %c0_25, %c0_26] : memref<1x18x18x128xbf16, #tpu.memory_space<vmem>>, vector<1x16x16x128xbf16>
    %51 = vector.shape_cast %50 : vector<1x16x16x128xbf16> to vector<16x16x128xbf16>
    %52 = vector.shape_cast %51 : vector<16x16x128xbf16> to vector<256x128xbf16>
    %53 = arith.extf %52 : vector<256x128xbf16> to vector<256x128xf32>
    %54 = vector.extract_strided_slice %0 {offsets = [6, 0], sizes = [1, 128], strides = [1, 1]} : vector<9x128xf32> to vector<1x128xf32>
    %55 = vector.broadcast %54 : vector<1x128xf32> to vector<256x128xf32>
    %56 = arith.mulf %53, %55 : vector<256x128xf32>
    %57 = arith.addf %49, %56 : vector<256x128xf32>
    %c0_27 = arith.constant 0 : index
    %c2_28 = arith.constant 2 : index
    %c1_29 = arith.constant 1 : index
    %c0_30 = arith.constant 0 : index
    %58 = vector.load %arg1[%c0_27, %c2_28, %c1_29, %c0_30] : memref<1x18x18x128xbf16, #tpu.memory_space<vmem>>, vector<1x16x16x128xbf16>
    %59 = vector.shape_cast %58 : vector<1x16x16x128xbf16> to vector<16x16x128xbf16>
    %60 = vector.shape_cast %59 : vector<16x16x128xbf16> to vector<256x128xbf16>
    %61 = arith.extf %60 : vector<256x128xbf16> to vector<256x128xf32>
    %62 = vector.extract_strided_slice %0 {offsets = [7, 0], sizes = [1, 128], strides = [1, 1]} : vector<9x128xf32> to vector<1x128xf32>
    %63 = vector.broadcast %62 : vector<1x128xf32> to vector<256x128xf32>
    %64 = arith.mulf %61, %63 : vector<256x128xf32>
    %65 = arith.addf %57, %64 : vector<256x128xf32>
    %c0_31 = arith.constant 0 : index
    %c2_32 = arith.constant 2 : index
    %c2_33 = arith.constant 2 : index
    %c0_34 = arith.constant 0 : index
    %66 = vector.load %arg1[%c0_31, %c2_32, %c2_33, %c0_34] : memref<1x18x18x128xbf16, #tpu.memory_space<vmem>>, vector<1x16x16x128xbf16>
    %67 = vector.shape_cast %66 : vector<1x16x16x128xbf16> to vector<16x16x128xbf16>
    %68 = vector.shape_cast %67 : vector<16x16x128xbf16> to vector<256x128xbf16>
    %69 = arith.extf %68 : vector<256x128xbf16> to vector<256x128xf32>
    %70 = vector.extract_strided_slice %0 {offsets = [8, 0], sizes = [1, 128], strides = [1, 1]} : vector<9x128xf32> to vector<1x128xf32>
    %71 = vector.broadcast %70 : vector<1x128xf32> to vector<256x128xf32>
    %72 = arith.mulf %69, %71 : vector<256x128xf32>
    %73 = arith.addf %65, %72 : vector<256x128xf32>
    %c0_35 = arith.constant 0 : index
    %c0_36 = arith.constant 0 : index
    %74 = vector.load %arg3[%c0_35, %c0_36] : memref<1x128xf32, #tpu.memory_space<vmem>>, vector<1x128xf32>
    %75 = vector.broadcast %74 : vector<1x128xf32> to vector<256x128xf32>
    %76 = arith.mulf %73, %75 : vector<256x128xf32>
    %c0_37 = arith.constant 0 : index
    %c0_38 = arith.constant 0 : index
    %77 = vector.load %arg4[%c0_37, %c0_38] : memref<1x128xf32, #tpu.memory_space<vmem>>, vector<1x128xf32>
    %78 = vector.broadcast %77 : vector<1x128xf32> to vector<256x128xf32>
    %79 = arith.addf %76, %78 : vector<256x128xf32>
    %80 = arith.negf %79 : vector<256x128xf32>
    %81 = math.exp %80 : vector<256x128xf32>
    %cst_39 = arith.constant 1.000000e+00 : f32
    %82 = vector.broadcast %cst_39 : f32 to vector<256x128xf32>
    %83 = arith.addf %82, %81 : vector<256x128xf32>
    %84 = arith.divf %82, %83 : vector<256x128xf32>
    %85 = arith.mulf %79, %84 : vector<256x128xf32>
    %86 = arith.truncf %85 : vector<256x128xf32> to vector<256x128xbf16>
    %c0_40 = arith.constant 0 : index
    %c0_41 = arith.constant 0 : index
    %87 = vector.load %arg5[%c0_40, %c0_41] : memref<128x128xbf16, #tpu.memory_space<vmem>>, vector<128x128xbf16>
    %cst_42 = arith.constant dense<0.000000e+00> : vector<256x128xf32>
    %88 = tpu.matmul %86, %87, %cst_42 {dimension_numbers = #tpu.dot_dimension_numbers<[1], [0], [0], [1], [0, 0, 1, 1], [], []>} : vector<256x128xbf16>, vector<128x128xbf16>, vector<256x128xf32> -> vector<256x128xf32>
    %c0_43 = arith.constant 0 : index
    %c0_44 = arith.constant 0 : index
    %89 = vector.load %arg6[%c0_43, %c0_44] : memref<1x128xf32, #tpu.memory_space<vmem>>, vector<1x128xf32>
    %90 = vector.broadcast %89 : vector<1x128xf32> to vector<256x128xf32>
    %91 = arith.mulf %88, %90 : vector<256x128xf32>
    %c0_45 = arith.constant 0 : index
    %c0_46 = arith.constant 0 : index
    %92 = vector.load %arg7[%c0_45, %c0_46] : memref<1x128xf32, #tpu.memory_space<vmem>>, vector<1x128xf32>
    %93 = vector.broadcast %92 : vector<1x128xf32> to vector<256x128xf32>
    %94 = arith.addf %91, %93 : vector<256x128xf32>
    %95 = arith.negf %94 : vector<256x128xf32>
    %96 = math.exp %95 : vector<256x128xf32>
    %cst_47 = arith.constant 1.000000e+00 : f32
    %97 = vector.broadcast %cst_47 : f32 to vector<256x128xf32>
    %98 = arith.addf %97, %96 : vector<256x128xf32>
    %99 = arith.divf %97, %98 : vector<256x128xf32>
    %100 = arith.mulf %94, %99 : vector<256x128xf32>
    %101 = arith.truncf %100 : vector<256x128xf32> to vector<256x128xbf16>
    %c0_48 = arith.constant 0 : index
    %c0_49 = arith.constant 0 : index
    %c0_50 = arith.constant 0 : index
    %102 = vector.load %arg8[%c0_48, %c0_49, %c0_50] : memref<1x256x128xbf16, #tpu.memory_space<vmem>>, vector<1x256x128xbf16>
    %103 = vector.shape_cast %102 : vector<1x256x128xbf16> to vector<256x128xbf16>
    %104 = vector.shape_cast %101 : vector<256x128xbf16> to vector<1x256x128xbf16>
    tpu.vector_store %arg8[%c0_48, %c0_49, %c0_50], %104 {strides = array<i32>} : memref<1x256x128xbf16, #tpu.memory_space<vmem>>, vector<1x256x128xbf16>,
    return
  }
  func.func @transform_0(%arg0: i32) -> (i32, i32, i32, i32) {
    %c0_i32 = arith.constant 0 : i32
    %c0_i32_0 = arith.constant 0 : i32
    %c0_i32_1 = arith.constant 0 : i32
    %c0_i32_2 = arith.constant 0 : i32
    return %arg0, %c0_i32, %c0_i32_0, %c0_i32_1 : i32, i32, i32, i32
  }
  func.func @transform_1(%arg0: i32) -> (i32, i32) {
    %c0_i32 = arith.constant 0 : i32
    %c0_i32_0 = arith.constant 0 : i32
    %c0_i32_1 = arith.constant 0 : i32
    return %c0_i32, %c0_i32_0 : i32, i32
  }
  func.func @transform_2(%arg0: i32) -> (i32, i32) {
    %c0_i32 = arith.constant 0 : i32
    %c0_i32_0 = arith.constant 0 : i32
    %c0_i32_1 = arith.constant 0 : i32
    return %c0_i32, %c0_i32_0 : i32, i32
  }
  func.func @transform_3(%arg0: i32) -> (i32, i32) {
    %c0_i32 = arith.constant 0 : i32
    %c0_i32_0 = arith.constant 0 : i32
    %c0_i32_1 = arith.constant 0 : i32
    return %c0_i32, %c0_i32_0 : i32, i32
  }
  func.func @transform_4(%arg0: i32) -> (i32, i32) {
    %c0_i32 = arith.constant 0 : i32
    %c0_i32_0 = arith.constant 0 : i32
    %c0_i32_1 = arith.constant 0 : i32
    return %c0_i32, %c0_i32_0 : i32, i32
  }
  func.func @transform_5(%arg0: i32) -> (i32, i32) {
    %c0_i32 = arith.constant 0 : i32
    %c0_i32_0 = arith.constant 0 : i32
    %c0_i32_1 = arith.constant 0 : i32
    return %c0_i32, %c0_i32_0 : i32, i32
  }
  func.func @transform_6(%arg0: i32) -> (i32, i32) {
    %c0_i32 = arith.constant 0 : i32
    %c0_i32_0 = arith.constant 0 : i32
    %c0_i32_1 = arith.constant 0 : i32
    return %c0_i32, %c0_i32_0 : i32, i32
  }
  func.func @transform_7(%arg0: i32) -> (i32, i32, i32) {
    %c0_i32 = arith.constant 0 : i32
    %c0_i32_0 = arith.constant 0 : i32
    %c0_i32_1 = arith.constant 0 : i32
    return %arg0, %c0_i32, %c0_i32_0 : i32, i32, i32
  }
}

module attributes {stable_mosaic.version = 11 : i64} {
  func.func @_stage_kernel(%arg0: i32, %arg1: memref<1x9x9x512xbf16, #tpu.memory_space<vmem>>, %arg2: memref<9x128xf32, #tpu.memory_space<vmem>>, %arg3: memref<1x128xf32, #tpu.memory_space<vmem>>, %arg4: memref<1x128xf32, #tpu.memory_space<vmem>>, %arg5: memref<128x128xbf16, #tpu.memory_space<vmem>>, %arg6: memref<1x128xf32, #tpu.memory_space<vmem>>, %arg7: memref<1x128xf32, #tpu.memory_space<vmem>>, %arg8: memref<1x64x128xbf16, #tpu.memory_space<vmem>>) attributes {dimension_semantics = [#tpu.dimension_semantics<parallel>], iteration_bounds = array<i64: 2>, scalar_prefetch = 0 : i64, scratch_operands = 0 : i64, tpu.core_type = #tpu.core_type<tc>, window_params = [{transform_indices = @transform_0, window_bounds = array<i64: 1, 9, 9, 512>}, {pipeline_mode = #tpu.pipeline_mode<synchronous>, transform_indices = @transform_1, window_bounds = array<i64: 9, 128>}, {pipeline_mode = #tpu.pipeline_mode<synchronous>, transform_indices = @transform_2, window_bounds = array<i64: 1, 128>}, {pipeline_mode = #tpu.pipeline_mode<synchronous>, transform_indices = @transform_3, window_bounds = array<i64: 1, 128>}, {pipeline_mode = #tpu.pipeline_mode<synchronous>, transform_indices = @transform_4, window_bounds = array<i64: 128, 128>}, {pipeline_mode = #tpu.pipeline_mode<synchronous>, transform_indices = @transform_5, window_bounds = array<i64: 1, 128>}, {pipeline_mode = #tpu.pipeline_mode<synchronous>, transform_indices = @transform_6, window_bounds = array<i64: 1, 128>}, {transform_indices = @transform_7, window_bounds = array<i64: 1, 64, 128>}]} {
    %c0 = arith.constant 0 : index
    %c0_0 = arith.constant 0 : index
    %0 = vector.load %arg2[%c0, %c0_0] : memref<9x128xf32, #tpu.memory_space<vmem>>, vector<9x128xf32>
    %cst = arith.constant 0.000000e+00 : f32
    %1 = vector.broadcast %cst : f32 to vector<64x128xf32>
    %c0_1 = arith.constant 0 : index
    %c0_2 = arith.constant 0 : index
    %c0_3 = arith.constant 0 : index
    %c0_4 = arith.constant 0 : index
    %2 = vector.load %arg1[%c0_1, %c0_2, %c0_3, %c0_4] : memref<1x9x9x512xbf16, #tpu.memory_space<vmem>>, vector<1x8x8x128xbf16>
    %3 = vector.shape_cast %2 : vector<1x8x8x128xbf16> to vector<8x8x128xbf16>
    %4 = vector.shape_cast %3 : vector<8x8x128xbf16> to vector<64x128xbf16>
    %5 = arith.extf %4 : vector<64x128xbf16> to vector<64x128xf32>
    %6 = vector.extract_strided_slice %0 {offsets = [0, 0], sizes = [1, 128], strides = [1, 1]} : vector<9x128xf32> to vector<1x128xf32>
    %7 = vector.broadcast %6 : vector<1x128xf32> to vector<64x128xf32>
    %8 = arith.mulf %5, %7 : vector<64x128xf32>
    %9 = arith.addf %1, %8 : vector<64x128xf32>
    %c0_5 = arith.constant 0 : index
    %c0_6 = arith.constant 0 : index
    %c0_7 = arith.constant 0 : index
    %c128 = arith.constant 128 : index
    %10 = vector.load %arg1[%c0_5, %c0_6, %c0_7, %c128] : memref<1x9x9x512xbf16, #tpu.memory_space<vmem>>, vector<1x8x8x128xbf16>
    %11 = vector.shape_cast %10 : vector<1x8x8x128xbf16> to vector<8x8x128xbf16>
    %12 = vector.shape_cast %11 : vector<8x8x128xbf16> to vector<64x128xbf16>
    %13 = arith.extf %12 : vector<64x128xbf16> to vector<64x128xf32>
    %14 = vector.extract_strided_slice %0 {offsets = [1, 0], sizes = [1, 128], strides = [1, 1]} : vector<9x128xf32> to vector<1x128xf32>
    %15 = vector.broadcast %14 : vector<1x128xf32> to vector<64x128xf32>
    %16 = arith.mulf %13, %15 : vector<64x128xf32>
    %17 = arith.addf %9, %16 : vector<64x128xf32>
    %c0_8 = arith.constant 0 : index
    %c0_9 = arith.constant 0 : index
    %c1 = arith.constant 1 : index
    %c0_10 = arith.constant 0 : index
    %18 = vector.load %arg1[%c0_8, %c0_9, %c1, %c0_10] : memref<1x9x9x512xbf16, #tpu.memory_space<vmem>>, vector<1x8x8x128xbf16>
    %19 = vector.shape_cast %18 : vector<1x8x8x128xbf16> to vector<8x8x128xbf16>
    %20 = vector.shape_cast %19 : vector<8x8x128xbf16> to vector<64x128xbf16>
    %21 = arith.extf %20 : vector<64x128xbf16> to vector<64x128xf32>
    %22 = vector.extract_strided_slice %0 {offsets = [2, 0], sizes = [1, 128], strides = [1, 1]} : vector<9x128xf32> to vector<1x128xf32>
    %23 = vector.broadcast %22 : vector<1x128xf32> to vector<64x128xf32>
    %24 = arith.mulf %21, %23 : vector<64x128xf32>
    %25 = arith.addf %17, %24 : vector<64x128xf32>
    %c0_11 = arith.constant 0 : index
    %c0_12 = arith.constant 0 : index
    %c0_13 = arith.constant 0 : index
    %c256 = arith.constant 256 : index
    %26 = vector.load %arg1[%c0_11, %c0_12, %c0_13, %c256] : memref<1x9x9x512xbf16, #tpu.memory_space<vmem>>, vector<1x8x8x128xbf16>
    %27 = vector.shape_cast %26 : vector<1x8x8x128xbf16> to vector<8x8x128xbf16>
    %28 = vector.shape_cast %27 : vector<8x8x128xbf16> to vector<64x128xbf16>
    %29 = arith.extf %28 : vector<64x128xbf16> to vector<64x128xf32>
    %30 = vector.extract_strided_slice %0 {offsets = [3, 0], sizes = [1, 128], strides = [1, 1]} : vector<9x128xf32> to vector<1x128xf32>
    %31 = vector.broadcast %30 : vector<1x128xf32> to vector<64x128xf32>
    %32 = arith.mulf %29, %31 : vector<64x128xf32>
    %33 = arith.addf %25, %32 : vector<64x128xf32>
    %c0_14 = arith.constant 0 : index
    %c0_15 = arith.constant 0 : index
    %c0_16 = arith.constant 0 : index
    %c384 = arith.constant 384 : index
    %34 = vector.load %arg1[%c0_14, %c0_15, %c0_16, %c384] : memref<1x9x9x512xbf16, #tpu.memory_space<vmem>>, vector<1x8x8x128xbf16>
    %35 = vector.shape_cast %34 : vector<1x8x8x128xbf16> to vector<8x8x128xbf16>
    %36 = vector.shape_cast %35 : vector<8x8x128xbf16> to vector<64x128xbf16>
    %37 = arith.extf %36 : vector<64x128xbf16> to vector<64x128xf32>
    %38 = vector.extract_strided_slice %0 {offsets = [4, 0], sizes = [1, 128], strides = [1, 1]} : vector<9x128xf32> to vector<1x128xf32>
    %39 = vector.broadcast %38 : vector<1x128xf32> to vector<64x128xf32>
    %40 = arith.mulf %37, %39 : vector<64x128xf32>
    %41 = arith.addf %33, %40 : vector<64x128xf32>
    %c0_17 = arith.constant 0 : index
    %c0_18 = arith.constant 0 : index
    %c1_19 = arith.constant 1 : index
    %c256_20 = arith.constant 256 : index
    %42 = vector.load %arg1[%c0_17, %c0_18, %c1_19, %c256_20] : memref<1x9x9x512xbf16, #tpu.memory_space<vmem>>, vector<1x8x8x128xbf16>
    %43 = vector.shape_cast %42 : vector<1x8x8x128xbf16> to vector<8x8x128xbf16>
    %44 = vector.shape_cast %43 : vector<8x8x128xbf16> to vector<64x128xbf16>
    %45 = arith.extf %44 : vector<64x128xbf16> to vector<64x128xf32>
    %46 = vector.extract_strided_slice %0 {offsets = [5, 0], sizes = [1, 128], strides = [1, 1]} : vector<9x128xf32> to vector<1x128xf32>
    %47 = vector.broadcast %46 : vector<1x128xf32> to vector<64x128xf32>
    %48 = arith.mulf %45, %47 : vector<64x128xf32>
    %49 = arith.addf %41, %48 : vector<64x128xf32>
    %c0_21 = arith.constant 0 : index
    %c1_22 = arith.constant 1 : index
    %c0_23 = arith.constant 0 : index
    %c0_24 = arith.constant 0 : index
    %50 = vector.load %arg1[%c0_21, %c1_22, %c0_23, %c0_24] : memref<1x9x9x512xbf16, #tpu.memory_space<vmem>>, vector<1x8x8x128xbf16>
    %51 = vector.shape_cast %50 : vector<1x8x8x128xbf16> to vector<8x8x128xbf16>
    %52 = vector.shape_cast %51 : vector<8x8x128xbf16> to vector<64x128xbf16>
    %53 = arith.extf %52 : vector<64x128xbf16> to vector<64x128xf32>
    %54 = vector.extract_strided_slice %0 {offsets = [6, 0], sizes = [1, 128], strides = [1, 1]} : vector<9x128xf32> to vector<1x128xf32>
    %55 = vector.broadcast %54 : vector<1x128xf32> to vector<64x128xf32>
    %56 = arith.mulf %53, %55 : vector<64x128xf32>
    %57 = arith.addf %49, %56 : vector<64x128xf32>
    %c0_25 = arith.constant 0 : index
    %c1_26 = arith.constant 1 : index
    %c0_27 = arith.constant 0 : index
    %c128_28 = arith.constant 128 : index
    %58 = vector.load %arg1[%c0_25, %c1_26, %c0_27, %c128_28] : memref<1x9x9x512xbf16, #tpu.memory_space<vmem>>, vector<1x8x8x128xbf16>
    %59 = vector.shape_cast %58 : vector<1x8x8x128xbf16> to vector<8x8x128xbf16>
    %60 = vector.shape_cast %59 : vector<8x8x128xbf16> to vector<64x128xbf16>
    %61 = arith.extf %60 : vector<64x128xbf16> to vector<64x128xf32>
    %62 = vector.extract_strided_slice %0 {offsets = [7, 0], sizes = [1, 128], strides = [1, 1]} : vector<9x128xf32> to vector<1x128xf32>
    %63 = vector.broadcast %62 : vector<1x128xf32> to vector<64x128xf32>
    %64 = arith.mulf %61, %63 : vector<64x128xf32>
    %65 = arith.addf %57, %64 : vector<64x128xf32>
    %c0_29 = arith.constant 0 : index
    %c1_30 = arith.constant 1 : index
    %c1_31 = arith.constant 1 : index
    %c0_32 = arith.constant 0 : index
    %66 = vector.load %arg1[%c0_29, %c1_30, %c1_31, %c0_32] : memref<1x9x9x512xbf16, #tpu.memory_space<vmem>>, vector<1x8x8x128xbf16>
    %67 = vector.shape_cast %66 : vector<1x8x8x128xbf16> to vector<8x8x128xbf16>
    %68 = vector.shape_cast %67 : vector<8x8x128xbf16> to vector<64x128xbf16>
    %69 = arith.extf %68 : vector<64x128xbf16> to vector<64x128xf32>
    %70 = vector.extract_strided_slice %0 {offsets = [8, 0], sizes = [1, 128], strides = [1, 1]} : vector<9x128xf32> to vector<1x128xf32>
    %71 = vector.broadcast %70 : vector<1x128xf32> to vector<64x128xf32>
    %72 = arith.mulf %69, %71 : vector<64x128xf32>
    %73 = arith.addf %65, %72 : vector<64x128xf32>
    %c0_33 = arith.constant 0 : index
    %c0_34 = arith.constant 0 : index
    %74 = vector.load %arg3[%c0_33, %c0_34] : memref<1x128xf32, #tpu.memory_space<vmem>>, vector<1x128xf32>
    %75 = vector.broadcast %74 : vector<1x128xf32> to vector<64x128xf32>
    %76 = arith.mulf %73, %75 : vector<64x128xf32>
    %c0_35 = arith.constant 0 : index
    %c0_36 = arith.constant 0 : index
    %77 = vector.load %arg4[%c0_35, %c0_36] : memref<1x128xf32, #tpu.memory_space<vmem>>, vector<1x128xf32>
    %78 = vector.broadcast %77 : vector<1x128xf32> to vector<64x128xf32>
    %79 = arith.addf %76, %78 : vector<64x128xf32>
    %80 = arith.negf %79 : vector<64x128xf32>
    %81 = math.exp %80 : vector<64x128xf32>
    %cst_37 = arith.constant 1.000000e+00 : f32
    %82 = vector.broadcast %cst_37 : f32 to vector<64x128xf32>
    %83 = arith.addf %82, %81 : vector<64x128xf32>
    %84 = arith.divf %82, %83 : vector<64x128xf32>
    %85 = arith.mulf %79, %84 : vector<64x128xf32>
    %86 = arith.truncf %85 : vector<64x128xf32> to vector<64x128xbf16>
    %c0_38 = arith.constant 0 : index
    %c0_39 = arith.constant 0 : index
    %87 = vector.load %arg5[%c0_38, %c0_39] : memref<128x128xbf16, #tpu.memory_space<vmem>>, vector<128x128xbf16>
    %cst_40 = arith.constant dense<0.000000e+00> : vector<64x128xf32>
    %88 = tpu.matmul %86, %87, %cst_40 {dimension_numbers = #tpu.dot_dimension_numbers<[1], [0], [0], [1], [0, 0, 1, 1], [], []>} : vector<64x128xbf16>, vector<128x128xbf16>, vector<64x128xf32> -> vector<64x128xf32>
    %c0_41 = arith.constant 0 : index
    %c0_42 = arith.constant 0 : index
    %89 = vector.load %arg6[%c0_41, %c0_42] : memref<1x128xf32, #tpu.memory_space<vmem>>, vector<1x128xf32>
    %90 = vector.broadcast %89 : vector<1x128xf32> to vector<64x128xf32>
    %91 = arith.mulf %88, %90 : vector<64x128xf32>
    %c0_43 = arith.constant 0 : index
    %c0_44 = arith.constant 0 : index
    %92 = vector.load %arg7[%c0_43, %c0_44] : memref<1x128xf32, #tpu.memory_space<vmem>>, vector<1x128xf32>
    %93 = vector.broadcast %92 : vector<1x128xf32> to vector<64x128xf32>
    %94 = arith.addf %91, %93 : vector<64x128xf32>
    %95 = arith.negf %94 : vector<64x128xf32>
    %96 = math.exp %95 : vector<64x128xf32>
    %cst_45 = arith.constant 1.000000e+00 : f32
    %97 = vector.broadcast %cst_45 : f32 to vector<64x128xf32>
    %98 = arith.addf %97, %96 : vector<64x128xf32>
    %99 = arith.divf %97, %98 : vector<64x128xf32>
    %100 = arith.mulf %94, %99 : vector<64x128xf32>
    %101 = arith.truncf %100 : vector<64x128xf32> to vector<64x128xbf16>
    %c0_46 = arith.constant 0 : index
    %c0_47 = arith.constant 0 : index
    %c0_48 = arith.constant 0 : index
    %102 = vector.load %arg8[%c0_46, %c0_47, %c0_48] : memref<1x64x128xbf16, #tpu.memory_space<vmem>>, vector<1x64x128xbf16>
    %103 = vector.shape_cast %102 : vector<1x64x128xbf16> to vector<64x128xbf16>
    %104 = vector.shape_cast %101 : vector<64x128xbf16> to vector<1x64x128xbf16>
    tpu.vector_store %arg8[%c0_46, %c0_47, %c0_48], %104 {strides = array<i32>} : memref<1x64x128xbf16, #tpu.memory_space<vmem>>, vector<1x64x128xbf16>,
    return
  }
  func.func @transform_0(%arg0: i32) -> (i32, i32, i32, i32) {
    %c0_i32 = arith.constant 0 : i32
    %c0_i32_0 = arith.constant 0 : i32
    %c0_i32_1 = arith.constant 0 : i32
    %c0_i32_2 = arith.constant 0 : i32
    return %arg0, %c0_i32, %c0_i32_0, %c0_i32_1 : i32, i32, i32, i32
  }
  func.func @transform_1(%arg0: i32) -> (i32, i32) {
    %c0_i32 = arith.constant 0 : i32
    %c0_i32_0 = arith.constant 0 : i32
    %c0_i32_1 = arith.constant 0 : i32
    return %c0_i32, %c0_i32_0 : i32, i32
  }
  func.func @transform_2(%arg0: i32) -> (i32, i32) {
    %c0_i32 = arith.constant 0 : i32
    %c0_i32_0 = arith.constant 0 : i32
    %c0_i32_1 = arith.constant 0 : i32
    return %c0_i32, %c0_i32_0 : i32, i32
  }
  func.func @transform_3(%arg0: i32) -> (i32, i32) {
    %c0_i32 = arith.constant 0 : i32
    %c0_i32_0 = arith.constant 0 : i32
    %c0_i32_1 = arith.constant 0 : i32
    return %c0_i32, %c0_i32_0 : i32, i32
  }
  func.func @transform_4(%arg0: i32) -> (i32, i32) {
    %c0_i32 = arith.constant 0 : i32
    %c0_i32_0 = arith.constant 0 : i32
    %c0_i32_1 = arith.constant 0 : i32
    return %c0_i32, %c0_i32_0 : i32, i32
  }
  func.func @transform_5(%arg0: i32) -> (i32, i32) {
    %c0_i32 = arith.constant 0 : i32
    %c0_i32_0 = arith.constant 0 : i32
    %c0_i32_1 = arith.constant 0 : i32
    return %c0_i32, %c0_i32_0 : i32, i32
  }
  func.func @transform_6(%arg0: i32) -> (i32, i32) {
    %c0_i32 = arith.constant 0 : i32
    %c0_i32_0 = arith.constant 0 : i32
    %c0_i32_1 = arith.constant 0 : i32
    return %c0_i32, %c0_i32_0 : i32, i32
  }
  func.func @transform_7(%arg0: i32) -> (i32, i32, i32) {
    %c0_i32 = arith.constant 0 : i32
    %c0_i32_0 = arith.constant 0 : i32
    %c0_i32_1 = arith.constant 0 : i32
    return %arg0, %c0_i32, %c0_i32_0 : i32, i32, i32
  }
}

module attributes {stable_mosaic.version = 11 : i64} {
  func.func @_stage_kernel(%arg0: i32, %arg1: memref<1x5x5x512xbf16, #tpu.memory_space<vmem>>, %arg2: memref<9x128xf32, #tpu.memory_space<vmem>>, %arg3: memref<1x128xf32, #tpu.memory_space<vmem>>, %arg4: memref<1x128xf32, #tpu.memory_space<vmem>>, %arg5: memref<128x128xbf16, #tpu.memory_space<vmem>>, %arg6: memref<1x128xf32, #tpu.memory_space<vmem>>, %arg7: memref<1x128xf32, #tpu.memory_space<vmem>>, %arg8: memref<1x16x128xbf16, #tpu.memory_space<vmem>>) attributes {dimension_semantics = [#tpu.dimension_semantics<parallel>], iteration_bounds = array<i64: 2>, scalar_prefetch = 0 : i64, scratch_operands = 0 : i64, tpu.core_type = #tpu.core_type<tc>, window_params = [{transform_indices = @transform_0, window_bounds = array<i64: 1, 5, 5, 512>}, {pipeline_mode = #tpu.pipeline_mode<synchronous>, transform_indices = @transform_1, window_bounds = array<i64: 9, 128>}, {pipeline_mode = #tpu.pipeline_mode<synchronous>, transform_indices = @transform_2, window_bounds = array<i64: 1, 128>}, {pipeline_mode = #tpu.pipeline_mode<synchronous>, transform_indices = @transform_3, window_bounds = array<i64: 1, 128>}, {pipeline_mode = #tpu.pipeline_mode<synchronous>, transform_indices = @transform_4, window_bounds = array<i64: 128, 128>}, {pipeline_mode = #tpu.pipeline_mode<synchronous>, transform_indices = @transform_5, window_bounds = array<i64: 1, 128>}, {pipeline_mode = #tpu.pipeline_mode<synchronous>, transform_indices = @transform_6, window_bounds = array<i64: 1, 128>}, {transform_indices = @transform_7, window_bounds = array<i64: 1, 16, 128>}]} {
    %c0 = arith.constant 0 : index
    %c0_0 = arith.constant 0 : index
    %0 = vector.load %arg2[%c0, %c0_0] : memref<9x128xf32, #tpu.memory_space<vmem>>, vector<9x128xf32>
    %cst = arith.constant 0.000000e+00 : f32
    %1 = vector.broadcast %cst : f32 to vector<16x128xf32>
    %c0_1 = arith.constant 0 : index
    %c0_2 = arith.constant 0 : index
    %c0_3 = arith.constant 0 : index
    %c0_4 = arith.constant 0 : index
    %2 = vector.load %arg1[%c0_1, %c0_2, %c0_3, %c0_4] : memref<1x5x5x512xbf16, #tpu.memory_space<vmem>>, vector<1x4x4x128xbf16>
    %3 = vector.shape_cast %2 : vector<1x4x4x128xbf16> to vector<4x4x128xbf16>
    %4 = vector.shape_cast %3 : vector<4x4x128xbf16> to vector<16x128xbf16>
    %5 = arith.extf %4 : vector<16x128xbf16> to vector<16x128xf32>
    %6 = vector.extract_strided_slice %0 {offsets = [0, 0], sizes = [1, 128], strides = [1, 1]} : vector<9x128xf32> to vector<1x128xf32>
    %7 = vector.broadcast %6 : vector<1x128xf32> to vector<16x128xf32>
    %8 = arith.mulf %5, %7 : vector<16x128xf32>
    %9 = arith.addf %1, %8 : vector<16x128xf32>
    %c0_5 = arith.constant 0 : index
    %c0_6 = arith.constant 0 : index
    %c0_7 = arith.constant 0 : index
    %c128 = arith.constant 128 : index
    %10 = vector.load %arg1[%c0_5, %c0_6, %c0_7, %c128] : memref<1x5x5x512xbf16, #tpu.memory_space<vmem>>, vector<1x4x4x128xbf16>
    %11 = vector.shape_cast %10 : vector<1x4x4x128xbf16> to vector<4x4x128xbf16>
    %12 = vector.shape_cast %11 : vector<4x4x128xbf16> to vector<16x128xbf16>
    %13 = arith.extf %12 : vector<16x128xbf16> to vector<16x128xf32>
    %14 = vector.extract_strided_slice %0 {offsets = [1, 0], sizes = [1, 128], strides = [1, 1]} : vector<9x128xf32> to vector<1x128xf32>
    %15 = vector.broadcast %14 : vector<1x128xf32> to vector<16x128xf32>
    %16 = arith.mulf %13, %15 : vector<16x128xf32>
    %17 = arith.addf %9, %16 : vector<16x128xf32>
    %c0_8 = arith.constant 0 : index
    %c0_9 = arith.constant 0 : index
    %c1 = arith.constant 1 : index
    %c0_10 = arith.constant 0 : index
    %18 = vector.load %arg1[%c0_8, %c0_9, %c1, %c0_10] : memref<1x5x5x512xbf16, #tpu.memory_space<vmem>>, vector<1x4x4x128xbf16>
    %19 = vector.shape_cast %18 : vector<1x4x4x128xbf16> to vector<4x4x128xbf16>
    %20 = vector.shape_cast %19 : vector<4x4x128xbf16> to vector<16x128xbf16>
    %21 = arith.extf %20 : vector<16x128xbf16> to vector<16x128xf32>
    %22 = vector.extract_strided_slice %0 {offsets = [2, 0], sizes = [1, 128], strides = [1, 1]} : vector<9x128xf32> to vector<1x128xf32>
    %23 = vector.broadcast %22 : vector<1x128xf32> to vector<16x128xf32>
    %24 = arith.mulf %21, %23 : vector<16x128xf32>
    %25 = arith.addf %17, %24 : vector<16x128xf32>
    %c0_11 = arith.constant 0 : index
    %c0_12 = arith.constant 0 : index
    %c0_13 = arith.constant 0 : index
    %c256 = arith.constant 256 : index
    %26 = vector.load %arg1[%c0_11, %c0_12, %c0_13, %c256] : memref<1x5x5x512xbf16, #tpu.memory_space<vmem>>, vector<1x4x4x128xbf16>
    %27 = vector.shape_cast %26 : vector<1x4x4x128xbf16> to vector<4x4x128xbf16>
    %28 = vector.shape_cast %27 : vector<4x4x128xbf16> to vector<16x128xbf16>
    %29 = arith.extf %28 : vector<16x128xbf16> to vector<16x128xf32>
    %30 = vector.extract_strided_slice %0 {offsets = [3, 0], sizes = [1, 128], strides = [1, 1]} : vector<9x128xf32> to vector<1x128xf32>
    %31 = vector.broadcast %30 : vector<1x128xf32> to vector<16x128xf32>
    %32 = arith.mulf %29, %31 : vector<16x128xf32>
    %33 = arith.addf %25, %32 : vector<16x128xf32>
    %c0_14 = arith.constant 0 : index
    %c0_15 = arith.constant 0 : index
    %c0_16 = arith.constant 0 : index
    %c384 = arith.constant 384 : index
    %34 = vector.load %arg1[%c0_14, %c0_15, %c0_16, %c384] : memref<1x5x5x512xbf16, #tpu.memory_space<vmem>>, vector<1x4x4x128xbf16>
    %35 = vector.shape_cast %34 : vector<1x4x4x128xbf16> to vector<4x4x128xbf16>
    %36 = vector.shape_cast %35 : vector<4x4x128xbf16> to vector<16x128xbf16>
    %37 = arith.extf %36 : vector<16x128xbf16> to vector<16x128xf32>
    %38 = vector.extract_strided_slice %0 {offsets = [4, 0], sizes = [1, 128], strides = [1, 1]} : vector<9x128xf32> to vector<1x128xf32>
    %39 = vector.broadcast %38 : vector<1x128xf32> to vector<16x128xf32>
    %40 = arith.mulf %37, %39 : vector<16x128xf32>
    %41 = arith.addf %33, %40 : vector<16x128xf32>
    %c0_17 = arith.constant 0 : index
    %c0_18 = arith.constant 0 : index
    %c1_19 = arith.constant 1 : index
    %c256_20 = arith.constant 256 : index
    %42 = vector.load %arg1[%c0_17, %c0_18, %c1_19, %c256_20] : memref<1x5x5x512xbf16, #tpu.memory_space<vmem>>, vector<1x4x4x128xbf16>
    %43 = vector.shape_cast %42 : vector<1x4x4x128xbf16> to vector<4x4x128xbf16>
    %44 = vector.shape_cast %43 : vector<4x4x128xbf16> to vector<16x128xbf16>
    %45 = arith.extf %44 : vector<16x128xbf16> to vector<16x128xf32>
    %46 = vector.extract_strided_slice %0 {offsets = [5, 0], sizes = [1, 128], strides = [1, 1]} : vector<9x128xf32> to vector<1x128xf32>
    %47 = vector.broadcast %46 : vector<1x128xf32> to vector<16x128xf32>
    %48 = arith.mulf %45, %47 : vector<16x128xf32>
    %49 = arith.addf %41, %48 : vector<16x128xf32>
    %c0_21 = arith.constant 0 : index
    %c1_22 = arith.constant 1 : index
    %c0_23 = arith.constant 0 : index
    %c0_24 = arith.constant 0 : index
    %50 = vector.load %arg1[%c0_21, %c1_22, %c0_23, %c0_24] : memref<1x5x5x512xbf16, #tpu.memory_space<vmem>>, vector<1x4x4x128xbf16>
    %51 = vector.shape_cast %50 : vector<1x4x4x128xbf16> to vector<4x4x128xbf16>
    %52 = vector.shape_cast %51 : vector<4x4x128xbf16> to vector<16x128xbf16>
    %53 = arith.extf %52 : vector<16x128xbf16> to vector<16x128xf32>
    %54 = vector.extract_strided_slice %0 {offsets = [6, 0], sizes = [1, 128], strides = [1, 1]} : vector<9x128xf32> to vector<1x128xf32>
    %55 = vector.broadcast %54 : vector<1x128xf32> to vector<16x128xf32>
    %56 = arith.mulf %53, %55 : vector<16x128xf32>
    %57 = arith.addf %49, %56 : vector<16x128xf32>
    %c0_25 = arith.constant 0 : index
    %c1_26 = arith.constant 1 : index
    %c0_27 = arith.constant 0 : index
    %c128_28 = arith.constant 128 : index
    %58 = vector.load %arg1[%c0_25, %c1_26, %c0_27, %c128_28] : memref<1x5x5x512xbf16, #tpu.memory_space<vmem>>, vector<1x4x4x128xbf16>
    %59 = vector.shape_cast %58 : vector<1x4x4x128xbf16> to vector<4x4x128xbf16>
    %60 = vector.shape_cast %59 : vector<4x4x128xbf16> to vector<16x128xbf16>
    %61 = arith.extf %60 : vector<16x128xbf16> to vector<16x128xf32>
    %62 = vector.extract_strided_slice %0 {offsets = [7, 0], sizes = [1, 128], strides = [1, 1]} : vector<9x128xf32> to vector<1x128xf32>
    %63 = vector.broadcast %62 : vector<1x128xf32> to vector<16x128xf32>
    %64 = arith.mulf %61, %63 : vector<16x128xf32>
    %65 = arith.addf %57, %64 : vector<16x128xf32>
    %c0_29 = arith.constant 0 : index
    %c1_30 = arith.constant 1 : index
    %c1_31 = arith.constant 1 : index
    %c0_32 = arith.constant 0 : index
    %66 = vector.load %arg1[%c0_29, %c1_30, %c1_31, %c0_32] : memref<1x5x5x512xbf16, #tpu.memory_space<vmem>>, vector<1x4x4x128xbf16>
    %67 = vector.shape_cast %66 : vector<1x4x4x128xbf16> to vector<4x4x128xbf16>
    %68 = vector.shape_cast %67 : vector<4x4x128xbf16> to vector<16x128xbf16>
    %69 = arith.extf %68 : vector<16x128xbf16> to vector<16x128xf32>
    %70 = vector.extract_strided_slice %0 {offsets = [8, 0], sizes = [1, 128], strides = [1, 1]} : vector<9x128xf32> to vector<1x128xf32>
    %71 = vector.broadcast %70 : vector<1x128xf32> to vector<16x128xf32>
    %72 = arith.mulf %69, %71 : vector<16x128xf32>
    %73 = arith.addf %65, %72 : vector<16x128xf32>
    %c0_33 = arith.constant 0 : index
    %c0_34 = arith.constant 0 : index
    %74 = vector.load %arg3[%c0_33, %c0_34] : memref<1x128xf32, #tpu.memory_space<vmem>>, vector<1x128xf32>
    %75 = vector.broadcast %74 : vector<1x128xf32> to vector<16x128xf32>
    %76 = arith.mulf %73, %75 : vector<16x128xf32>
    %c0_35 = arith.constant 0 : index
    %c0_36 = arith.constant 0 : index
    %77 = vector.load %arg4[%c0_35, %c0_36] : memref<1x128xf32, #tpu.memory_space<vmem>>, vector<1x128xf32>
    %78 = vector.broadcast %77 : vector<1x128xf32> to vector<16x128xf32>
    %79 = arith.addf %76, %78 : vector<16x128xf32>
    %80 = arith.negf %79 : vector<16x128xf32>
    %81 = math.exp %80 : vector<16x128xf32>
    %cst_37 = arith.constant 1.000000e+00 : f32
    %82 = vector.broadcast %cst_37 : f32 to vector<16x128xf32>
    %83 = arith.addf %82, %81 : vector<16x128xf32>
    %84 = arith.divf %82, %83 : vector<16x128xf32>
    %85 = arith.mulf %79, %84 : vector<16x128xf32>
    %86 = arith.truncf %85 : vector<16x128xf32> to vector<16x128xbf16>
    %c0_38 = arith.constant 0 : index
    %c0_39 = arith.constant 0 : index
    %87 = vector.load %arg5[%c0_38, %c0_39] : memref<128x128xbf16, #tpu.memory_space<vmem>>, vector<128x128xbf16>
    %cst_40 = arith.constant dense<0.000000e+00> : vector<16x128xf32>
    %88 = tpu.matmul %86, %87, %cst_40 {dimension_numbers = #tpu.dot_dimension_numbers<[1], [0], [0], [1], [0, 0, 1, 1], [], []>} : vector<16x128xbf16>, vector<128x128xbf16>, vector<16x128xf32> -> vector<16x128xf32>
    %c0_41 = arith.constant 0 : index
    %c0_42 = arith.constant 0 : index
    %89 = vector.load %arg6[%c0_41, %c0_42] : memref<1x128xf32, #tpu.memory_space<vmem>>, vector<1x128xf32>
    %90 = vector.broadcast %89 : vector<1x128xf32> to vector<16x128xf32>
    %91 = arith.mulf %88, %90 : vector<16x128xf32>
    %c0_43 = arith.constant 0 : index
    %c0_44 = arith.constant 0 : index
    %92 = vector.load %arg7[%c0_43, %c0_44] : memref<1x128xf32, #tpu.memory_space<vmem>>, vector<1x128xf32>
    %93 = vector.broadcast %92 : vector<1x128xf32> to vector<16x128xf32>
    %94 = arith.addf %91, %93 : vector<16x128xf32>
    %95 = arith.negf %94 : vector<16x128xf32>
    %96 = math.exp %95 : vector<16x128xf32>
    %cst_45 = arith.constant 1.000000e+00 : f32
    %97 = vector.broadcast %cst_45 : f32 to vector<16x128xf32>
    %98 = arith.addf %97, %96 : vector<16x128xf32>
    %99 = arith.divf %97, %98 : vector<16x128xf32>
    %100 = arith.mulf %94, %99 : vector<16x128xf32>
    %101 = arith.truncf %100 : vector<16x128xf32> to vector<16x128xbf16>
    %c0_46 = arith.constant 0 : index
    %c0_47 = arith.constant 0 : index
    %c0_48 = arith.constant 0 : index
    %102 = vector.load %arg8[%c0_46, %c0_47, %c0_48] : memref<1x16x128xbf16, #tpu.memory_space<vmem>>, vector<1x16x128xbf16>
    %103 = vector.shape_cast %102 : vector<1x16x128xbf16> to vector<16x128xbf16>
    %104 = vector.shape_cast %101 : vector<16x128xbf16> to vector<1x16x128xbf16>
    tpu.vector_store %arg8[%c0_46, %c0_47, %c0_48], %104 {strides = array<i32>} : memref<1x16x128xbf16, #tpu.memory_space<vmem>>, vector<1x16x128xbf16>,
    return
  }
  func.func @transform_0(%arg0: i32) -> (i32, i32, i32, i32) {
    %c0_i32 = arith.constant 0 : i32
    %c0_i32_0 = arith.constant 0 : i32
    %c0_i32_1 = arith.constant 0 : i32
    %c0_i32_2 = arith.constant 0 : i32
    return %arg0, %c0_i32, %c0_i32_0, %c0_i32_1 : i32, i32, i32, i32
  }
  func.func @transform_1(%arg0: i32) -> (i32, i32) {
    %c0_i32 = arith.constant 0 : i32
    %c0_i32_0 = arith.constant 0 : i32
    %c0_i32_1 = arith.constant 0 : i32
    return %c0_i32, %c0_i32_0 : i32, i32
  }
  func.func @transform_2(%arg0: i32) -> (i32, i32) {
    %c0_i32 = arith.constant 0 : i32
    %c0_i32_0 = arith.constant 0 : i32
    %c0_i32_1 = arith.constant 0 : i32
    return %c0_i32, %c0_i32_0 : i32, i32
  }
  func.func @transform_3(%arg0: i32) -> (i32, i32) {
    %c0_i32 = arith.constant 0 : i32
    %c0_i32_0 = arith.constant 0 : i32
    %c0_i32_1 = arith.constant 0 : i32
    return %c0_i32, %c0_i32_0 : i32, i32
  }
  func.func @transform_4(%arg0: i32) -> (i32, i32) {
    %c0_i32 = arith.constant 0 : i32
    %c0_i32_0 = arith.constant 0 : i32
    %c0_i32_1 = arith.constant 0 : i32
    return %c0_i32, %c0_i32_0 : i32, i32
  }
  func.func @transform_5(%arg0: i32) -> (i32, i32) {
    %c0_i32 = arith.constant 0 : i32
    %c0_i32_0 = arith.constant 0 : i32
    %c0_i32_1 = arith.constant 0 : i32
    return %c0_i32, %c0_i32_0 : i32, i32
  }
  func.func @transform_6(%arg0: i32) -> (i32, i32) {
    %c0_i32 = arith.constant 0 : i32
    %c0_i32_0 = arith.constant 0 : i32
    %c0_i32_1 = arith.constant 0 : i32
    return %c0_i32, %c0_i32_0 : i32, i32
  }
  func.func @transform_7(%arg0: i32) -> (i32, i32, i32) {
    %c0_i32 = arith.constant 0 : i32
    %c0_i32_0 = arith.constant 0 : i32
    %c0_i32_1 = arith.constant 0 : i32
    return %arg0, %c0_i32, %c0_i32_0 : i32, i32, i32
  }
}

module attributes {stable_mosaic.version = 11 : i64} {
  func.func @_stage_kernel(%arg0: i32, %arg1: memref<1x3x3x512xbf16, #tpu.memory_space<vmem>>, %arg2: memref<9x128xf32, #tpu.memory_space<vmem>>, %arg3: memref<1x128xf32, #tpu.memory_space<vmem>>, %arg4: memref<1x128xf32, #tpu.memory_space<vmem>>, %arg5: memref<128x128xbf16, #tpu.memory_space<vmem>>, %arg6: memref<1x128xf32, #tpu.memory_space<vmem>>, %arg7: memref<1x128xf32, #tpu.memory_space<vmem>>, %arg8: memref<1x4x128xbf16, #tpu.memory_space<vmem>>) attributes {dimension_semantics = [#tpu.dimension_semantics<parallel>], iteration_bounds = array<i64: 2>, scalar_prefetch = 0 : i64, scratch_operands = 0 : i64, tpu.core_type = #tpu.core_type<tc>, window_params = [{transform_indices = @transform_0, window_bounds = array<i64: 1, 3, 3, 512>}, {pipeline_mode = #tpu.pipeline_mode<synchronous>, transform_indices = @transform_1, window_bounds = array<i64: 9, 128>}, {pipeline_mode = #tpu.pipeline_mode<synchronous>, transform_indices = @transform_2, window_bounds = array<i64: 1, 128>}, {pipeline_mode = #tpu.pipeline_mode<synchronous>, transform_indices = @transform_3, window_bounds = array<i64: 1, 128>}, {pipeline_mode = #tpu.pipeline_mode<synchronous>, transform_indices = @transform_4, window_bounds = array<i64: 128, 128>}, {pipeline_mode = #tpu.pipeline_mode<synchronous>, transform_indices = @transform_5, window_bounds = array<i64: 1, 128>}, {pipeline_mode = #tpu.pipeline_mode<synchronous>, transform_indices = @transform_6, window_bounds = array<i64: 1, 128>}, {transform_indices = @transform_7, window_bounds = array<i64: 1, 4, 128>}]} {
    %c0 = arith.constant 0 : index
    %c0_0 = arith.constant 0 : index
    %0 = vector.load %arg2[%c0, %c0_0] : memref<9x128xf32, #tpu.memory_space<vmem>>, vector<9x128xf32>
    %cst = arith.constant 0.000000e+00 : f32
    %1 = vector.broadcast %cst : f32 to vector<4x128xf32>
    %c0_1 = arith.constant 0 : index
    %c0_2 = arith.constant 0 : index
    %c0_3 = arith.constant 0 : index
    %c0_4 = arith.constant 0 : index
    %2 = vector.load %arg1[%c0_1, %c0_2, %c0_3, %c0_4] : memref<1x3x3x512xbf16, #tpu.memory_space<vmem>>, vector<1x2x2x128xbf16>
    %3 = vector.shape_cast %2 : vector<1x2x2x128xbf16> to vector<2x2x128xbf16>
    %4 = vector.shape_cast %3 : vector<2x2x128xbf16> to vector<4x128xbf16>
    %5 = arith.extf %4 : vector<4x128xbf16> to vector<4x128xf32>
    %6 = vector.extract_strided_slice %0 {offsets = [0, 0], sizes = [1, 128], strides = [1, 1]} : vector<9x128xf32> to vector<1x128xf32>
    %7 = vector.broadcast %6 : vector<1x128xf32> to vector<4x128xf32>
    %8 = arith.mulf %5, %7 : vector<4x128xf32>
    %9 = arith.addf %1, %8 : vector<4x128xf32>
    %c0_5 = arith.constant 0 : index
    %c0_6 = arith.constant 0 : index
    %c0_7 = arith.constant 0 : index
    %c128 = arith.constant 128 : index
    %10 = vector.load %arg1[%c0_5, %c0_6, %c0_7, %c128] : memref<1x3x3x512xbf16, #tpu.memory_space<vmem>>, vector<1x2x2x128xbf16>
    %11 = vector.shape_cast %10 : vector<1x2x2x128xbf16> to vector<2x2x128xbf16>
    %12 = vector.shape_cast %11 : vector<2x2x128xbf16> to vector<4x128xbf16>
    %13 = arith.extf %12 : vector<4x128xbf16> to vector<4x128xf32>
    %14 = vector.extract_strided_slice %0 {offsets = [1, 0], sizes = [1, 128], strides = [1, 1]} : vector<9x128xf32> to vector<1x128xf32>
    %15 = vector.broadcast %14 : vector<1x128xf32> to vector<4x128xf32>
    %16 = arith.mulf %13, %15 : vector<4x128xf32>
    %17 = arith.addf %9, %16 : vector<4x128xf32>
    %c0_8 = arith.constant 0 : index
    %c0_9 = arith.constant 0 : index
    %c1 = arith.constant 1 : index
    %c0_10 = arith.constant 0 : index
    %18 = vector.load %arg1[%c0_8, %c0_9, %c1, %c0_10] : memref<1x3x3x512xbf16, #tpu.memory_space<vmem>>, vector<1x2x2x128xbf16>
    %19 = vector.shape_cast %18 : vector<1x2x2x128xbf16> to vector<2x2x128xbf16>
    %20 = vector.shape_cast %19 : vector<2x2x128xbf16> to vector<4x128xbf16>
    %21 = arith.extf %20 : vector<4x128xbf16> to vector<4x128xf32>
    %22 = vector.extract_strided_slice %0 {offsets = [2, 0], sizes = [1, 128], strides = [1, 1]} : vector<9x128xf32> to vector<1x128xf32>
    %23 = vector.broadcast %22 : vector<1x128xf32> to vector<4x128xf32>
    %24 = arith.mulf %21, %23 : vector<4x128xf32>
    %25 = arith.addf %17, %24 : vector<4x128xf32>
    %c0_11 = arith.constant 0 : index
    %c0_12 = arith.constant 0 : index
    %c0_13 = arith.constant 0 : index
    %c256 = arith.constant 256 : index
    %26 = vector.load %arg1[%c0_11, %c0_12, %c0_13, %c256] : memref<1x3x3x512xbf16, #tpu.memory_space<vmem>>, vector<1x2x2x128xbf16>
    %27 = vector.shape_cast %26 : vector<1x2x2x128xbf16> to vector<2x2x128xbf16>
    %28 = vector.shape_cast %27 : vector<2x2x128xbf16> to vector<4x128xbf16>
    %29 = arith.extf %28 : vector<4x128xbf16> to vector<4x128xf32>
    %30 = vector.extract_strided_slice %0 {offsets = [3, 0], sizes = [1, 128], strides = [1, 1]} : vector<9x128xf32> to vector<1x128xf32>
    %31 = vector.broadcast %30 : vector<1x128xf32> to vector<4x128xf32>
    %32 = arith.mulf %29, %31 : vector<4x128xf32>
    %33 = arith.addf %25, %32 : vector<4x128xf32>
    %c0_14 = arith.constant 0 : index
    %c0_15 = arith.constant 0 : index
    %c0_16 = arith.constant 0 : index
    %c384 = arith.constant 384 : index
    %34 = vector.load %arg1[%c0_14, %c0_15, %c0_16, %c384] : memref<1x3x3x512xbf16, #tpu.memory_space<vmem>>, vector<1x2x2x128xbf16>
    %35 = vector.shape_cast %34 : vector<1x2x2x128xbf16> to vector<2x2x128xbf16>
    %36 = vector.shape_cast %35 : vector<2x2x128xbf16> to vector<4x128xbf16>
    %37 = arith.extf %36 : vector<4x128xbf16> to vector<4x128xf32>
    %38 = vector.extract_strided_slice %0 {offsets = [4, 0], sizes = [1, 128], strides = [1, 1]} : vector<9x128xf32> to vector<1x128xf32>
    %39 = vector.broadcast %38 : vector<1x128xf32> to vector<4x128xf32>
    %40 = arith.mulf %37, %39 : vector<4x128xf32>
    %41 = arith.addf %33, %40 : vector<4x128xf32>
    %c0_17 = arith.constant 0 : index
    %c0_18 = arith.constant 0 : index
    %c1_19 = arith.constant 1 : index
    %c256_20 = arith.constant 256 : index
    %42 = vector.load %arg1[%c0_17, %c0_18, %c1_19, %c256_20] : memref<1x3x3x512xbf16, #tpu.memory_space<vmem>>, vector<1x2x2x128xbf16>
    %43 = vector.shape_cast %42 : vector<1x2x2x128xbf16> to vector<2x2x128xbf16>
    %44 = vector.shape_cast %43 : vector<2x2x128xbf16> to vector<4x128xbf16>
    %45 = arith.extf %44 : vector<4x128xbf16> to vector<4x128xf32>
    %46 = vector.extract_strided_slice %0 {offsets = [5, 0], sizes = [1, 128], strides = [1, 1]} : vector<9x128xf32> to vector<1x128xf32>
    %47 = vector.broadcast %46 : vector<1x128xf32> to vector<4x128xf32>
    %48 = arith.mulf %45, %47 : vector<4x128xf32>
    %49 = arith.addf %41, %48 : vector<4x128xf32>
    %c0_21 = arith.constant 0 : index
    %c1_22 = arith.constant 1 : index
    %c0_23 = arith.constant 0 : index
    %c0_24 = arith.constant 0 : index
    %50 = vector.load %arg1[%c0_21, %c1_22, %c0_23, %c0_24] : memref<1x3x3x512xbf16, #tpu.memory_space<vmem>>, vector<1x2x2x128xbf16>
    %51 = vector.shape_cast %50 : vector<1x2x2x128xbf16> to vector<2x2x128xbf16>
    %52 = vector.shape_cast %51 : vector<2x2x128xbf16> to vector<4x128xbf16>
    %53 = arith.extf %52 : vector<4x128xbf16> to vector<4x128xf32>
    %54 = vector.extract_strided_slice %0 {offsets = [6, 0], sizes = [1, 128], strides = [1, 1]} : vector<9x128xf32> to vector<1x128xf32>
    %55 = vector.broadcast %54 : vector<1x128xf32> to vector<4x128xf32>
    %56 = arith.mulf %53, %55 : vector<4x128xf32>
    %57 = arith.addf %49, %56 : vector<4x128xf32>
    %c0_25 = arith.constant 0 : index
    %c1_26 = arith.constant 1 : index
    %c0_27 = arith.constant 0 : index
    %c128_28 = arith.constant 128 : index
    %58 = vector.load %arg1[%c0_25, %c1_26, %c0_27, %c128_28] : memref<1x3x3x512xbf16, #tpu.memory_space<vmem>>, vector<1x2x2x128xbf16>
    %59 = vector.shape_cast %58 : vector<1x2x2x128xbf16> to vector<2x2x128xbf16>
    %60 = vector.shape_cast %59 : vector<2x2x128xbf16> to vector<4x128xbf16>
    %61 = arith.extf %60 : vector<4x128xbf16> to vector<4x128xf32>
    %62 = vector.extract_strided_slice %0 {offsets = [7, 0], sizes = [1, 128], strides = [1, 1]} : vector<9x128xf32> to vector<1x128xf32>
    %63 = vector.broadcast %62 : vector<1x128xf32> to vector<4x128xf32>
    %64 = arith.mulf %61, %63 : vector<4x128xf32>
    %65 = arith.addf %57, %64 : vector<4x128xf32>
    %c0_29 = arith.constant 0 : index
    %c1_30 = arith.constant 1 : index
    %c1_31 = arith.constant 1 : index
    %c0_32 = arith.constant 0 : index
    %66 = vector.load %arg1[%c0_29, %c1_30, %c1_31, %c0_32] : memref<1x3x3x512xbf16, #tpu.memory_space<vmem>>, vector<1x2x2x128xbf16>
    %67 = vector.shape_cast %66 : vector<1x2x2x128xbf16> to vector<2x2x128xbf16>
    %68 = vector.shape_cast %67 : vector<2x2x128xbf16> to vector<4x128xbf16>
    %69 = arith.extf %68 : vector<4x128xbf16> to vector<4x128xf32>
    %70 = vector.extract_strided_slice %0 {offsets = [8, 0], sizes = [1, 128], strides = [1, 1]} : vector<9x128xf32> to vector<1x128xf32>
    %71 = vector.broadcast %70 : vector<1x128xf32> to vector<4x128xf32>
    %72 = arith.mulf %69, %71 : vector<4x128xf32>
    %73 = arith.addf %65, %72 : vector<4x128xf32>
    %c0_33 = arith.constant 0 : index
    %c0_34 = arith.constant 0 : index
    %74 = vector.load %arg3[%c0_33, %c0_34] : memref<1x128xf32, #tpu.memory_space<vmem>>, vector<1x128xf32>
    %75 = vector.broadcast %74 : vector<1x128xf32> to vector<4x128xf32>
    %76 = arith.mulf %73, %75 : vector<4x128xf32>
    %c0_35 = arith.constant 0 : index
    %c0_36 = arith.constant 0 : index
    %77 = vector.load %arg4[%c0_35, %c0_36] : memref<1x128xf32, #tpu.memory_space<vmem>>, vector<1x128xf32>
    %78 = vector.broadcast %77 : vector<1x128xf32> to vector<4x128xf32>
    %79 = arith.addf %76, %78 : vector<4x128xf32>
    %80 = arith.negf %79 : vector<4x128xf32>
    %81 = math.exp %80 : vector<4x128xf32>
    %cst_37 = arith.constant 1.000000e+00 : f32
    %82 = vector.broadcast %cst_37 : f32 to vector<4x128xf32>
    %83 = arith.addf %82, %81 : vector<4x128xf32>
    %84 = arith.divf %82, %83 : vector<4x128xf32>
    %85 = arith.mulf %79, %84 : vector<4x128xf32>
    %86 = arith.truncf %85 : vector<4x128xf32> to vector<4x128xbf16>
    %cst_38 = arith.constant 0.000000e+00 : bf16
    %87 = vector.broadcast %cst_38 : bf16 to vector<4x128xbf16>
    %88 = tpu.concatenate %86, %87 in 0 : vector<4x128xbf16>, vector<4x128xbf16> -> vector<8x128xbf16>
    %c0_39 = arith.constant 0 : index
    %c0_40 = arith.constant 0 : index
    %89 = vector.load %arg5[%c0_39, %c0_40] : memref<128x128xbf16, #tpu.memory_space<vmem>>, vector<128x128xbf16>
    %cst_41 = arith.constant dense<0.000000e+00> : vector<8x128xf32>
    %90 = tpu.matmul %88, %89, %cst_41 {dimension_numbers = #tpu.dot_dimension_numbers<[1], [0], [0], [1], [0, 0, 1, 1], [], []>} : vector<8x128xbf16>, vector<128x128xbf16>, vector<8x128xf32> -> vector<8x128xf32>
    %c0_42 = arith.constant 0 : index
    %c0_43 = arith.constant 0 : index
    %91 = vector.load %arg6[%c0_42, %c0_43] : memref<1x128xf32, #tpu.memory_space<vmem>>, vector<1x128xf32>
    %92 = vector.broadcast %91 : vector<1x128xf32> to vector<8x128xf32>
    %93 = arith.mulf %90, %92 : vector<8x128xf32>
    %c0_44 = arith.constant 0 : index
    %c0_45 = arith.constant 0 : index
    %94 = vector.load %arg7[%c0_44, %c0_45] : memref<1x128xf32, #tpu.memory_space<vmem>>, vector<1x128xf32>
    %95 = vector.broadcast %94 : vector<1x128xf32> to vector<8x128xf32>
    %96 = arith.addf %93, %95 : vector<8x128xf32>
    %97 = arith.negf %96 : vector<8x128xf32>
    %98 = math.exp %97 : vector<8x128xf32>
    %cst_46 = arith.constant 1.000000e+00 : f32
    %99 = vector.broadcast %cst_46 : f32 to vector<8x128xf32>
    %100 = arith.addf %99, %98 : vector<8x128xf32>
    %101 = arith.divf %99, %100 : vector<8x128xf32>
    %102 = arith.mulf %96, %101 : vector<8x128xf32>
    %103 = arith.truncf %102 : vector<8x128xf32> to vector<8x128xbf16>
    %104 = vector.extract_strided_slice %103 {offsets = [0, 0], sizes = [4, 128], strides = [1, 1]} : vector<8x128xbf16> to vector<4x128xbf16>
    %c0_47 = arith.constant 0 : index
    %c0_48 = arith.constant 0 : index
    %c0_49 = arith.constant 0 : index
    %105 = vector.load %arg8[%c0_47, %c0_48, %c0_49] : memref<1x4x128xbf16, #tpu.memory_space<vmem>>, vector<1x4x128xbf16>
    %106 = vector.shape_cast %105 : vector<1x4x128xbf16> to vector<4x128xbf16>
    %107 = vector.shape_cast %104 : vector<4x128xbf16> to vector<1x4x128xbf16>
    tpu.vector_store %arg8[%c0_47, %c0_48, %c0_49], %107 {strides = array<i32>} : memref<1x4x128xbf16, #tpu.memory_space<vmem>>, vector<1x4x128xbf16>,
    return
  }
  func.func @transform_0(%arg0: i32) -> (i32, i32, i32, i32) {
    %c0_i32 = arith.constant 0 : i32
    %c0_i32_0 = arith.constant 0 : i32
    %c0_i32_1 = arith.constant 0 : i32
    %c0_i32_2 = arith.constant 0 : i32
    return %arg0, %c0_i32, %c0_i32_0, %c0_i32_1 : i32, i32, i32, i32
  }
  func.func @transform_1(%arg0: i32) -> (i32, i32) {
    %c0_i32 = arith.constant 0 : i32
    %c0_i32_0 = arith.constant 0 : i32
    %c0_i32_1 = arith.constant 0 : i32
    return %c0_i32, %c0_i32_0 : i32, i32
  }
  func.func @transform_2(%arg0: i32) -> (i32, i32) {
    %c0_i32 = arith.constant 0 : i32
    %c0_i32_0 = arith.constant 0 : i32
    %c0_i32_1 = arith.constant 0 : i32
    return %c0_i32, %c0_i32_0 : i32, i32
  }
  func.func @transform_3(%arg0: i32) -> (i32, i32) {
    %c0_i32 = arith.constant 0 : i32
    %c0_i32_0 = arith.constant 0 : i32
    %c0_i32_1 = arith.constant 0 : i32
    return %c0_i32, %c0_i32_0 : i32, i32
  }
  func.func @transform_4(%arg0: i32) -> (i32, i32) {
    %c0_i32 = arith.constant 0 : i32
    %c0_i32_0 = arith.constant 0 : i32
    %c0_i32_1 = arith.constant 0 : i32
    return %c0_i32, %c0_i32_0 : i32, i32
  }
  func.func @transform_5(%arg0: i32) -> (i32, i32) {
    %c0_i32 = arith.constant 0 : i32
    %c0_i32_0 = arith.constant 0 : i32
    %c0_i32_1 = arith.constant 0 : i32
    return %c0_i32, %c0_i32_0 : i32, i32
  }
  func.func @transform_6(%arg0: i32) -> (i32, i32) {
    %c0_i32 = arith.constant 0 : i32
    %c0_i32_0 = arith.constant 0 : i32
    %c0_i32_1 = arith.constant 0 : i32
    return %c0_i32, %c0_i32_0 : i32, i32
  }
  func.func @transform_7(%arg0: i32) -> (i32, i32, i32) {
    %c0_i32 = arith.constant 0 : i32
    %c0_i32_0 = arith.constant 0 : i32
    %c0_i32_1 = arith.constant 0 : i32
    return %arg0, %c0_i32, %c0_i32_0 : i32, i32, i32
  }
}

module attributes {stable_mosaic.version = 11 : i64} {
  func.func @_stage_kernel(%arg0: i32, %arg1: memref<1x2x2x512xbf16, #tpu.memory_space<vmem>>, %arg2: memref<9x128xf32, #tpu.memory_space<vmem>>, %arg3: memref<1x128xf32, #tpu.memory_space<vmem>>, %arg4: memref<1x128xf32, #tpu.memory_space<vmem>>, %arg5: memref<128x384xbf16, #tpu.memory_space<vmem>>, %arg6: memref<1x384xf32, #tpu.memory_space<vmem>>, %arg7: memref<1x384xf32, #tpu.memory_space<vmem>>, %arg8: memref<1x1x384xbf16, #tpu.memory_space<vmem>>) attributes {dimension_semantics = [#tpu.dimension_semantics<parallel>], iteration_bounds = array<i64: 2>, scalar_prefetch = 0 : i64, scratch_operands = 0 : i64, tpu.core_type = #tpu.core_type<tc>, window_params = [{transform_indices = @transform_0, window_bounds = array<i64: 1, 2, 2, 512>}, {pipeline_mode = #tpu.pipeline_mode<synchronous>, transform_indices = @transform_1, window_bounds = array<i64: 9, 128>}, {pipeline_mode = #tpu.pipeline_mode<synchronous>, transform_indices = @transform_2, window_bounds = array<i64: 1, 128>}, {pipeline_mode = #tpu.pipeline_mode<synchronous>, transform_indices = @transform_3, window_bounds = array<i64: 1, 128>}, {pipeline_mode = #tpu.pipeline_mode<synchronous>, transform_indices = @transform_4, window_bounds = array<i64: 128, 384>}, {pipeline_mode = #tpu.pipeline_mode<synchronous>, transform_indices = @transform_5, window_bounds = array<i64: 1, 384>}, {pipeline_mode = #tpu.pipeline_mode<synchronous>, transform_indices = @transform_6, window_bounds = array<i64: 1, 384>}, {transform_indices = @transform_7, window_bounds = array<i64: 1, 1, 384>}]} {
    %c0 = arith.constant 0 : index
    %c0_0 = arith.constant 0 : index
    %0 = vector.load %arg2[%c0, %c0_0] : memref<9x128xf32, #tpu.memory_space<vmem>>, vector<9x128xf32>
    %cst = arith.constant 0.000000e+00 : f32
    %1 = vector.broadcast %cst : f32 to vector<1x128xf32>
    %c0_1 = arith.constant 0 : index
    %c0_2 = arith.constant 0 : index
    %c0_3 = arith.constant 0 : index
    %c0_4 = arith.constant 0 : index
    %2 = vector.load %arg1[%c0_1, %c0_2, %c0_3, %c0_4] : memref<1x2x2x512xbf16, #tpu.memory_space<vmem>>, vector<1x1x1x128xbf16>
    %3 = vector.shape_cast %2 : vector<1x1x1x128xbf16> to vector<1x1x128xbf16>
    %4 = vector.shape_cast %3 : vector<1x1x128xbf16> to vector<1x128xbf16>
    %5 = arith.extf %4 : vector<1x128xbf16> to vector<1x128xf32>
    %6 = vector.extract_strided_slice %0 {offsets = [0, 0], sizes = [1, 128], strides = [1, 1]} : vector<9x128xf32> to vector<1x128xf32>
    %7 = arith.mulf %5, %6 : vector<1x128xf32>
    %8 = arith.addf %1, %7 : vector<1x128xf32>
    %c0_5 = arith.constant 0 : index
    %c0_6 = arith.constant 0 : index
    %c0_7 = arith.constant 0 : index
    %c128 = arith.constant 128 : index
    %9 = vector.load %arg1[%c0_5, %c0_6, %c0_7, %c128] : memref<1x2x2x512xbf16, #tpu.memory_space<vmem>>, vector<1x1x1x128xbf16>
    %10 = vector.shape_cast %9 : vector<1x1x1x128xbf16> to vector<1x1x128xbf16>
    %11 = vector.shape_cast %10 : vector<1x1x128xbf16> to vector<1x128xbf16>
    %12 = arith.extf %11 : vector<1x128xbf16> to vector<1x128xf32>
    %13 = vector.extract_strided_slice %0 {offsets = [1, 0], sizes = [1, 128], strides = [1, 1]} : vector<9x128xf32> to vector<1x128xf32>
    %14 = arith.mulf %12, %13 : vector<1x128xf32>
    %15 = arith.addf %8, %14 : vector<1x128xf32>
    %c0_8 = arith.constant 0 : index
    %c0_9 = arith.constant 0 : index
    %c1 = arith.constant 1 : index
    %c0_10 = arith.constant 0 : index
    %16 = vector.load %arg1[%c0_8, %c0_9, %c1, %c0_10] : memref<1x2x2x512xbf16, #tpu.memory_space<vmem>>, vector<1x1x1x128xbf16>
    %17 = vector.shape_cast %16 : vector<1x1x1x128xbf16> to vector<1x1x128xbf16>
    %18 = vector.shape_cast %17 : vector<1x1x128xbf16> to vector<1x128xbf16>
    %19 = arith.extf %18 : vector<1x128xbf16> to vector<1x128xf32>
    %20 = vector.extract_strided_slice %0 {offsets = [2, 0], sizes = [1, 128], strides = [1, 1]} : vector<9x128xf32> to vector<1x128xf32>
    %21 = arith.mulf %19, %20 : vector<1x128xf32>
    %22 = arith.addf %15, %21 : vector<1x128xf32>
    %c0_11 = arith.constant 0 : index
    %c0_12 = arith.constant 0 : index
    %c0_13 = arith.constant 0 : index
    %c256 = arith.constant 256 : index
    %23 = vector.load %arg1[%c0_11, %c0_12, %c0_13, %c256] : memref<1x2x2x512xbf16, #tpu.memory_space<vmem>>, vector<1x1x1x128xbf16>
    %24 = vector.shape_cast %23 : vector<1x1x1x128xbf16> to vector<1x1x128xbf16>
    %25 = vector.shape_cast %24 : vector<1x1x128xbf16> to vector<1x128xbf16>
    %26 = arith.extf %25 : vector<1x128xbf16> to vector<1x128xf32>
    %27 = vector.extract_strided_slice %0 {offsets = [3, 0], sizes = [1, 128], strides = [1, 1]} : vector<9x128xf32> to vector<1x128xf32>
    %28 = arith.mulf %26, %27 : vector<1x128xf32>
    %29 = arith.addf %22, %28 : vector<1x128xf32>
    %c0_14 = arith.constant 0 : index
    %c0_15 = arith.constant 0 : index
    %c0_16 = arith.constant 0 : index
    %c384 = arith.constant 384 : index
    %30 = vector.load %arg1[%c0_14, %c0_15, %c0_16, %c384] : memref<1x2x2x512xbf16, #tpu.memory_space<vmem>>, vector<1x1x1x128xbf16>
    %31 = vector.shape_cast %30 : vector<1x1x1x128xbf16> to vector<1x1x128xbf16>
    %32 = vector.shape_cast %31 : vector<1x1x128xbf16> to vector<1x128xbf16>
    %33 = arith.extf %32 : vector<1x128xbf16> to vector<1x128xf32>
    %34 = vector.extract_strided_slice %0 {offsets = [4, 0], sizes = [1, 128], strides = [1, 1]} : vector<9x128xf32> to vector<1x128xf32>
    %35 = arith.mulf %33, %34 : vector<1x128xf32>
    %36 = arith.addf %29, %35 : vector<1x128xf32>
    %c0_17 = arith.constant 0 : index
    %c0_18 = arith.constant 0 : index
    %c1_19 = arith.constant 1 : index
    %c256_20 = arith.constant 256 : index
    %37 = vector.load %arg1[%c0_17, %c0_18, %c1_19, %c256_20] : memref<1x2x2x512xbf16, #tpu.memory_space<vmem>>, vector<1x1x1x128xbf16>
    %38 = vector.shape_cast %37 : vector<1x1x1x128xbf16> to vector<1x1x128xbf16>
    %39 = vector.shape_cast %38 : vector<1x1x128xbf16> to vector<1x128xbf16>
    %40 = arith.extf %39 : vector<1x128xbf16> to vector<1x128xf32>
    %41 = vector.extract_strided_slice %0 {offsets = [5, 0], sizes = [1, 128], strides = [1, 1]} : vector<9x128xf32> to vector<1x128xf32>
    %42 = arith.mulf %40, %41 : vector<1x128xf32>
    %43 = arith.addf %36, %42 : vector<1x128xf32>
    %c0_21 = arith.constant 0 : index
    %c1_22 = arith.constant 1 : index
    %c0_23 = arith.constant 0 : index
    %c0_24 = arith.constant 0 : index
    %44 = vector.load %arg1[%c0_21, %c1_22, %c0_23, %c0_24] : memref<1x2x2x512xbf16, #tpu.memory_space<vmem>>, vector<1x1x1x128xbf16>
    %45 = vector.shape_cast %44 : vector<1x1x1x128xbf16> to vector<1x1x128xbf16>
    %46 = vector.shape_cast %45 : vector<1x1x128xbf16> to vector<1x128xbf16>
    %47 = arith.extf %46 : vector<1x128xbf16> to vector<1x128xf32>
    %48 = vector.extract_strided_slice %0 {offsets = [6, 0], sizes = [1, 128], strides = [1, 1]} : vector<9x128xf32> to vector<1x128xf32>
    %49 = arith.mulf %47, %48 : vector<1x128xf32>
    %50 = arith.addf %43, %49 : vector<1x128xf32>
    %c0_25 = arith.constant 0 : index
    %c1_26 = arith.constant 1 : index
    %c0_27 = arith.constant 0 : index
    %c128_28 = arith.constant 128 : index
    %51 = vector.load %arg1[%c0_25, %c1_26, %c0_27, %c128_28] : memref<1x2x2x512xbf16, #tpu.memory_space<vmem>>, vector<1x1x1x128xbf16>
    %52 = vector.shape_cast %51 : vector<1x1x1x128xbf16> to vector<1x1x128xbf16>
    %53 = vector.shape_cast %52 : vector<1x1x128xbf16> to vector<1x128xbf16>
    %54 = arith.extf %53 : vector<1x128xbf16> to vector<1x128xf32>
    %55 = vector.extract_strided_slice %0 {offsets = [7, 0], sizes = [1, 128], strides = [1, 1]} : vector<9x128xf32> to vector<1x128xf32>
    %56 = arith.mulf %54, %55 : vector<1x128xf32>
    %57 = arith.addf %50, %56 : vector<1x128xf32>
    %c0_29 = arith.constant 0 : index
    %c1_30 = arith.constant 1 : index
    %c1_31 = arith.constant 1 : index
    %c0_32 = arith.constant 0 : index
    %58 = vector.load %arg1[%c0_29, %c1_30, %c1_31, %c0_32] : memref<1x2x2x512xbf16, #tpu.memory_space<vmem>>, vector<1x1x1x128xbf16>
    %59 = vector.shape_cast %58 : vector<1x1x1x128xbf16> to vector<1x1x128xbf16>
    %60 = vector.shape_cast %59 : vector<1x1x128xbf16> to vector<1x128xbf16>
    %61 = arith.extf %60 : vector<1x128xbf16> to vector<1x128xf32>
    %62 = vector.extract_strided_slice %0 {offsets = [8, 0], sizes = [1, 128], strides = [1, 1]} : vector<9x128xf32> to vector<1x128xf32>
    %63 = arith.mulf %61, %62 : vector<1x128xf32>
    %64 = arith.addf %57, %63 : vector<1x128xf32>
    %c0_33 = arith.constant 0 : index
    %c0_34 = arith.constant 0 : index
    %65 = vector.load %arg3[%c0_33, %c0_34] : memref<1x128xf32, #tpu.memory_space<vmem>>, vector<1x128xf32>
    %66 = arith.mulf %64, %65 : vector<1x128xf32>
    %c0_35 = arith.constant 0 : index
    %c0_36 = arith.constant 0 : index
    %67 = vector.load %arg4[%c0_35, %c0_36] : memref<1x128xf32, #tpu.memory_space<vmem>>, vector<1x128xf32>
    %68 = arith.addf %66, %67 : vector<1x128xf32>
    %69 = arith.negf %68 : vector<1x128xf32>
    %70 = math.exp %69 : vector<1x128xf32>
    %cst_37 = arith.constant 1.000000e+00 : f32
    %71 = vector.broadcast %cst_37 : f32 to vector<1x128xf32>
    %72 = arith.addf %71, %70 : vector<1x128xf32>
    %73 = arith.divf %71, %72 : vector<1x128xf32>
    %74 = arith.mulf %68, %73 : vector<1x128xf32>
    %75 = arith.truncf %74 : vector<1x128xf32> to vector<1x128xbf16>
    %cst_38 = arith.constant 0.000000e+00 : bf16
    %76 = vector.broadcast %cst_38 : bf16 to vector<7x128xbf16>
    %77 = tpu.concatenate %75, %76 in 0 : vector<1x128xbf16>, vector<7x128xbf16> -> vector<8x128xbf16>
    %c0_39 = arith.constant 0 : index
    %c0_40 = arith.constant 0 : index
    %78 = vector.load %arg5[%c0_39, %c0_40] : memref<128x384xbf16, #tpu.memory_space<vmem>>, vector<128x384xbf16>
    %cst_41 = arith.constant dense<0.000000e+00> : vector<8x384xf32>
    %79 = tpu.matmul %77, %78, %cst_41 {dimension_numbers = #tpu.dot_dimension_numbers<[1], [0], [0], [1], [0, 0, 1, 1], [], []>} : vector<8x128xbf16>, vector<128x384xbf16>, vector<8x384xf32> -> vector<8x384xf32>
    %c0_42 = arith.constant 0 : index
    %c0_43 = arith.constant 0 : index
    %80 = vector.load %arg6[%c0_42, %c0_43] : memref<1x384xf32, #tpu.memory_space<vmem>>, vector<1x384xf32>
    %81 = vector.broadcast %80 : vector<1x384xf32> to vector<8x384xf32>
    %82 = arith.mulf %79, %81 : vector<8x384xf32>
    %c0_44 = arith.constant 0 : index
    %c0_45 = arith.constant 0 : index
    %83 = vector.load %arg7[%c0_44, %c0_45] : memref<1x384xf32, #tpu.memory_space<vmem>>, vector<1x384xf32>
    %84 = vector.broadcast %83 : vector<1x384xf32> to vector<8x384xf32>
    %85 = arith.addf %82, %84 : vector<8x384xf32>
    %86 = arith.negf %85 : vector<8x384xf32>
    %87 = math.exp %86 : vector<8x384xf32>
    %cst_46 = arith.constant 1.000000e+00 : f32
    %88 = vector.broadcast %cst_46 : f32 to vector<8x384xf32>
    %89 = arith.addf %88, %87 : vector<8x384xf32>
    %90 = arith.divf %88, %89 : vector<8x384xf32>
    %91 = arith.mulf %85, %90 : vector<8x384xf32>
    %92 = arith.truncf %91 : vector<8x384xf32> to vector<8x384xbf16>
    %93 = vector.extract_strided_slice %92 {offsets = [0, 0], sizes = [1, 384], strides = [1, 1]} : vector<8x384xbf16> to vector<1x384xbf16>
    %c0_47 = arith.constant 0 : index
    %c0_48 = arith.constant 0 : index
    %c0_49 = arith.constant 0 : index
    %94 = vector.load %arg8[%c0_47, %c0_48, %c0_49] : memref<1x1x384xbf16, #tpu.memory_space<vmem>>, vector<1x1x384xbf16>
    %95 = vector.shape_cast %94 : vector<1x1x384xbf16> to vector<1x384xbf16>
    %96 = vector.shape_cast %93 : vector<1x384xbf16> to vector<1x1x384xbf16>
    tpu.vector_store %arg8[%c0_47, %c0_48, %c0_49], %96 {strides = array<i32>} : memref<1x1x384xbf16, #tpu.memory_space<vmem>>, vector<1x1x384xbf16>,
    return
  }
  func.func @transform_0(%arg0: i32) -> (i32, i32, i32, i32) {
    %c0_i32 = arith.constant 0 : i32
    %c0_i32_0 = arith.constant 0 : i32
    %c0_i32_1 = arith.constant 0 : i32
    %c0_i32_2 = arith.constant 0 : i32
    return %arg0, %c0_i32, %c0_i32_0, %c0_i32_1 : i32, i32, i32, i32
  }
  func.func @transform_1(%arg0: i32) -> (i32, i32) {
    %c0_i32 = arith.constant 0 : i32
    %c0_i32_0 = arith.constant 0 : i32
    %c0_i32_1 = arith.constant 0 : i32
    return %c0_i32, %c0_i32_0 : i32, i32
  }
  func.func @transform_2(%arg0: i32) -> (i32, i32) {
    %c0_i32 = arith.constant 0 : i32
    %c0_i32_0 = arith.constant 0 : i32
    %c0_i32_1 = arith.constant 0 : i32
    return %c0_i32, %c0_i32_0 : i32, i32
  }
  func.func @transform_3(%arg0: i32) -> (i32, i32) {
    %c0_i32 = arith.constant 0 : i32
    %c0_i32_0 = arith.constant 0 : i32
    %c0_i32_1 = arith.constant 0 : i32
    return %c0_i32, %c0_i32_0 : i32, i32
  }
  func.func @transform_4(%arg0: i32) -> (i32, i32) {
    %c0_i32 = arith.constant 0 : i32
    %c0_i32_0 = arith.constant 0 : i32
    %c0_i32_1 = arith.constant 0 : i32
    return %c0_i32, %c0_i32_0 : i32, i32
  }
  func.func @transform_5(%arg0: i32) -> (i32, i32) {
    %c0_i32 = arith.constant 0 : i32
    %c0_i32_0 = arith.constant 0 : i32
    %c0_i32_1 = arith.constant 0 : i32
    return %c0_i32, %c0_i32_0 : i32, i32
  }
  func.func @transform_6(%arg0: i32) -> (i32, i32) {
    %c0_i32 = arith.constant 0 : i32
    %c0_i32_0 = arith.constant 0 : i32
    %c0_i32_1 = arith.constant 0 : i32
    return %c0_i32, %c0_i32_0 : i32, i32
  }
  func.func @transform_7(%arg0: i32) -> (i32, i32, i32) {
    %c0_i32 = arith.constant 0 : i32
    %c0_i32_0 = arith.constant 0 : i32
    %c0_i32_1 = arith.constant 0 : i32
    return %arg0, %c0_i32, %c0_i32_0 : i32, i32, i32
  }
}

</mosaic_0001>

<bundles_post_ra>
// kernel: encoder_forward.6
= control target key start
LH: loop header
LB: loop body
LE: loop exit
PB: predicated region body
PF: predicated region fallthrough
CT: control target
= control target key end

     0   :  { %s1539_s15 = smov 0   ;;  %s1850_s0 = inlined_call_operand.vmem [shape: bf16[2,256,32], index: 0, kind: input, shape index: {}]   ;;  %s1851_s1 = inlined_call_operand.vmem [shape: bf16[32,128], index: 1, kind: input, shape index: {}]   ;;  %s1852_s2 = inlined_call_operand.vmem [shape: f32[1,128], index: 2, kind: input, shape index: {}]   ;;  %s1853_s3 = inlined_call_operand.vmem [shape: f32[1,128], index: 3, kind: input, shape index: {}]   ;;  %s1854_s4 = inlined_call_operand.vmem [shape: bf16[2,256,128], index: 4, kind: output, shape index: {}]  }
   0x1 LB: > { %s1054_s16 = sadd.s32 4294967295, %s1512_s15   ;;  %p1058_p0 = scmp.ge.s32.totalorder %s1512_s15, 1  ;;  %s1512_s15 = sphi %s1539_s15, %s14_s15  }
   0x2   : > { %p162_p1 = scmp.lt.s32.totalorder %s1512_s15, 3 }
   0x4   : > { %p163_p2 = pnand %p1058_p0, %p162_p1 }
   0x5   : > { %v1360_v0 = vld [vmem:[%s1851_s1] sm:$0xff] (!%p163_p2)   ;;  %p188_p3 = scmp.lt.s32.totalorder (!%p163_p2), %s1054_s16, 1  ;;  %v1361_v1 = vld [vmem:[%s1851_s1 + $0x8] sm:$0xff] (!%p163_p2)   ;;  %vm327_vm0 = vcmask (!%p163_p2), 261120  }
   0x6   : > { %166 = sbr.rel (%p163_p2) target bundleno = 322 (0x142), region = 36  ;;  %1312 = vmatprep.subr.bf16.mxu0 (!%p163_p2), %v1360_v0  ;;  %1348 = vmatprep.subr.bf16.mxu1 (!%p163_p2), %v1360_v0  ;;  %v1598_v18 = vld [vmem:[%s1852_s2] ss:$0 sm:$0xff] (!%p163_p2) }
   0x7   : > { %1313 = vmatpush3.bf16.msra.mxu0 (!%p163_p2), %v1360_v0  ;;  %1350 = vmatpush3.bf16.msra.mxu1 (!%p163_p2), %v1360_v0  ;;  %v1603_v20 = vld [vmem:[%s1853_s3] ss:$0 sm:$0xff] (!%p163_p2) }
   0x8   : > { %1314 = vmatprep.subr.bf16.mxu0 (!%p163_p2), %v1361_v1  ;;  %1349 = vmatprep.subr.bf16.mxu1 (!%p163_p2), %v1361_v1 }
   0xb   : > { %1315 = vmatpush3.bf16.msra.mxu0 (!%p163_p2), %v1361_v1  ;;  %1351 = vmatpush3.bf16.msra.mxu1 (!%p163_p2), %v1361_v1 }
   0xd   : > { %s1856_s16 = smov (!%p188_p3, %s1054_s16), 1 }
   0xe   : > { %s1165_s21 = sshll.u32 %s1856_s16, 7 }
   0xf   : > { %s1561_s24 = scalar_lea.vmem %s1850_s0, %s1165_s21  ;;  %s1749_s5 = scalar_lea.vmem %s1854_s4, %s1165_s21 }
  0x10   : > { %v1362_v2 = vld [vmem:[%s1561_s24] sm:$0xff]   ;;  %v1364_v4 = vld [vmem:[%s1561_s24 + $0x8] sm:$0xff]   ;;  %v1366_v6 = vld [vmem:[%s1561_s24 + $0x10] sm:$0xff]  }
  0x11   : > { %v1363_v3 = vld [vmem:[%s1561_s24 + $0x40] sm:$0xff]   ;;  %1316 = vmatprep.mubr.msk.bf16.mxu0 %vm327_vm0, %v1362_v2  ;;  %v1365_v5 = vld [vmem:[%s1561_s24 + $0x48] sm:$0xff]   ;;  %v1367_v7 = vld [vmem:[%s1561_s24 + $0x50] sm:$0xff]  }
  0x12   : > { %1332 = vmatprep.mubr.msk.bf16.mxu1 %vm327_vm0, %v1363_v3  ;;  %1317 = vmatmul.mubr.msk.bf16.vlgmr.msra.gmra.mrb[0].mxu0 %vm327_vm0, %v1364_v4  ;;  %v1368_v8 = vld [vmem:[%s1561_s24 + $0x18] sm:$0xff]   ;;  %v1370_v10 = vld [vmem:[%s1561_s24 + $0x20] sm:$0xff]   ;;  %v1372_v12 = vld [vmem:[%s1561_s24 + $0x28] sm:$0xff]  }
  0x13   : > { %1333 = vmatmul.mubr.msk.bf16.vlgmr.msra.gmra.mrb[0].mxu1 %vm327_vm0, %v1365_v5  ;;  %1320 = vmatprep.mubr.msk.bf16.mxu0 %vm327_vm0, %v1366_v6  ;;  %v1369_v9 = vld [vmem:[%s1561_s24 + $0x58] sm:$0xff]   ;;  %v1371_v11 = vld [vmem:[%s1561_s24 + $0x60] sm:$0xff]   ;;  %v1373_v13 = vld [vmem:[%s1561_s24 + $0x68] sm:$0xff]  }
  0x14   : > { %1336 = vmatprep.mubr.msk.bf16.mxu1 %vm327_vm0, %v1367_v7  ;;  %v1374_v14 = vld [vmem:[%s1561_s24 + $0x30] sm:$0xff]   ;;  %v1376_v16 = vld [vmem:[%s1561_s24 + $0x38] sm:$0xff]  }
  0x15   : > { %v1375_v15 = vld [vmem:[%s1561_s24 + $0x70] sm:$0xff]   ;;  %v1377_v17 = vld [vmem:[%s1561_s24 + $0x78] sm:$0xff]  }
  0x1a   : > { %1321 = vmatmul.mubr.msk.bf16.gmra.mrb[4].mxu0 %vm327_vm0, %v1368_v8 }
  0x1b   : > { %1337 = vmatmul.mubr.msk.bf16.gmra.mrb[4].mxu1 %vm327_vm0, %v1369_v9  ;;  %1324 = vmatprep.mubr.msk.bf16.mxu0 %vm327_vm0, %v1370_v10 }
  0x1c   : > { %1340 = vmatprep.mubr.msk.bf16.mxu1 %vm327_vm0, %v1371_v11 }
  0x22   : > { %1325 = vmatmul.mubr.msk.bf16.gmra.mrb[8].mxu0 %vm327_vm0, %v1372_v12 }
  0x23   : > { %1341 = vmatmul.mubr.msk.bf16.gmra.mrb[8].mxu1 %vm327_vm0, %v1373_v13  ;;  %1328 = vmatprep.mubr.msk.bf16.mxu0 %vm327_vm0, %v1374_v14 }
  0x24   : > { %1344 = vmatprep.mubr.msk.bf16.mxu1 %vm327_vm0, %v1375_v15 }
  0x2a   : > { %1329 = vmatmul.mubr.msk.bf16.gmra.mrb[12].mxu0 %vm327_vm0, %v1376_v16 }
  0x2b   : > { %1345 = vmatmul.mubr.msk.bf16.gmra.mrb[12].mxu1 %vm327_vm0, %v1377_v17 }
  0xe5   : > { %v1318_v19 = vpop.f32.mrb[0].mxu0 }
  0xe6   : > { %v546_v21 = vmul.f32 %v1318_v19, %v1598_v18  ;;  %v1334_v22 = vpop.f32.mrb[0].mxu1  ;;  %v410_v23 = vpop.f32.mrb[1].mxu0 }
  0xe7   : > { %v562_v24 = vmul.f32 %v1334_v22, %v1598_v18  ;;  %v544_v25 = vmul.f32 %v1598_v18, %v410_v23  ;;  %v474_v26 = vpop.f32.mrb[1].mxu1  ;;  %v1319_v27 = vpop.f32.mrb[2].mxu0 }
  0xe8   : > { %v1609_v28 = vadd.f32 %v1603_v20, %v546_v21  ;;  %v560_v29 = vmul.f32 %v1598_v18, %v474_v26  ;;  %v547_v30 = vmul.f32 %v1319_v27, %v1598_v18  ;;  %v1335_v31 = vpop.f32.mrb[2].mxu1  ;;  %v413_v32 = vpop.f32.mrb[3].mxu0 }
  0xe9   : > { %v1614_v33 = vadd.f32 %v1603_v20, %v562_v24  ;;  %v1617_v34 = vadd.f32 %v1603_v20, %v544_v25  ;;  %v563_v35 = vmul.f32 %v1335_v31, %v1598_v18  ;;  %v545_v36 = vmul.f32 %v1598_v18, %v413_v32  ;;  %v477_v37 = vpop.f32.mrb[3].mxu1 }
  0xea   : > { %v1101_v38 = vmul.f32 -1.442695, %v1609_v28  ;;  %v1623_v39 = vadd.f32 %v1603_v20, %v560_v29  ;;  %v1626_v40 = vadd.f32 %v1603_v20, %v547_v30  ;;  %v561_v41 = vmul.f32 %v1598_v18, %v477_v37 }
  0xeb   : > { %v1117_v42 = vmul.f32 -1.442695, %v1614_v33  ;;  %v1099_v43 = vmul.f32 -1.442695, %v1617_v34  ;;  %v1632_v44 = vadd.f32 %v1603_v20, %v563_v35  ;;  %v1635_v45 = vadd.f32 %v1603_v20, %v545_v36 }
  0xec   : > { %1378 = vpow2.f32 %v1101_v38  ;;  %v1115_v46 = vmul.f32 -1.442695, %v1623_v39  ;;  %v1102_v47 = vmul.f32 -1.442695, %v1626_v40  ;;  %v1640_v48 = vadd.f32 %v1603_v20, %v561_v41 }
  0xed   : > { %1380 = vpow2.f32 %v1117_v42  ;;  %v1118_v49 = vmul.f32 -1.442695, %v1632_v44  ;;  %v1322_v50 = vpop.f32.mrb[4].mxu0  ;;  %v1100_v51 = vmul.f32 -1.442695, %v1635_v45 }
  0xee   : > { %1382 = vpow2.f32 %v1099_v43  ;;  %v550_v52 = vmul.f32 %v1322_v50, %v1598_v18  ;;  %v1338_v53 = vpop.f32.mrb[4].mxu1  ;;  %v426_v54 = vpop.f32.mrb[5].mxu0  ;;  %v1116_v55 = vmul.f32 -1.442695, %v1640_v48 }
  0xef   : > { %1384 = vpow2.f32 %v1115_v46  ;;  %v566_v56 = vmul.f32 %v1338_v53, %v1598_v18  ;;  %v548_v57 = vmul.f32 %v1598_v18, %v426_v54  ;;  %v490_v58 = vpop.f32.mrb[5].mxu1  ;;  %v1323_v59 = vpop.f32.mrb[6].mxu0 }
  0xf0   : > { %1386 = vpow2.f32 %v1102_v47  ;;  %v1649_v60 = vadd.f32 %v1603_v20, %v550_v52  ;;  %v564_v61 = vmul.f32 %v1598_v18, %v490_v58  ;;  %v551_v62 = vmul.f32 %v1323_v59, %v1598_v18  ;;  %v1339_v63 = vpop.f32.mrb[6].mxu1  ;;  %v429_v0 = vpop.f32.mrb[7].mxu0 }
  0xf1   : > { %1388 = vpow2.f32 %v1118_v49  ;;  %v1654_v1 = vadd.f32 %v1603_v20, %v566_v56  ;;  %v1657_v2 = vadd.f32 %v1603_v20, %v548_v57  ;;  %v493_v3 = vpop.f32.mrb[7].mxu1  ;;  %v567_v9 = vmul.f32 %v1339_v63, %v1598_v18 }
  0xf2   : > { %1390 = vpow2.f32 %v1100_v51  ;;  %v1105_v4 = vmul.f32 -1.442695, %v1649_v60  ;;  %v1661_v5 = vadd.f32 %v1603_v20, %v564_v61  ;;  %v1664_v6 = vadd.f32 %v1603_v20, %v551_v62 }
  0xf3   : > { %1392 = vpow2.f32 %v1116_v55  ;;  %v1121_v7 = vmul.f32 -1.442695, %v1654_v1  ;;  %v1103_v8 = vmul.f32 -1.442695, %v1657_v2  ;;  %v1672_v19 = vadd.f32 %v1603_v20, %v567_v9 }
  0xf4   : > { %1394 = vpow2.f32 %v1105_v4  ;;  %v1119_v10 = vmul.f32 -1.442695, %v1661_v5  ;;  %v1106_v11 = vmul.f32 -1.442695, %v1664_v6  ;;  %v549_v21 = vmul.f32 %v1598_v18, %v429_v0 }
  0xf5   : > { %1396 = vpow2.f32 %v1121_v7  ;;  %v1326_v12 = vpop.f32.mrb[8].mxu0  ;;  %v565_v26 = vmul.f32 %v1598_v18, %v493_v3  ;;  %v1122_v41 = vmul.f32 -1.442695, %v1672_v19 }
  0xf6   : > { %v1379_v13 = vpop.eup %1378  ;;  %1398 = vpow2.f32 %v1103_v8  ;;  %v1342_v14 = vpop.f32.mrb[8].mxu1  ;;  %v1678_v42 = vadd.f32 %v1603_v20, %v549_v21  ;;  %v554_v49 = vmul.f32 %v1326_v12, %v1598_v18 }
  0xf7   : > { %v442_v15 = vpop.f32.mrb[9].mxu0  ;;  %v1381_v16 = vpop.eup %1380  ;;  %v713_v17 = vadd.f32 1.0, %v1379_v13  ;;  %1400 = vpow2.f32 %v1119_v10  ;;  %v1681_v47 = vadd.f32 %v1603_v20, %v565_v26  ;;  %v570_v52 = vmul.f32 %v1342_v14, %v1598_v18 }
  0xf8   : > { %v506_v22 = vpop.f32.mrb[9].mxu1  ;;  %v1327_v23 = vpop.f32.mrb[10].mxu0  ;;  %v729_v25 = vadd.f32 1.0, %v1381_v16  ;;  %1402 = vpow2.f32 %v1106_v11  ;;  %v552_v53 = vmul.f32 %v1598_v18, %v442_v15  ;;  %v1104_v0 = vmul.f32 -1.442695, %v1678_v42 }
  0xf9   : > { %v1383_v24 = vpop.eup %1382  ;;  %v1343_v27 = vpop.f32.mrb[10].mxu1  ;;  %1404 = vrcp.f32 %v713_v17  ;;  %v568_v57 = vmul.f32 %v1598_v18, %v506_v22  ;;  %v555_v58 = vmul.f32 %v1327_v23, %v1598_v18  ;;  %v1697_v10 = vadd.f32 %v1603_v20, %v554_v49 }
  0xfa   : > { %v445_v29 = vpop.f32.mrb[11].mxu0  ;;  %v1385_v30 = vpop.eup %1384  ;;  %v711_v31 = vadd.f32 1.0, %v1383_v24  ;;  %1406 = vrcp.f32 %v729_v25  ;;  %v571_v3 = vmul.f32 %v1343_v27, %v1598_v18  ;;  %v1705_v16 = vadd.f32 %v1603_v20, %v570_v52 }
  0xfb   : > { %v509_v32 = vpop.f32.mrb[11].mxu1  ;;  %v1387_v35 = vpop.eup %1386  ;;  %v727_v36 = vadd.f32 1.0, %v1385_v30  ;;  %v553_v11 = vmul.f32 %v1598_v18, %v445_v29  ;;  %v1708_v17 = vadd.f32 %v1603_v20, %v552_v53  ;;  %v1713_v24 = vadd.f32 %v1603_v20, %v568_v57 }
  0xfc   : > { %v1389_v37 = vpop.eup %1388  ;;  %1408 = vrcp.f32 %v711_v31  ;;  %v714_v38 = vadd.f32 1.0, %v1387_v35  ;;  %v1716_v25 = vadd.f32 %v1603_v20, %v555_v58  ;;  %v1719_v29 = vadd.f32 %v1603_v20, %v571_v3 }
  0xfd   : > { %v1391_v43 = vpop.eup %1390  ;;  %1410 = vrcp.f32 %v727_v36  ;;  %v730_v46 = vadd.f32 1.0, %v1389_v37  ;;  %v1330_v54 = vpop.f32.mrb[12].mxu0  ;;  %v569_v30 = vmul.f32 %v1598_v18, %v509_v32  ;;  %v1120_v35 = vmul.f32 -1.442695, %v1681_v47 }
  0xfe   : > { %v1393_v50 = vpop.eup %1392  ;;  %1412 = vrcp.f32 %v714_v38  ;;  %v712_v51 = vadd.f32 1.0, %v1391_v43  ;;  %v1346_v59 = vpop.f32.mrb[12].mxu1  ;;  %v1724_v36 = vadd.f32 %v1603_v20, %v553_v11  ;;  %v558_v37 = vmul.f32 %v1330_v54, %v1598_v18 }
  0xff   : > { %v1395_v55 = vpop.eup %1394  ;;  %1414 = vrcp.f32 %v730_v46  ;;  %v728_v56 = vadd.f32 1.0, %v1393_v50  ;;  %v1688_v61 = vpop.f32.mrb[13].mxu0  ;;  %v1109_v43 = vmul.f32 -1.442695, %v1697_v10  ;;  %v1125_v46 = vmul.f32 -1.442695, %v1705_v16 }
 0x100   : > { %v1397_v62 = vpop.eup %1396  ;;  %1416 = vrcp.f32 %v712_v51  ;;  %v717_v63 = vadd.f32 1.0, %v1395_v55  ;;  %v1692_v4 = vpop.f32.mrb[13].mxu1  ;;  %v574_v49 = vmul.f32 %v1346_v59, %v1598_v18  ;;  %v1107_v32 = vmul.f32 -1.442695, %v1708_v17 }
 0x101   : > { %v1694_v7 = vpop.f32.mrb[14].mxu0  ;;  %v1399_v8 = vpop.eup %1398  ;;  %1418 = vrcp.f32 %v728_v56  ;;  %v733_v9 = vadd.f32 1.0, %v1397_v62  ;;  %v1123_v51 = vmul.f32 -1.442695, %v1713_v24  ;;  %v1110_v52 = vmul.f32 -1.442695, %v1716_v25 }
 0x102   : > { %v1700_v12 = vpop.f32.mrb[14].mxu1  ;;  %v1702_v13 = vpop.f32.mrb[15].mxu0  ;;  %1420 = vrcp.f32 %v717_v63  ;;  %v715_v15 = vadd.f32 1.0, %v1399_v8  ;;  %v1126_v55 = vmul.f32 -1.442695, %v1719_v29  ;;  %v1736_v56 = vadd.f32 %v1603_v20, %v569_v30 }
 0x103   : > { %v1401_v14 = vpop.eup %1400  ;;  %v1710_v21 = vpop.f32.mrb[15].mxu1  ;;  %1422 = vrcp.f32 %v733_v9  ;;  %v1741_v59 = vadd.f32 %v1603_v20, %v558_v37 }
 0x104   : > { %v1403_v22 = vpop.eup %1402  ;;  %v731_v23 = vadd.f32 1.0, %v1401_v14  ;;  %1424 = vrcp.f32 %v715_v15 }
 0x105   : > { %v1405_v26 = vpop.eup %1404  ;;  %v718_v27 = vadd.f32 1.0, %v1403_v22 }
 0x106   : > { %v1407_v31 = vpop.eup %1406  ;;  %1426 = vrcp.f32 %v731_v23  ;;  %v809_v54 = vmul.f32 %v1405_v26, %v1609_v28  ;;  %v1113_v26 = vmul.f32 -1.442695, %v1741_v59 }
 0x107   : > { %v1409_v38 = vpop.eup %1408  ;;  %1428 = vrcp.f32 %v718_v27  ;;  %v825_v63 = vmul.f32 %v1407_v31, %v1614_v33 }
 0x108   : > { %v1411_v50 = vpop.eup %1410  ;;  %1430 = vpow2.f32 %v1122_v41  ;;  %v1108_v41 = vmul.f32 -1.442695, %v1724_v36  ;;  %v807_v3 = vmul.f32 %v1409_v38, %v1617_v34  ;;  %v1124_v34 = vmul.f32 -1.442695, %v1736_v56 }
 0x109   : > { %v1413_v53 = vpop.eup %1412  ;;  %1432 = vpow2.f32 %v1104_v0  ;;  %v823_v11 = vmul.f32 %v1411_v50, %v1623_v39 }
 0x10a   : > { %v1415_v57 = vpop.eup %1414  ;;  %v810_v58 = vmul.f32 %v1413_v53, %v1626_v40  ;;  %1434 = vpow2.f32 %v1120_v35  ;;  %v1753_v40 = vadd.f32 %v1603_v20, %v574_v49 }
 0x10b   : > { %v1417_v62 = vpop.eup %1416  ;;  %v826_v28 = vmul.f32 %v1415_v57, %v1632_v44  ;;  %1436 = vpow2.f32 %v1109_v43 }
 0x10c   : > { %v1419_v0 = vpop.eup %1418  ;;  %v1207_v8 = vpack.c.bf16 %v810_v58, %v809_v54  ;;  %v808_v33 = vmul.f32 %v1417_v62, %v1635_v45  ;;  %1438 = vpow2.f32 %v1125_v46  ;;  %v572_v54 = vmul.f32 %v1598_v18, %v1692_v4 }
 0x10d   : > { %v1421_v9 = vpop.eup %1420  ;;  %v1247_v14 = vpack.c.bf16 %v826_v28, %v825_v63  ;;  %v824_v15 = vmul.f32 %v1419_v0, %v1640_v48  ;;  %1440 = vpow2.f32 %v1107_v32  ;;  %v1129_v48 = vmul.f32 -1.442695, %v1753_v40 }
 0x10e   : > { %v1759_v44 = vpop.eup %1422  ;;  %1279 = vst [vmem:[%s1749_s5 + $0x8] sm:$0xff] %v1207_v8   ;;  %v1202_v22 = vpack.c.bf16 %v808_v33, %v807_v3  ;;  %1442 = vpow2.f32 %v1123_v51  ;;  %v813_v31 = vmul.f32 %v1421_v9, %v1649_v60  ;;  %v556_v60 = vmul.f32 %v1598_v18, %v1688_v61 }
 0x10f   : > { %v1763_v23 = vpop.eup %1424  ;;  %1287 = vst [vmem:[%s1749_s5 + $0x48] sm:$0xff] %v1247_v14   ;;  %v1242_v45 = vpack.c.bf16 %v824_v15, %v823_v11  ;;  %1444 = vpow2.f32 %v1110_v52  ;;  %v559_v58 = vmul.f32 %v1694_v7, %v1598_v18  ;;  %v575_v63 = vmul.f32 %v1700_v12, %v1598_v18 }
 0x110   : > { %v1767_v39 = vpop.eup %1426  ;;  %1203 = vst [vmem:[%s1749_s5] sm:$0xff] %v1202_v22   ;;  %1446 = vpow2.f32 %v1126_v55  ;;  %v1784_v0 = vadd.f32 %v1603_v20, %v556_v60  ;;  %v557_v4 = vmul.f32 %v1598_v18, %v1702_v13  ;;  %v1789_v7 = vadd.f32 %v1603_v20, %v572_v54 }
 0x111   : > { %v1429_v27 = vpop.eup %1428  ;;  %1286 = vst [vmem:[%s1749_s5 + $0x40] sm:$0xff] %v1242_v45   ;;  %1448 = vpow2.f32 %v1108_v41  ;;  %v573_v33 = vmul.f32 %v1598_v18, %v1710_v21  ;;  %v1794_v11 = vadd.f32 %v1603_v20, %v559_v58  ;;  %v1797_v13 = vadd.f32 %v1603_v20, %v575_v63 }
 0x112   : > { %v1431_v30 = vpop.eup %1430  ;;  %v814_v35 = vmul.f32 %v1429_v27, %v1664_v6  ;;  %1450 = vpow2.f32 %v1124_v34  ;;  %v1111_v34 = vmul.f32 -1.442695, %v1784_v0  ;;  %v1801_v45 = vadd.f32 %v1603_v20, %v557_v4 }
 0x113   : > { %v1433_v37 = vpop.eup %1432  ;;  %v734_v38 = vadd.f32 1.0, %v1431_v30  ;;  %1452 = vpow2.f32 %v1113_v26  ;;  %v1127_v21 = vmul.f32 -1.442695, %v1789_v7  ;;  %v1805_v26 = vadd.f32 %v1603_v20, %v573_v33 }
 0x114   : > { %v1435_v43 = vpop.eup %1434  ;;  %v1217_v46 = vpack.c.bf16 %v814_v35, %v813_v31  ;;  %v716_v49 = vadd.f32 1.0, %v1433_v37  ;;  %1454 = vpow2.f32 %v1129_v48  ;;  %v829_v27 = vmul.f32 %v1759_v44, %v1654_v1 }
 0x115   : > { %v1437_v50 = vpop.eup %1436  ;;  %1456 = vrcp.f32 %v734_v38  ;;  %v732_v32 = vadd.f32 1.0, %v1435_v43  ;;  %v1114_v31 = vmul.f32 -1.442695, %v1794_v11  ;;  %v811_v37 = vmul.f32 %v1763_v23, %v1657_v2 }
 0x116   : > { %v1439_v51 = vpop.eup %1438  ;;  %1281 = vst [vmem:[%s1749_s5 + $0x18] sm:$0xff] %v1217_v46   ;;  %1458 = vrcp.f32 %v716_v49  ;;  %v721_v52 = vadd.f32 1.0, %v1437_v50  ;;  %v827_v38 = vmul.f32 %v1767_v39, %v1661_v5  ;;  %v1130_v20 = vmul.f32 -1.442695, %v1797_v13 }
 0x117   : > { %v1441_v53 = vpop.eup %1440  ;;  %1460 = vrcp.f32 %v732_v32  ;;  %v737_v6 = vadd.f32 1.0, %v1439_v51  ;;  %v1128_v2 = vmul.f32 -1.442695, %v1805_v26 }
 0x118   : > { %v1443_v55 = vpop.eup %1442  ;;  %1462 = vrcp.f32 %v721_v52  ;;  %v719_v57 = vadd.f32 1.0, %v1441_v53 }
 0x119   : > { %v1445_v41 = vpop.eup %1444  ;;  %1464 = vrcp.f32 %v737_v6  ;;  %v735_v62 = vadd.f32 1.0, %v1443_v55 }
 0x11a   : > { %v1447_v28 = vpop.eup %1446  ;;  %1466 = vrcp.f32 %v719_v57  ;;  %v722_v61 = vadd.f32 1.0, %v1445_v41 }
 0x11b   : > { %v1449_v3 = vpop.eup %1448  ;;  %1468 = vrcp.f32 %v735_v62  ;;  %v738_v8 = vadd.f32 1.0, %v1447_v28 }
 0x11c   : > { %v1451_v9 = vpop.eup %1450  ;;  %1470 = vrcp.f32 %v722_v61  ;;  %v720_v12 = vadd.f32 1.0, %v1449_v3 }
 0x11d   : > { %v1453_v14 = vpop.eup %1452  ;;  %1472 = vrcp.f32 %v738_v8  ;;  %v736_v15 = vadd.f32 1.0, %v1451_v9 }
 0x11e   : > { %v1455_v22 = vpop.eup %1454  ;;  %1474 = vrcp.f32 %v720_v12  ;;  %v725_v58 = vadd.f32 1.0, %v1453_v14 }
 0x11f   : > { %v1457_v18 = vpop.eup %1456  ;;  %1476 = vrcp.f32 %v736_v15  ;;  %v741_v62 = vadd.f32 1.0, %v1455_v22 }
 0x120   : > { %v1459_v48 = vpop.eup %1458  ;;  %v830_v30 = vmul.f32 %v1457_v18, %v1672_v19  ;;  %1478 = vpow2.f32 %v1111_v34  ;;  %v1112_v19 = vmul.f32 -1.442695, %v1801_v45 }
 0x121   : > { %v1461_v35 = vpop.eup %1460  ;;  %v812_v43 = vmul.f32 %v1459_v48, %v1678_v42  ;;  %1480 = vpow2.f32 %v1127_v21 }
 0x122   : > { %v1463_v46 = vpop.eup %1462  ;;  %v1257_v49 = vpack.c.bf16 %v830_v30, %v829_v27  ;;  %v828_v1 = vmul.f32 %v1461_v35, %v1681_v47  ;;  %1482 = vpow2.f32 %v1114_v31 }
 0x123   : > { %v1465_v44 = vpop.eup %1464  ;;  %v1212_v50 = vpack.c.bf16 %v812_v43, %v811_v37  ;;  %1484 = vpow2.f32 %v1130_v20  ;;  %v817_v47 = vmul.f32 %v1463_v46, %v1697_v10 }
 0x124   : > { %v1467_v23 = vpop.eup %1466  ;;  %1289 = vst [vmem:[%s1749_s5 + $0x58] sm:$0xff] %v1257_v49   ;;  %v1252_v5 = vpack.c.bf16 %v828_v1, %v827_v38  ;;  %1486 = vpow2.f32 %v1112_v19  ;;  %v833_v60 = vmul.f32 %v1465_v44, %v1705_v16 }
 0x125   : > { %v1469_v42 = vpop.eup %1468  ;;  %1280 = vst [vmem:[%s1749_s5 + $0x10] sm:$0xff] %v1212_v50   ;;  %1488 = vpow2.f32 %v1128_v2  ;;  %v815_v54 = vmul.f32 %v1467_v23, %v1708_v17 }
 0x126   : > { %v1471_v39 = vpop.eup %1470  ;;  %1288 = vst [vmem:[%s1749_s5 + $0x50] sm:$0xff] %v1252_v5   ;;  %v831_v10 = vmul.f32 %v1469_v42, %v1713_v24  ;;  %1490 = vrcp.f32 %v725_v58 }
 0x127   : > { %v1473_v32 = vpop.eup %1472  ;;  %v818_v51 = vmul.f32 %v1471_v39, %v1716_v25  ;;  %1492 = vrcp.f32 %v741_v62 }
 0x128   : > { %v1475_v52 = vpop.eup %1474  ;;  %v834_v53 = vmul.f32 %v1473_v32, %v1719_v29 }
 0x129   : > { %v1477_v6 = vpop.eup %1476  ;;  %v1227_v55 = vpack.c.bf16 %v818_v51, %v817_v47  ;;  %v816_v57 = vmul.f32 %v1475_v52, %v1724_v36 }
 0x12a   : > { %v1267_v41 = vpack.c.bf16 %v834_v53, %v833_v60  ;;  %v832_v25 = vmul.f32 %v1477_v6, %v1736_v56  ;;  %v1479_v16 = vpop.eup %1478 }
 0x12b   : > { %1283 = vst [vmem:[%s1749_s5 + $0x28] sm:$0xff] %v1227_v55   ;;  %v1222_v63 = vpack.c.bf16 %v816_v57, %v815_v54  ;;  %v1481_v28 = vpop.eup %1480  ;;  %v723_v17 = vadd.f32 1.0, %v1479_v16 }
 0x12c   : > { %1291 = vst [vmem:[%s1749_s5 + $0x68] sm:$0xff] %v1267_v41   ;;  %v1262_v29 = vpack.c.bf16 %v832_v25, %v831_v10  ;;  %v1483_v61 = vpop.eup %1482  ;;  %v739_v36 = vadd.f32 1.0, %v1481_v28 }
 0x12d   : > { %1282 = vst [vmem:[%s1749_s5 + $0x20] sm:$0xff] %v1222_v63   ;;  %v1485_v4 = vpop.eup %1484  ;;  %1494 = vrcp.f32 %v723_v17  ;;  %v726_v24 = vadd.f32 1.0, %v1483_v61 }
 0x12e   : > { %1290 = vst [vmem:[%s1749_s5 + $0x60] sm:$0xff] %v1262_v29   ;;  %v1487_v3 = vpop.eup %1486  ;;  %1496 = vrcp.f32 %v739_v36  ;;  %v742_v56 = vadd.f32 1.0, %v1485_v4 }
 0x12f   : > { %v1489_v8 = vpop.eup %1488  ;;  %1498 = vrcp.f32 %v726_v24  ;;  %v724_v33 = vadd.f32 1.0, %v1487_v3 }
 0x130   : > { %1500 = vrcp.f32 %v742_v56  ;;  %v740_v9 = vadd.f32 1.0, %v1489_v8  ;;  %v1491_v12 = vpop.eup %1490 }
 0x131   : > { %1502 = vrcp.f32 %v724_v33  ;;  %v1493_v14 = vpop.eup %1492  ;;  %v821_v21 = vmul.f32 %v1491_v12, %v1741_v59 }
 0x132   : > { %1504 = vrcp.f32 %v740_v9  ;;  %v837_v30 = vmul.f32 %v1493_v14, %v1753_v40 }
 0x137   : > { %v1495_v15 = vpop.eup %1494 }
 0x138   : > { %v1497_v22 = vpop.eup %1496  ;;  %v819_v37 = vmul.f32 %v1495_v15, %v1784_v0 }
 0x139   : > { %v1499_v34 = vpop.eup %1498  ;;  %v835_v20 = vmul.f32 %v1497_v22, %v1789_v7 }
 0x13a   : > { %v1501_v18 = vpop.eup %1500  ;;  %v822_v48 = vmul.f32 %v1499_v34, %v1794_v11 }
 0x13b   : > { %v1503_v27 = vpop.eup %1502  ;;  %v838_v31 = vmul.f32 %v1501_v18, %v1797_v13 }
 0x13c   : > { %v1505_v35 = vpop.eup %1504  ;;  %v1237_v38 = vpack.c.bf16 %v822_v48, %v821_v21  ;;  %v820_v43 = vmul.f32 %v1503_v27, %v1801_v45 }
 0x13d   : > { %v1277_v46 = vpack.c.bf16 %v838_v31, %v837_v30  ;;  %v836_v59 = vmul.f32 %v1505_v35, %v1805_v26 }
 0x13e   : > { %1285 = vst [vmem:[%s1749_s5 + $0x38] sm:$0xff] %v1237_v38   ;;  %v1232_v49 = vpack.c.bf16 %v820_v43, %v819_v37 }
 0x13f   : > { %1293 = vst [vmem:[%s1749_s5 + $0x78] sm:$0xff] %v1277_v46   ;;  %v1272_v11 = vpack.c.bf16 %v836_v59, %v835_v20 }
 0x140   : > { %1284 = vst [vmem:[%s1749_s5 + $0x30] sm:$0xff] %v1232_v49  }
 0x141   : > { %1292 = vst [vmem:[%s1749_s5 + $0x70] sm:$0xff] %v1272_v11  }
 0x142 PF: > { %s14_s15 = sadd.s32 1, %s1512_s15  }
 0x143   : > { %p11_p4 = scmp.ge.s32.totalorder %s14_s15, 4  }
 0x145   :  { %13 = sbr.rel (!%p11_p4) target bundleno = 1 (0x1), region = 66 }

// kernel: encoder_forward.8
= control target key start
LH: loop header
LB: loop body
LE: loop exit
PB: predicated region body
PF: predicated region fallthrough
CT: control target
= control target key end

     0   :  { %s1654_s24 = smov 0   ;;  %s2040_s0 = inlined_call_operand.vmem [shape: bf16[2,9,9,512], index: 0, kind: input, shape index: {}]   ;;  %s2041_s1 = inlined_call_operand.vmem [shape: f32[9,128], index: 1, kind: input, shape index: {}]   ;;  %s2042_s2 = inlined_call_operand.vmem [shape: f32[1,128], index: 2, kind: input, shape index: {}]   ;;  %s2043_s3 = inlined_call_operand.vmem [shape: f32[1,128], index: 3, kind: input, shape index: {}]   ;;  %s2044_s4 = inlined_call_operand.vmem [shape: bf16[128,128], index: 4, kind: input, shape index: {}]   ;;  %s2045_s5 = inlined_call_operand.vmem [shape: f32[1,128], index: 5, kind: input, shape index: {}]   ;;  %s2046_s6 = inlined_call_operand.vmem [shape: f32[1,128], index: 6, kind: input, shape index: {}]   ;;  %s2047_s7 = inlined_call_operand.vmem [shape: bf16[2,64,128], index: 7, kind: output, shape index: {}]  }
   0x1 LB: > { %s1370_s25 = sadd.s32 4294967295, %s1612_s24   ;;  %p1374_p0 = scmp.ge.s32.totalorder %s1612_s24, 1  ;;  %s1612_s24 = sphi %s1654_s24, %s17_s24  }
   0x2   : > { %p237_p1 = scmp.lt.s32.totalorder %s1612_s24, 3 }
   0x4   : > { %p238_p2 = pnand %p1374_p0, %p237_p1 }
   0x5   : > { %v1534_v0 = vld [vmem:[%s2044_s4] sm:$0xff] (!%p238_p2)   ;;  %p269_p3 = scmp.lt.s32.totalorder (!%p238_p2), %s1370_s25, 1  ;;  %v298_v1 = vlaneseq (!%p238_p2)  ;;  %v1535_v2 = vld [vmem:[%s2044_s4 + $0x8] sm:$0xff] (!%p238_p2)   ;;  %v1536_v4 = vld [vmem:[%s2044_s4 + $0x10] sm:$0xff] (!%p238_p2)   ;;  %vm362_vm0 = vsmask.f32 (!%p238_p2), 3328 }
   0x6   : > { %241 = sbr.rel (%p238_p2) target bundleno = 428 (0x1ac), region = 48  ;;  %1485 = vmatprep.subr.bf16.mxu0 (!%p238_p2), %v1534_v0  ;;  %1509 = vmatprep.subr.bf16.mxu1 (!%p238_p2), %v1534_v0  ;;  %v1537_v8 = vld [vmem:[%s2044_s4 + $0x18] sm:$0xff] (!%p238_p2)   ;;  %v1690_v9 = vld [vmem:[%s2041_s1] sm:$0xff] (!%p238_p2)  ;;  %vm363_vm1 = vsmask.f32 (!%p238_p2), 7440  ;;  %v1539_v46 = vld [vmem:[%s2044_s4 + $0x28] sm:$0xff] (!%p238_p2)  }
   0x7   : > { %1486 = vmatpush3.bf16.msra.mxu0 (!%p238_p2), %v1534_v0  ;;  %1517 = vmatpush3.bf16.msra.mxu1 (!%p238_p2), %v1534_v0  ;;  %v1670_v3 = vshrl.u32 (!%p238_p2), %v298_v1, 7  ;;  %v1538_v27 = vld [vmem:[%s2044_s4 + $0x20] sm:$0xff] (!%p238_p2)   ;;  %vm1732_vm2 = vmor (!%p238_p2), %vm362_vm0, %vm363_vm1  ;;  %v1540_v1 = vld [vmem:[%s2044_s4 + $0x30] sm:$0xff] (!%p238_p2)  }
   0x8   : > { %1487 = vmatprep.subr.bf16.mxu0 (!%p238_p2), %v1535_v2  ;;  %1510 = vmatprep.subr.bf16.mxu1 (!%p238_p2), %v1535_v2 }
   0x9   : > { %v300_v5 = vsub.s32 (!%p238_p2), 0, %v1670_v3  ;;  %v336_v6 = vsub.s32 (!%p238_p2), 1, %v1670_v3  ;;  %v495_v7 = vsub.s32 (!%p238_p2), 2, %v1670_v3  ;;  %v531_v11 = vsub.s32 (!%p238_p2), 3, %v1670_v3 }
   0xa   : > { %v567_v56 = vsub.s32 (!%p238_p2), 4, %v1670_v3 }
   0xb   : > { %1488 = vmatpush3.bf16.msra.mxu0 (!%p238_p2), %v1535_v2  ;;  %1518 = vmatpush3.bf16.msra.mxu1 (!%p238_p2), %v1535_v2  ;;  %v1696_v14 = vrot.slane (!%p238_p2), %v1690_v9, %v300_v5  ;;  %v1705_v17 = vrot.slane (!%p238_p2), %v1690_v9, %v336_v6  ;;  %v1708_v18 = vrot.slane (!%p238_p2), %v1690_v9, %v495_v7 }
   0xc   : > { %1489 = vmatprep.subr.bf16.mxu0 (!%p238_p2), %v1536_v4  ;;  %1511 = vmatprep.subr.bf16.mxu1 (!%p238_p2), %v1536_v4  ;;  %v1737_v50 = vrot.slane (!%p238_p2), %v1690_v9, %v531_v11  ;;  %v1748_v63 = vrot.slane (!%p238_p2), %v1690_v9, %v567_v56 }
   0xd   : > { %s2051_s25 = smov (!%p269_p3, %s1370_s25), 1 }
   0xe   : > { %s1525_s9 = smul.u32 288, %s2051_s25  ;;  %s1441_s14 = sshll.u32 %s2051_s25, 5 }
   0xf   : > { %1490 = vmatpush3.bf16.msra.mxu0 %v1536_v4  ;;  %1519 = vmatpush3.bf16.msra.mxu1 %v1536_v4  ;;  %s2031_s17 = scalar_lea.vmem %s2047_s7, %s1441_s14 }
  0x10   : > { %s1680_s12 = scalar_lea.vmem %s2040_s0, %s1525_s9  ;;  %1491 = vmatprep.subr.bf16.mxu0 %v1537_v8  ;;  %1512 = vmatprep.subr.bf16.mxu1 %v1537_v8 }
  0x11   : > { %v282_v10 = vld [vmem:[%s1680_s12] sm:$0xf]  ;;  %v1699_v15 = vld [vmem:[%s1680_s12 + $0x4] ss:$8 sps:$4 sm:$0xff]   ;;  %v354_v22 = vld [vmem:[%s1680_s12 + $0x10] sm:$0x1] }
  0x12   : > { %v283_v12 = vld [vmem:[%s1680_s12 + $0x20] sm:$0xf]  ;;  %v290_v13 = vunpack.c.l.bf16 %v282_v10  ;;  %v1702_v16 = vld [vmem:[%s1680_s12 + $0x24] ss:$8 sps:$4 sm:$0xff]   ;;  %v326_v20 = vunpack.c.l.bf16 %v1699_v15  ;;  %v355_v24 = vld [vmem:[%s1680_s12 + $0x30] sm:$0x1]  ;;  %v557_v51 = vunpack.c.h.bf16 %v1699_v15 }
  0x13   : > { %v291_v19 = vunpack.c.l.bf16 %v283_v12  ;;  %v327_v21 = vunpack.c.l.bf16 %v1702_v16  ;;  %v366_v25 = vshrl.u32 %v282_v10, 16  ;;  %v369_v26 = vshll.u32 %v282_v10, 16  ;;  %v513_v40 = vld [vmem:[%s1680_s12 + $0x8] sm:$0xf]  ;;  %1492 = vmatpush3.bf16.msra.mxu0 %v1537_v8  ;;  %1520 = vmatpush3.bf16.msra.mxu1 %v1537_v8  ;;  %v585_v52 = vld [vmem:[%s1680_s12 + $0x18] sm:$0x1] }
  0x14   : > { %v302_v23 = vmul.f32 %v1696_v14, %v290_v13  ;;  %v338_v29 = vmul.f32 %v1705_v17, %v326_v20  ;;  %v375_v31 = vshll.u32 %v354_v22, 16  ;;  %v380_v34 = vshrl.u32 %v283_v12, 16  ;;  %v514_v44 = vld [vmem:[%s1680_s12 + $0x28] sm:$0xf]  ;;  %1493 = vmatprep.subr.bf16.mxu0 %v1538_v27  ;;  %1513 = vmatprep.subr.bf16.mxu1 %v1538_v27  ;;  %v586_v4 = vld [vmem:[%s1680_s12 + $0x38] sm:$0x1] }
  0x15   : > { %v303_v28 = vmul.f32 %v1696_v14, %v291_v19  ;;  %v339_v30 = vmul.f32 %v1705_v17, %v327_v21  ;;  %v368_v32 = vrot.slane %v366_v25, 4  ;;  %v371_v33 = vrot.slane %v369_v26, 5  ;;  %v1378_v20 = vld [vmem:[%s1680_s12 + $0x20] sm:$0xf]  ;;  %v1541_v26 = vld [vmem:[%s2044_s4 + $0x38] sm:$0xff]  }
  0x16   : > { %v383_v35 = vshll.u32 %v283_v12, 16  ;;  %v1721_v36 = vadd.f32 %v338_v29, %v302_v23  ;;  %v377_v38 = vrot.slane %v375_v31, 5  ;;  %v389_v39 = vshll.u32 %v355_v24, 16  ;;  %v1762_v24 = vld [vmem:[%s1680_s12 + $0x40] sm:$0xf] }
  0x17   : > { %v1723_v37 = vadd.f32 %v339_v30, %v303_v28  ;;  %v372_v41 = vor.u32 %v371_v33, %v368_v32  ;;  %v382_v42 = vrot.slane %v380_v34, 4  ;;  %v521_v45 = vunpack.c.l.bf16 %v513_v40  ;;  %1494 = vmatpush3.bf16.msra.mxu0 %v1538_v27  ;;  %1521 = vmatpush3.bf16.msra.mxu1 %v1538_v27 }
  0x18   : > { %v385_v43 = vrot.slane %v383_v35, 5  ;;  %v391_v48 = vrot.slane %v389_v39, 5  ;;  %v522_v49 = vunpack.c.l.bf16 %v514_v44  ;;  %v558_v55 = vunpack.c.h.bf16 %v1702_v16  ;;  %1495 = vmatprep.subr.bf16.mxu0 %v1539_v46  ;;  %1514 = vmatprep.subr.bf16.mxu1 %v1539_v46  ;;  %v1775_v35 = vld [vmem:[%s1680_s12 + $0x24] ss:$104 sps:$4 sm:$0xff]  }
  0x19   : > { %v373_v53 = vrot.slane %v372_v41, 4  ;;  %v533_v57 = vmul.f32 %v1737_v50, %v521_v45  ;;  %v594_v59 = vshrl.u32 %v513_v40, 16  ;;  %v597_v60 = vshll.u32 %v513_v40, 16 }
  0x1a   : > { %v386_v54 = vor.u32 %v385_v43, %v382_v42  ;;  %v534_v58 = vmul.f32 %v1737_v50, %v522_v49  ;;  %v603_v0 = vshll.u32 %v585_v52, 16  ;;  %v608_v7 = vshrl.u32 %v514_v44, 16  ;;  %v1394_v49 = vld [vmem:[%s1680_s12 + $0x30] sm:$0x1] }
  0x1b   : > { %v378_v61 = vsel %vm1732_vm2, %v373_v53, %v377_v38  ;;  %v596_v5 = vrot.slane %v594_v59, 4  ;;  %v599_v6 = vrot.slane %v597_v60, 5  ;;  %v569_v10 = vmul.f32 %v1748_v63, %v557_v51  ;;  %1496 = vmatpush3.bf16.msra.mxu0 %v1539_v46  ;;  %1522 = vmatpush3.bf16.msra.mxu1 %v1539_v46 }
  0x1c   : > { %v387_v62 = vrot.slane %v386_v54, 4  ;;  %v485_v2 = vunpack.c.l.bf16 %v378_v61  ;;  %v570_v11 = vmul.f32 %v1748_v63, %v558_v55  ;;  %v605_v12 = vrot.slane %v603_v0, 5  ;;  %1497 = vmatprep.subr.bf16.mxu0 %v1540_v1  ;;  %1515 = vmatprep.subr.bf16.mxu1 %v1540_v1  ;;  %v1395_v61 = vld [vmem:[%s1680_s12 + $0x50] sm:$0x1] }
  0x1d   : > { %v600_v16 = vor.u32 %v599_v6, %v596_v5  ;;  %v610_v19 = vrot.slane %v608_v7, 4  ;;  %v611_v21 = vshll.u32 %v514_v44, 16  ;;  %v617_v22 = vshll.u32 %v586_v4, 16  ;;  %v1803_v5 = vld [vmem:[%s1680_s12 + $0x4c] ss:$56 sps:$4 sm:$0xff]  }
  0x1e   : > { %v392_v8 = vsel %vm1732_vm2, %v387_v62, %v391_v48  ;;  %v497_v15 = vmul.f32 %v1708_v18, %v485_v2  ;;  %v723_v23 = vsub.s32 5, %v1670_v3  ;;  %v750_v25 = vunpack.c.l.bf16 %v1378_v20 }
  0x1f   : > { %v486_v13 = vunpack.c.l.bf16 %v392_v8  ;;  %v601_v29 = vrot.slane %v600_v16, 4  ;;  %v751_v30 = vunpack.c.l.bf16 %v1762_v24  ;;  %v613_v31 = vrot.slane %v611_v21, 5  ;;  %1498 = vmatpush3.bf16.msra.mxu0 %v1540_v1  ;;  %1523 = vmatpush3.bf16.msra.mxu1 %v1540_v1  ;;  %v287_v16 = vld [vmem:[%s1680_s12 + $0xa0] sm:$0xf] }
  0x20   : > { %v505_v28 = vadd.f32 %v497_v15, %v1721_v36  ;;  %v619_v32 = vrot.slane %v617_v22, 5  ;;  %v1771_v33 = vrot.slane %v1690_v9, %v723_v23  ;;  %v760_v34 = vsub.s32 6, %v1670_v3  ;;  %v1781_v36 = vld [vmem:[%s1680_s12 + $0x44] ss:$104 sps:$4 sm:$0xff]   ;;  %1499 = vmatprep.subr.bf16.mxu0 %v1541_v26  ;;  %1516 = vmatprep.subr.bf16.mxu1 %v1541_v26 }
  0x21   : > { %v498_v27 = vmul.f32 %v1708_v18, %v486_v13  ;;  %v606_v40 = vsel %vm1732_vm2, %v601_v29, %v605_v12  ;;  %v786_v41 = vunpack.c.l.bf16 %v1775_v35  ;;  %v614_v42 = vor.u32 %v613_v31, %v610_v19 }
  0x22   : > { %v541_v39 = vadd.f32 %v533_v57, %v505_v28  ;;  %v713_v43 = vunpack.c.l.bf16 %v606_v40  ;;  %v1785_v44 = vrot.slane %v1690_v9, %v760_v34  ;;  %v787_v45 = vunpack.c.l.bf16 %v1781_v36  ;;  %v358_v34 = vld [vmem:[%s1680_s12 + $0x90] sm:$0x1] }
  0x23   : > { %v506_v38 = vadd.f32 %v498_v27, %v1723_v37  ;;  %v796_v48 = vsub.s32 7, %v1670_v3  ;;  %v823_v51 = vshrl.u32 %v1378_v20, 16  ;;  %v615_v52 = vrot.slane %v614_v42, 4  ;;  %1500 = vmatpush3.bf16.msra.mxu0 %v1541_v26  ;;  %1524 = vmatpush3.bf16.msra.mxu1 %v1541_v26 }
  0x24   : > { %v577_v46 = vadd.f32 %v569_v10, %v541_v39  ;;  %v725_v53 = vmul.f32 %v1771_v33, %v713_v43  ;;  %v762_v54 = vmul.f32 %v1785_v44, %v750_v25  ;;  %v763_v55 = vmul.f32 %v1785_v44, %v751_v30 }
  0x25   : > { %v542_v37 = vadd.f32 %v534_v58, %v506_v38  ;;  %v1794_v57 = vrot.slane %v1690_v9, %v796_v48  ;;  %v825_v59 = vrot.slane %v823_v51, 4  ;;  %v826_v58 = vshll.u32 %v1378_v20, 16  ;;  %v1810_v20 = vld [vmem:[%s1680_s12 + $0x6c] ss:$56 sps:$4 sm:$0xff]   ;;  %v1821_v38 = vld [vmem:[%s2041_s1 + $0x8] ss:$0 sm:$0xff] }
  0x26   : > { %v620_v3 = vsel %vm1732_vm2, %v615_v52, %v619_v32  ;;  %v733_v60 = vadd.f32 %v725_v53, %v577_v46  ;;  %v832_v62 = vshll.u32 %v1394_v49, 16  ;;  %v837_v0 = vshrl.u32 %v1762_v24, 16  ;;  %v359_v49 = vld [vmem:[%s1680_s12 + $0xb0] sm:$0x1] }
  0x27   : > { %v578_v56 = vadd.f32 %v570_v11, %v542_v37  ;;  %v714_v1 = vunpack.c.l.bf16 %v620_v3  ;;  %v798_v2 = vmul.f32 %v1794_v57, %v786_v41  ;;  %v799_v9 = vmul.f32 %v1794_v57, %v787_v45  ;;  %v286_v11 = vld [vmem:[%s1680_s12 + $0x80] sm:$0xf] }
  0x28   : > { %v828_v4 = vrot.slane %v826_v58, 5  ;;  %v770_v6 = vadd.f32 %v762_v54, %v733_v60  ;;  %v834_v7 = vrot.slane %v832_v62, 5  ;;  %v839_v8 = vrot.slane %v837_v0, 4  ;;  %v1833_v3 = vld [vmem:[%s2042_s2] ss:$0 sm:$0xff] }
  0x29   : > { %v840_v10 = vshll.u32 %v1762_v24, 16  ;;  %v726_v12 = vmul.f32 %v1771_v33, %v714_v1  ;;  %v846_v15 = vshll.u32 %v1395_v61, 16  ;;  %v294_v19 = vunpack.c.l.bf16 %v286_v11  ;;  %v517_v0 = vld [vmem:[%s1680_s12 + $0x88] sm:$0xf] }
  0x2a   : > { %v829_v13 = vor.u32 %v828_v4, %v825_v59  ;;  %v806_v21 = vadd.f32 %v798_v2, %v770_v6  ;;  %v295_v23 = vunpack.c.l.bf16 %v287_v16  ;;  %v330_v25 = vunpack.c.h.bf16 %v1803_v5  ;;  %v518_v4 = vld [vmem:[%s1680_s12 + $0xa8] sm:$0xf] }
  0x2b   : > { %v842_v22 = vrot.slane %v840_v10, 5  ;;  %v734_v26 = vadd.f32 %v726_v12, %v578_v56  ;;  %v848_v28 = vrot.slane %v846_v15, 5  ;;  %v306_v24 = vmul.f32 %v1696_v14, %v294_v19 }
  0x2c   : > { %v830_v27 = vrot.slane %v829_v13, 4  ;;  %v307_v30 = vmul.f32 %v1696_v14, %v295_v23  ;;  %v331_v31 = vunpack.c.h.bf16 %v1810_v20  ;;  %v342_v32 = vmul.f32 %v1705_v17, %v330_v25 }
  0x2d   : > { %v843_v29 = vor.u32 %v842_v22, %v839_v8  ;;  %v771_v39 = vadd.f32 %v763_v55, %v734_v26  ;;  %v422_v41 = vshrl.u32 %v286_v11, 16  ;;  %v425_v42 = vshll.u32 %v286_v11, 16  ;;  %v1841_v8 = vld [vmem:[%s2043_s3] ss:$0 sm:$0xff]  ;;  %v589_v26 = vld [vmem:[%s1680_s12 + $0x98] sm:$0x1] }
  0x2e   : > { %v835_v40 = vsel %vm1732_vm2, %v830_v27, %v834_v7  ;;  %v343_v37 = vmul.f32 %v1705_v17, %v331_v31  ;;  %v350_v46 = vadd.f32 %v342_v32, %v306_v24  ;;  %v431_v53 = vshll.u32 %v358_v34, 16 }
  0x2f   : > { %v844_v43 = vrot.slane %v843_v29, 4  ;;  %v942_v45 = vunpack.c.l.bf16 %v835_v40  ;;  %v807_v48 = vadd.f32 %v799_v9, %v771_v39  ;;  %v424_v51 = vrot.slane %v422_v41, 4 }
  0x30   : > { %v427_v52 = vrot.slane %v425_v42, 5  ;;  %v351_v56 = vadd.f32 %v343_v37, %v307_v30  ;;  %v436_v59 = vshrl.u32 %v287_v16, 16  ;;  %v433_v61 = vrot.slane %v431_v53, 5 }
  0x31   : > { %v849_v54 = vsel %vm1732_vm2, %v844_v43, %v848_v28  ;;  %v954_v55 = vmul.f32 %v1821_v38, %v942_v45  ;;  %v439_v62 = vshll.u32 %v287_v16, 16  ;;  %v445_v9 = vshll.u32 %v359_v49, 16  ;;  %v590_v43 = vld [vmem:[%s1680_s12 + $0xb8] sm:$0x1] }
  0x32   : > { %v943_v58 = vunpack.c.l.bf16 %v849_v54  ;;  %v428_v60 = vor.u32 %v427_v52, %v424_v51  ;;  %v438_v2 = vrot.slane %v436_v59, 4  ;;  %v525_v6 = vunpack.c.l.bf16 %v517_v0  ;;  %v1382_v59 = vld [vmem:[%s1680_s12 + $0xa0] sm:$0xf] }
  0x33   : > { %v962_v1 = vadd.f32 %v954_v55, %v806_v21  ;;  %v441_v11 = vrot.slane %v439_v62, 5  ;;  %v526_v12 = vunpack.c.l.bf16 %v518_v4  ;;  %v447_v15 = vrot.slane %v445_v9, 5 }
  0x34   : > { %v955_v7 = vmul.f32 %v1821_v38, %v943_v58  ;;  %v429_v10 = vrot.slane %v428_v60, 4  ;;  %v537_v16 = vmul.f32 %v1737_v50, %v525_v6  ;;  %v561_v19 = vunpack.c.h.bf16 %v1775_v35 }
  0x35   : > { %v977_v13 = vmul.f32 %v1833_v3, %v962_v1  ;;  %v442_v23 = vor.u32 %v441_v11, %v438_v2  ;;  %v538_v25 = vmul.f32 %v1737_v50, %v526_v12  ;;  %v562_v24 = vunpack.c.h.bf16 %v1781_v36  ;;  %v1870_v11 = vld [vmem:[%s1680_s12 + $0xa4] ss:$40 sps:$4 sm:$0xff]  }
  0x36   : > { %v963_v21 = vadd.f32 %v955_v7, %v807_v48  ;;  %v434_v22 = vsel %vm1732_vm2, %v429_v10, %v433_v61  ;;  %v573_v29 = vmul.f32 %v1748_v63, %v561_v19  ;;  %v650_v31 = vshrl.u32 %v517_v0, 16  ;;  %v1398_v19 = vld [vmem:[%s1680_s12 + $0xb0] sm:$0x1] }
  0x37   : > { %v1851_v27 = vadd.f32 %v1841_v8, %v977_v13  ;;  %v489_v28 = vunpack.c.l.bf16 %v434_v22  ;;  %v443_v35 = vrot.slane %v442_v23, 4  ;;  %v653_v32 = vshll.u32 %v517_v0, 16 }
  0x38   : > { %v978_v30 = vmul.f32 %v1833_v3, %v963_v21  ;;  %v574_v40 = vmul.f32 %v1748_v63, %v562_v24  ;;  %v659_v41 = vshll.u32 %v589_v26, 16  ;;  %v652_v45 = vrot.slane %v650_v31, 4 }
  0x39   : > { %v1405_v34 = vmul.f32 -1.442695, %v1851_v27  ;;  %v501_v39 = vmul.f32 %v1708_v18, %v489_v28  ;;  %v448_v36 = vsel %vm1732_vm2, %v443_v35, %v447_v15  ;;  %v655_v37 = vrot.slane %v653_v32, 5  ;;  %v1876_v15 = vld [vmem:[%s1680_s12 + $0xc4] ss:$40 sps:$4 sm:$0xff]  }
  0x3a   : > { %v1860_v42 = vadd.f32 %v1841_v8, %v978_v30  ;;  %v490_v48 = vunpack.c.l.bf16 %v448_v36  ;;  %v661_v51 = vrot.slane %v659_v41, 5  ;;  %v664_v54 = vshrl.u32 %v518_v4, 16  ;;  %v1399_v32 = vld [vmem:[%s1680_s12 + $0xd0] sm:$0x1] }
  0x3b   : > { %1542 = vpow2.f32 %v1405_v34  ;;  %v509_v49 = vadd.f32 %v501_v39, %v350_v46  ;;  %v656_v53 = vor.u32 %v655_v37, %v652_v45  ;;  %v667_v55 = vshll.u32 %v518_v4, 16  ;;  %v1383_v46 = vld [vmem:[%s1680_s12 + $0xc0] sm:$0xf] }
  0x3c   : > { %v1406_v52 = vmul.f32 -1.442695, %v1860_v42  ;;  %v502_v58 = vmul.f32 %v1708_v18, %v490_v48  ;;  %v673_v61 = vshll.u32 %v590_v43, 16  ;;  %v754_v62 = vunpack.c.l.bf16 %v1382_v59 }
  0x3d   : > { %v545_v60 = vadd.f32 %v537_v16, %v509_v49  ;;  %v657_v0 = vrot.slane %v656_v53, 4  ;;  %v666_v1 = vrot.slane %v664_v54, 4  ;;  %v669_v2 = vrot.slane %v667_v55, 5  ;;  %v284_v54 = vld [vmem:[%s1680_s12 + $0x40] sm:$0xf] }
  0x3e   : > { %1544 = vpow2.f32 %v1406_v52  ;;  %v510_v9 = vadd.f32 %v502_v58, %v351_v56  ;;  %v675_v7 = vrot.slane %v673_v61, 5  ;;  %v755_v10 = vunpack.c.l.bf16 %v1383_v46 }
  0x3f   : > { %v581_v6 = vadd.f32 %v573_v29, %v545_v60  ;;  %v662_v4 = vsel %vm1732_vm2, %v657_v0, %v661_v51  ;;  %v670_v12 = vor.u32 %v669_v2, %v666_v1  ;;  %v766_v13 = vmul.f32 %v1785_v44, %v754_v62  ;;  %v285_v60 = vld [vmem:[%s1680_s12 + $0x60] sm:$0xf]  ;;  %v320_v62 = vld [vmem:[%s1680_s12 + $0x44] sm:$0xf] }
  0x40   : > { %v790_v16 = vunpack.c.l.bf16 %v1870_v11  ;;  %v546_v21 = vadd.f32 %v538_v25, %v510_v9  ;;  %v717_v22 = vunpack.c.l.bf16 %v662_v4  ;;  %v767_v56 = vmul.f32 %v1785_v44, %v755_v10  ;;  %v321_v4 = vld [vmem:[%s1680_s12 + $0x64] sm:$0xf] }
  0x41   : > { %v791_v23 = vunpack.c.l.bf16 %v1876_v15  ;;  %v671_v26 = vrot.slane %v670_v12, 4  ;;  %v879_v24 = vshrl.u32 %v1382_v59, 16  ;;  %v882_v29 = vshll.u32 %v1382_v59, 16 }
  0x42   : > { %v802_v28 = vmul.f32 %v1794_v57, %v790_v16  ;;  %v582_v30 = vadd.f32 %v574_v40, %v546_v21  ;;  %v729_v35 = vmul.f32 %v1771_v33, %v717_v22  ;;  %v888_v34 = vshll.u32 %v1398_v19, 16  ;;  %v356_v21 = vld [vmem:[%s1680_s12 + $0x50] sm:$0x1] }
  0x43   : > { %v803_v31 = vmul.f32 %v1794_v57, %v791_v23  ;;  %v676_v25 = vsel %vm1732_vm2, %v671_v26, %v675_v7  ;;  %v881_v39 = vrot.slane %v879_v24, 4  ;;  %v884_v41 = vrot.slane %v882_v29, 5 }
  0x44   : > { %v893_v36 = vshrl.u32 %v1383_v46, 16  ;;  %v718_v45 = vunpack.c.l.bf16 %v676_v25  ;;  %v737_v37 = vadd.f32 %v729_v35, %v581_v6  ;;  %v890_v48 = vrot.slane %v888_v34, 5  ;;  %v357_v25 = vld [vmem:[%s1680_s12 + $0x70] sm:$0x1] }
  0x45   : > { %v1543_v43 = vpop.eup %1542  ;;  %v896_v40 = vshll.u32 %v1383_v46, 16  ;;  %v885_v51 = vor.u32 %v884_v41, %v881_v39  ;;  %v902_v53 = vshll.u32 %v1399_v32, 16  ;;  %v292_v61 = vunpack.c.l.bf16 %v284_v54 }
  0x46   : > { %v1024_v49 = vadd.f32 1.0, %v1543_v43  ;;  %v895_v52 = vrot.slane %v893_v36, 4  ;;  %v730_v55 = vmul.f32 %v1771_v33, %v718_v45  ;;  %v774_v59 = vadd.f32 %v766_v13, %v737_v37 }
  0x47   : > { %v898_v58 = vrot.slane %v896_v40, 5  ;;  %v886_v1 = vrot.slane %v885_v51, 4  ;;  %v904_v2 = vrot.slane %v902_v53, 5  ;;  %v293_v9 = vunpack.c.l.bf16 %v285_v60  ;;  %v515_v53 = vld [vmem:[%s1680_s12 + $0x48] sm:$0xf] }
  0x48   : > { %v1545_v0 = vpop.eup %1544  ;;  %1546 = vrcp.f32 %v1024_v49  ;;  %v738_v6 = vadd.f32 %v730_v55, %v582_v30  ;;  %v810_v7 = vadd.f32 %v802_v28, %v774_v59  ;;  %v304_v13 = vmul.f32 %v1696_v14, %v292_v61 }
  0x49   : > { %v1025_v46 = vadd.f32 1.0, %v1545_v0  ;;  %v899_v10 = vor.u32 %v898_v58, %v895_v52  ;;  %v891_v12 = vsel %vm1732_vm2, %v886_v1, %v890_v48  ;;  %v305_v16 = vmul.f32 %v1696_v14, %v293_v9  ;;  %v516_v58 = vld [vmem:[%s1680_s12 + $0x68] sm:$0xf] }
  0x4a   : > { %v328_v19 = vunpack.c.l.bf16 %v320_v62  ;;  %v775_v22 = vadd.f32 %v767_v56, %v738_v6  ;;  %v946_v26 = vunpack.c.l.bf16 %v891_v12  ;;  %v329_v24 = vunpack.c.l.bf16 %v321_v4 }
  0x4b   : > { %1548 = vrcp.f32 %v1025_v46  ;;  %v900_v23 = vrot.slane %v899_v10, 4  ;;  %v394_v28 = vshrl.u32 %v284_v54, 16  ;;  %v397_v30 = vshll.u32 %v284_v54, 16 }
  0x4c   : > { %v340_v29 = vmul.f32 %v1705_v17, %v328_v19  ;;  %v811_v35 = vadd.f32 %v803_v31, %v775_v22  ;;  %v958_v34 = vmul.f32 %v1821_v38, %v946_v26  ;;  %v403_v39 = vshll.u32 %v356_v21, 16 }
  0x4d   : > { %v905_v32 = vsel %vm1732_vm2, %v900_v23, %v904_v2  ;;  %v341_v56 = vmul.f32 %v1705_v17, %v329_v24  ;;  %v396_v43 = vrot.slane %v394_v28, 4  ;;  %v399_v37 = vrot.slane %v397_v30, 5  ;;  %v587_v28 = vld [vmem:[%s1680_s12 + $0x58] sm:$0x1] }
  0x4e   : > { %v947_v41 = vunpack.c.l.bf16 %v905_v32  ;;  %v348_v36 = vadd.f32 %v340_v29, %v304_v13  ;;  %v966_v45 = vadd.f32 %v958_v34, %v810_v7  ;;  %v405_v48 = vrot.slane %v403_v39, 5 }
  0x4f   : > { %v408_v40 = vshrl.u32 %v285_v60, 16  ;;  %v349_v49 = vadd.f32 %v341_v56, %v305_v16  ;;  %v411_v51 = vshll.u32 %v285_v60, 16  ;;  %v417_v52 = vshll.u32 %v357_v25, 16 }
  0x50   : > { %v959_v31 = vmul.f32 %v1821_v38, %v947_v41  ;;  %v981_v54 = vmul.f32 %v1833_v3, %v966_v45  ;;  %v400_v55 = vor.u32 %v399_v37, %v396_v43  ;;  %v523_v61 = vunpack.c.l.bf16 %v515_v53 }
  0x51   : > { %v410_v59 = vrot.slane %v408_v40, 4  ;;  %v413_v1 = vrot.slane %v411_v51, 5  ;;  %v419_v2 = vrot.slane %v417_v52, 5  ;;  %v524_v9 = vunpack.c.l.bf16 %v516_v58  ;;  %v1380_v40 = vld [vmem:[%s1680_s12 + $0x60] sm:$0xf] }
  0x52   : > { %v1547_v62 = vpop.eup %1546  ;;  %v967_v0 = vadd.f32 %v959_v31, %v811_v35  ;;  %v1910_v6 = vadd.f32 %v1841_v8, %v981_v54  ;;  %v401_v60 = vrot.slane %v400_v55, 4  ;;  %v535_v7 = vmul.f32 %v1737_v50, %v523_v61  ;;  %v588_v35 = vld [vmem:[%s1680_s12 + $0x78] sm:$0x1]  ;;  %v1388_v31 = vld [vmem:[%s1680_s12 + $0x64] sm:$0xf] }
  0x53   : > { %v1048_v46 = vmul.f32 %v1547_v62, %v1851_v27  ;;  %v414_v4 = vor.u32 %v413_v1, %v410_v59  ;;  %v536_v12 = vmul.f32 %v1737_v50, %v524_v9  ;;  %v559_v13 = vunpack.c.l.bf16 %v1803_v5  ;;  %v1389_v59 = vld [vmem:[%s1680_s12 + $0x84] sm:$0xf] }
  0x54   : > { %v982_v10 = vmul.f32 %v1833_v3, %v967_v0  ;;  %v1409_v19 = vmul.f32 -1.442695, %v1910_v6  ;;  %v406_v27 = vsel %vm1732_vm2, %v401_v60, %v405_v48  ;;  %v560_v21 = vunpack.c.l.bf16 %v1810_v20  ;;  %v1381_v0 = vld [vmem:[%s1680_s12 + $0x80] sm:$0xf] }
  0x55   : > { %v1549_v16 = vpop.eup %1548  ;;  %v622_v22 = vshrl.u32 %v515_v53, 16  ;;  %v415_v24 = vrot.slane %v414_v4, 4  ;;  %v487_v29 = vunpack.c.l.bf16 %v406_v27  ;;  %v571_v5 = vmul.f32 %v1748_v63, %v559_v13  ;;  %v1396_v13 = vld [vmem:[%s1680_s12 + $0x70] sm:$0x1] }
  0x56   : > { %v1049_v23 = vmul.f32 %v1549_v16, %v1860_v42  ;;  %v1922_v26 = vadd.f32 %v1841_v8, %v982_v10  ;;  %1550 = vpow2.f32 %v1409_v19  ;;  %v572_v30 = vmul.f32 %v1748_v63, %v560_v21 }
  0x57   : > { %v624_v32 = vrot.slane %v622_v22, 4  ;;  %v420_v42 = vsel %vm1732_vm2, %v415_v24, %v419_v2  ;;  %v499_v25 = vmul.f32 %v1708_v18, %v487_v29  ;;  %v625_v41 = vshll.u32 %v515_v53, 16 }
  0x58   : > { %v1056_v34 = vpack.c.bf16 %v1049_v23, %v1048_v46  ;;  %v1410_v20 = vmul.f32 -1.442695, %v1922_v26  ;;  %v488_v39 = vunpack.c.l.bf16 %v420_v42  ;;  %v631_v56 = vshll.u32 %v587_v28, 16 }
  0x59   : > { %v636_v43 = vshrl.u32 %v516_v58, 16  ;;  %v507_v45 = vadd.f32 %v499_v25, %v348_v36  ;;  %v639_v37 = vshll.u32 %v516_v58, 16  ;;  %v645_v48 = vshll.u32 %v588_v35, 16 }
  0x5a   : > { %1501 = vmatprep.mubr.bf16.mxu0 %v1056_v34  ;;  %1552 = vpow2.f32 %v1410_v20  ;;  %v500_v51 = vmul.f32 %v1708_v18, %v488_v39  ;;  %v627_v52 = vrot.slane %v625_v41, 5  ;;  %v633_v54 = vrot.slane %v631_v56, 5 }
  0x5b   : > { %v638_v55 = vrot.slane %v636_v43, 4  ;;  %v543_v61 = vadd.f32 %v535_v7, %v507_v45  ;;  %v641_v62 = vrot.slane %v639_v37, 5  ;;  %v647_v53 = vrot.slane %v645_v48, 5  ;;  %v288_v48 = vld [vmem:[%s1680_s12 + $0xc0] sm:$0xf] }
  0x5c   : > { %v752_v1 = vunpack.c.l.bf16 %v1380_v40  ;;  %v508_v2 = vadd.f32 %v500_v51, %v349_v49  ;;  %v628_v9 = vor.u32 %v627_v52, %v624_v32  ;;  %v753_v46 = vunpack.c.l.bf16 %v1381_v0  ;;  %v289_v52 = vld [vmem:[%s1680_s12 + $0xe0] sm:$0xf] }
  0x5d   : > { %v788_v36 = vunpack.c.l.bf16 %v1388_v31  ;;  %v579_v58 = vadd.f32 %v571_v5, %v543_v61  ;;  %v642_v60 = vor.u32 %v641_v62, %v638_v55  ;;  %v789_v4 = vunpack.c.l.bf16 %v1389_v59  ;;  %v1397_v5 = vld [vmem:[%s1680_s12 + $0x90] sm:$0x1]  ;;  %v324_v55 = vld [vmem:[%s1680_s12 + $0xc4] sm:$0xf] }
  0x5e   : > { %v764_v10 = vmul.f32 %v1785_v44, %v752_v1  ;;  %v544_v16 = vadd.f32 %v536_v12, %v508_v2  ;;  %v629_v19 = vrot.slane %v628_v9, 4  ;;  %v765_v27 = vmul.f32 %v1785_v44, %v753_v46  ;;  %v325_v1 = vld [vmem:[%s1680_s12 + $0xe4] sm:$0xf] }
  0x5f   : > { %v800_v7 = vmul.f32 %v1794_v57, %v788_v36  ;;  %v643_v21 = vrot.slane %v642_v60, 4  ;;  %v801_v22 = vmul.f32 %v1794_v57, %v789_v4  ;;  %v851_v49 = vshrl.u32 %v1380_v40, 16 }
  0x60   : > { %v854_v23 = vshll.u32 %v1380_v40, 16  ;;  %v1551_v24 = vpop.eup %1550  ;;  %v580_v29 = vadd.f32 %v572_v30, %v544_v16  ;;  %v634_v28 = vsel %vm1732_vm2, %v629_v19, %v633_v54  ;;  %v860_v35 = vshll.u32 %v1396_v13, 16  ;;  %v360_v19 = vld [vmem:[%s1680_s12 + $0xd0] sm:$0x1] }
  0x61   : > { %v865_v32 = vshrl.u32 %v1381_v0, 16  ;;  %v1028_v12 = vadd.f32 1.0, %v1551_v24  ;;  %v648_v34 = vsel %vm1732_vm2, %v643_v21, %v647_v53  ;;  %v715_v20 = vunpack.c.l.bf16 %v634_v28 }
  0x62   : > { %v853_v42 = vrot.slane %v851_v49, 4  ;;  %v716_v25 = vunpack.c.l.bf16 %v648_v34  ;;  %v856_v39 = vrot.slane %v854_v23, 5  ;;  %v862_v41 = vrot.slane %v860_v35, 5 }
  0x63   : > { %v867_v56 = vrot.slane %v865_v32, 4  ;;  %1554 = vrcp.f32 %v1028_v12  ;;  %v727_v43 = vmul.f32 %v1771_v33, %v715_v20  ;;  %v868_v45 = vshll.u32 %v1381_v0, 16 }
  0x64   : > { %v1553_v30 = vpop.eup %1552  ;;  %v874_v37 = vshll.u32 %v1397_v5, 16  ;;  %v728_v31 = vmul.f32 %v1771_v33, %v716_v25  ;;  %v857_v51 = vor.u32 %v856_v39, %v853_v42  ;;  %v296_v54 = vunpack.c.l.bf16 %v288_v48  ;;  %v361_v5 = vld [vmem:[%s1680_s12 + $0xf0] sm:$0x1] }
  0x65   : > { %v1029_v40 = vadd.f32 1.0, %v1553_v30  ;;  %v735_v59 = vadd.f32 %v727_v43, %v579_v58  ;;  %v870_v61 = vrot.slane %v868_v45, 5  ;;  %v297_v53 = vunpack.c.l.bf16 %v289_v52 }
  0x66   : > { %v876_v62 = vrot.slane %v874_v37, 5  ;;  %v736_v2 = vadd.f32 %v728_v31, %v580_v29  ;;  %v858_v9 = vrot.slane %v857_v51, 4  ;;  %v308_v0 = vmul.f32 %v1696_v14, %v296_v54  ;;  %v519_v37 = vld [vmem:[%s1680_s12 + $0xc8] sm:$0xf] }
  0x67   : > { %1556 = vrcp.f32 %v1029_v40  ;;  %v772_v46 = vadd.f32 %v764_v10, %v735_v59  ;;  %v871_v36 = vor.u32 %v870_v61, %v867_v56  ;;  %v309_v60 = vmul.f32 %v1696_v14, %v297_v53  ;;  %v520_v51 = vld [vmem:[%s1680_s12 + $0xe8] sm:$0xf] }
  0x68   : > { %v332_v4 = vunpack.c.l.bf16 %v324_v55  ;;  %v773_v13 = vadd.f32 %v765_v27, %v736_v2  ;;  %v863_v58 = vsel %vm1732_vm2, %v858_v9, %v862_v41  ;;  %v333_v16 = vunpack.c.l.bf16 %v325_v1 }
  0x69   : > { %v450_v21 = vshrl.u32 %v288_v48, 16  ;;  %v808_v49 = vadd.f32 %v800_v7, %v772_v46  ;;  %v872_v23 = vrot.slane %v871_v36, 4  ;;  %v944_v24 = vunpack.c.l.bf16 %v863_v58 }
  0x6a   : > { %v344_v29 = vmul.f32 %v1705_v17, %v332_v4  ;;  %v345_v28 = vmul.f32 %v1705_v17, %v333_v16  ;;  %v453_v35 = vshll.u32 %v288_v48, 16  ;;  %v809_v32 = vadd.f32 %v801_v22, %v773_v13  ;;  %v591_v13 = vld [vmem:[%s1680_s12 + $0xd8] sm:$0x1] }
  0x6b   : > { %v452_v10 = vrot.slane %v450_v21, 4  ;;  %v877_v14 = vsel %vm1732_vm2, %v872_v23, %v876_v62  ;;  %v956_v27 = vmul.f32 %v1821_v38, %v944_v24  ;;  %v459_v12 = vshll.u32 %v360_v19, 16  ;;  %v592_v23 = vld [vmem:[%s1680_s12 + $0xf8] sm:$0x1] }
  0x6c   : > { %v945_v34 = vunpack.c.l.bf16 %v877_v14  ;;  %v352_v20 = vadd.f32 %v344_v29, %v308_v0  ;;  %v455_v7 = vrot.slane %v453_v35, 5  ;;  %v464_v42 = vshrl.u32 %v289_v52, 16 }
  0x6d   : > { %v1555_v25 = vpop.eup %1554  ;;  %v964_v39 = vadd.f32 %v956_v27, %v808_v49  ;;  %v353_v41 = vadd.f32 %v345_v28, %v309_v60  ;;  %v467_v17 = vshll.u32 %v289_v52, 16  ;;  %v473_v56 = vshll.u32 %v361_v5, 16 }
  0x6e   : > { %v957_v30 = vmul.f32 %v1821_v38, %v945_v34  ;;  %v456_v22 = vor.u32 %v455_v7, %v452_v10  ;;  %v461_v43 = vrot.slane %v459_v12, 5  ;;  %v466_v45 = vrot.slane %v464_v42, 4  ;;  %v1384_v7 = vld [vmem:[%s1680_s12 + $0xe0] sm:$0xf] }
  0x6f   : > { %v1052_v48 = vmul.f32 %v1555_v25, %v1910_v6  ;;  %v979_v40 = vmul.f32 %v1833_v3, %v964_v39  ;;  %v469_v31 = vrot.slane %v467_v17, 5  ;;  %v527_v54 = vunpack.c.l.bf16 %v519_v37 }
  0x70   : > { %v965_v59 = vadd.f32 %v957_v30, %v809_v32  ;;  %v457_v61 = vrot.slane %v456_v22, 4  ;;  %v528_v62 = vunpack.c.l.bf16 %v520_v51  ;;  %v563_v52 = vunpack.c.h.bf16 %v1870_v11  ;;  %v1392_v30 = vld [vmem:[%s1680_s12 + $0xe4] sm:$0xf] }
  0x71   : > { %v1557_v55 = vpop.eup %1556  ;;  %v1972_v1 = vadd.f32 %v1841_v8, %v979_v40  ;;  %v470_v2 = vor.u32 %v469_v31, %v466_v45  ;;  %v475_v9 = vrot.slane %v473_v56, 5  ;;  %v539_v46 = vmul.f32 %v1737_v50, %v527_v54  ;;  %v1385_v56 = vld [vmem:[%s1680_s12 + $0x100] sm:$0xf]  ;;  %v1393_v40 = vld [vmem:[%s1680_s12 + $0x104] sm:$0xf] }
  0x72   : > { %v1053_v53 = vmul.f32 %v1557_v55, %v1922_v26  ;;  %v980_v6 = vmul.f32 %v1833_v3, %v965_v59  ;;  %v462_v0 = vsel %vm1732_vm2, %v457_v61, %v461_v43  ;;  %v540_v36 = vmul.f32 %v1737_v50, %v528_v62  ;;  %v1400_v59 = vld [vmem:[%s1680_s12 + $0xf0] sm:$0x1] }
  0x73   : > { %v1407_v11 = vmul.f32 -1.442695, %v1972_v1  ;;  %v471_v4 = vrot.slane %v470_v2, 4  ;;  %v491_v26 = vunpack.c.l.bf16 %v462_v0  ;;  %v564_v16 = vunpack.c.h.bf16 %v1876_v15 }
  0x74   : > { %v1058_v60 = vpack.c.bf16 %v1053_v53, %v1052_v48  ;;  %v1982_v58 = vadd.f32 %v1841_v8, %v980_v6  ;;  %v575_v19 = vmul.f32 %v1748_v63, %v563_v52  ;;  %v678_v21 = vshrl.u32 %v519_v37, 16 }
  0x75   : > { %1558 = vpow2.f32 %v1407_v11  ;;  %v476_v49 = vsel %vm1732_vm2, %v471_v4, %v475_v9  ;;  %v503_v50 = vmul.f32 %v1708_v18, %v491_v26  ;;  %v681_v24 = vshll.u32 %v519_v37, 16  ;;  %v1401_v9 = vld [vmem:[%s1680_s12 + $0x110] sm:$0x1] }
  0x76   : > { %1505 = vmatprep.mubr.bf16.mxu1 %v1058_v60  ;;  %v1408_v29 = vmul.f32 -1.442695, %v1982_v58  ;;  %v492_v28 = vunpack.c.l.bf16 %v476_v49  ;;  %v680_v5 = vrot.slane %v678_v21, 4  ;;  %v687_v15 = vshll.u32 %v591_v13, 16 }
  0x77   : > { %v511_v10 = vadd.f32 %v503_v50, %v352_v20  ;;  %v683_v35 = vrot.slane %v681_v24, 5  ;;  %v692_v32 = vshrl.u32 %v520_v51, 16  ;;  %v695_v14 = vshll.u32 %v520_v51, 16 }
  0x78   : > { %1560 = vpow2.f32 %v1408_v29  ;;  %v504_v27 = vmul.f32 %v1708_v18, %v492_v28  ;;  %v689_v12 = vrot.slane %v687_v15, 5  ;;  %v701_v34 = vshll.u32 %v592_v23, 16 }
  0x79   : > { %v547_v42 = vadd.f32 %v539_v46, %v511_v10  ;;  %v684_v25 = vor.u32 %v683_v35, %v680_v5  ;;  %v694_v39 = vrot.slane %v692_v32, 4  ;;  %v697_v17 = vrot.slane %v695_v14, 5 }
  0x7a   : > { %v512_v22 = vadd.f32 %v504_v27, %v353_v41  ;;  %v576_v20 = vmul.f32 %v1748_v63, %v564_v16  ;;  %v756_v43 = vunpack.c.l.bf16 %v1384_v7  ;;  %v757_v45 = vunpack.c.l.bf16 %v1385_v56 }
  0x7b   : > { %v685_v37 = vrot.slane %v684_v25, 4  ;;  %v698_v48 = vor.u32 %v697_v17, %v694_v39  ;;  %v703_v18 = vrot.slane %v701_v34, 5  ;;  %v583_v51 = vadd.f32 %v575_v19, %v547_v42 }
  0x7c   : > { %v548_v31 = vadd.f32 %v540_v36, %v512_v22  ;;  %v768_v54 = vmul.f32 %v1785_v44, %v756_v43  ;;  %v792_v55 = vunpack.c.l.bf16 %v1392_v30  ;;  %v769_v41 = vmul.f32 %v1785_v44, %v757_v45 }
  0x7d   : > { %v690_v61 = vsel %vm1732_vm2, %v685_v37, %v689_v12  ;;  %v699_v62 = vrot.slane %v698_v48, 4  ;;  %v907_v63 = vshrl.u32 %v1384_v7, 16  ;;  %v793_v2 = vunpack.c.l.bf16 %v1393_v40 }
  0x7e   : > { %v584_v52 = vadd.f32 %v576_v20, %v548_v31  ;;  %v719_v53 = vunpack.c.l.bf16 %v690_v61  ;;  %v910_v6 = vshll.u32 %v1384_v7, 16  ;;  %v916_v60 = vshll.u32 %v1400_v59, 16 }
  0x7f   : > { %v1559_v0 = vpop.eup %1558  ;;  %v704_v46 = vsel %vm1732_vm2, %v699_v62, %v703_v18  ;;  %v909_v36 = vrot.slane %v907_v63, 4  ;;  %v921_v11 = vshrl.u32 %v1385_v56, 16  ;;  %v924_v21 = vshll.u32 %v1385_v56, 16 }
  0x80   : > { %v1026_v4 = vadd.f32 1.0, %v1559_v0  ;;  %v720_v26 = vunpack.c.l.bf16 %v704_v46  ;;  %v731_v13 = vmul.f32 %v1771_v33, %v719_v53  ;;  %v912_v16 = vrot.slane %v910_v6, 5  ;;  %v1422_v53 = vld [vmem:[%s2046_s6] ss:$0 sm:$0xff] }
  0x81   : > { %v918_v19 = vrot.slane %v916_v60, 5  ;;  %v923_v44 = vrot.slane %v921_v11, 4  ;;  %v930_v49 = vshll.u32 %v1401_v9, 16  ;;  %v804_v5 = vmul.f32 %v1794_v57, %v792_v55 }
  0x82   : > { %v1561_v50 = vpop.eup %1560  ;;  %1562 = vrcp.f32 %v1026_v4  ;;  %v732_v23 = vmul.f32 %v1771_v33, %v720_v26  ;;  %v739_v24 = vadd.f32 %v731_v13, %v583_v51  ;;  %v913_v29 = vor.u32 %v912_v16, %v909_v36 }
  0x83   : > { %v1027_v28 = vadd.f32 1.0, %v1561_v50  ;;  %v926_v15 = vrot.slane %v924_v21, 5  ;;  %v932_v27 = vrot.slane %v930_v49, 5  ;;  %v805_v34 = vmul.f32 %v1794_v57, %v793_v2 }
  0x84   : > { %v740_v10 = vadd.f32 %v732_v23, %v584_v52  ;;  %v776_v35 = vadd.f32 %v768_v54, %v739_v24  ;;  %v914_v32 = vrot.slane %v913_v29, 4 }
  0x85   : > { %1564 = vrcp.f32 %v1027_v28  ;;  %v927_v14 = vor.u32 %v926_v15, %v923_v44 }
  0x86   : > { %v777_v12 = vadd.f32 %v769_v41, %v740_v10  ;;  %v919_v7 = vsel %vm1732_vm2, %v914_v32, %v918_v19  ;;  %v812_v42 = vadd.f32 %v804_v5, %v776_v35 }
  0x87   : > { %v928_v33 = vrot.slane %v927_v14, 4  ;;  %v948_v25 = vunpack.c.l.bf16 %v919_v7 }
  0x88   : > { %v813_v56 = vadd.f32 %v805_v34, %v777_v12 }
  0x89   : > { %v933_v39 = vsel %vm1732_vm2, %v928_v33, %v932_v27  ;;  %v960_v17 = vmul.f32 %v1821_v38, %v948_v25 }
  0x8a   : > { %v949_v30 = vunpack.c.l.bf16 %v933_v39 }
  0x8b   : > { %v968_v22 = vadd.f32 %v960_v17, %v812_v42 }
  0x8c   : > { %v1563_v20 = vpop.eup %1562  ;;  %v961_v43 = vmul.f32 %v1821_v38, %v949_v30 }
  0x8d   : > { %v983_v45 = vmul.f32 %v1833_v3, %v968_v22  ;;  %v1050_v57 = vmul.f32 %v1563_v20, %v1972_v1 }
  0x8e   : > { %v969_v37 = vadd.f32 %v961_v43, %v813_v56 }
  0x8f   : > { %v1565_v48 = vpop.eup %1564  ;;  %v998_v18 = vadd.f32 %v1841_v8, %v983_v45 }
  0x90   : > { %v1051_v40 = vmul.f32 %v1565_v48, %v1982_v58  ;;  %v984_v47 = vmul.f32 %v1833_v3, %v969_v37  ;;  %v1421_v3 = vld [vmem:[%s2045_s5] ss:$0 sm:$0xff] }
  0x91   : > { %v1411_v31 = vmul.f32 -1.442695, %v998_v18 }
  0x92   : > { %v1057_v51 = vpack.c.bf16 %v1051_v40, %v1050_v57  ;;  %v999_v54 = vadd.f32 %v1841_v8, %v984_v47 }
  0x93   : > { %1566 = vpow2.f32 %v1411_v31 }
  0x94   : > { %1502 = vmatmul.mubr.bf16.vlgmr.msra.gmra.mrb[0].mxu0 %v1057_v51  ;;  %v1412_v55 = vmul.f32 -1.442695, %v999_v54 }
  0x96   : > { %1568 = vpow2.f32 %v1412_v55 }
  0x9d   : > { %v1567_v38 = vpop.eup %1566 }
  0x9e   : > { %v1030_v59 = vadd.f32 1.0, %v1567_v38 }
  0xa0   : > { %v1569_v61 = vpop.eup %1568  ;;  %1570 = vrcp.f32 %v1030_v59 }
  0xa1   : > { %v1031_v1 = vadd.f32 1.0, %v1569_v61 }
  0xa3   : > { %1572 = vrcp.f32 %v1031_v1 }
  0xaa   : > { %v1571_v62 = vpop.eup %1570 }
  0xab   : > { %v1054_v41 = vmul.f32 %v1571_v62, %v998_v18 }
  0xad   : > { %v1573_v63 = vpop.eup %1572 }
  0xae   : > { %v1055_v58 = vmul.f32 %v1573_v63, %v999_v54 }
  0xb0   : > { %v1059_v52 = vpack.c.bf16 %v1055_v58, %v1054_v41 }
  0xb2   : > { %1506 = vmatmul.mubr.bf16.vlgmr.msra.gmra.mrb[0].mxu1 %v1059_v52 }
 0x167   : > { %v1503_v8 = vpop.f32.mrb[0].mxu0 }
 0x168   : > { %v1198_v2 = vmul.f32 %v1503_v8, %v1421_v3  ;;  %v1158_v9 = vpop.f32.mrb[1].mxu0 }
 0x169   : > { %v1196_v6 = vmul.f32 %v1421_v3, %v1158_v9  ;;  %v1504_v0 = vpop.f32.mrb[2].mxu0 }
 0x16a   : > { %v1213_v46 = vadd.f32 %v1422_v53, %v1198_v2  ;;  %v1199_v36 = vmul.f32 %v1504_v0, %v1421_v3  ;;  %v1161_v60 = vpop.f32.mrb[3].mxu0 }
 0x16b   : > { %v1211_v11 = vadd.f32 %v1422_v53, %v1196_v6  ;;  %v1197_v4 = vmul.f32 %v1421_v3, %v1161_v60 }
 0x16c   : > { %v1425_v26 = vmul.f32 -1.442695, %v1213_v46  ;;  %v1214_v13 = vadd.f32 %v1422_v53, %v1199_v36 }
 0x16d   : > { %v1423_v16 = vmul.f32 -1.442695, %v1211_v11  ;;  %v1212_v19 = vadd.f32 %v1422_v53, %v1197_v4 }
 0x16e   : > { %1574 = vpow2.f32 %v1425_v26  ;;  %v1426_v44 = vmul.f32 -1.442695, %v1214_v13 }
 0x16f   : > { %1576 = vpow2.f32 %v1423_v16  ;;  %v1424_v21 = vmul.f32 -1.442695, %v1212_v19 }
 0x170   : > { %1578 = vpow2.f32 %v1426_v44 }
 0x171   : > { %1580 = vpow2.f32 %v1424_v21 }
 0x178   : > { %v1575_v49 = vpop.eup %1574 }
 0x179   : > { %v1577_v50 = vpop.eup %1576  ;;  %v1245_v23 = vadd.f32 1.0, %v1575_v49 }
 0x17a   : > { %v1579_v24 = vpop.eup %1578  ;;  %v1243_v29 = vadd.f32 1.0, %v1577_v50 }
 0x17b   : > { %v1581_v28 = vpop.eup %1580  ;;  %1582 = vrcp.f32 %v1245_v23  ;;  %v1246_v5 = vadd.f32 1.0, %v1579_v24 }
 0x17c   : > { %1584 = vrcp.f32 %v1243_v29  ;;  %v1244_v15 = vadd.f32 1.0, %v1581_v28 }
 0x17d   : > { %1586 = vrcp.f32 %v1246_v5 }
 0x17e   : > { %1588 = vrcp.f32 %v1244_v15 }
 0x185   : > { %v1583_v10 = vpop.eup %1582  ;;  %v1507_v35 = vpop.f32.mrb[0].mxu1 }
 0x186   : > { %v1585_v32 = vpop.eup %1584  ;;  %v1202_v14 = vmul.f32 %v1507_v35, %v1421_v3  ;;  %v1174_v27 = vpop.f32.mrb[1].mxu1  ;;  %v1269_v33 = vmul.f32 %v1583_v10, %v1213_v46 }
 0x187   : > { %v1587_v12 = vpop.eup %1586  ;;  %v1200_v34 = vmul.f32 %v1421_v3, %v1174_v27  ;;  %v1508_v7 = vpop.f32.mrb[2].mxu1  ;;  %v1267_v30 = vmul.f32 %v1585_v32, %v1211_v11 }
 0x188   : > { %v1589_v42 = vpop.eup %1588  ;;  %v1217_v25 = vadd.f32 %v1422_v53, %v1202_v14  ;;  %v1270_v39 = vmul.f32 %v1587_v12, %v1214_v13  ;;  %v1203_v17 = vmul.f32 %v1508_v7, %v1421_v3  ;;  %v1177_v56 = vpop.f32.mrb[3].mxu1 }
 0x189   : > { %v1215_v22 = vadd.f32 %v1422_v53, %v1200_v34  ;;  %v1268_v20 = vmul.f32 %v1589_v42, %v1212_v19  ;;  %v1201_v43 = vmul.f32 %v1421_v3, %v1177_v56 }
 0x18a   : > { %v1429_v45 = vmul.f32 -1.442695, %v1217_v25  ;;  %v1458_v57 = vpack.c.bf16 %v1270_v39, %v1269_v33  ;;  %v1218_v37 = vadd.f32 %v1422_v53, %v1203_v17 }
 0x18b   : > { %v1427_v48 = vmul.f32 -1.442695, %v1215_v22  ;;  %v1453_v18 = vpack.c.bf16 %v1268_v20, %v1267_v30  ;;  %v1216_v40 = vadd.f32 %v1422_v53, %v1201_v43 }
 0x18c   : > { %1590 = vpow2.f32 %v1429_v45  ;;  %1470 = vst [vmem:[%s2031_s17 + $0x8] sm:$0xff] %v1458_v57   ;;  %v1430_v47 = vmul.f32 -1.442695, %v1218_v37 }
 0x18d   : > { %1592 = vpow2.f32 %v1427_v48  ;;  %1454 = vst [vmem:[%s2031_s17] sm:$0xff] %v1453_v18   ;;  %v1428_v31 = vmul.f32 -1.442695, %v1216_v40 }
 0x18e   : > { %1594 = vpow2.f32 %v1430_v47 }
 0x18f   : > { %1596 = vpow2.f32 %v1428_v31 }
 0x196   : > { %v1591_v51 = vpop.eup %1590 }
 0x197   : > { %v1593_v54 = vpop.eup %1592  ;;  %v1249_v55 = vadd.f32 1.0, %v1591_v51 }
 0x198   : > { %v1595_v38 = vpop.eup %1594  ;;  %v1247_v59 = vadd.f32 1.0, %v1593_v54 }
 0x199   : > { %v1597_v61 = vpop.eup %1596  ;;  %1598 = vrcp.f32 %v1249_v55  ;;  %v1250_v1 = vadd.f32 1.0, %v1595_v38 }
 0x19a   : > { %1600 = vrcp.f32 %v1247_v59  ;;  %v1248_v62 = vadd.f32 1.0, %v1597_v61 }
 0x19b   : > { %1602 = vrcp.f32 %v1250_v1 }
 0x19c   : > { %1604 = vrcp.f32 %v1248_v62 }
 0x1a3   : > { %v1599_v41 = vpop.eup %1598 }
 0x1a4   : > { %v1601_v63 = vpop.eup %1600  ;;  %v1273_v3 = vmul.f32 %v1599_v41, %v1217_v25 }
 0x1a5   : > { %v1603_v58 = vpop.eup %1602  ;;  %v1271_v53 = vmul.f32 %v1601_v63, %v1215_v22 }
 0x1a6   : > { %v1605_v52 = vpop.eup %1604  ;;  %v1274_v8 = vmul.f32 %v1603_v58, %v1218_v37 }
 0x1a7   : > { %v1272_v2 = vmul.f32 %v1605_v52, %v1216_v40 }
 0x1a8   : > { %v1468_v9 = vpack.c.bf16 %v1274_v8, %v1273_v3 }
 0x1a9   : > { %v1463_v6 = vpack.c.bf16 %v1272_v2, %v1271_v53 }
 0x1aa   : > { %1472 = vst [vmem:[%s2031_s17 + $0x18] sm:$0xff] %v1468_v9  }
 0x1ab   : > { %1471 = vst [vmem:[%s2031_s17 + $0x10] sm:$0xff] %v1463_v6  }
 0x1ac PF: > { %s17_s24 = sadd.s32 1, %s1612_s24  }
 0x1ad   : > { %p14_p4 = scmp.ge.s32.totalorder %s17_s24, 4  }
 0x1af   :  { %16 = sbr.rel (!%p14_p4) target bundleno = 1 (0x1), region = 79 }

// kernel: encoder_forward.7
= control target key start
LH: loop header
LB: loop body
LE: loop exit
PB: predicated region body
PF: predicated region fallthrough
CT: control target
= control target key end

     0   :  { %s5107_s24 = smov 0   ;;  %s6630_s0 = inlined_call_operand.vmem [shape: bf16[2,18,18,128], index: 0, kind: input, shape index: {}]   ;;  %s6631_s1 = inlined_call_operand.vmem [shape: f32[9,128], index: 1, kind: input, shape index: {}]   ;;  %s6632_s2 = inlined_call_operand.vmem [shape: f32[1,128], index: 2, kind: input, shape index: {}]   ;;  %s6633_s3 = inlined_call_operand.vmem [shape: f32[1,128], index: 3, kind: input, shape index: {}]   ;;  %s6634_s4 = inlined_call_operand.vmem [shape: bf16[128,128], index: 4, kind: input, shape index: {}]   ;;  %s6635_s5 = inlined_call_operand.vmem [shape: f32[1,128], index: 5, kind: input, shape index: {}]   ;;  %s6636_s6 = inlined_call_operand.vmem [shape: f32[1,128], index: 6, kind: input, shape index: {}]   ;;  %s6637_s7 = inlined_call_operand.vmem [shape: bf16[2,256,128], index: 7, kind: output, shape index: {}]  }
   0x1 LB: > { %s4266_s25 = sadd.s32 4294967295, %s5065_s24   ;;  %p4270_p0 = scmp.ge.s32.totalorder %s5065_s24, 1  ;;  %s5065_s24 = sphi %s5107_s24, %s17_s24  }
   0x2   : > { %p237_p1 = scmp.lt.s32.totalorder %s5065_s24, 3 }
   0x4   : > { %p238_p2 = pnand %p4270_p0, %p237_p1 }
   0x5   : > { %v4786_v0 = vld [vmem:[%s6634_s4] sm:$0xff] (!%p238_p2)   ;;  %p269_p3 = scmp.lt.s32.totalorder (!%p238_p2), %s4266_s25, 1  ;;  %v346_v1 = vlaneseq (!%p238_p2)  ;;  %v4787_v2 = vld [vmem:[%s6634_s4 + $0x8] sm:$0xff] (!%p238_p2)   ;;  %v4788_v4 = vld [vmem:[%s6634_s4 + $0x10] sm:$0xff] (!%p238_p2)   ;;  %vm1013_vm0 = vcmask (!%p238_p2), 1042432   ;;  %vm1014_vm1 = vcmask (!%p238_p2), 1046532  }
   0x6   : > { %241 = sbr.rel (%p238_p2) target bundleno = 839 (0x347), region = 48  ;;  %4713 = vmatprep.subr.bf16.mxu0 (!%p238_p2), %v4786_v0  ;;  %4761 = vmatprep.subr.bf16.mxu1 (!%p238_p2), %v4786_v0  ;;  %v4789_v7 = vld [vmem:[%s6634_s4 + $0x18] sm:$0xff] (!%p238_p2)   ;;  %v5142_v8 = vld [vmem:[%s6631_s1] sm:$0xff] (!%p238_p2)  ;;  %vm430_vm2 = vsmask.f32 (!%p238_p2), 3328  ;;  %vm5166_vm4 = vmor (!%p238_p2), %vm1013_vm0, %vm1014_vm1 }
   0x7   : > { %4714 = vmatpush3.bf16.msra.mxu0 (!%p238_p2), %v4786_v0  ;;  %4769 = vmatpush3.bf16.msra.mxu1 (!%p238_p2), %v4786_v0  ;;  %v5123_v3 = vshrl.u32 (!%p238_p2), %v346_v1, 7  ;;  %vm431_vm3 = vsmask.f32 (!%p238_p2), 7440  ;;  %v4790_v24 = vld [vmem:[%s6634_s4 + $0x20] sm:$0xff] (!%p238_p2)   ;;  %v4791_v45 = vld [vmem:[%s6634_s4 + $0x28] sm:$0xff] (!%p238_p2)   ;;  %v4792_v0 = vld [vmem:[%s6634_s4 + $0x30] sm:$0xff] (!%p238_p2)  }
   0x8   : > { %4715 = vmatprep.subr.bf16.mxu0 (!%p238_p2), %v4787_v2  ;;  %4762 = vmatprep.subr.bf16.mxu1 (!%p238_p2), %v4787_v2  ;;  %vm5179_vm5 = vmor (!%p238_p2), %vm430_vm2, %vm431_vm3 }
   0x9   : > { %v348_v5 = vsub.s32 (!%p238_p2), 0, %v5123_v3  ;;  %v883_v6 = vsub.s32 (!%p238_p2), 1, %v5123_v3  ;;  %v1194_v10 = vsub.s32 (!%p238_p2), 2, %v5123_v3  ;;  %v1327_v48 = vsub.s32 (!%p238_p2), 3, %v5123_v3 }
   0xb   : > { %4716 = vmatpush3.bf16.msra.mxu0 (!%p238_p2), %v4787_v2  ;;  %4770 = vmatpush3.bf16.msra.mxu1 (!%p238_p2), %v4787_v2  ;;  %v5148_v13 = vrot.slane (!%p238_p2), %v5142_v8, %v348_v5  ;;  %v5152_v15 = vrot.slane (!%p238_p2), %v5142_v8, %v883_v6  ;;  %v5172_v37 = vrot.slane (!%p238_p2), %v5142_v8, %v1194_v10 }
   0xc   : > { %4717 = vmatprep.subr.bf16.mxu0 (!%p238_p2), %v4788_v4  ;;  %4763 = vmatprep.subr.bf16.mxu1 (!%p238_p2), %v4788_v4  ;;  %v5197_v57 = vrot.slane (!%p238_p2), %v5142_v8, %v1327_v48 }
   0xd   : > { %s6643_s25 = smov (!%p269_p3, %s4266_s25), 1 }
   0xe   : > { %s4777_s9 = smul.u32 216, %s6643_s25  ;;  %s4561_s11 = sshll.u32 %s6643_s25, 7 }
   0xf   : > { %4718 = vmatpush3.bf16.msra.mxu0 %v4788_v4  ;;  %4771 = vmatpush3.bf16.msra.mxu1 %v4788_v4  ;;  %s6561_s15 = scalar_lea.vmem %s6637_s7, %s4561_s11 }
  0x10   : > { %s5133_s12 = scalar_lea.vmem %s6630_s0, %s4777_s9  ;;  %4719 = vmatprep.subr.bf16.mxu0 %v4789_v7  ;;  %4764 = vmatprep.subr.bf16.mxu1 %v4789_v7 }
  0x11   : > { %v282_v9 = vld [vmem:[%s5133_s12] sm:$0xf]  ;;  %v283_v11 = vld [vmem:[%s5133_s12 + $0x4] sm:$0xf]  ;;  %v414_v14 = vld [vmem:[%s5133_s12 + $0x8] sm:$0x1] }
  0x12   : > { %v314_v12 = vunpack.c.l.bf16 %v282_v9  ;;  %v315_v16 = vunpack.c.l.bf16 %v283_v11  ;;  %v434_v17 = vshrl.u32 %v282_v9, 16  ;;  %v437_v18 = vshll.u32 %v282_v9, 16  ;;  %v949_v19 = vld [vmem:[%s5133_s12] sm:$0xe]  ;;  %v4290_v34 = vld [vmem:[%s5133_s12 + $0xc] sm:$0xf] }
  0x13   : > { %v443_v21 = vshll.u32 %v283_v11, 16  ;;  %v447_v22 = vshrl.u32 %v283_v11, 16  ;;  %v453_v23 = vshll.u32 %v414_v14, 16  ;;  %v4274_v29 = vrot.slane %v949_v19, 9  ;;  %v5175_v38 = vld [vmem:[%s5133_s12 + $0x10] sm:$0xf]  ;;  %4720 = vmatpush3.bf16.msra.mxu0 %v4789_v7  ;;  %4772 = vmatpush3.bf16.msra.mxu1 %v4789_v7 }
  0x14   : > { %v5156_v20 = vmul.f32 %v5148_v13, %v314_v12  ;;  %v5162_v25 = vmul.f32 %v5148_v13, %v315_v16  ;;  %v436_v26 = vrot.slane %v434_v17, 4  ;;  %v439_v27 = vrot.slane %v437_v18, 5  ;;  %4721 = vmatprep.subr.bf16.mxu0 %v4790_v24  ;;  %4765 = vmatprep.subr.bf16.mxu1 %v4790_v24  ;;  %v4322_v60 = vld [vmem:[%s5133_s12 + $0x14] sm:$0x1]  ;;  %v4338_v63 = vld [vmem:[%s5133_s12 + $0xc] sm:$0xe] }
  0x15   : > { %v445_v30 = vrot.slane %v443_v21, 5  ;;  %v449_v31 = vrot.slane %v447_v22, 4  ;;  %v455_v32 = vrot.slane %v453_v23, 5  ;;  %v1018_v33 = vrot.slane %v283_v11, 5  ;;  %v4793_v22 = vld [vmem:[%s6634_s4 + $0x38] sm:$0xff]  }
  0x16   : > { %v440_v35 = vor.u32 %v439_v27, %v436_v26  ;;  %v1021_v36 = vrot.slane %v414_v14, 5  ;;  %v1293_v39 = vunpack.c.l.bf16 %v4290_v34  ;;  %v1294_v44 = vunpack.c.l.bf16 %v5175_v38 }
  0x17   : > { %v450_v41 = vor.u32 %v449_v31, %v445_v30  ;;  %v1019_v42 = vsel %vm5166_vm4, %v4274_v29, %v1018_v33  ;;  %v1020_v43 = vrot.slane %v1018_v33, 4  ;;  %v1410_v49 = vshrl.u32 %v4290_v34, 16  ;;  %4722 = vmatpush3.bf16.msra.mxu0 %v4790_v24  ;;  %4773 = vmatpush3.bf16.msra.mxu1 %v4790_v24 }
  0x18   : > { %v441_v46 = vrot.slane %v440_v35, 4  ;;  %v1160_v47 = vunpack.c.l.bf16 %v1019_v42  ;;  %v1413_v52 = vshll.u32 %v4290_v34, 16  ;;  %v1419_v53 = vshll.u32 %v5175_v38, 16  ;;  %4723 = vmatprep.subr.bf16.mxu0 %v4791_v45  ;;  %4766 = vmatprep.subr.bf16.mxu1 %v4791_v45 }
  0x19   : > { %v451_v50 = vrot.slane %v450_v41, 4  ;;  %v1022_v51 = vsel %vm5166_vm4, %v1020_v43, %v1021_v36  ;;  %v1412_v61 = vrot.slane %v1410_v49, 4  ;;  %v1329_v4 = vmul.f32 %v5197_v57, %v1293_v39  ;;  %v4370_v36 = vld [vmem:[%s5133_s12 + $0x18] sm:$0xf]  ;;  %v4371_v41 = vld [vmem:[%s5133_s12 + $0x1c] sm:$0xf] }
  0x1a   : > { %v446_v54 = vsel %vm5179_vm5, %v441_v46, %v445_v30  ;;  %v1161_v55 = vunpack.c.l.bf16 %v1022_v51  ;;  %v1196_v56 = vmul.f32 %v5172_v37, %v1160_v47  ;;  %v1415_v62 = vrot.slane %v1413_v52, 5 }
  0x1b   : > { %v456_v58 = vsel %vm5179_vm5, %v451_v50, %v455_v32  ;;  %v849_v59 = vunpack.c.l.bf16 %v446_v54  ;;  %v1330_v5 = vmul.f32 %v5197_v57, %v1294_v44  ;;  %v1421_v9 = vrot.slane %v1419_v53, 5  ;;  %4724 = vmatpush3.bf16.msra.mxu0 %v4791_v45  ;;  %4774 = vmatpush3.bf16.msra.mxu1 %v4791_v45 }
  0x1c   : > { %v850_v1 = vunpack.c.l.bf16 %v456_v58  ;;  %v1197_v2 = vmul.f32 %v5172_v37, %v1161_v55  ;;  %v1416_v7 = vor.u32 %v1415_v62, %v1412_v61  ;;  %v1423_v10 = vshrl.u32 %v5175_v38, 16  ;;  %4725 = vmatprep.subr.bf16.mxu0 %v4792_v0  ;;  %4767 = vmatprep.subr.bf16.mxu1 %v4792_v0 }
  0x1d   : > { %v885_v6 = vmul.f32 %v5152_v15, %v849_v59  ;;  %v1429_v12 = vshll.u32 %v4322_v60, 16  ;;  %v1859_v14 = vsub.s32 4, %v5123_v3  ;;  %v4354_v16 = vrot.slane %v4338_v63, 9  ;;  %v4402_v59 = vld [vmem:[%s5133_s12 + $0x20] sm:$0x1] }
  0x1e   : > { %v886_v11 = vmul.f32 %v5152_v15, %v850_v1  ;;  %v1417_v18 = vrot.slane %v1416_v7, 4  ;;  %v1425_v19 = vrot.slane %v1423_v10, 4  ;;  %v1991_v21 = vrot.slane %v5175_v38, 5  ;;  %v4418_v1 = vld [vmem:[%s5133_s12 + $0x18] sm:$0xe] }
  0x1f   : > { %v917_v17 = vadd.f32 %v885_v6, %v5156_v20  ;;  %v1431_v24 = vrot.slane %v1429_v12, 5  ;;  %v5220_v26 = vrot.slane %v5142_v8, %v1859_v14  ;;  %v1994_v27 = vrot.slane %v4322_v60, 5  ;;  %4726 = vmatpush3.bf16.msra.mxu0 %v4792_v0  ;;  %4775 = vmatpush3.bf16.msra.mxu1 %v4792_v0 }
  0x20   : > { %v918_v23 = vadd.f32 %v886_v11, %v5162_v25  ;;  %v1422_v29 = vsel %vm5179_vm5, %v1417_v18, %v1421_v9  ;;  %v1426_v30 = vor.u32 %v1425_v19, %v1421_v9  ;;  %v1992_v31 = vsel %vm5166_vm4, %v4354_v16, %v1991_v21  ;;  %4727 = vmatprep.subr.bf16.mxu0 %v4793_v22 }
  0x21   : > { %v1228_v20 = vadd.f32 %v1196_v56, %v917_v17  ;;  %v1825_v33 = vunpack.c.l.bf16 %v1422_v29  ;;  %v1993_v34 = vrot.slane %v1991_v21, 4  ;;  %v2133_v35 = vunpack.c.l.bf16 %v1992_v31  ;;  %4768 = vmatprep.subr.bf16.mxu1 %v4793_v22  ;;  %v298_v29 = vld [vmem:[%s5133_s12 + $0x60] sm:$0xf] }
  0x22   : > { %v1229_v32 = vadd.f32 %v1197_v2, %v918_v23  ;;  %v1427_v38 = vrot.slane %v1426_v30, 4  ;;  %v2167_v39 = vsub.s32 5, %v5123_v3  ;;  %v2266_v42 = vunpack.c.l.bf16 %v4370_v36  ;;  %v5252_v23 = vld [vmem:[%s6631_s1 + $0x8] ss:$0 sm:$0xff] }
  0x23   : > { %v1361_v25 = vadd.f32 %v1329_v4, %v1228_v20  ;;  %v1861_v44 = vmul.f32 %v5220_v26, %v1825_v33  ;;  %v1995_v45 = vsel %vm5166_vm4, %v1993_v34, %v1994_v27  ;;  %v2267_v46 = vunpack.c.l.bf16 %v4371_v41  ;;  %4728 = vmatpush3.bf16.msra.mxu0 %v4793_v22  ;;  %4776 = vmatpush3.bf16.msra.mxu1 %v4793_v22  ;;  %v299_v34 = vld [vmem:[%s5133_s12 + $0x64] sm:$0xf] }
  0x24   : > { %v1362_v43 = vadd.f32 %v1330_v5, %v1229_v32  ;;  %v1432_v47 = vsel %vm5179_vm5, %v1427_v38, %v1431_v24  ;;  %v2134_v48 = vunpack.c.l.bf16 %v1995_v45  ;;  %v5235_v49 = vrot.slane %v5142_v8, %v2167_v39 }
  0x25   : > { %v2300_v50 = vsub.s32 6, %v5123_v3  ;;  %v1826_v51 = vunpack.c.l.bf16 %v1432_v47  ;;  %v1893_v52 = vadd.f32 %v1861_v44, %v1361_v25  ;;  %v2383_v53 = vshrl.u32 %v4370_v36, 16 }
  0x26   : > { %v2386_v54 = vshll.u32 %v4370_v36, 16  ;;  %v2169_v55 = vmul.f32 %v5235_v49, %v2133_v35  ;;  %v2170_v56 = vmul.f32 %v5235_v49, %v2134_v48  ;;  %v2392_v60 = vshll.u32 %v4371_v41, 16  ;;  %v957_v48 = vld [vmem:[%s5133_s12 + $0x60] sm:$0xe] }
  0x27   : > { %v5241_v58 = vrot.slane %v5142_v8, %v2300_v50  ;;  %v1862_v61 = vmul.f32 %v5220_v26, %v1826_v51  ;;  %v2385_v62 = vrot.slane %v2383_v53, 4  ;;  %v2396_v0 = vshrl.u32 %v4371_v41, 16 }
  0x28   : > { %v2388_v63 = vrot.slane %v2386_v54, 5  ;;  %v2201_v2 = vadd.f32 %v2169_v55, %v1893_v52  ;;  %v2394_v6 = vrot.slane %v2392_v60, 5  ;;  %v2402_v11 = vshll.u32 %v4402_v59, 16  ;;  %v5280_v60 = vld [vmem:[%s6632_s2] ss:$0 sm:$0xff] }
  0x29   : > { %v2302_v4 = vmul.f32 %v5241_v58, %v2266_v42  ;;  %v2303_v5 = vmul.f32 %v5241_v58, %v2267_v46  ;;  %v1894_v7 = vadd.f32 %v1862_v61, %v1362_v43  ;;  %v2398_v10 = vrot.slane %v2396_v0, 4  ;;  %v422_v42 = vld [vmem:[%s5133_s12 + $0x68] sm:$0x1] }
  0x2a   : > { %v2389_v9 = vor.u32 %v2388_v63, %v2385_v62  ;;  %v2832_v14 = vsub.s32 7, %v5123_v3  ;;  %v4434_v16 = vrot.slane %v4418_v1, 9  ;;  %v2964_v17 = vrot.slane %v4371_v41, 5 }
  0x2b   : > { %v2334_v12 = vadd.f32 %v2302_v4, %v2201_v2  ;;  %v2202_v18 = vadd.f32 %v2170_v56, %v1894_v7  ;;  %v2399_v21 = vor.u32 %v2398_v10, %v2394_v6  ;;  %v2404_v22 = vrot.slane %v2402_v11, 5 }
  0x2c   : > { %v2390_v19 = vrot.slane %v2389_v9, 4  ;;  %v5255_v24 = vrot.slane %v5142_v8, %v2832_v14  ;;  %v2965_v27 = vsel %vm5166_vm4, %v4434_v16, %v2964_v17  ;;  %v2966_v3 = vrot.slane %v2964_v17, 4 }
  0x2d   : > { %v2967_v20 = vrot.slane %v4402_v59, 5  ;;  %v2335_v30 = vadd.f32 %v2303_v5, %v2202_v18  ;;  %v2400_v32 = vrot.slane %v2399_v21, 4  ;;  %v3106_v33 = vunpack.c.l.bf16 %v2965_v27  ;;  %v4306_v18 = vld [vmem:[%s5133_s12 + $0x6c] sm:$0xf] }
  0x2e   : > { %v2395_v31 = vsel %vm5179_vm5, %v2390_v19, %v2394_v6  ;;  %v330_v36 = vunpack.c.l.bf16 %v298_v29  ;;  %v331_v25 = vunpack.c.l.bf16 %v299_v34  ;;  %v626_v43 = vshrl.u32 %v298_v29, 16  ;;  %v5285_v6 = vld [vmem:[%s6633_s3] ss:$0 sm:$0xff]  ;;  %v4307_v19 = vld [vmem:[%s5133_s12 + $0x70] sm:$0xf] }
  0x2f   : > { %v2798_v35 = vunpack.c.l.bf16 %v2395_v31  ;;  %v2968_v8 = vsel %vm5166_vm4, %v2966_v3, %v2967_v20  ;;  %v2405_v38 = vsel %vm5179_vm5, %v2400_v32, %v2404_v22  ;;  %v3142_v41 = vmul.f32 %v5252_v23, %v3106_v33 }
  0x30   : > { %v3107_v39 = vunpack.c.l.bf16 %v2968_v8  ;;  %v2799_v44 = vunpack.c.l.bf16 %v2405_v38  ;;  %v366_v46 = vmul.f32 %v5148_v13, %v330_v36  ;;  %v5272_v47 = vmul.f32 %v5148_v13, %v331_v25 }
  0x31   : > { %v2834_v45 = vmul.f32 %v5255_v24, %v2798_v35  ;;  %v628_v51 = vrot.slane %v626_v43, 4  ;;  %v629_v52 = vshll.u32 %v298_v29, 16  ;;  %v635_v53 = vshll.u32 %v299_v34, 16 }
  0x32   : > { %v3143_v50 = vmul.f32 %v5252_v23, %v3107_v39  ;;  %v2835_v54 = vmul.f32 %v5255_v24, %v2799_v44  ;;  %v639_v56 = vshrl.u32 %v299_v34, 16  ;;  %v645_v59 = vshll.u32 %v422_v42, 16 }
  0x33   : > { %v2866_v55 = vadd.f32 %v2834_v45, %v2334_v12  ;;  %v631_v61 = vrot.slane %v629_v52, 5  ;;  %v637_v62 = vrot.slane %v635_v53, 5  ;;  %v4282_v63 = vrot.slane %v957_v48, 9 }
  0x34   : > { %v1074_v0 = vrot.slane %v299_v34, 5  ;;  %v2867_v1 = vadd.f32 %v2835_v54, %v2335_v30  ;;  %v641_v4 = vrot.slane %v639_v56, 4  ;;  %v647_v5 = vrot.slane %v645_v59, 5 }
  0x35   : > { %v3174_v2 = vadd.f32 %v3142_v41, %v2866_v55  ;;  %v632_v7 = vor.u32 %v631_v61, %v628_v51  ;;  %v1077_v11 = vrot.slane %v422_v42, 5  ;;  %v1309_v27 = vunpack.c.l.bf16 %v4306_v18  ;;  %v4330_v42 = vld [vmem:[%s5133_s12 + $0x74] sm:$0x1]  ;;  %v4346_v51 = vld [vmem:[%s5133_s12 + $0x6c] sm:$0xe] }
  0x36   : > { %v1075_v9 = vsel %vm5166_vm4, %v4282_v63, %v1074_v0  ;;  %v1076_v10 = vrot.slane %v1074_v0, 4  ;;  %v3175_v12 = vadd.f32 %v3143_v50, %v2867_v1  ;;  %v642_v16 = vor.u32 %v641_v4, %v637_v62 }
  0x37   : > { %v3213_v14 = vmul.f32 %v5280_v60, %v3174_v2  ;;  %v1176_v17 = vunpack.c.l.bf16 %v1075_v9  ;;  %v633_v21 = vrot.slane %v632_v7, 4  ;;  %v1310_v3 = vunpack.c.l.bf16 %v4307_v19  ;;  %v4386_v9 = vld [vmem:[%s5133_s12 + $0x78] sm:$0xf] }
  0x38   : > { %v1078_v22 = vsel %vm5166_vm4, %v1076_v10, %v1077_v11  ;;  %v3214_v20 = vmul.f32 %v5280_v60, %v3175_v12  ;;  %v643_v30 = vrot.slane %v642_v16, 4  ;;  %v1345_v34 = vmul.f32 %v5197_v57, %v1309_v27 }
  0x39   : > { %v5296_v29 = vadd.f32 %v5285_v6, %v3213_v14  ;;  %v1177_v31 = vunpack.c.l.bf16 %v1078_v22  ;;  %v638_v32 = vsel %vm5179_vm5, %v633_v21, %v637_v62  ;;  %v1212_v33 = vmul.f32 %v5172_v37, %v1176_v17  ;;  %v4387_v14 = vld [vmem:[%s5133_s12 + $0x7c] sm:$0xf] }
  0x3a   : > { %v1346_v35 = vmul.f32 %v5197_v57, %v1310_v3  ;;  %v5304_v8 = vadd.f32 %v5285_v6, %v3214_v20  ;;  %v648_v25 = vsel %vm5179_vm5, %v643_v30, %v647_v5  ;;  %v865_v38 = vunpack.c.l.bf16 %v638_v32 }
  0x3b   : > { %v4453_v36 = vmul.f32 -1.442695, %v5296_v29  ;;  %v866_v39 = vunpack.c.l.bf16 %v648_v25  ;;  %v1213_v41 = vmul.f32 %v5172_v37, %v1177_v31  ;;  %v1602_v43 = vshrl.u32 %v4306_v18, 16 }
  0x3c   : > { %v1605_v44 = vshll.u32 %v4306_v18, 16  ;;  %v4454_v45 = vmul.f32 -1.442695, %v5304_v8  ;;  %v901_v48 = vmul.f32 %v5152_v15, %v865_v38  ;;  %v1611_v50 = vshll.u32 %v4307_v19, 16 }
  0x3d   : > { %4794 = vpow2.f32 %v4453_v36  ;;  %v902_v52 = vmul.f32 %v5152_v15, %v866_v39  ;;  %v1604_v53 = vrot.slane %v1602_v43, 4  ;;  %v1615_v55 = vshrl.u32 %v4307_v19, 16  ;;  %v4410_v39 = vld [vmem:[%s5133_s12 + $0x80] sm:$0x1] }
  0x3e   : > { %v1607_v54 = vrot.slane %v1605_v44, 5  ;;  %4796 = vpow2.f32 %v4454_v45  ;;  %v933_v56 = vadd.f32 %v901_v48, %v366_v46  ;;  %v1613_v59 = vrot.slane %v1611_v50, 5  ;;  %v4426_v50 = vld [vmem:[%s5133_s12 + $0x78] sm:$0xe] }
  0x3f   : > { %v1621_v61 = vshll.u32 %v4330_v42, 16  ;;  %v934_v62 = vadd.f32 %v902_v52, %v5272_v47  ;;  %v1617_v0 = vrot.slane %v1615_v55, 4  ;;  %v4362_v1 = vrot.slane %v4346_v51, 9 }
  0x40   : > { %v1608_v63 = vor.u32 %v1607_v54, %v1604_v53  ;;  %v1244_v2 = vadd.f32 %v1212_v33, %v933_v56  ;;  %v2047_v5 = vrot.slane %v4307_v19, 5  ;;  %v2050_v7 = vrot.slane %v4330_v42, 5 }
  0x41   : > { %v1623_v4 = vrot.slane %v1621_v61, 5  ;;  %v1245_v10 = vadd.f32 %v1213_v41, %v934_v62  ;;  %v1618_v12 = vor.u32 %v1617_v0, %v1613_v59  ;;  %v2282_v16 = vunpack.c.l.bf16 %v4386_v9 }
  0x42   : > { %v1609_v11 = vrot.slane %v1608_v63, 4  ;;  %v1377_v17 = vadd.f32 %v1345_v34, %v1244_v2  ;;  %v2048_v46 = vsel %vm5166_vm4, %v4362_v1, %v2047_v5  ;;  %v2049_v18 = vrot.slane %v2047_v5, 4 }
  0x43   : > { %v2283_v21 = vunpack.c.l.bf16 %v4387_v14  ;;  %v1378_v47 = vadd.f32 %v1346_v35, %v1245_v10  ;;  %v1619_v27 = vrot.slane %v1618_v12, 4  ;;  %v2149_v19 = vunpack.c.l.bf16 %v2048_v46  ;;  %v284_v12 = vld [vmem:[%s5133_s12 + $0xc] sm:$0xf] }
  0x44   : > { %v1614_v22 = vsel %vm5179_vm5, %v1609_v11, %v1613_v59  ;;  %v2051_v20 = vsel %vm5166_vm4, %v2049_v18, %v2050_v7  ;;  %v2318_v30 = vmul.f32 %v5241_v58, %v2282_v16  ;;  %v2575_v35 = vshrl.u32 %v4386_v9, 16  ;;  %v285_v18 = vld [vmem:[%s5133_s12 + $0x10] sm:$0xf] }
  0x45   : > { %v1841_v3 = vunpack.c.l.bf16 %v1614_v22  ;;  %v2319_v31 = vmul.f32 %v5241_v58, %v2283_v21  ;;  %v1624_v32 = vsel %vm5179_vm5, %v1619_v27, %v1623_v4  ;;  %v2150_v33 = vunpack.c.l.bf16 %v2051_v20 }
  0x46   : > { %v2185_v34 = vmul.f32 %v5235_v49, %v2149_v19  ;;  %v1842_v25 = vunpack.c.l.bf16 %v1624_v32  ;;  %v2578_v41 = vshll.u32 %v4386_v9, 16  ;;  %v2584_v42 = vshll.u32 %v4387_v14, 16  ;;  %v415_v32 = vld [vmem:[%s5133_s12 + $0x14] sm:$0x1] }
  0x47   : > { %v4795_v36 = vpop.eup %4794  ;;  %v1877_v38 = vmul.f32 %v5220_v26, %v1841_v3  ;;  %v2186_v44 = vmul.f32 %v5235_v49, %v2150_v33  ;;  %v2577_v45 = vrot.slane %v2575_v35, 4  ;;  %v2588_v48 = vshrl.u32 %v4387_v14, 16 }
  0x48   : > { %v3380_v43 = vadd.f32 1.0, %v4795_v36  ;;  %v4797_v51 = vpop.eup %4796  ;;  %v1878_v52 = vmul.f32 %v5220_v26, %v1842_v25  ;;  %v2580_v54 = vrot.slane %v2578_v41, 5  ;;  %v2586_v55 = vrot.slane %v2584_v42, 5 }
  0x49   : > { %v1909_v53 = vadd.f32 %v1877_v38, %v1377_v17  ;;  %v3381_v56 = vadd.f32 1.0, %v4797_v51  ;;  %v2590_v59 = vrot.slane %v2588_v48, 4  ;;  %v2594_v61 = vshll.u32 %v4410_v39, 16 }
  0x4a   : > { %4798 = vrcp.f32 %v3380_v43  ;;  %v1910_v62 = vadd.f32 %v1878_v52, %v1378_v47  ;;  %v2581_v0 = vor.u32 %v2580_v54, %v2577_v45  ;;  %v4442_v1 = vrot.slane %v4426_v50, 9  ;;  %v950_v45 = vld [vmem:[%s5133_s12 + $0xc] sm:$0xe] }
  0x4b   : > { %v2217_v63 = vadd.f32 %v2185_v34, %v1909_v53  ;;  %4800 = vrcp.f32 %v3381_v56  ;;  %v2591_v2 = vor.u32 %v2590_v59, %v2586_v55  ;;  %v2596_v4 = vrot.slane %v2594_v61, 5 }
  0x4c   : > { %v3020_v5 = vrot.slane %v4387_v14, 5  ;;  %v2218_v7 = vadd.f32 %v2186_v44, %v1910_v62  ;;  %v2582_v10 = vrot.slane %v2581_v0, 4  ;;  %v3023_v11 = vrot.slane %v4410_v39, 5 }
  0x4d   : > { %v2350_v9 = vadd.f32 %v2318_v30, %v2217_v63  ;;  %v2592_v16 = vrot.slane %v2591_v2, 4  ;;  %v316_v21 = vunpack.c.l.bf16 %v284_v12  ;;  %v317_v19 = vunpack.c.l.bf16 %v285_v18 }
  0x4e   : > { %v3021_v17 = vsel %vm5166_vm4, %v4442_v1, %v3020_v5  ;;  %v3022_v46 = vrot.slane %v3020_v5, 4  ;;  %v2351_v47 = vadd.f32 %v2319_v31, %v2218_v7  ;;  %v2587_v22 = vsel %vm5179_vm5, %v2582_v10, %v2586_v55 }
  0x4f   : > { %v3122_v27 = vunpack.c.l.bf16 %v3021_v17  ;;  %v2597_v14 = vsel %vm5179_vm5, %v2592_v16, %v2596_v4  ;;  %v2814_v3 = vunpack.c.l.bf16 %v2587_v22  ;;  %v5345_v30 = vmul.f32 %v5148_v13, %v316_v21  ;;  %v4292_v21 = vld [vmem:[%s5133_s12 + $0x18] sm:$0xf] }
  0x50   : > { %v3024_v20 = vsel %vm5166_vm4, %v3022_v46, %v3023_v11  ;;  %v2815_v33 = vunpack.c.l.bf16 %v2597_v14  ;;  %v5350_v35 = vmul.f32 %v5148_v13, %v317_v19  ;;  %v458_v25 = vshrl.u32 %v284_v12, 16 }
  0x51   : > { %v3123_v34 = vunpack.c.l.bf16 %v3024_v20  ;;  %v3158_v31 = vmul.f32 %v5252_v23, %v3122_v27  ;;  %v2850_v36 = vmul.f32 %v5255_v24, %v2814_v3  ;;  %v461_v38 = vshll.u32 %v284_v12, 16  ;;  %v4293_v20 = vld [vmem:[%s5133_s12 + $0x1c] sm:$0xf] }
  0x52   : > { %v467_v39 = vshll.u32 %v285_v18, 16  ;;  %v2851_v41 = vmul.f32 %v5255_v24, %v2815_v33  ;;  %v471_v43 = vshrl.u32 %v285_v18, 16  ;;  %v477_v44 = vshll.u32 %v415_v32, 16 }
  0x53   : > { %v3159_v42 = vmul.f32 %v5252_v23, %v3123_v34  ;;  %v2882_v50 = vadd.f32 %v2850_v36, %v2350_v9  ;;  %v460_v51 = vrot.slane %v458_v25, 4  ;;  %v463_v52 = vrot.slane %v461_v38, 5 }
  0x54   : > { %v4799_v48 = vpop.eup %4798  ;;  %v469_v53 = vrot.slane %v467_v39, 5  ;;  %v2883_v55 = vadd.f32 %v2851_v41, %v2351_v47  ;;  %v473_v56 = vrot.slane %v471_v43, 4  ;;  %v479_v59 = vrot.slane %v477_v44, 5  ;;  %v4323_v41 = vld [vmem:[%s5133_s12 + $0x20] sm:$0x1] }
  0x55   : > { %v3476_v54 = vmul.f32 %v4799_v48, %v5296_v29  ;;  %v4801_v61 = vpop.eup %4800  ;;  %v3190_v62 = vadd.f32 %v3158_v31, %v2882_v50  ;;  %v464_v63 = vor.u32 %v463_v52, %v460_v51  ;;  %v4275_v0 = vrot.slane %v950_v45, 9  ;;  %v4339_v45 = vld [vmem:[%s5133_s12 + $0x18] sm:$0xe] }
  0x56   : > { %v1025_v1 = vrot.slane %v285_v18, 5  ;;  %v3477_v2 = vmul.f32 %v4801_v61, %v5304_v8  ;;  %v3191_v4 = vadd.f32 %v3159_v42, %v2883_v55  ;;  %v474_v5 = vor.u32 %v473_v56, %v469_v53 }
  0x57   : > { %v1028_v7 = vrot.slane %v415_v32, 5  ;;  %v3229_v9 = vmul.f32 %v5280_v60, %v3190_v62  ;;  %v465_v10 = vrot.slane %v464_v63, 4  ;;  %v1295_v22 = vunpack.c.l.bf16 %v4292_v21 }
  0x58   : > { %v1026_v29 = vsel %vm5166_vm4, %v4275_v0, %v1025_v1  ;;  %v1027_v11 = vrot.slane %v1025_v1, 4  ;;  %v3508_v12 = vpack.c.bf16 %v3477_v2, %v3476_v54  ;;  %v3230_v16 = vmul.f32 %v5280_v60, %v3191_v4  ;;  %v4372_v4 = vld [vmem:[%s5133_s12 + $0x24] sm:$0xf] }
  0x59   : > { %v475_v17 = vrot.slane %v474_v5, 4  ;;  %v1162_v46 = vunpack.c.l.bf16 %v1026_v29  ;;  %v5364_v18 = vadd.f32 %v5285_v6, %v3229_v9  ;;  %v470_v8 = vsel %vm5179_vm5, %v465_v10, %v469_v53 }
  0x5a   : > { %v1029_v47 = vsel %vm5166_vm4, %v1027_v11, %v1028_v7  ;;  %4729 = vmatprep.mubr.bf16.mxu0 %v3508_v12  ;;  %v5371_v27 = vadd.f32 %v5285_v6, %v3230_v16  ;;  %v851_v14 = vunpack.c.l.bf16 %v470_v8  ;;  %v1296_v31 = vunpack.c.l.bf16 %v4293_v20  ;;  %v4373_v12 = vld [vmem:[%s5133_s12 + $0x28] sm:$0xf] }
  0x5b   : > { %v480_v19 = vsel %vm5179_vm5, %v475_v17, %v479_v59  ;;  %v1163_v3 = vunpack.c.l.bf16 %v1029_v47  ;;  %v4469_v32 = vmul.f32 -1.442695, %v5364_v18  ;;  %v1198_v34 = vmul.f32 %v5172_v37, %v1162_v46 }
  0x5c   : > { %v852_v33 = vunpack.c.l.bf16 %v480_v19  ;;  %v4470_v36 = vmul.f32 -1.442695, %v5371_v27  ;;  %v887_v25 = vmul.f32 %v5152_v15, %v851_v14  ;;  %v1331_v39 = vmul.f32 %v5197_v57, %v1295_v22 }
  0x5d   : > { %v1199_v38 = vmul.f32 %v5172_v37, %v1163_v3  ;;  %4802 = vpow2.f32 %v4469_v32  ;;  %v1332_v43 = vmul.f32 %v5197_v57, %v1296_v31  ;;  %v1434_v44 = vshrl.u32 %v4292_v21, 16 }
  0x5e   : > { %v888_v42 = vmul.f32 %v5152_v15, %v852_v33  ;;  %4804 = vpow2.f32 %v4470_v36  ;;  %v919_v48 = vadd.f32 %v887_v25, %v5345_v30  ;;  %v1437_v50 = vshll.u32 %v4292_v21, 16  ;;  %v4403_v36 = vld [vmem:[%s5133_s12 + $0x2c] sm:$0x1] }
  0x5f   : > { %v1443_v51 = vshll.u32 %v4293_v20, 16  ;;  %v1436_v53 = vrot.slane %v1434_v44, 4  ;;  %v1447_v54 = vshrl.u32 %v4293_v20, 16  ;;  %v1453_v55 = vshll.u32 %v4323_v41, 16 }
  0x60   : > { %v920_v52 = vadd.f32 %v888_v42, %v5350_v35  ;;  %v1230_v56 = vadd.f32 %v1198_v34, %v919_v48  ;;  %v1439_v59 = vrot.slane %v1437_v50, 5  ;;  %v4355_v62 = vrot.slane %v4339_v45, 9 }
  0x61   : > { %v1445_v61 = vrot.slane %v1443_v51, 5  ;;  %v1449_v0 = vrot.slane %v1447_v54, 4  ;;  %v1455_v1 = vrot.slane %v1453_v55, 5  ;;  %v1998_v2 = vrot.slane %v4293_v20, 5 }
  0x62   : > { %v1231_v63 = vadd.f32 %v1199_v38, %v920_v52  ;;  %v1363_v5 = vadd.f32 %v1331_v39, %v1230_v56  ;;  %v1440_v7 = vor.u32 %v1439_v59, %v1436_v53  ;;  %v2001_v30 = vrot.slane %v4323_v41, 5  ;;  %v4419_v52 = vld [vmem:[%s5133_s12 + $0x24] sm:$0xe] }
  0x63   : > { %v2268_v9 = vunpack.c.l.bf16 %v4372_v4  ;;  %v1450_v29 = vor.u32 %v1449_v0, %v1445_v61  ;;  %v1999_v35 = vsel %vm5166_vm4, %v4355_v62, %v1998_v2  ;;  %v2000_v11 = vrot.slane %v1998_v2, 4 }
  0x64   : > { %v1364_v10 = vadd.f32 %v1332_v43, %v1231_v63  ;;  %v1441_v16 = vrot.slane %v1440_v7, 4  ;;  %v2135_v17 = vunpack.c.l.bf16 %v1999_v35  ;;  %v2269_v46 = vunpack.c.l.bf16 %v4373_v12 }
  0x65   : > { %v2304_v21 = vmul.f32 %v5241_v58, %v2268_v9  ;;  %v1451_v8 = vrot.slane %v1450_v29, 4  ;;  %v2002_v47 = vsel %vm5166_vm4, %v2000_v11, %v2001_v30  ;;  %v2407_v22 = vshrl.u32 %v4372_v4, 16  ;;  %v300_v11 = vld [vmem:[%s5133_s12 + $0x6c] sm:$0xf] }
  0x66   : > { %v2410_v19 = vshll.u32 %v4372_v4, 16  ;;  %v1446_v14 = vsel %vm5179_vm5, %v1441_v16, %v1445_v61  ;;  %v2136_v3 = vunpack.c.l.bf16 %v2002_v47  ;;  %v2171_v20 = vmul.f32 %v5235_v49, %v2135_v17 }
  0x67   : > { %v2305_v32 = vmul.f32 %v5241_v58, %v2269_v46  ;;  %v4803_v33 = vpop.eup %4802  ;;  %v1456_v34 = vsel %vm5179_vm5, %v1451_v8, %v1455_v1  ;;  %v1827_v31 = vunpack.c.l.bf16 %v1446_v14  ;;  %v2409_v25 = vrot.slane %v2407_v22, 4  ;;  %v301_v46 = vld [vmem:[%s5133_s12 + $0x70] sm:$0xf] }
  0x68   : > { %v2412_v38 = vrot.slane %v2410_v19, 5  ;;  %v4805_v39 = vpop.eup %4804  ;;  %v3396_v41 = vadd.f32 1.0, %v4803_v33  ;;  %v1828_v42 = vunpack.c.l.bf16 %v1456_v34  ;;  %v2172_v43 = vmul.f32 %v5235_v49, %v2136_v3  ;;  %v423_v33 = vld [vmem:[%s5133_s12 + $0x74] sm:$0x1] }
  0x69   : > { %v2416_v44 = vshll.u32 %v4373_v12, 16  ;;  %v3397_v45 = vadd.f32 1.0, %v4805_v39  ;;  %v1863_v48 = vmul.f32 %v5220_v26, %v1827_v31  ;;  %v2420_v51 = vshrl.u32 %v4373_v12, 16 }
  0x6a   : > { %v2413_v50 = vor.u32 %v2412_v38, %v2409_v25  ;;  %4806 = vrcp.f32 %v3396_v41  ;;  %v1864_v53 = vmul.f32 %v5220_v26, %v1828_v42  ;;  %v2426_v55 = vshll.u32 %v4403_v36, 16 }
  0x6b   : > { %v2418_v54 = vrot.slane %v2416_v44, 5  ;;  %4808 = vrcp.f32 %v3397_v45  ;;  %v1895_v56 = vadd.f32 %v1863_v48, %v1363_v5  ;;  %v2422_v61 = vrot.slane %v2420_v51, 4 }
  0x6c   : > { %v2414_v59 = vrot.slane %v2413_v50, 4  ;;  %v1896_v62 = vadd.f32 %v1864_v53, %v1364_v10  ;;  %v2428_v63 = vrot.slane %v2426_v55, 5  ;;  %v4435_v0 = vrot.slane %v4419_v52, 9  ;;  %v958_v50 = vld [vmem:[%s5133_s12 + $0x6c] sm:$0xe] }
  0x6d   : > { %v2971_v1 = vrot.slane %v4373_v12, 5  ;;  %v2203_v2 = vadd.f32 %v2171_v20, %v1895_v56  ;;  %v2423_v7 = vor.u32 %v2422_v61, %v2418_v54  ;;  %v2974_v30 = vrot.slane %v4403_v36, 5 }
  0x6e   : > { %v2419_v4 = vsel %vm5179_vm5, %v2414_v59, %v2418_v54  ;;  %v2204_v9 = vadd.f32 %v2172_v43, %v1896_v62  ;;  %v332_v8 = vunpack.c.l.bf16 %v300_v11  ;;  %v333_v19 = vunpack.c.l.bf16 %v301_v46 }
  0x6f   : > { %v2800_v29 = vunpack.c.l.bf16 %v2419_v4  ;;  %v2972_v35 = vsel %vm5166_vm4, %v4435_v0, %v2971_v1  ;;  %v2973_v5 = vrot.slane %v2971_v1, 4  ;;  %v2336_v16 = vadd.f32 %v2304_v21, %v2203_v2 }
  0x70   : > { %v2424_v10 = vrot.slane %v2423_v7, 4  ;;  %v3108_v17 = vunpack.c.l.bf16 %v2972_v35  ;;  %v2337_v12 = vadd.f32 %v2305_v32, %v2204_v9  ;;  %v5419_v21 = vmul.f32 %v5148_v13, %v332_v8 }
  0x71   : > { %v2836_v47 = vmul.f32 %v5255_v24, %v2800_v29  ;;  %v2975_v22 = vsel %vm5166_vm4, %v2973_v5, %v2974_v30  ;;  %v5423_v32 = vmul.f32 %v5148_v13, %v333_v19  ;;  %v650_v36 = vshrl.u32 %v300_v11, 16  ;;  %v4308_v5 = vld [vmem:[%s5133_s12 + $0x78] sm:$0xf] }
  0x72   : > { %v2429_v14 = vsel %vm5179_vm5, %v2424_v10, %v2428_v63  ;;  %v3109_v3 = vunpack.c.l.bf16 %v2975_v22  ;;  %v3144_v20 = vmul.f32 %v5252_v23, %v3108_v17  ;;  %v653_v38 = vshll.u32 %v300_v11, 16  ;;  %v4309_v17 = vld [vmem:[%s5133_s12 + $0x7c] sm:$0xf] }
  0x73   : > { %v2801_v34 = vunpack.c.l.bf16 %v2429_v14  ;;  %v2868_v31 = vadd.f32 %v2836_v47, %v2336_v16  ;;  %v659_v39 = vshll.u32 %v301_v46, 16  ;;  %v663_v41 = vshrl.u32 %v301_v46, 16 }
  0x74   : > { %v3145_v25 = vmul.f32 %v5252_v23, %v3109_v3  ;;  %v4807_v42 = vpop.eup %4806  ;;  %v652_v45 = vrot.slane %v650_v36, 4  ;;  %v669_v48 = vshll.u32 %v423_v33, 16  ;;  %v655_v53 = vrot.slane %v653_v38, 5 }
  0x75   : > { %v2837_v43 = vmul.f32 %v5255_v24, %v2801_v34  ;;  %v3176_v44 = vadd.f32 %v3144_v20, %v2868_v31  ;;  %v4809_v51 = vpop.eup %4808  ;;  %v3492_v52 = vmul.f32 %v4807_v42, %v5364_v18  ;;  %v661_v54 = vrot.slane %v659_v39, 5  ;;  %v4331_v39 = vld [vmem:[%s5133_s12 + $0x80] sm:$0x1] }
  0x76   : > { %v665_v55 = vrot.slane %v663_v41, 4  ;;  %v3493_v56 = vmul.f32 %v4809_v51, %v5371_v27  ;;  %v671_v62 = vrot.slane %v669_v48, 5  ;;  %v656_v63 = vor.u32 %v655_v53, %v652_v45  ;;  %v4347_v48 = vld [vmem:[%s5133_s12 + $0x78] sm:$0xe] }
  0x77   : > { %v2869_v59 = vadd.f32 %v2837_v43, %v2337_v12  ;;  %v3215_v61 = vmul.f32 %v5280_v60, %v3176_v44  ;;  %v4283_v1 = vrot.slane %v958_v50, 9  ;;  %v1081_v2 = vrot.slane %v301_v46, 5 }
  0x78   : > { %v666_v0 = vor.u32 %v665_v55, %v661_v54  ;;  %v3516_v4 = vpack.c.bf16 %v3493_v56, %v3492_v52  ;;  %v1084_v18 = vrot.slane %v423_v33, 5  ;;  %v657_v9 = vrot.slane %v656_v63, 4 }
  0x79   : > { %v3177_v7 = vadd.f32 %v3145_v25, %v2869_v59  ;;  %v5432_v30 = vadd.f32 %v5285_v6, %v3215_v61  ;;  %v1082_v27 = vsel %vm5166_vm4, %v4283_v1, %v1081_v2  ;;  %v1083_v35 = vrot.slane %v1081_v2, 4 }
  0x7a   : > { %v667_v29 = vrot.slane %v666_v0, 4  ;;  %4745 = vmatprep.mubr.bf16.mxu1 %v3516_v4  ;;  %v1178_v10 = vunpack.c.l.bf16 %v1082_v27  ;;  %v1311_v46 = vunpack.c.l.bf16 %v4308_v5  ;;  %v662_v8 = vsel %vm5179_vm5, %v657_v9, %v661_v54 }
  0x7b   : > { %v3216_v11 = vmul.f32 %v5280_v60, %v3177_v7  ;;  %v4455_v16 = vmul.f32 -1.442695, %v5432_v30  ;;  %v1085_v47 = vsel %vm5166_vm4, %v1083_v35, %v1084_v18  ;;  %v1312_v22 = vunpack.c.l.bf16 %v4309_v17  ;;  %v4388_v7 = vld [vmem:[%s5133_s12 + $0x84] sm:$0xf] }
  0x7c   : > { %v672_v12 = vsel %vm5179_vm5, %v667_v29, %v671_v62  ;;  %v867_v14 = vunpack.c.l.bf16 %v662_v8  ;;  %v1179_v20 = vunpack.c.l.bf16 %v1085_v47  ;;  %v1214_v33 = vmul.f32 %v5172_v37, %v1178_v10 }
  0x7d   : > { %v5447_v19 = vadd.f32 %v5285_v6, %v3216_v11  ;;  %4810 = vpow2.f32 %v4455_v16  ;;  %v868_v3 = vunpack.c.l.bf16 %v672_v12  ;;  %v1347_v34 = vmul.f32 %v5197_v57, %v1311_v46 }
  0x7e   : > { %v1348_v31 = vmul.f32 %v5197_v57, %v1312_v22  ;;  %v903_v25 = vmul.f32 %v5152_v15, %v867_v14  ;;  %v1626_v41 = vshrl.u32 %v4308_v5, 16  ;;  %v1215_v42 = vmul.f32 %v5172_v37, %v1179_v20 }
  0x7f   : > { %v4456_v36 = vmul.f32 -1.442695, %v5447_v19  ;;  %v904_v38 = vmul.f32 %v5152_v15, %v868_v3  ;;  %v1629_v43 = vshll.u32 %v4308_v5, 16  ;;  %v1635_v44 = vshll.u32 %v4309_v17, 16  ;;  %v4389_v5 = vld [vmem:[%s5133_s12 + $0x88] sm:$0xf] }
  0x80   : > { %v1639_v45 = vshrl.u32 %v4309_v17, 16  ;;  %v935_v50 = vadd.f32 %v903_v25, %v5419_v21  ;;  %v1628_v52 = vrot.slane %v1626_v41, 4  ;;  %v1645_v56 = vshll.u32 %v4331_v39, 16 }
  0x81   : > { %4812 = vpow2.f32 %v4456_v36  ;;  %v936_v51 = vadd.f32 %v904_v38, %v5423_v32  ;;  %v1631_v53 = vrot.slane %v1629_v43, 5  ;;  %v1637_v54 = vrot.slane %v1635_v44, 5  ;;  %v4427_v36 = vld [vmem:[%s5133_s12 + $0x84] sm:$0xe] }
  0x82   : > { %v1641_v55 = vrot.slane %v1639_v45, 4  ;;  %v1246_v59 = vadd.f32 %v1214_v33, %v935_v50  ;;  %v4363_v62 = vrot.slane %v4347_v48, 9  ;;  %v2054_v63 = vrot.slane %v4309_v17, 5 }
  0x83   : > { %v1247_v61 = vadd.f32 %v1215_v42, %v936_v51  ;;  %v1632_v0 = vor.u32 %v1631_v53, %v1628_v52  ;;  %v1647_v2 = vrot.slane %v1645_v56, 5  ;;  %v2057_v4 = vrot.slane %v4331_v39, 5 }
  0x84   : > { %v1642_v1 = vor.u32 %v1641_v55, %v1637_v54  ;;  %v1379_v18 = vadd.f32 %v1347_v34, %v1246_v59  ;;  %v2055_v21 = vsel %vm5166_vm4, %v4363_v62, %v2054_v63  ;;  %v2056_v32 = vrot.slane %v2054_v63, 4 }
  0x85   : > { %v1380_v9 = vadd.f32 %v1348_v31, %v1247_v61  ;;  %v1633_v29 = vrot.slane %v1632_v0, 4  ;;  %v2151_v35 = vunpack.c.l.bf16 %v2055_v21  ;;  %v2284_v11 = vunpack.c.l.bf16 %v4388_v7  ;;  %v4411_v31 = vld [vmem:[%s5133_s12 + $0x8c] sm:$0x1] }
  0x86   : > { %v1643_v27 = vrot.slane %v1642_v1, 4  ;;  %v2058_v10 = vsel %vm5166_vm4, %v2056_v32, %v2057_v4  ;;  %v2285_v17 = vunpack.c.l.bf16 %v4389_v5  ;;  %v2599_v46 = vshrl.u32 %v4388_v7, 16  ;;  %v286_v4 = vld [vmem:[%s5133_s12 + $0x18] sm:$0xf] }
  0x87   : > { %v4811_v16 = vpop.eup %4810  ;;  %v2602_v8 = vshll.u32 %v4388_v7, 16  ;;  %v1638_v47 = vsel %vm5179_vm5, %v1633_v29, %v1637_v54  ;;  %v2152_v14 = vunpack.c.l.bf16 %v2058_v10  ;;  %v2187_v33 = vmul.f32 %v5235_v49, %v2151_v35 }
  0x88   : > { %v3382_v12 = vadd.f32 1.0, %v4811_v16  ;;  %v1648_v22 = vsel %vm5179_vm5, %v1643_v27, %v1647_v2  ;;  %v1843_v3 = vunpack.c.l.bf16 %v1638_v47  ;;  %v2320_v34 = vmul.f32 %v5241_v58, %v2284_v11 }
  0x89   : > { %v1844_v20 = vunpack.c.l.bf16 %v1648_v22  ;;  %v2188_v25 = vmul.f32 %v5235_v49, %v2152_v14  ;;  %v2321_v38 = vmul.f32 %v5241_v58, %v2285_v17  ;;  %v2601_v39 = vrot.slane %v2599_v46, 4 }
  0x8a   : > { %4814 = vrcp.f32 %v3382_v12  ;;  %v1879_v42 = vmul.f32 %v5220_v26, %v1843_v3  ;;  %v2604_v44 = vrot.slane %v2602_v8, 5  ;;  %v2608_v45 = vshll.u32 %v4389_v5, 16 }
  0x8b   : > { %v4813_v41 = vpop.eup %4812  ;;  %v1880_v43 = vmul.f32 %v5220_v26, %v1844_v20  ;;  %v2612_v50 = vshrl.u32 %v4389_v5, 16  ;;  %v2618_v51 = vshll.u32 %v4411_v31, 16  ;;  %v4443_v52 = vrot.slane %v4427_v36, 9 }
  0x8c   : > { %v3383_v48 = vadd.f32 1.0, %v4813_v41  ;;  %v1911_v53 = vadd.f32 %v1879_v42, %v1379_v18  ;;  %v2605_v55 = vor.u32 %v2604_v44, %v2601_v39  ;;  %v2610_v56 = vrot.slane %v2608_v45, 5 }
  0x8d   : > { %v1912_v54 = vadd.f32 %v1880_v43, %v1380_v9  ;;  %v2614_v59 = vrot.slane %v2612_v50, 4  ;;  %v2620_v61 = vrot.slane %v2618_v51, 5  ;;  %v3027_v62 = vrot.slane %v4389_v5, 5  ;;  %v287_v5 = vld [vmem:[%s5133_s12 + $0x1c] sm:$0xf] }
  0x8e   : > { %4816 = vrcp.f32 %v3383_v48  ;;  %v2219_v63 = vadd.f32 %v2187_v33, %v1911_v53  ;;  %v2606_v1 = vrot.slane %v2605_v55, 4  ;;  %v3030_v2 = vrot.slane %v4411_v31, 5  ;;  %v416_v33 = vld [vmem:[%s5133_s12 + $0x20] sm:$0x1]  ;;  %v951_v31 = vld [vmem:[%s5133_s12 + $0x18] sm:$0xe] }
  0x8f   : > { %v2220_v0 = vadd.f32 %v2188_v25, %v1912_v54  ;;  %v2615_v7 = vor.u32 %v2614_v59, %v2610_v56  ;;  %v3028_v21 = vsel %vm5166_vm4, %v4443_v52, %v3027_v62  ;;  %v3029_v32 = vrot.slane %v3027_v62, 4 }
  0x90   : > { %v318_v29 = vunpack.c.l.bf16 %v286_v4  ;;  %v2352_v18 = vadd.f32 %v2320_v34, %v2219_v63  ;;  %v2611_v27 = vsel %vm5179_vm5, %v2606_v1, %v2610_v56  ;;  %v3124_v35 = vunpack.c.l.bf16 %v3028_v21 }
  0x91   : > { %v2353_v9 = vadd.f32 %v2321_v38, %v2220_v0  ;;  %v2616_v11 = vrot.slane %v2615_v7, 4  ;;  %v2816_v16 = vunpack.c.l.bf16 %v2611_v27  ;;  %v3031_v10 = vsel %vm5166_vm4, %v3029_v32, %v3030_v2  ;;  %v4294_v32 = vld [vmem:[%s5133_s12 + $0x24] sm:$0xf] }
  0x92   : > { %v319_v17 = vunpack.c.l.bf16 %v287_v5  ;;  %v3125_v46 = vunpack.c.l.bf16 %v3031_v10  ;;  %v3160_v8 = vmul.f32 %v5252_v23, %v3124_v35  ;;  %v5488_v12 = vmul.f32 %v5148_v13, %v318_v29 }
  0x93   : > { %v482_v47 = vshrl.u32 %v286_v4, 16  ;;  %v2621_v14 = vsel %vm5179_vm5, %v2616_v11, %v2620_v61  ;;  %v2852_v3 = vmul.f32 %v5255_v24, %v2816_v16  ;;  %v485_v34 = vshll.u32 %v286_v4, 16  ;;  %v4295_v16 = vld [vmem:[%s5133_s12 + $0x28] sm:$0xf] }
  0x94   : > { %v4815_v22 = vpop.eup %4814  ;;  %v5494_v20 = vmul.f32 %v5148_v13, %v319_v17  ;;  %v2817_v25 = vunpack.c.l.bf16 %v2621_v14  ;;  %v3161_v38 = vmul.f32 %v5252_v23, %v3125_v46  ;;  %v491_v43 = vshll.u32 %v287_v5, 16 }
  0x95   : > { %v3478_v36 = vmul.f32 %v4815_v22, %v5432_v30  ;;  %v484_v39 = vrot.slane %v482_v47, 4  ;;  %v2884_v41 = vadd.f32 %v2852_v3, %v2352_v18  ;;  %v487_v42 = vrot.slane %v485_v34, 5  ;;  %v4324_v3 = vld [vmem:[%s5133_s12 + $0x2c] sm:$0x1] }
  0x96   : > { %v495_v44 = vshrl.u32 %v287_v5, 16  ;;  %v2853_v45 = vmul.f32 %v5255_v24, %v2817_v25  ;;  %v501_v48 = vshll.u32 %v416_v33, 16  ;;  %v4276_v50 = vrot.slane %v951_v31, 9 }
  0x97   : > { %v1032_v51 = vrot.slane %v287_v5, 5  ;;  %v3192_v53 = vadd.f32 %v3160_v8, %v2884_v41  ;;  %v488_v54 = vor.u32 %v487_v42, %v484_v39  ;;  %v493_v55 = vrot.slane %v491_v43, 5  ;;  %v4340_v39 = vld [vmem:[%s5133_s12 + $0x24] sm:$0xe] }
  0x98   : > { %v4817_v52 = vpop.eup %4816  ;;  %v497_v56 = vrot.slane %v495_v44, 4  ;;  %v2885_v59 = vadd.f32 %v2853_v45, %v2353_v9  ;;  %v503_v23 = vrot.slane %v501_v48, 5  ;;  %v1035_v7 = vrot.slane %v416_v33, 5 }
  0x99   : > { %v3479_v30 = vmul.f32 %v4817_v52, %v5447_v19  ;;  %v1033_v61 = vsel %vm5166_vm4, %v4276_v50, %v1032_v51  ;;  %v3231_v62 = vmul.f32 %v5280_v60, %v3192_v53  ;;  %v489_v63 = vrot.slane %v488_v54, 4 }
  0x9a   : > { %v498_v0 = vor.u32 %v497_v56, %v493_v55  ;;  %v1034_v1 = vrot.slane %v1032_v51, 4  ;;  %v3193_v4 = vadd.f32 %v3161_v38, %v2885_v59  ;;  %v1164_v21 = vunpack.c.l.bf16 %v1033_v61  ;;  %v4374_v59 = vld [vmem:[%s5133_s12 + $0x30] sm:$0xf] }
  0x9b   : > { %v3509_v2 = vpack.c.bf16 %v3479_v30, %v3478_v36  ;;  %v5507_v29 = vadd.f32 %v5285_v6, %v3231_v62  ;;  %v494_v19 = vsel %vm5179_vm5, %v489_v63, %v493_v55  ;;  %v1297_v9 = vunpack.c.l.bf16 %v4294_v32 }
  0x9c   : > { %v499_v18 = vrot.slane %v498_v0, 4  ;;  %v3232_v27 = vmul.f32 %v5280_v60, %v3193_v4  ;;  %v853_v35 = vunpack.c.l.bf16 %v494_v19  ;;  %v1036_v5 = vsel %vm5166_vm4, %v1034_v1, %v1035_v7 }
  0x9d   : > { %4730 = vmatmul.mubr.bf16.vlgmr.msra.gmra.mrb[0].mxu0 %v3509_v2  ;;  %v1200_v11 = vmul.f32 %v5172_v37, %v1164_v21  ;;  %v4471_v10 = vmul.f32 -1.442695, %v5507_v29  ;;  %v1165_v46 = vunpack.c.l.bf16 %v1036_v5  ;;  %v1298_v8 = vunpack.c.l.bf16 %v4295_v16 }
  0x9e   : > { %v504_v17 = vsel %vm5179_vm5, %v499_v18, %v503_v23  ;;  %v5520_v47 = vadd.f32 %v5285_v6, %v3232_v27  ;;  %v889_v60 = vmul.f32 %v5152_v15, %v853_v35  ;;  %v1333_v14 = vmul.f32 %v5197_v57, %v1297_v9  ;;  %v4375_v23 = vld [vmem:[%s5133_s12 + $0x34] sm:$0xf] }
  0x9f   : > { %v854_v22 = vunpack.c.l.bf16 %v504_v17  ;;  %4818 = vpow2.f32 %v4471_v10  ;;  %v1201_v33 = vmul.f32 %v5172_v37, %v1165_v46  ;;  %v1334_v34 = vmul.f32 %v5197_v57, %v1298_v8  ;;  %v4404_v46 = vld [vmem:[%s5133_s12 + $0x38] sm:$0x1] }
  0xa0   : > { %v1458_v31 = vshrl.u32 %v4294_v32, 16  ;;  %v4472_v36 = vmul.f32 -1.442695, %v5520_v47  ;;  %v921_v38 = vadd.f32 %v889_v60, %v5488_v12  ;;  %v1461_v6 = vshll.u32 %v4294_v32, 16 }
  0xa1   : > { %v890_v25 = vmul.f32 %v5152_v15, %v854_v22  ;;  %v1467_v42 = vshll.u32 %v4295_v16, 16  ;;  %v1471_v43 = vshrl.u32 %v4295_v16, 16  ;;  %v1477_v44 = vshll.u32 %v4324_v3, 16 }
  0xa2   : > { %v1460_v41 = vrot.slane %v1458_v31, 4  ;;  %4820 = vpow2.f32 %v4472_v36  ;;  %v1232_v48 = vadd.f32 %v1200_v11, %v921_v38  ;;  %v1463_v50 = vrot.slane %v1461_v6, 5  ;;  %v4420_v36 = vld [vmem:[%s5133_s12 + $0x30] sm:$0xe] }
  0xa3   : > { %v922_v45 = vadd.f32 %v890_v25, %v5494_v20  ;;  %v1469_v51 = vrot.slane %v1467_v42, 5  ;;  %v1473_v52 = vrot.slane %v1471_v43, 4  ;;  %v1479_v53 = vrot.slane %v1477_v44, 5 }
  0xa4   : > { %v4356_v54 = vrot.slane %v4340_v39, 9  ;;  %v1365_v56 = vadd.f32 %v1333_v14, %v1232_v48  ;;  %v1464_v12 = vor.u32 %v1463_v50, %v1460_v41  ;;  %v2005_v30 = vrot.slane %v4295_v16, 5 }
  0xa5   : > { %v1233_v55 = vadd.f32 %v1201_v33, %v922_v45  ;;  %v1474_v61 = vor.u32 %v1473_v52, %v1469_v51  ;;  %v2008_v62 = vrot.slane %v4324_v3, 5  ;;  %v2270_v63 = vunpack.c.l.bf16 %v4374_v59 }
  0xa6   : > { %v2271_v0 = vunpack.c.l.bf16 %v4375_v23  ;;  %v1465_v2 = vrot.slane %v1464_v12, 4  ;;  %v2006_v20 = vsel %vm5166_vm4, %v4356_v54, %v2005_v30  ;;  %v2007_v4 = vrot.slane %v2005_v30, 4 }
  0xa7   : > { %v1366_v1 = vadd.f32 %v1334_v34, %v1233_v55  ;;  %v1475_v7 = vrot.slane %v1474_v61, 4  ;;  %v2137_v21 = vunpack.c.l.bf16 %v2006_v20  ;;  %v2306_v32 = vmul.f32 %v5241_v58, %v2270_v63  ;;  %v302_v55 = vld [vmem:[%s5133_s12 + $0x78] sm:$0xf] }
  0xa8   : > { %v2307_v19 = vmul.f32 %v5241_v58, %v2271_v0  ;;  %v1470_v18 = vsel %vm5179_vm5, %v1465_v2, %v1469_v51  ;;  %v2009_v9 = vsel %vm5166_vm4, %v2007_v4, %v2008_v62  ;;  %v2431_v27 = vshrl.u32 %v4374_v59, 16 }
  0xa9   : > { %v2434_v35 = vshll.u32 %v4374_v59, 16  ;;  %v4819_v5 = vpop.eup %4818  ;;  %v1480_v11 = vsel %vm5179_vm5, %v1475_v7, %v1479_v53  ;;  %v1829_v16 = vunpack.c.l.bf16 %v1470_v18  ;;  %v2138_v10 = vunpack.c.l.bf16 %v2009_v9  ;;  %v424_v9 = vld [vmem:[%s5133_s12 + $0x80] sm:$0x1] }
  0xaa   : > { %v2173_v17 = vmul.f32 %v5235_v49, %v2137_v21  ;;  %v3398_v8 = vadd.f32 1.0, %v4819_v5  ;;  %v1830_v22 = vunpack.c.l.bf16 %v1480_v11  ;;  %v2433_v60 = vrot.slane %v2431_v27, 4 }
  0xab   : > { %v2436_v14 = vrot.slane %v2434_v35, 5  ;;  %v1865_v3 = vmul.f32 %v5220_v26, %v1829_v16  ;;  %v2174_v33 = vmul.f32 %v5235_v49, %v2138_v10  ;;  %v2440_v34 = vshll.u32 %v4375_v23, 16 }
  0xac   : > { %v2444_v31 = vshrl.u32 %v4375_v23, 16  ;;  %v4821_v25 = vpop.eup %4820  ;;  %4822 = vrcp.f32 %v3398_v8  ;;  %v1866_v38 = vmul.f32 %v5220_v26, %v1830_v22  ;;  %v2450_v39 = vshll.u32 %v4404_v46, 16 }
  0xad   : > { %v2437_v6 = vor.u32 %v2436_v14, %v2433_v60  ;;  %v3399_v41 = vadd.f32 1.0, %v4821_v25  ;;  %v1897_v42 = vadd.f32 %v1865_v3, %v1365_v56  ;;  %v2442_v43 = vrot.slane %v2440_v34, 5 }
  0xae   : > { %v2446_v44 = vrot.slane %v2444_v31, 4  ;;  %v1898_v45 = vadd.f32 %v1866_v38, %v1366_v1  ;;  %v2452_v50 = vrot.slane %v2450_v39, 5  ;;  %v4436_v51 = vrot.slane %v4420_v36, 9  ;;  %v303_v1 = vld [vmem:[%s5133_s12 + $0x7c] sm:$0xf] }
  0xaf   : > { %v2438_v48 = vrot.slane %v2437_v6, 4  ;;  %4824 = vrcp.f32 %v3399_v41  ;;  %v2205_v52 = vadd.f32 %v2173_v17, %v1897_v42  ;;  %v2978_v54 = vrot.slane %v4375_v23, 5 }
  0xb0   : > { %v2447_v53 = vor.u32 %v2446_v44, %v2442_v43  ;;  %v2206_v12 = vadd.f32 %v2174_v33, %v1898_v45  ;;  %v2981_v59 = vrot.slane %v4404_v46, 5  ;;  %v334_v61 = vunpack.c.l.bf16 %v302_v55  ;;  %v959_v33 = vld [vmem:[%s5133_s12 + $0x78] sm:$0xe] }
  0xb1   : > { %v2443_v30 = vsel %vm5179_vm5, %v2438_v48, %v2442_v43  ;;  %v2338_v56 = vadd.f32 %v2306_v32, %v2205_v52  ;;  %v2979_v0 = vsel %vm5166_vm4, %v4436_v51, %v2978_v54  ;;  %v2980_v20 = vrot.slane %v2978_v54, 4  ;;  %v5581_v43 = vld [vmem:[%s6632_s2] ss:$0 sm:$0xff] }
  0xb2   : > { %v2448_v62 = vrot.slane %v2447_v53, 4  ;;  %v2802_v63 = vunpack.c.l.bf16 %v2443_v30  ;;  %v2339_v2 = vadd.f32 %v2307_v19, %v2206_v12  ;;  %v3110_v4 = vunpack.c.l.bf16 %v2979_v0  ;;  %v5568_v19 = vld [vmem:[%s6631_s1 + $0x8] ss:$0 sm:$0xff]  ;;  %v5588_v54 = vld [vmem:[%s6633_s3] ss:$0 sm:$0xff] }
  0xb3   : > { %v335_v7 = vunpack.c.l.bf16 %v303_v1  ;;  %v5560_v18 = vmul.f32 %v5148_v13, %v334_v61  ;;  %v674_v32 = vshrl.u32 %v302_v55, 16  ;;  %v2982_v35 = vsel %vm5166_vm4, %v2980_v20, %v2981_v59 }
  0xb4   : > { %v2453_v23 = vsel %vm5179_vm5, %v2448_v62, %v2452_v50  ;;  %v2838_v21 = vmul.f32 %v5255_v24, %v2802_v63  ;;  %v3146_v5 = vmul.f32 %v5568_v19, %v3110_v4  ;;  %v3111_v10 = vunpack.c.l.bf16 %v2982_v35  ;;  %v4310_v63 = vld [vmem:[%s5133_s12 + $0x84] sm:$0xf] }
  0xb5   : > { %v2803_v27 = vunpack.c.l.bf16 %v2453_v23  ;;  %v5572_v11 = vmul.f32 %v5148_v13, %v335_v7  ;;  %v676_v17 = vrot.slane %v674_v32, 4  ;;  %v677_v46 = vshll.u32 %v302_v55, 16 }
  0xb6   : > { %v2870_v16 = vadd.f32 %v2838_v21, %v2338_v56  ;;  %v4823_v8 = vpop.eup %4822  ;;  %v683_v60 = vshll.u32 %v303_v1, 16  ;;  %v687_v14 = vshrl.u32 %v303_v1, 16  ;;  %v693_v3 = vshll.u32 %v424_v9, 16 }
  0xb7   : > { %v2839_v22 = vmul.f32 %v5255_v24, %v2803_v27  ;;  %v3494_v34 = vmul.f32 %v4823_v8, %v5507_v29  ;;  %v3147_v31 = vmul.f32 %v5568_v19, %v3111_v10  ;;  %v679_v25 = vrot.slane %v677_v46, 5  ;;  %v4332_v46 = vld [vmem:[%s5133_s12 + $0x8c] sm:$0x1] }
  0xb8   : > { %v3178_v36 = vadd.f32 %v3146_v5, %v2870_v16  ;;  %v685_v6 = vrot.slane %v683_v60, 5  ;;  %v689_v39 = vrot.slane %v687_v14, 4  ;;  %v695_v41 = vrot.slane %v693_v3, 5  ;;  %v4348_v3 = vld [vmem:[%s5133_s12 + $0x84] sm:$0xe] }
  0xb9   : > { %v2871_v38 = vadd.f32 %v2839_v22, %v2339_v2  ;;  %v4825_v42 = vpop.eup %4824  ;;  %v680_v45 = vor.u32 %v679_v25, %v676_v17  ;;  %v4284_v48 = vrot.slane %v959_v33, 9  ;;  %v1088_v29 = vrot.slane %v303_v1, 5 }
  0xba   : > { %v3217_v44 = vmul.f32 %v5581_v43, %v3178_v36  ;;  %v3495_v50 = vmul.f32 %v4825_v42, %v5520_v47  ;;  %v690_v52 = vor.u32 %v689_v39, %v685_v6  ;;  %v1091_v53 = vrot.slane %v424_v9, 5  ;;  %v4311_v9 = vld [vmem:[%s5133_s12 + $0x88] sm:$0xf] }
  0xbb   : > { %v3179_v51 = vadd.f32 %v3147_v31, %v2871_v38  ;;  %v681_v12 = vrot.slane %v680_v45, 4  ;;  %v1089_v30 = vsel %vm5166_vm4, %v4284_v48, %v1088_v29  ;;  %v1090_v59 = vrot.slane %v1088_v29, 4 }
  0xbc   : > { %v5591_v55 = vadd.f32 %v5588_v54, %v3217_v44  ;;  %v3517_v61 = vpack.c.bf16 %v3495_v50, %v3494_v34  ;;  %v691_v56 = vrot.slane %v690_v52, 4  ;;  %v1180_v62 = vunpack.c.l.bf16 %v1089_v30 }
  0xbd   : > { %v3218_v47 = vmul.f32 %v5581_v43, %v3179_v51  ;;  %v686_v1 = vsel %vm5179_vm5, %v681_v12, %v685_v6  ;;  %v1092_v2 = vsel %vm5166_vm4, %v1090_v59, %v1091_v53  ;;  %v1313_v20 = vunpack.c.l.bf16 %v4310_v63  ;;  %v4390_v51 = vld [vmem:[%s5133_s12 + $0x90] sm:$0xf] }
  0xbe   : > { %v4457_v0 = vmul.f32 -1.442695, %v5591_v55  ;;  %4746 = vmatmul.mubr.bf16.vlgmr.msra.gmra.mrb[0].mxu1 %v3517_v61  ;;  %v696_v7 = vsel %vm5179_vm5, %v691_v56, %v695_v41  ;;  %v869_v23 = vunpack.c.l.bf16 %v686_v1  ;;  %v1181_v21 = vunpack.c.l.bf16 %v1092_v2 }
  0xbf   : > { %v5603_v4 = vadd.f32 %v5588_v54, %v3218_v47  ;;  %v870_v32 = vunpack.c.l.bf16 %v696_v7  ;;  %v1216_v27 = vmul.f32 %v5172_v37, %v1180_v62  ;;  %v1314_v35 = vunpack.c.l.bf16 %v4311_v9  ;;  %v4391_v47 = vld [vmem:[%s5133_s12 + $0x94] sm:$0xf] }
  0xc0   : > { %4826 = vpow2.f32 %v4457_v0  ;;  %v905_v16 = vmul.f32 %v5152_v15, %v869_v23  ;;  %v1217_v10 = vmul.f32 %v5172_v37, %v1181_v21  ;;  %v1349_v17 = vmul.f32 %v5197_v57, %v1313_v20 }
  0xc1   : > { %v4458_v5 = vmul.f32 -1.442695, %v5603_v4  ;;  %v906_v8 = vmul.f32 %v5152_v15, %v870_v32  ;;  %v1350_v22 = vmul.f32 %v5197_v57, %v1314_v35  ;;  %v1650_v60 = vshrl.u32 %v4310_v63, 16 }
  0xc2   : > { %v1653_v14 = vshll.u32 %v4310_v63, 16  ;;  %v937_v33 = vadd.f32 %v905_v16, %v5560_v18  ;;  %v1659_v34 = vshll.u32 %v4311_v9, 16  ;;  %v1663_v31 = vshrl.u32 %v4311_v9, 16 }
  0xc3   : > { %4828 = vpow2.f32 %v4458_v5  ;;  %v938_v36 = vadd.f32 %v906_v8, %v5572_v11  ;;  %v1652_v25 = vrot.slane %v1650_v60, 4  ;;  %v1669_v6 = vshll.u32 %v4332_v46, 16 }
  0xc4   : > { %v1655_v38 = vrot.slane %v1653_v14, 5  ;;  %v1248_v39 = vadd.f32 %v1216_v27, %v937_v33  ;;  %v1661_v41 = vrot.slane %v1659_v34, 5  ;;  %v1665_v42 = vrot.slane %v1663_v31, 4 }
  0xc5   : > { %v4364_v44 = vrot.slane %v4348_v3, 9  ;;  %v1249_v45 = vadd.f32 %v1217_v10, %v938_v36  ;;  %v1671_v29 = vrot.slane %v1669_v6, 5  ;;  %v2061_v50 = vrot.slane %v4311_v9, 5  ;;  %v4412_v10 = vld [vmem:[%s5133_s12 + $0x98] sm:$0x1] }
  0xc6   : > { %v1656_v48 = vor.u32 %v1655_v38, %v1652_v25  ;;  %v1381_v52 = vadd.f32 %v1349_v17, %v1248_v39  ;;  %v1666_v53 = vor.u32 %v1665_v42, %v1661_v41  ;;  %v2064_v18 = vrot.slane %v4332_v46, 5  ;;  %v4428_v46 = vld [vmem:[%s5133_s12 + $0x90] sm:$0xe] }
  0xc7   : > { %v2286_v12 = vunpack.c.l.bf16 %v4390_v51  ;;  %v1382_v30 = vadd.f32 %v1350_v22, %v1249_v45  ;;  %v2062_v11 = vsel %vm5166_vm4, %v4364_v44, %v2061_v50  ;;  %v2063_v61 = vrot.slane %v2061_v50, 4  ;;  %v288_v50 = vld [vmem:[%s5133_s12 + $0x24] sm:$0xf] }
  0xc8   : > { %v1657_v59 = vrot.slane %v1656_v48, 4  ;;  %v1667_v56 = vrot.slane %v1666_v53, 4  ;;  %v2153_v62 = vunpack.c.l.bf16 %v2062_v11  ;;  %v2287_v63 = vunpack.c.l.bf16 %v4391_v47 }
  0xc9   : > { %v2322_v0 = vmul.f32 %v5241_v58, %v2286_v12  ;;  %v2065_v20 = vsel %vm5166_vm4, %v2063_v61, %v2064_v18  ;;  %v2623_v7 = vshrl.u32 %v4390_v51, 16  ;;  %v2626_v23 = vshll.u32 %v4390_v51, 16 }
  0xca   : > { %v4827_v1 = vpop.eup %4826  ;;  %v1662_v2 = vsel %vm5179_vm5, %v1657_v59, %v1661_v41  ;;  %v1672_v9 = vsel %vm5179_vm5, %v1667_v56, %v1671_v29  ;;  %v2154_v27 = vunpack.c.l.bf16 %v2065_v20  ;;  %v2189_v5 = vmul.f32 %v5235_v49, %v2153_v62 }
  0xcb   : > { %v3384_v21 = vadd.f32 1.0, %v4827_v1  ;;  %v1845_v32 = vunpack.c.l.bf16 %v1662_v2  ;;  %v1846_v35 = vunpack.c.l.bf16 %v1672_v9  ;;  %v2323_v16 = vmul.f32 %v5241_v58, %v2287_v63 }
  0xcc   : > { %v2625_v17 = vrot.slane %v2623_v7, 4  ;;  %v2190_v60 = vmul.f32 %v5235_v49, %v2154_v27  ;;  %v2628_v14 = vrot.slane %v2626_v23, 5  ;;  %v2632_v34 = vshll.u32 %v4391_v47, 16 }
  0xcd   : > { %v4829_v8 = vpop.eup %4828  ;;  %4830 = vrcp.f32 %v3384_v21  ;;  %v1881_v22 = vmul.f32 %v5220_v26, %v1845_v32  ;;  %v1882_v33 = vmul.f32 %v5220_v26, %v1846_v35  ;;  %v2636_v31 = vshrl.u32 %v4391_v47, 16  ;;  %v417_v32 = vld [vmem:[%s5133_s12 + $0x2c] sm:$0x1] }
  0xce   : > { %v3385_v3 = vadd.f32 1.0, %v4829_v8  ;;  %v2629_v25 = vor.u32 %v2628_v14, %v2625_v17  ;;  %v2642_v38 = vshll.u32 %v4412_v10, 16  ;;  %v4444_v6 = vrot.slane %v4428_v46, 9  ;;  %v952_v17 = vld [vmem:[%s5133_s12 + $0x24] sm:$0xe] }
  0xcf   : > { %v1913_v36 = vadd.f32 %v1881_v22, %v1381_v52  ;;  %v1914_v39 = vadd.f32 %v1882_v33, %v1382_v30  ;;  %v2634_v41 = vrot.slane %v2632_v34, 5  ;;  %v2638_v42 = vrot.slane %v2636_v31, 4 }
  0xd0   : > { %4832 = vrcp.f32 %v3385_v3  ;;  %v2630_v45 = vrot.slane %v2629_v25, 4  ;;  %v2644_v48 = vrot.slane %v2642_v38, 5  ;;  %v3034_v29 = vrot.slane %v4391_v47, 5  ;;  %v289_v47 = vld [vmem:[%s5133_s12 + $0x28] sm:$0xf] }
  0xd1   : > { %v2221_v44 = vadd.f32 %v2189_v5, %v1913_v36  ;;  %v2222_v51 = vadd.f32 %v2190_v60, %v1914_v39  ;;  %v2639_v53 = vor.u32 %v2638_v42, %v2634_v41  ;;  %v3037_v18 = vrot.slane %v4412_v10, 5 }
  0xd2   : > { %v320_v12 = vunpack.c.l.bf16 %v288_v50  ;;  %v2635_v52 = vsel %vm5179_vm5, %v2630_v45, %v2634_v41  ;;  %v3035_v30 = vsel %vm5166_vm4, %v4444_v6, %v3034_v29  ;;  %v3036_v11 = vrot.slane %v3034_v29, 4 }
  0xd3   : > { %v2354_v59 = vadd.f32 %v2322_v0, %v2221_v44  ;;  %v2355_v61 = vadd.f32 %v2323_v16, %v2222_v51  ;;  %v2640_v56 = vrot.slane %v2639_v53, 4  ;;  %v2818_v62 = vunpack.c.l.bf16 %v2635_v52 }
  0xd4   : > { %v3126_v63 = vunpack.c.l.bf16 %v3035_v30  ;;  %v3038_v1 = vsel %vm5166_vm4, %v3036_v11, %v3037_v18  ;;  %v321_v2 = vunpack.c.l.bf16 %v289_v47  ;;  %v5646_v0 = vmul.f32 %v5148_v13, %v320_v12  ;;  %v4296_v12 = vld [vmem:[%s5133_s12 + $0x30] sm:$0xf]  ;;  %v4297_v30 = vld [vmem:[%s5133_s12 + $0x34] sm:$0xf] }
  0xd5   : > { %v506_v20 = vshrl.u32 %v288_v50, 16  ;;  %v2645_v7 = vsel %vm5179_vm5, %v2640_v56, %v2644_v48  ;;  %v2854_v23 = vmul.f32 %v5255_v24, %v2818_v62  ;;  %v3127_v21 = vunpack.c.l.bf16 %v3038_v1 }
  0xd6   : > { %v3162_v9 = vmul.f32 %v5568_v19, %v3126_v63  ;;  %v2819_v35 = vunpack.c.l.bf16 %v2645_v7  ;;  %v5654_v5 = vmul.f32 %v5148_v13, %v321_v2  ;;  %v509_v10 = vshll.u32 %v288_v50, 16 }
  0xd7   : > { %v4831_v27 = vpop.eup %4830  ;;  %v508_v16 = vrot.slane %v506_v20, 4  ;;  %v2886_v8 = vadd.f32 %v2854_v23, %v2354_v59  ;;  %v3163_v22 = vmul.f32 %v5568_v19, %v3127_v21  ;;  %v515_v60 = vshll.u32 %v289_v47, 16 }
  0xd8   : > { %v3480_v46 = vmul.f32 %v4831_v27, %v5591_v55  ;;  %v2855_v14 = vmul.f32 %v5255_v24, %v2819_v35  ;;  %v511_v3 = vrot.slane %v509_v10, 5  ;;  %v519_v33 = vshrl.u32 %v289_v47, 16 }
  0xd9   : > { %v525_v34 = vshll.u32 %v417_v32, 16  ;;  %v3194_v36 = vadd.f32 %v3162_v9, %v2886_v8  ;;  %v517_v25 = vrot.slane %v515_v60, 5  ;;  %v4277_v38 = vrot.slane %v952_v17, 9 }
  0xda   : > { %v4833_v31 = vpop.eup %4832  ;;  %v1039_v6 = vrot.slane %v289_v47, 5  ;;  %v2887_v41 = vadd.f32 %v2855_v14, %v2355_v61  ;;  %v512_v55 = vor.u32 %v511_v3, %v508_v16  ;;  %v521_v42 = vrot.slane %v519_v33, 4  ;;  %v4325_v16 = vld [vmem:[%s5133_s12 + $0x38] sm:$0x1]  ;;  %v4341_v33 = vld [vmem:[%s5133_s12 + $0x30] sm:$0xe] }
  0xdb   : > { %v3481_v39 = vmul.f32 %v4833_v31, %v5603_v4  ;;  %v3233_v44 = vmul.f32 %v5581_v43, %v3194_v36  ;;  %v527_v45 = vrot.slane %v525_v34, 5  ;;  %v1042_v4 = vrot.slane %v417_v32, 5 }
  0xdc   : > { %v1040_v48 = vsel %vm5166_vm4, %v4277_v38, %v1039_v6  ;;  %v1041_v29 = vrot.slane %v1039_v6, 4  ;;  %v3195_v51 = vadd.f32 %v3163_v22, %v2887_v41  ;;  %v513_v53 = vrot.slane %v512_v55, 4 }
  0xdd   : > { %v3510_v50 = vpack.c.bf16 %v3481_v39, %v3480_v46  ;;  %v522_v18 = vor.u32 %v521_v42, %v517_v25  ;;  %v5666_v59 = vadd.f32 %v5588_v54, %v3233_v44  ;;  %v1166_v52 = vunpack.c.l.bf16 %v1040_v48 }
  0xde   : > { %v1299_v11 = vunpack.c.l.bf16 %v4296_v12  ;;  %v3234_v61 = vmul.f32 %v5581_v43, %v3195_v51  ;;  %v518_v56 = vsel %vm5179_vm5, %v513_v53, %v517_v25  ;;  %v1300_v63 = vunpack.c.l.bf16 %v4297_v30 }
  0xdf   : > { %4733 = vmatprep.mubr.bf16.mxu0 %v3510_v50  ;;  %v523_v62 = vrot.slane %v522_v18, 4  ;;  %v4473_v47 = vmul.f32 -1.442695, %v5666_v59  ;;  %v855_v1 = vunpack.c.l.bf16 %v518_v56  ;;  %v1043_v2 = vsel %vm5166_vm4, %v1041_v29, %v1042_v4  ;;  %v4376_v50 = vld [vmem:[%s5133_s12 + $0x3c] sm:$0xf] }
  0xe0   : > { %v1202_v20 = vmul.f32 %v5172_v37, %v1166_v52  ;;  %v5677_v7 = vadd.f32 %v5588_v54, %v3234_v61  ;;  %v1167_v21 = vunpack.c.l.bf16 %v1043_v2  ;;  %v1335_v9 = vmul.f32 %v5197_v57, %v1299_v11 }
  0xe1   : > { %v528_v23 = vsel %vm5179_vm5, %v523_v62, %v527_v45  ;;  %4834 = vpow2.f32 %v4473_v47  ;;  %v891_v27 = vmul.f32 %v5152_v15, %v855_v1  ;;  %v1336_v35 = vmul.f32 %v5197_v57, %v1300_v63 }
  0xe2   : > { %v856_v32 = vunpack.c.l.bf16 %v528_v23  ;;  %v4474_v10 = vmul.f32 -1.442695, %v5677_v7  ;;  %v1203_v17 = vmul.f32 %v5172_v37, %v1167_v21  ;;  %v1482_v46 = vshrl.u32 %v4296_v12, 16  ;;  %v4405_v21 = vld [vmem:[%s5133_s12 + $0x44] sm:$0x1] }
  0xe3   : > { %v1485_v8 = vshll.u32 %v4296_v12, 16  ;;  %v923_v60 = vadd.f32 %v891_v27, %v5646_v0  ;;  %v1491_v14 = vshll.u32 %v4297_v30, 16  ;;  %v1495_v3 = vshrl.u32 %v4297_v30, 16 }
  0xe4   : > { %v892_v22 = vmul.f32 %v5152_v15, %v856_v32  ;;  %4836 = vpow2.f32 %v4474_v10  ;;  %v1484_v34 = vrot.slane %v1482_v46, 4  ;;  %v1501_v36 = vshll.u32 %v4325_v16, 16 }
  0xe5   : > { %v1487_v31 = vrot.slane %v1485_v8, 5  ;;  %v1234_v38 = vadd.f32 %v1202_v20, %v923_v60  ;;  %v1493_v6 = vrot.slane %v1491_v14, 5  ;;  %v1497_v39 = vrot.slane %v1495_v3, 4  ;;  %v4421_v8 = vld [vmem:[%s5133_s12 + $0x3c] sm:$0xe] }
  0xe6   : > { %v924_v25 = vadd.f32 %v892_v22, %v5654_v5  ;;  %v1503_v55 = vrot.slane %v1501_v36, 5  ;;  %v4357_v42 = vrot.slane %v4341_v33, 9  ;;  %v2012_v44 = vrot.slane %v4297_v30, 5  ;;  %v4377_v5 = vld [vmem:[%s5133_s12 + $0x40] sm:$0xf] }
  0xe7   : > { %v1488_v41 = vor.u32 %v1487_v31, %v1484_v34  ;;  %v1367_v0 = vadd.f32 %v1335_v9, %v1234_v38  ;;  %v1498_v48 = vor.u32 %v1497_v39, %v1493_v6  ;;  %v2015_v29 = vrot.slane %v4325_v16, 5 }
  0xe8   : > { %v1235_v45 = vadd.f32 %v1203_v17, %v924_v25  ;;  %v2013_v53 = vsel %vm5166_vm4, %v4357_v42, %v2012_v44  ;;  %v2014_v18 = vrot.slane %v2012_v44, 4  ;;  %v2272_v12 = vunpack.c.l.bf16 %v4376_v50  ;;  %v304_v44 = vld [vmem:[%s5133_s12 + $0x84] sm:$0xf] }
  0xe9   : > { %v1489_v51 = vrot.slane %v1488_v41, 4  ;;  %v1499_v52 = vrot.slane %v1498_v48, 4  ;;  %v2139_v11 = vunpack.c.l.bf16 %v2013_v53  ;;  %v2273_v61 = vunpack.c.l.bf16 %v4377_v5 }
  0xea   : > { %v1368_v4 = vadd.f32 %v1336_v35, %v1235_v45  ;;  %v2016_v56 = vsel %vm5166_vm4, %v2014_v18, %v2015_v29  ;;  %v2308_v62 = vmul.f32 %v5241_v58, %v2272_v12  ;;  %v2455_v63 = vshrl.u32 %v4376_v50, 16  ;;  %v305_v12 = vld [vmem:[%s5133_s12 + $0x88] sm:$0xf] }
  0xeb   : > { %v1494_v30 = vsel %vm5179_vm5, %v1489_v51, %v1493_v6  ;;  %v4835_v47 = vpop.eup %4834  ;;  %v1504_v1 = vsel %vm5179_vm5, %v1499_v52, %v1503_v55  ;;  %v2140_v20 = vunpack.c.l.bf16 %v2016_v56  ;;  %v2175_v23 = vmul.f32 %v5235_v49, %v2139_v11 }
  0xec   : > { %v1831_v2 = vunpack.c.l.bf16 %v1494_v30  ;;  %v3400_v9 = vadd.f32 1.0, %v4835_v47  ;;  %v1832_v32 = vunpack.c.l.bf16 %v1504_v1  ;;  %v2309_v27 = vmul.f32 %v5241_v58, %v2273_v61 }
  0xed   : > { %v2457_v35 = vrot.slane %v2455_v63, 4  ;;  %v2176_v10 = vmul.f32 %v5235_v49, %v2140_v20  ;;  %v2458_v17 = vshll.u32 %v4376_v50, 16  ;;  %v2464_v46 = vshll.u32 %v4377_v5, 16  ;;  %v425_v20 = vld [vmem:[%s5133_s12 + $0x8c] sm:$0x1] }
  0xee   : > { %v1867_v16 = vmul.f32 %v5220_v26, %v1831_v2  ;;  %v4837_v22 = vpop.eup %4836  ;;  %4838 = vrcp.f32 %v3400_v9  ;;  %v1868_v60 = vmul.f32 %v5220_v26, %v1832_v32  ;;  %v2468_v14 = vshrl.u32 %v4377_v5, 16 }
  0xef   : > { %v2474_v3 = vshll.u32 %v4405_v21, 16  ;;  %v3401_v33 = vadd.f32 1.0, %v4837_v22  ;;  %v2460_v31 = vrot.slane %v2458_v17, 5  ;;  %v2466_v36 = vrot.slane %v2464_v46, 5 }
  0xf0   : > { %v1899_v34 = vadd.f32 %v1867_v16, %v1367_v0  ;;  %v1900_v25 = vadd.f32 %v1868_v60, %v1368_v4  ;;  %v2470_v38 = vrot.slane %v2468_v14, 4  ;;  %v4437_v39 = vrot.slane %v4421_v8, 9 }
  0xf1   : > { %v2476_v6 = vrot.slane %v2474_v3, 5  ;;  %4840 = vrcp.f32 %v3401_v33  ;;  %v2461_v55 = vor.u32 %v2460_v31, %v2457_v35  ;;  %v2985_v42 = vrot.slane %v4377_v5, 5 }
  0xf2   : > { %v2207_v41 = vadd.f32 %v2175_v23, %v1899_v34  ;;  %v2208_v45 = vadd.f32 %v2176_v10, %v1900_v25  ;;  %v2471_v48 = vor.u32 %v2470_v38, %v2466_v36  ;;  %v2988_v29 = vrot.slane %v4405_v21, 5 }
  0xf3   : > { %v336_v50 = vunpack.c.l.bf16 %v304_v44  ;;  %v2462_v53 = vrot.slane %v2461_v55, 4  ;;  %v2986_v0 = vsel %vm5166_vm4, %v4437_v39, %v2985_v42  ;;  %v2987_v18 = vrot.slane %v2985_v42, 4 }
  0xf4   : > { %v2340_v51 = vadd.f32 %v2308_v62, %v2207_v41  ;;  %v2341_v4 = vadd.f32 %v2309_v27, %v2208_v45  ;;  %v2472_v52 = vrot.slane %v2471_v48, 4  ;;  %v3112_v11 = vunpack.c.l.bf16 %v2986_v0  ;;  %v960_v27 = vld [vmem:[%s5133_s12 + $0x84] sm:$0xe] }
  0xf5   : > { %v337_v61 = vunpack.c.l.bf16 %v305_v12  ;;  %v2467_v5 = vsel %vm5179_vm5, %v2462_v53, %v2466_v36  ;;  %v2989_v30 = vsel %vm5166_vm4, %v2987_v18, %v2988_v29  ;;  %v5718_v56 = vmul.f32 %v5148_v13, %v336_v50  ;;  %v4312_v18 = vld [vmem:[%s5133_s12 + $0x90] sm:$0xf] }
  0xf6   : > { %v698_v62 = vshrl.u32 %v304_v44, 16  ;;  %v2477_v63 = vsel %vm5179_vm5, %v2472_v52, %v2476_v6  ;;  %v2804_v47 = vunpack.c.l.bf16 %v2467_v5  ;;  %v3113_v1 = vunpack.c.l.bf16 %v2989_v30 }
  0xf7   : > { %v3148_v2 = vmul.f32 %v5568_v19, %v3112_v11  ;;  %v2805_v23 = vunpack.c.l.bf16 %v2477_v63  ;;  %v5725_v21 = vmul.f32 %v5148_v13, %v337_v61  ;;  %v701_v32 = vshll.u32 %v304_v44, 16 }
  0xf8   : > { %v700_v9 = vrot.slane %v698_v62, 4  ;;  %v4839_v35 = vpop.eup %4838  ;;  %v2840_v16 = vmul.f32 %v5255_v24, %v2804_v47  ;;  %v3149_v10 = vmul.f32 %v5568_v19, %v3113_v1  ;;  %v707_v17 = vshll.u32 %v305_v12, 16  ;;  %v4313_v62 = vld [vmem:[%s5133_s12 + $0x94] sm:$0xf] }
  0xf9   : > { %v711_v46 = vshrl.u32 %v305_v12, 16  ;;  %v3496_v8 = vmul.f32 %v4839_v35, %v5666_v59  ;;  %v2841_v22 = vmul.f32 %v5255_v24, %v2805_v23  ;;  %v703_v60 = vrot.slane %v701_v32, 5 }
  0xfa   : > { %v717_v14 = vshll.u32 %v425_v20, 16  ;;  %v2872_v3 = vadd.f32 %v2840_v16, %v2340_v51  ;;  %v709_v33 = vrot.slane %v707_v17, 5  ;;  %v4285_v31 = vrot.slane %v960_v27, 9 }
  0xfb   : > { %v713_v34 = vrot.slane %v711_v46, 4  ;;  %v4841_v36 = vpop.eup %4840  ;;  %v2873_v25 = vadd.f32 %v2841_v22, %v2341_v4  ;;  %v704_v38 = vor.u32 %v703_v60, %v700_v9  ;;  %v1095_v39 = vrot.slane %v305_v12, 5  ;;  %v4349_v60 = vld [vmem:[%s5133_s12 + $0x90] sm:$0xe] }
  0xfc   : > { %v719_v6 = vrot.slane %v717_v14, 5  ;;  %v3497_v41 = vmul.f32 %v4841_v36, %v5677_v7  ;;  %v3180_v55 = vadd.f32 %v3148_v2, %v2872_v3  ;;  %v1098_v44 = vrot.slane %v425_v20, 5 }
  0xfd   : > { %v714_v42 = vor.u32 %v713_v34, %v709_v33  ;;  %v3181_v59 = vadd.f32 %v3149_v10, %v2873_v25  ;;  %v705_v45 = vrot.slane %v704_v38, 4  ;;  %v1096_v48 = vsel %vm5166_vm4, %v4285_v31, %v1095_v39  ;;  %v4333_v10 = vld [vmem:[%s5133_s12 + $0x98] sm:$0x1] }
  0xfe   : > { %v1097_v29 = vrot.slane %v1095_v39, 4  ;;  %v3518_v50 = vpack.c.bf16 %v3497_v41, %v3496_v8  ;;  %v3219_v51 = vmul.f32 %v5581_v43, %v3180_v55  ;;  %v1182_v0 = vunpack.c.l.bf16 %v1096_v48 }
  0xff   : > { %v715_v53 = vrot.slane %v714_v42, 4  ;;  %v3220_v12 = vmul.f32 %v5581_v43, %v3181_v59  ;;  %v710_v7 = vsel %vm5179_vm5, %v705_v45, %v709_v33  ;;  %v1315_v52 = vunpack.c.l.bf16 %v4312_v18  ;;  %v4392_v59 = vld [vmem:[%s5133_s12 + $0x9c] sm:$0xf] }
 0x100   : > { %v1099_v4 = vsel %vm5166_vm4, %v1097_v29, %v1098_v44  ;;  %4749 = vmatprep.mubr.bf16.mxu1 %v3518_v50  ;;  %v5743_v11 = vadd.f32 %v5588_v54, %v3219_v51  ;;  %v871_v5 = vunpack.c.l.bf16 %v710_v7  ;;  %v1218_v1 = vmul.f32 %v5172_v37, %v1182_v0  ;;  %v4393_v50 = vld [vmem:[%s5133_s12 + $0xa0] sm:$0xf] }
 0x101   : > { %v720_v61 = vsel %vm5179_vm5, %v715_v53, %v719_v6  ;;  %v1183_v30 = vunpack.c.l.bf16 %v1099_v4  ;;  %v5749_v63 = vadd.f32 %v5588_v54, %v3220_v12  ;;  %v1316_v2 = vunpack.c.l.bf16 %v4313_v62 }
 0x102   : > { %v872_v47 = vunpack.c.l.bf16 %v720_v61  ;;  %v4459_v20 = vmul.f32 -1.442695, %v5743_v11  ;;  %v907_v23 = vmul.f32 %v5152_v15, %v871_v5  ;;  %v1351_v32 = vmul.f32 %v5197_v57, %v1315_v52 }
 0x103   : > { %v1219_v9 = vmul.f32 %v5172_v37, %v1183_v30  ;;  %v4460_v27 = vmul.f32 -1.442695, %v5749_v63  ;;  %v1352_v16 = vmul.f32 %v5197_v57, %v1316_v2  ;;  %v1674_v17 = vshrl.u32 %v4312_v18, 16 }
 0x104   : > { %v908_v35 = vmul.f32 %v5152_v15, %v872_v47  ;;  %4842 = vpow2.f32 %v4459_v20  ;;  %v939_v46 = vadd.f32 %v907_v23, %v5718_v56  ;;  %v1677_v8 = vshll.u32 %v4312_v18, 16  ;;  %v4413_v47 = vld [vmem:[%s5133_s12 + $0xa4] sm:$0x1] }
 0x105   : > { %v1683_v22 = vshll.u32 %v4313_v62, 16  ;;  %4844 = vpow2.f32 %v4460_v27  ;;  %v1676_v3 = vrot.slane %v1674_v17, 4  ;;  %v1687_v33 = vshrl.u32 %v4313_v62, 16 }
 0x106   : > { %v940_v14 = vadd.f32 %v908_v35, %v5725_v21  ;;  %v1250_v34 = vadd.f32 %v1218_v1, %v939_v46  ;;  %v1679_v31 = vrot.slane %v1677_v8, 5  ;;  %v1693_v25 = vshll.u32 %v4333_v10, 16 }
 0x107   : > { %v1685_v36 = vrot.slane %v1683_v22, 5  ;;  %v1689_v6 = vrot.slane %v1687_v33, 4  ;;  %v4365_v39 = vrot.slane %v4349_v60, 9  ;;  %v2068_v41 = vrot.slane %v4313_v62, 5  ;;  %v4429_v60 = vld [vmem:[%s5133_s12 + $0x9c] sm:$0xe] }
 0x108   : > { %v1251_v38 = vadd.f32 %v1219_v9, %v940_v14  ;;  %v1383_v55 = vadd.f32 %v1351_v32, %v1250_v34  ;;  %v1680_v56 = vor.u32 %v1679_v31, %v1676_v3  ;;  %v1695_v42 = vrot.slane %v1693_v25, 5 }
 0x109   : > { %v2071_v44 = vrot.slane %v4333_v10, 5  ;;  %v1690_v48 = vor.u32 %v1689_v6, %v1685_v36  ;;  %v2069_v21 = vsel %vm5166_vm4, %v4365_v39, %v2068_v41  ;;  %v2070_v29 = vrot.slane %v2068_v41, 4 }
 0x10a   : > { %v1384_v45 = vadd.f32 %v1352_v16, %v1251_v38  ;;  %v1681_v51 = vrot.slane %v1680_v56, 4  ;;  %v2155_v53 = vunpack.c.l.bf16 %v2069_v21  ;;  %v2288_v0 = vunpack.c.l.bf16 %v4392_v59 }
 0x10b   : > { %v2289_v18 = vunpack.c.l.bf16 %v4393_v50  ;;  %v1691_v12 = vrot.slane %v1690_v48, 4  ;;  %v2072_v7 = vsel %vm5166_vm4, %v2070_v29, %v2071_v44  ;;  %v2647_v4 = vshrl.u32 %v4392_v59, 16  ;;  %v291_v48 = vld [vmem:[%s5133_s12 + $0x34] sm:$0xf] }
 0x10c   : > { %v2650_v52 = vshll.u32 %v4392_v59, 16  ;;  %v1686_v61 = vsel %vm5179_vm5, %v1681_v51, %v1685_v36  ;;  %v2156_v5 = vunpack.c.l.bf16 %v2072_v7  ;;  %v2191_v30 = vmul.f32 %v5235_v49, %v2155_v53  ;;  %v290_v59 = vld [vmem:[%s5133_s12 + $0x30] sm:$0xf] }
 0x10d   : > { %v2324_v62 = vmul.f32 %v5241_v58, %v2288_v0  ;;  %v1696_v1 = vsel %vm5179_vm5, %v1691_v12, %v1695_v42  ;;  %v1847_v2 = vunpack.c.l.bf16 %v1686_v61  ;;  %v2325_v20 = vmul.f32 %v5241_v58, %v2289_v18 }
 0x10e   : > { %v2649_v23 = vrot.slane %v2647_v4, 4  ;;  %v4843_v9 = vpop.eup %4842  ;;  %v1848_v32 = vunpack.c.l.bf16 %v1696_v1  ;;  %v2192_v27 = vmul.f32 %v5235_v49, %v2156_v5  ;;  %v2652_v35 = vrot.slane %v2650_v52, 5 }
 0x10f   : > { %v2656_v16 = vshll.u32 %v4393_v50, 16  ;;  %v4845_v10 = vpop.eup %4844  ;;  %v3386_v17 = vadd.f32 1.0, %v4843_v9  ;;  %v1883_v46 = vmul.f32 %v5220_v26, %v1847_v2  ;;  %v2660_v8 = vshrl.u32 %v4393_v50, 16 }
 0x110   : > { %v2666_v22 = vshll.u32 %v4413_v47, 16  ;;  %v3387_v14 = vadd.f32 1.0, %v4845_v10  ;;  %v1884_v3 = vmul.f32 %v5220_v26, %v1848_v32  ;;  %v2653_v33 = vor.u32 %v2652_v35, %v2649_v23  ;;  %v953_v23 = vld [vmem:[%s5133_s12 + $0x30] sm:$0xe] }
 0x111   : > { %v2658_v34 = vrot.slane %v2656_v16, 5  ;;  %4846 = vrcp.f32 %v3386_v17  ;;  %v1915_v31 = vadd.f32 %v1883_v46, %v1383_v55  ;;  %v2662_v36 = vrot.slane %v2660_v8, 4 }
 0x112   : > { %v2668_v25 = vrot.slane %v2666_v22, 5  ;;  %4848 = vrcp.f32 %v3387_v14  ;;  %v1916_v38 = vadd.f32 %v1884_v3, %v1384_v45  ;;  %v2654_v6 = vrot.slane %v2653_v33, 4 }
 0x113   : > { %v4445_v39 = vrot.slane %v4429_v60, 9  ;;  %v2223_v41 = vadd.f32 %v2191_v30, %v1915_v31  ;;  %v2663_v56 = vor.u32 %v2662_v36, %v2658_v34  ;;  %v3041_v42 = vrot.slane %v4393_v50, 5  ;;  %v418_v30 = vld [vmem:[%s5133_s12 + $0x38] sm:$0x1] }
 0x114   : > { %v3044_v44 = vrot.slane %v4413_v47, 5  ;;  %v2224_v21 = vadd.f32 %v2192_v27, %v1916_v38  ;;  %v2659_v29 = vsel %vm5179_vm5, %v2654_v6, %v2658_v34  ;;  %v322_v51 = vunpack.c.l.bf16 %v290_v59 }
 0x115   : > { %v323_v53 = vunpack.c.l.bf16 %v291_v48  ;;  %v2356_v55 = vadd.f32 %v2324_v62, %v2223_v41  ;;  %v2664_v0 = vrot.slane %v2663_v56, 4  ;;  %v2820_v18 = vunpack.c.l.bf16 %v2659_v29 }
 0x116   : > { %v3042_v45 = vsel %vm5166_vm4, %v4445_v39, %v3041_v42  ;;  %v2357_v12 = vadd.f32 %v2325_v20, %v2224_v21  ;;  %v3043_v7 = vrot.slane %v3041_v42, 4  ;;  %v5788_v4 = vmul.f32 %v5148_v13, %v322_v51 }
 0x117   : > { %v3128_v50 = vunpack.c.l.bf16 %v3042_v45  ;;  %v2669_v52 = vsel %vm5179_vm5, %v2664_v0, %v2668_v25  ;;  %v2856_v61 = vmul.f32 %v5255_v24, %v2820_v18  ;;  %v5794_v5 = vmul.f32 %v5148_v13, %v323_v53 }
 0x118   : > { %v530_v62 = vshrl.u32 %v290_v59, 16  ;;  %v2821_v47 = vunpack.c.l.bf16 %v2669_v52  ;;  %v3045_v1 = vsel %vm5166_vm4, %v3043_v7, %v3044_v44  ;;  %v533_v20 = vshll.u32 %v290_v59, 16 }
 0x119   : > { %v3164_v2 = vmul.f32 %v5568_v19, %v3128_v50  ;;  %v2888_v9 = vadd.f32 %v2856_v61, %v2356_v55  ;;  %v3129_v32 = vunpack.c.l.bf16 %v3045_v1  ;;  %v539_v35 = vshll.u32 %v291_v48, 16  ;;  %v4298_v55 = vld [vmem:[%s5133_s12 + $0x3c] sm:$0xf]  ;;  %v4299_v61 = vld [vmem:[%s5133_s12 + $0x40] sm:$0xf] }
 0x11a   : > { %v532_v27 = vrot.slane %v530_v62, 4  ;;  %v2857_v16 = vmul.f32 %v5255_v24, %v2821_v47  ;;  %v535_v10 = vrot.slane %v533_v20, 5  ;;  %v543_v17 = vshrl.u32 %v291_v48, 16  ;;  %v4326_v20 = vld [vmem:[%s5133_s12 + $0x44] sm:$0x1] }
 0x11b   : > { %v549_v46 = vshll.u32 %v418_v30, 16  ;;  %v4847_v8 = vpop.eup %4846  ;;  %v3165_v22 = vmul.f32 %v5568_v19, %v3129_v32  ;;  %v3196_v60 = vadd.f32 %v3164_v2, %v2888_v9  ;;  %v541_v14 = vrot.slane %v539_v35, 5 }
 0x11c   : > { %v4278_v3 = vrot.slane %v953_v23, 9  ;;  %v4849_v33 = vpop.eup %4848  ;;  %v3482_v34 = vmul.f32 %v4847_v8, %v5743_v11  ;;  %v2889_v31 = vadd.f32 %v2857_v16, %v2357_v12  ;;  %v536_v36 = vor.u32 %v535_v10, %v532_v27  ;;  %v4342_v16 = vld [vmem:[%s5133_s12 + $0x3c] sm:$0xe] }
 0x11d   : > { %v545_v25 = vrot.slane %v543_v17, 4  ;;  %v3483_v38 = vmul.f32 %v4849_v33, %v5749_v63  ;;  %v3235_v6 = vmul.f32 %v5581_v43, %v3196_v60  ;;  %v551_v39 = vrot.slane %v549_v46, 5 }
 0x11e   : > { %v1046_v41 = vrot.slane %v291_v48, 5  ;;  %v3197_v56 = vadd.f32 %v3165_v22, %v2889_v31  ;;  %v537_v42 = vrot.slane %v536_v36, 4  ;;  %v1049_v19 = vrot.slane %v418_v30, 5 }
 0x11f   : > { %v546_v44 = vor.u32 %v545_v25, %v541_v14  ;;  %v3511_v59 = vpack.c.bf16 %v3483_v38, %v3482_v34  ;;  %v5807_v21 = vadd.f32 %v5588_v54, %v3235_v6  ;;  %v1301_v12 = vunpack.c.l.bf16 %v4298_v55  ;;  %v4378_v6 = vld [vmem:[%s5133_s12 + $0x48] sm:$0xf] }
 0x120   : > { %v1047_v11 = vsel %vm5166_vm4, %v4278_v3, %v1046_v41  ;;  %v1048_v29 = vrot.slane %v1046_v41, 4  ;;  %v3236_v63 = vmul.f32 %v5581_v43, %v3197_v56  ;;  %v542_v51 = vsel %vm5179_vm5, %v537_v42, %v541_v14 }
 0x121   : > { %v547_v53 = vrot.slane %v546_v44, 4  ;;  %v1168_v48 = vunpack.c.l.bf16 %v1047_v11  ;;  %4734 = vmatmul.mubr.bf16.gmra.mrb[4].mxu0 %v3511_v59  ;;  %v4475_v0 = vmul.f32 -1.442695, %v5807_v21  ;;  %v857_v18 = vunpack.c.l.bf16 %v542_v51  ;;  %v4379_v59 = vld [vmem:[%s5133_s12 + $0x4c] sm:$0xf] }
 0x122   : > { %v1050_v45 = vsel %vm5166_vm4, %v1048_v29, %v1049_v19  ;;  %v5819_v7 = vadd.f32 %v5588_v54, %v3236_v63  ;;  %v1302_v47 = vunpack.c.l.bf16 %v4299_v61  ;;  %v1337_v54 = vmul.f32 %v5197_v57, %v1301_v12 }
 0x123   : > { %v552_v43 = vsel %vm5179_vm5, %v547_v53, %v551_v39  ;;  %v1169_v50 = vunpack.c.l.bf16 %v1050_v45  ;;  %v1204_v52 = vmul.f32 %v5172_v37, %v1168_v48  ;;  %4850 = vpow2.f32 %v4475_v0 }
 0x124   : > { %v858_v30 = vunpack.c.l.bf16 %v552_v43  ;;  %v893_v62 = vmul.f32 %v5152_v15, %v857_v18  ;;  %v4476_v1 = vmul.f32 -1.442695, %v5819_v7  ;;  %v1506_v23 = vshrl.u32 %v4298_v55, 16 }
 0x125   : > { %v1205_v2 = vmul.f32 %v5172_v37, %v1169_v50  ;;  %v1338_v27 = vmul.f32 %v5197_v57, %v1302_v47  ;;  %v1509_v35 = vshll.u32 %v4298_v55, 16  ;;  %v1515_v17 = vshll.u32 %v4299_v61, 16 }
 0x126   : > { %v894_v9 = vmul.f32 %v5152_v15, %v858_v30  ;;  %v925_v32 = vadd.f32 %v893_v62, %v5788_v4  ;;  %4852 = vpow2.f32 %v4476_v1  ;;  %v1508_v10 = vrot.slane %v1506_v23, 4 }
 0x127   : > { %v1519_v46 = vshrl.u32 %v4299_v61, 16  ;;  %v1511_v60 = vrot.slane %v1509_v35, 5  ;;  %v1525_v14 = vshll.u32 %v4326_v20, 16  ;;  %v1517_v3 = vrot.slane %v1515_v17, 5 }
 0x128   : > { %v926_v8 = vadd.f32 %v894_v9, %v5794_v5  ;;  %v1236_v22 = vadd.f32 %v1204_v52, %v925_v32  ;;  %v4358_v34 = vrot.slane %v4342_v16, 9  ;;  %v2019_v31 = vrot.slane %v4299_v61, 5  ;;  %v4406_v61 = vld [vmem:[%s5133_s12 + $0x50] sm:$0x1] }
 0x129   : > { %v1521_v33 = vrot.slane %v1519_v46, 4  ;;  %v1512_v25 = vor.u32 %v1511_v60, %v1508_v10  ;;  %v1527_v38 = vrot.slane %v1525_v14, 5  ;;  %v2022_v42 = vrot.slane %v4326_v20, 5 }
 0x12a   : > { %v1237_v4 = vadd.f32 %v1205_v2, %v926_v8  ;;  %v1369_v36 = vadd.f32 %v1337_v54, %v1236_v22  ;;  %v2020_v41 = vsel %vm5166_vm4, %v4358_v34, %v2019_v31  ;;  %v2021_v56 = vrot.slane %v2019_v31, 4  ;;  %v4422_v2 = vld [vmem:[%s5133_s12 + $0x48] sm:$0xe] }
 0x12b   : > { %v1522_v39 = vor.u32 %v1521_v33, %v1517_v3  ;;  %v1513_v44 = vrot.slane %v1512_v25, 4  ;;  %v2141_v19 = vunpack.c.l.bf16 %v2020_v41  ;;  %v2274_v11 = vunpack.c.l.bf16 %v4378_v6  ;;  %v307_v25 = vld [vmem:[%s5133_s12 + $0x94] sm:$0xf] }
 0x12c   : > { %v1370_v5 = vadd.f32 %v1338_v27, %v1237_v4  ;;  %v2023_v63 = vsel %vm5166_vm4, %v2021_v56, %v2022_v42  ;;  %v2275_v51 = vunpack.c.l.bf16 %v4379_v59  ;;  %v2479_v53 = vshrl.u32 %v4378_v6, 16  ;;  %v306_v4 = vld [vmem:[%s5133_s12 + $0x90] sm:$0xf] }
 0x12d   : > { %v1523_v29 = vrot.slane %v1522_v39, 4  ;;  %v4851_v48 = vpop.eup %4850  ;;  %v1518_v55 = vsel %vm5179_vm5, %v1513_v44, %v1517_v3  ;;  %v2142_v0 = vunpack.c.l.bf16 %v2023_v63  ;;  %v2177_v18 = vmul.f32 %v5235_v49, %v2141_v19 }
 0x12e   : > { %v2310_v45 = vmul.f32 %v5241_v58, %v2274_v11  ;;  %v3402_v12 = vadd.f32 1.0, %v4851_v48  ;;  %v1833_v50 = vunpack.c.l.bf16 %v1518_v55  ;;  %v2311_v52 = vmul.f32 %v5241_v58, %v2275_v51 }
 0x12f   : > { %v1528_v43 = vsel %vm5179_vm5, %v1523_v29, %v1527_v38  ;;  %v2178_v62 = vmul.f32 %v5235_v49, %v2142_v0  ;;  %v2481_v47 = vrot.slane %v2479_v53, 4  ;;  %v2482_v1 = vshll.u32 %v4378_v6, 16  ;;  %v5872_v0 = vld [vmem:[%s6631_s1 + $0x8] ss:$0 sm:$0xff] }
 0x130   : > { %v1834_v30 = vunpack.c.l.bf16 %v1528_v43  ;;  %v4853_v54 = vpop.eup %4852  ;;  %4854 = vrcp.f32 %v3402_v12  ;;  %v1869_v20 = vmul.f32 %v5220_v26, %v1833_v50  ;;  %v2488_v23 = vshll.u32 %v4379_v59, 16 }
 0x131   : > { %v2492_v9 = vshrl.u32 %v4379_v59, 16  ;;  %v3403_v32 = vadd.f32 1.0, %v4853_v54  ;;  %v2484_v35 = vrot.slane %v2482_v1, 5  ;;  %v2498_v16 = vshll.u32 %v4406_v61, 16 }
 0x132   : > { %v1870_v27 = vmul.f32 %v5220_v26, %v1834_v30  ;;  %v1901_v10 = vadd.f32 %v1869_v20, %v1369_v36  ;;  %v2490_v17 = vrot.slane %v2488_v23, 5  ;;  %v4438_v8 = vrot.slane %v4422_v2, 9 }
 0x133   : > { %v2494_v46 = vrot.slane %v2492_v9, 4  ;;  %4856 = vrcp.f32 %v3403_v32  ;;  %v2485_v60 = vor.u32 %v2484_v35, %v2481_v47  ;;  %v2500_v14 = vrot.slane %v2498_v16, 5 }
 0x134   : > { %v1902_v22 = vadd.f32 %v1870_v27, %v1370_v5  ;;  %v2209_v3 = vadd.f32 %v2177_v18, %v1901_v10  ;;  %v2992_v34 = vrot.slane %v4379_v59, 5  ;;  %v2995_v31 = vrot.slane %v4406_v61, 5 }
 0x135   : > { %v2495_v33 = vor.u32 %v2494_v46, %v2490_v17  ;;  %v2486_v6 = vrot.slane %v2485_v60, 4  ;;  %v338_v39 = vunpack.c.l.bf16 %v306_v4  ;;  %v339_v41 = vunpack.c.l.bf16 %v307_v25 }
 0x136   : > { %v2210_v38 = vadd.f32 %v2178_v62, %v1902_v22  ;;  %v2342_v56 = vadd.f32 %v2310_v45, %v2209_v3  ;;  %v2993_v42 = vsel %vm5166_vm4, %v4438_v8, %v2992_v34  ;;  %v2994_v44 = vrot.slane %v2992_v34, 4  ;;  %v426_v45 = vld [vmem:[%s5133_s12 + $0x98] sm:$0x1]  ;;  %v961_v62 = vld [vmem:[%s5133_s12 + $0x90] sm:$0xe] }
 0x137   : > { %v2496_v36 = vrot.slane %v2495_v33, 4  ;;  %v2491_v19 = vsel %vm5179_vm5, %v2486_v6, %v2490_v17  ;;  %v3114_v11 = vunpack.c.l.bf16 %v2993_v42  ;;  %v5860_v59 = vmul.f32 %v5148_v13, %v338_v39  ;;  %v5896_v42 = vld [vmem:[%s6633_s3] ss:$0 sm:$0xff] }
 0x138   : > { %v2343_v5 = vadd.f32 %v2311_v52, %v2210_v38  ;;  %v2806_v63 = vunpack.c.l.bf16 %v2491_v19  ;;  %v2996_v51 = vsel %vm5166_vm4, %v2994_v44, %v2995_v31  ;;  %v5867_v53 = vmul.f32 %v5148_v13, %v339_v41  ;;  %v5887_v31 = vld [vmem:[%s6632_s2] ss:$0 sm:$0xff]  ;;  %v4314_v38 = vld [vmem:[%s5133_s12 + $0x9c] sm:$0xf] }
 0x139   : > { %v2501_v29 = vsel %vm5179_vm5, %v2496_v36, %v2500_v14  ;;  %v3115_v55 = vunpack.c.l.bf16 %v2996_v51  ;;  %v3150_v18 = vmul.f32 %v5872_v0, %v3114_v11  ;;  %v722_v12 = vshrl.u32 %v306_v4, 16 }
 0x13a   : > { %v2807_v48 = vunpack.c.l.bf16 %v2501_v29  ;;  %v4855_v43 = vpop.eup %4854  ;;  %v2842_v50 = vmul.f32 %v5255_v24, %v2806_v63  ;;  %v725_v52 = vshll.u32 %v306_v4, 16  ;;  %v731_v61 = vshll.u32 %v307_v25, 16 }
 0x13b   : > { %v735_v30 = vshrl.u32 %v307_v25, 16  ;;  %v3498_v47 = vmul.f32 %v4855_v43, %v5807_v21  ;;  %v3151_v2 = vmul.f32 %v5872_v0, %v3115_v55  ;;  %v724_v54 = vrot.slane %v722_v12, 4 }
 0x13c   : > { %v2843_v1 = vmul.f32 %v5255_v24, %v2807_v48  ;;  %v2874_v20 = vadd.f32 %v2842_v50, %v2342_v56  ;;  %v727_v23 = vrot.slane %v725_v52, 5  ;;  %v733_v9 = vrot.slane %v731_v61, 5  ;;  %v4315_v56 = vld [vmem:[%s5133_s12 + $0xa0] sm:$0xf] }
 0x13d   : > { %v737_v32 = vrot.slane %v735_v30, 4  ;;  %v4857_v27 = vpop.eup %4856  ;;  %v741_v16 = vshll.u32 %v426_v45, 16  ;;  %v4286_v10 = vrot.slane %v961_v62, 9  ;;  %v1102_v17 = vrot.slane %v307_v25, 5  ;;  %v4334_v30 = vld [vmem:[%s5133_s12 + $0xa4] sm:$0x1] }
 0x13e   : > { %v2875_v35 = vadd.f32 %v2843_v1, %v2343_v5  ;;  %v3499_v46 = vmul.f32 %v4857_v27, %v5819_v7  ;;  %v3182_v8 = vadd.f32 %v3150_v18, %v2874_v20  ;;  %v728_v21 = vor.u32 %v727_v23, %v724_v54 }
 0x13f   : > { %v738_v22 = vor.u32 %v737_v32, %v733_v9  ;;  %v743_v14 = vrot.slane %v741_v16, 5  ;;  %v1103_v3 = vsel %vm5166_vm4, %v4286_v10, %v1102_v17  ;;  %v1104_v33 = vrot.slane %v1102_v17, 4 }
 0x140   : > { %v3183_v60 = vadd.f32 %v3151_v2, %v2875_v35  ;;  %v3519_v34 = vpack.c.bf16 %v3499_v46, %v3498_v47  ;;  %v3221_v4 = vmul.f32 %v5887_v31, %v3182_v8  ;;  %v729_v25 = vrot.slane %v728_v21, 4  ;;  %v4350_v2 = vld [vmem:[%s5133_s12 + $0x9c] sm:$0xe] }
 0x141   : > { %v739_v7 = vrot.slane %v738_v22, 4  ;;  %v1105_v39 = vrot.slane %v426_v45, 5  ;;  %v1184_v41 = vunpack.c.l.bf16 %v1103_v3  ;;  %v1317_v36 = vunpack.c.l.bf16 %v4314_v38 }
 0x142   : > { %v3222_v6 = vmul.f32 %v5887_v31, %v3183_v60  ;;  %4750 = vmatmul.mubr.bf16.gmra.mrb[4].mxu1 %v3519_v34  ;;  %v5899_v44 = vadd.f32 %v5896_v42, %v3221_v4  ;;  %v734_v5 = vsel %vm5179_vm5, %v729_v25, %v733_v9  ;;  %v1318_v11 = vunpack.c.l.bf16 %v4315_v56 }
 0x143   : > { %v744_v19 = vsel %vm5179_vm5, %v739_v7, %v743_v14  ;;  %v873_v63 = vunpack.c.l.bf16 %v734_v5  ;;  %v1106_v48 = vsel %vm5166_vm4, %v1104_v33, %v1105_v39  ;;  %v1220_v45 = vmul.f32 %v5172_v37, %v1184_v41  ;;  %v4394_v14 = vld [vmem:[%s5133_s12 + $0xa8] sm:$0xf] }
 0x144   : > { %v5906_v29 = vadd.f32 %v5896_v42, %v3222_v6  ;;  %v874_v51 = vunpack.c.l.bf16 %v744_v19  ;;  %v4461_v55 = vmul.f32 -1.442695, %v5899_v44  ;;  %v1185_v18 = vunpack.c.l.bf16 %v1106_v48 }
 0x145   : > { %v1353_v12 = vmul.f32 %v5197_v57, %v1317_v36  ;;  %v909_v50 = vmul.f32 %v5152_v15, %v873_v63  ;;  %v1354_v61 = vmul.f32 %v5197_v57, %v1318_v11  ;;  %v1698_v47 = vshrl.u32 %v4314_v38, 16 }
 0x146   : > { %v4462_v43 = vmul.f32 -1.442695, %v5906_v29  ;;  %v910_v52 = vmul.f32 %v5152_v15, %v874_v51  ;;  %4858 = vpow2.f32 %v4461_v55  ;;  %v1221_v62 = vmul.f32 %v5172_v37, %v1185_v18 }
 0x147   : > { %v1701_v1 = vshll.u32 %v4314_v38, 16  ;;  %v941_v54 = vadd.f32 %v909_v50, %v5860_v59  ;;  %v1707_v23 = vshll.u32 %v4315_v56, 16  ;;  %v1700_v9 = vrot.slane %v1698_v47, 4  ;;  %v4395_v38 = vld [vmem:[%s5133_s12 + $0xac] sm:$0xf] }
 0x148   : > { %4860 = vpow2.f32 %v4462_v43  ;;  %v942_v20 = vadd.f32 %v910_v52, %v5867_v53  ;;  %v1711_v27 = vshrl.u32 %v4315_v56, 16  ;;  %v1717_v35 = vshll.u32 %v4334_v30, 16 }
 0x149   : > { %v1703_v32 = vrot.slane %v1701_v1, 5  ;;  %v1252_v16 = vadd.f32 %v1220_v45, %v941_v54  ;;  %v1709_v17 = vrot.slane %v1707_v23, 5  ;;  %v4366_v46 = vrot.slane %v4350_v2, 9  ;;  %v4430_v2 = vld [vmem:[%s5133_s12 + $0xa8] sm:$0xe] }
 0x14a   : > { %v1253_v10 = vadd.f32 %v1221_v62, %v942_v20  ;;  %v1713_v21 = vrot.slane %v1711_v27, 4  ;;  %v1719_v22 = vrot.slane %v1717_v35, 5  ;;  %v2075_v60 = vrot.slane %v4315_v56, 5 }
 0x14b   : > { %v1704_v8 = vor.u32 %v1703_v32, %v1700_v9  ;;  %v1385_v3 = vadd.f32 %v1353_v12, %v1252_v16  ;;  %v2078_v59 = vrot.slane %v4334_v30, 5  ;;  %v2290_v34 = vunpack.c.l.bf16 %v4394_v14  ;;  %v4414_v12 = vld [vmem:[%s5133_s12 + $0xb0] sm:$0x1] }
 0x14c   : > { %v1386_v33 = vadd.f32 %v1354_v61, %v1253_v10  ;;  %v1714_v4 = vor.u32 %v1713_v21, %v1709_v17  ;;  %v2076_v25 = vsel %vm5166_vm4, %v4366_v46, %v2075_v60  ;;  %v2077_v7 = vrot.slane %v2075_v60, 4  ;;  %v292_v60 = vld [vmem:[%s5133_s12 + $0x3c] sm:$0xf] }
 0x14d   : > { %v1705_v53 = vrot.slane %v1704_v8, 4  ;;  %v2157_v6 = vunpack.c.l.bf16 %v2076_v25  ;;  %v2291_v39 = vunpack.c.l.bf16 %v4395_v38  ;;  %v2326_v41 = vmul.f32 %v5241_v58, %v2290_v34 }
 0x14e   : > { %v2671_v36 = vshrl.u32 %v4394_v14, 16  ;;  %v1715_v5 = vrot.slane %v1714_v4, 4  ;;  %v2079_v19 = vsel %vm5166_vm4, %v2077_v7, %v2078_v59  ;;  %v2674_v11 = vshll.u32 %v4394_v14, 16 }
 0x14f   : > { %v1710_v56 = vsel %vm5179_vm5, %v1705_v53, %v1709_v17  ;;  %v2158_v51 = vunpack.c.l.bf16 %v2079_v19  ;;  %v2193_v48 = vmul.f32 %v5235_v49, %v2157_v6  ;;  %v2327_v55 = vmul.f32 %v5241_v58, %v2291_v39  ;;  %v293_v6 = vld [vmem:[%s5133_s12 + $0x40] sm:$0xf] }
 0x150   : > { %v1849_v63 = vunpack.c.l.bf16 %v1710_v56  ;;  %v4859_v18 = vpop.eup %4858  ;;  %v1720_v45 = vsel %vm5179_vm5, %v1715_v5, %v1719_v22  ;;  %v2673_v43 = vrot.slane %v2671_v36, 4  ;;  %v2676_v50 = vrot.slane %v2674_v11, 5  ;;  %v419_v11 = vld [vmem:[%s5133_s12 + $0x44] sm:$0x1] }
 0x151   : > { %v2680_v52 = vshll.u32 %v4395_v38, 16  ;;  %v3388_v30 = vadd.f32 1.0, %v4859_v18  ;;  %v1850_v62 = vunpack.c.l.bf16 %v1720_v45  ;;  %v2194_v1 = vmul.f32 %v5235_v49, %v2158_v51  ;;  %v954_v45 = vld [vmem:[%s5133_s12 + $0x3c] sm:$0xe] }
 0x152   : > { %v4861_v61 = vpop.eup %4860  ;;  %v1885_v47 = vmul.f32 %v5220_v26, %v1849_v63  ;;  %v2677_v20 = vor.u32 %v2676_v50, %v2673_v43  ;;  %v2684_v9 = vshrl.u32 %v4395_v38, 16  ;;  %v2690_v35 = vshll.u32 %v4414_v12, 16 }
 0x153   : > { %v3389_v54 = vadd.f32 1.0, %v4861_v61  ;;  %v2682_v23 = vrot.slane %v2680_v52, 5  ;;  %4862 = vrcp.f32 %v3388_v30  ;;  %v1886_v32 = vmul.f32 %v5220_v26, %v1850_v62 }
 0x154   : > { %v1917_v27 = vadd.f32 %v1885_v47, %v1385_v3  ;;  %v2678_v16 = vrot.slane %v2677_v20, 4  ;;  %v2686_v10 = vrot.slane %v2684_v9, 4  ;;  %v4446_v17 = vrot.slane %v4430_v2, 9 }
 0x155   : > { %4864 = vrcp.f32 %v3389_v54  ;;  %v1918_v46 = vadd.f32 %v1886_v32, %v1386_v33  ;;  %v2692_v21 = vrot.slane %v2690_v35, 5  ;;  %v3048_v22 = vrot.slane %v4395_v38, 5 }
 0x156   : > { %v2225_v8 = vadd.f32 %v2193_v48, %v1917_v27  ;;  %v2683_v14 = vsel %vm5179_vm5, %v2678_v16, %v2682_v23  ;;  %v2687_v59 = vor.u32 %v2686_v10, %v2682_v23  ;;  %v3051_v34 = vrot.slane %v4414_v12, 5 }
 0x157   : > { %v324_v53 = vunpack.c.l.bf16 %v292_v60  ;;  %v2226_v4 = vadd.f32 %v2194_v1, %v1918_v46  ;;  %v2822_v25 = vunpack.c.l.bf16 %v2683_v14  ;;  %v3049_v7 = vsel %vm5166_vm4, %v4446_v17, %v3048_v22  ;;  %v4300_v14 = vld [vmem:[%s5133_s12 + $0x48] sm:$0xf] }
 0x158   : > { %v2358_v3 = vadd.f32 %v2326_v41, %v2225_v8  ;;  %v2688_v33 = vrot.slane %v2687_v59, 4  ;;  %v3050_v39 = vrot.slane %v3048_v22, 4  ;;  %v3130_v36 = vunpack.c.l.bf16 %v3049_v7  ;;  %v4301_v7 = vld [vmem:[%s5133_s12 + $0x4c] sm:$0xf] }
 0x159   : > { %v325_v38 = vunpack.c.l.bf16 %v293_v6  ;;  %v2359_v56 = vadd.f32 %v2327_v55, %v2226_v4  ;;  %v2858_v5 = vmul.f32 %v5255_v24, %v2822_v25  ;;  %v5948_v19 = vmul.f32 %v5148_v13, %v324_v53 }
 0x15a   : > { %v554_v63 = vshrl.u32 %v292_v60, 16  ;;  %v2693_v41 = vsel %vm5179_vm5, %v2688_v33, %v2692_v21  ;;  %v3052_v51 = vsel %vm5166_vm4, %v3050_v39, %v3051_v34  ;;  %v3166_v48 = vmul.f32 %v5872_v0, %v3130_v36 }
 0x15b   : > { %v5957_v18 = vmul.f32 %v5148_v13, %v325_v38  ;;  %v2823_v55 = vunpack.c.l.bf16 %v2693_v41  ;;  %v2890_v12 = vadd.f32 %v2858_v5, %v2358_v3  ;;  %v3131_v43 = vunpack.c.l.bf16 %v3052_v51 }
 0x15c   : > { %v556_v50 = vrot.slane %v554_v63, 4  ;;  %v557_v52 = vshll.u32 %v292_v60, 16  ;;  %v563_v61 = vshll.u32 %v293_v6, 16  ;;  %v567_v30 = vshrl.u32 %v293_v6, 16 }
 0x15d   : > { %v573_v62 = vshll.u32 %v419_v11, 16  ;;  %v4863_v47 = vpop.eup %4862  ;;  %v2859_v1 = vmul.f32 %v5255_v24, %v2823_v55  ;;  %v3167_v2 = vmul.f32 %v5872_v0, %v3131_v43  ;;  %v3198_v54 = vadd.f32 %v3166_v48, %v2890_v12  ;;  %v4327_v12 = vld [vmem:[%s5133_s12 + $0x50] sm:$0x1] }
 0x15e   : > { %v4279_v20 = vrot.slane %v954_v45, 9  ;;  %v3484_v9 = vmul.f32 %v4863_v47, %v5899_v44  ;;  %v559_v32 = vrot.slane %v557_v52, 5  ;;  %v565_v27 = vrot.slane %v563_v61, 5 }
 0x15f   : > { %v4865_v23 = vpop.eup %4864  ;;  %v569_v35 = vrot.slane %v567_v30, 4  ;;  %v2891_v10 = vadd.f32 %v2859_v1, %v2359_v56  ;;  %v3237_v17 = vmul.f32 %v5887_v31, %v3198_v54  ;;  %v575_v46 = vrot.slane %v573_v62, 5  ;;  %v4343_v62 = vld [vmem:[%s5133_s12 + $0x48] sm:$0xe] }
 0x160   : > { %v3485_v16 = vmul.f32 %v4865_v23, %v5906_v29  ;;  %v560_v8 = vor.u32 %v559_v32, %v556_v50  ;;  %v1053_v22 = vrot.slane %v293_v6, 5  ;;  %v1056_v60 = vrot.slane %v419_v11, 5 }
 0x161   : > { %v570_v21 = vor.u32 %v569_v35, %v565_v27  ;;  %v3199_v34 = vadd.f32 %v3167_v2, %v2891_v10  ;;  %v5967_v53 = vadd.f32 %v5896_v42, %v3237_v17  ;;  %v1303_v44 = vunpack.c.l.bf16 %v4300_v14 }
 0x162   : > { %v3512_v59 = vpack.c.bf16 %v3485_v16, %v3484_v9  ;;  %v561_v4 = vrot.slane %v560_v8, 4  ;;  %v1054_v29 = vsel %vm5166_vm4, %v4279_v20, %v1053_v22  ;;  %v1055_v25 = vrot.slane %v1053_v22, 4 }
 0x163   : > { %v571_v3 = vrot.slane %v570_v21, 4  ;;  %v3238_v33 = vmul.f32 %v5887_v31, %v3199_v34  ;;  %v4477_v6 = vmul.f32 -1.442695, %v5967_v53  ;;  %v1170_v39 = vunpack.c.l.bf16 %v1054_v29  ;;  %v4380_v21 = vld [vmem:[%s5133_s12 + $0x54] sm:$0xf] }
 0x164   : > { %4737 = vmatprep.mubr.bf16.mxu0 %v3512_v59  ;;  %v1304_v36 = vunpack.c.l.bf16 %v4301_v7  ;;  %v566_v38 = vsel %vm5179_vm5, %v561_v4, %v565_v27  ;;  %v1057_v5 = vsel %vm5166_vm4, %v1055_v25, %v1056_v60  ;;  %v1339_v11 = vmul.f32 %v5197_v57, %v1303_v44  ;;  %v4381_v4 = vld [vmem:[%s5133_s12 + $0x58] sm:$0xf] }
 0x165   : > { %v576_v56 = vsel %vm5179_vm5, %v571_v3, %v575_v46  ;;  %v5982_v63 = vadd.f32 %v5896_v42, %v3238_v33  ;;  %4866 = vpow2.f32 %v4477_v6  ;;  %v859_v41 = vunpack.c.l.bf16 %v566_v38 }
 0x166   : > { %v860_v51 = vunpack.c.l.bf16 %v576_v56  ;;  %v1171_v48 = vunpack.c.l.bf16 %v1057_v5  ;;  %v1206_v45 = vmul.f32 %v5172_v37, %v1170_v39  ;;  %v1340_v55 = vmul.f32 %v5197_v57, %v1304_v36 }
 0x167   : > { %v1530_v43 = vshrl.u32 %v4300_v14, 16  ;;  %v4478_v50 = vmul.f32 -1.442695, %v5982_v63  ;;  %v895_v52 = vmul.f32 %v5152_v15, %v859_v41  ;;  %v1533_v30 = vshll.u32 %v4300_v14, 16 }
 0x168   : > { %v896_v61 = vmul.f32 %v5152_v15, %v860_v51  ;;  %v1207_v47 = vmul.f32 %v5172_v37, %v1171_v48  ;;  %v1539_v2 = vshll.u32 %v4301_v7, 16  ;;  %v1543_v54 = vshrl.u32 %v4301_v7, 16 }
 0x169   : > { %v1532_v1 = vrot.slane %v1530_v43, 4  ;;  %4868 = vpow2.f32 %v4478_v50  ;;  %v927_v20 = vadd.f32 %v895_v52, %v5948_v19  ;;  %v1535_v9 = vrot.slane %v1533_v30, 5 }
 0x16a   : > { %v928_v23 = vadd.f32 %v896_v61, %v5957_v18  ;;  %v1541_v32 = vrot.slane %v1539_v2, 5  ;;  %v1545_v27 = vrot.slane %v1543_v54, 4  ;;  %v1549_v35 = vshll.u32 %v4327_v12, 16  ;;  %v4423_v61 = vld [vmem:[%s5133_s12 + $0x54] sm:$0xe] }
 0x16b   : > { %v4359_v16 = vrot.slane %v4343_v62, 9  ;;  %v1238_v10 = vadd.f32 %v1206_v45, %v927_v20  ;;  %v1536_v46 = vor.u32 %v1535_v9, %v1532_v1  ;;  %v2026_v8 = vrot.slane %v4301_v7, 5 }
 0x16c   : > { %v1239_v17 = vadd.f32 %v1207_v47, %v928_v23  ;;  %v1546_v22 = vor.u32 %v1545_v27, %v1541_v32  ;;  %v1551_v60 = vrot.slane %v1549_v35, 5  ;;  %v2029_v14 = vrot.slane %v4327_v12, 5  ;;  %v4407_v12 = vld [vmem:[%s5133_s12 + $0x5c] sm:$0x1] }
 0x16d   : > { %v2276_v59 = vunpack.c.l.bf16 %v4380_v21  ;;  %v1371_v34 = vadd.f32 %v1339_v11, %v1238_v10  ;;  %v1537_v19 = vrot.slane %v1536_v46, 4  ;;  %v2027_v18 = vsel %vm5166_vm4, %v4359_v16, %v2026_v8 }
 0x16e   : > { %v1372_v44 = vadd.f32 %v1340_v55, %v1239_v17  ;;  %v1547_v3 = vrot.slane %v1546_v22, 4  ;;  %v2028_v29 = vrot.slane %v2026_v8, 4  ;;  %v2143_v25 = vunpack.c.l.bf16 %v2027_v18 }
 0x16f   : > { %v2277_v33 = vunpack.c.l.bf16 %v4381_v4  ;;  %v4867_v6 = vpop.eup %4866  ;;  %v1542_v7 = vsel %vm5179_vm5, %v1537_v19, %v1541_v32  ;;  %v2312_v39 = vmul.f32 %v5241_v58, %v2276_v59  ;;  %v2503_v36 = vshrl.u32 %v4380_v21, 16  ;;  %v309_v59 = vld [vmem:[%s5133_s12 + $0xa0] sm:$0xf] }
 0x170   : > { %v2506_v38 = vshll.u32 %v4380_v21, 16  ;;  %v3404_v56 = vadd.f32 1.0, %v4867_v6  ;;  %v1552_v5 = vsel %vm5179_vm5, %v1547_v3, %v1551_v60  ;;  %v1835_v11 = vunpack.c.l.bf16 %v1542_v7 }
 0x171   : > { %v2030_v41 = vsel %vm5166_vm4, %v2028_v29, %v2029_v14  ;;  %v1836_v51 = vunpack.c.l.bf16 %v1552_v5  ;;  %v2179_v45 = vmul.f32 %v5235_v49, %v2143_v25  ;;  %v2313_v55 = vmul.f32 %v5241_v58, %v2277_v33  ;;  %v308_v14 = vld [vmem:[%s5133_s12 + $0x9c] sm:$0xf] }
 0x172   : > { %v2144_v48 = vunpack.c.l.bf16 %v2030_v41  ;;  %4870 = vrcp.f32 %v3404_v56  ;;  %v1871_v43 = vmul.f32 %v5220_v26, %v1835_v11  ;;  %v2505_v50 = vrot.slane %v2503_v36, 4 }
 0x173   : > { %v2508_v52 = vrot.slane %v2506_v38, 5  ;;  %v4869_v30 = vpop.eup %4868  ;;  %v1872_v62 = vmul.f32 %v5220_v26, %v1836_v51  ;;  %v2512_v1 = vshll.u32 %v4381_v4, 16  ;;  %v2516_v2 = vshrl.u32 %v4381_v4, 16 }
 0x174   : > { %v2180_v47 = vmul.f32 %v5235_v49, %v2144_v48  ;;  %v3405_v54 = vadd.f32 1.0, %v4869_v30  ;;  %v1903_v20 = vadd.f32 %v1871_v43, %v1371_v34  ;;  %v2522_v9 = vshll.u32 %v4407_v12, 16 }
 0x175   : > { %v2509_v23 = vor.u32 %v2508_v52, %v2505_v50  ;;  %v1904_v32 = vadd.f32 %v1872_v62, %v1372_v44  ;;  %v2514_v27 = vrot.slane %v2512_v1, 5  ;;  %v2518_v35 = vrot.slane %v2516_v2, 4 }
 0x176   : > { %v4439_v16 = vrot.slane %v4423_v61, 9  ;;  %4872 = vrcp.f32 %v3405_v54  ;;  %v2211_v10 = vadd.f32 %v2179_v45, %v1903_v20  ;;  %v2524_v46 = vrot.slane %v2522_v9, 5  ;;  %v427_v45 = vld [vmem:[%s5133_s12 + $0xa4] sm:$0x1] }
 0x177   : > { %v2510_v17 = vrot.slane %v2509_v23, 4  ;;  %v2212_v8 = vadd.f32 %v2180_v47, %v1904_v32  ;;  %v2519_v21 = vor.u32 %v2518_v35, %v2514_v27  ;;  %v2999_v22 = vrot.slane %v4381_v4, 5 }
 0x178   : > { %v3002_v60 = vrot.slane %v4407_v12, 5  ;;  %v2344_v19 = vadd.f32 %v2312_v39, %v2211_v10  ;;  %v340_v18 = vunpack.c.l.bf16 %v308_v14  ;;  %v341_v3 = vunpack.c.l.bf16 %v309_v59  ;;  %v962_v12 = vld [vmem:[%s5133_s12 + $0x9c] sm:$0xe] }
 0x179   : > { %v2515_v34 = vsel %vm5179_vm5, %v2510_v17, %v2514_v27  ;;  %v2345_v44 = vadd.f32 %v2313_v55, %v2212_v8  ;;  %v2520_v29 = vrot.slane %v2519_v21, 4  ;;  %v3000_v33 = vsel %vm5166_vm4, %v4439_v16, %v2999_v22 }
 0x17a   : > { %v2808_v25 = vunpack.c.l.bf16 %v2515_v34  ;;  %v3001_v6 = vrot.slane %v2999_v22, 4  ;;  %v3116_v7 = vunpack.c.l.bf16 %v3000_v33  ;;  %v6019_v4 = vmul.f32 %v5148_v13, %v340_v18 }
 0x17b   : > { %v6022_v39 = vmul.f32 %v5148_v13, %v341_v3  ;;  %v2525_v36 = vsel %vm5179_vm5, %v2520_v29, %v2524_v46  ;;  %v746_v56 = vshrl.u32 %v308_v14, 16  ;;  %v749_v5 = vshll.u32 %v308_v14, 16 }
 0x17c   : > { %v2844_v38 = vmul.f32 %v5255_v24, %v2808_v25  ;;  %v4871_v11 = vpop.eup %4870  ;;  %v2809_v41 = vunpack.c.l.bf16 %v2525_v36  ;;  %v3003_v51 = vsel %vm5166_vm4, %v3001_v6, %v3002_v60  ;;  %v3152_v48 = vmul.f32 %v5872_v0, %v3116_v7  ;;  %v4317_v36 = vld [vmem:[%s5133_s12 + $0xac] sm:$0xf] }
 0x17d   : > { %v755_v55 = vshll.u32 %v309_v59, 16  ;;  %v3500_v43 = vmul.f32 %v4871_v11, %v5967_v53  ;;  %v3117_v52 = vunpack.c.l.bf16 %v3003_v51  ;;  %v748_v61 = vrot.slane %v746_v56, 4 }
 0x17e   : > { %v2876_v50 = vadd.f32 %v2844_v38, %v2344_v19  ;;  %v2845_v30 = vmul.f32 %v5255_v24, %v2809_v41  ;;  %v751_v62 = vrot.slane %v749_v5, 5  ;;  %v759_v1 = vshrl.u32 %v309_v59, 16 }
 0x17f   : > { %v757_v47 = vrot.slane %v755_v55, 5  ;;  %v3153_v2 = vmul.f32 %v5872_v0, %v3117_v52  ;;  %v765_v20 = vshll.u32 %v427_v45, 16  ;;  %v4287_v23 = vrot.slane %v962_v12, 9 }
 0x180   : > { %v3184_v54 = vadd.f32 %v3152_v48, %v2876_v50  ;;  %v4873_v9 = vpop.eup %4872  ;;  %v2877_v32 = vadd.f32 %v2845_v30, %v2345_v44  ;;  %v752_v27 = vor.u32 %v751_v62, %v748_v61  ;;  %v761_v35 = vrot.slane %v759_v1, 4 }
 0x181   : > { %v1109_v16 = vrot.slane %v309_v59, 5  ;;  %v3501_v53 = vmul.f32 %v4873_v9, %v5982_v63  ;;  %v767_v17 = vrot.slane %v765_v20, 5  ;;  %v1112_v46 = vrot.slane %v427_v45, 5  ;;  %v4316_v59 = vld [vmem:[%s5133_s12 + $0xa8] sm:$0xf] }
 0x182   : > { %v3223_v10 = vmul.f32 %v5887_v31, %v3184_v54  ;;  %v3185_v8 = vadd.f32 %v3153_v2, %v2877_v32  ;;  %v753_v21 = vrot.slane %v752_v27, 4  ;;  %v762_v22 = vor.u32 %v761_v35, %v757_v47  ;;  %v4335_v45 = vld [vmem:[%s5133_s12 + $0xb0] sm:$0x1] }
 0x183   : > { %v1110_v60 = vsel %vm5166_vm4, %v4287_v23, %v1109_v16  ;;  %v3520_v14 = vpack.c.bf16 %v3501_v53, %v3500_v43  ;;  %v1111_v34 = vrot.slane %v1109_v16, 4  ;;  %v1319_v29 = vunpack.c.l.bf16 %v4316_v59 }
 0x184   : > { %v6040_v19 = vadd.f32 %v5896_v42, %v3223_v10  ;;  %v1186_v18 = vunpack.c.l.bf16 %v1110_v60  ;;  %v3224_v63 = vmul.f32 %v5887_v31, %v3185_v8  ;;  %v758_v3 = vsel %vm5179_vm5, %v753_v21, %v757_v47  ;;  %v4351_v47 = vld [vmem:[%s5133_s12 + $0xa8] sm:$0xe]  ;;  %v4396_v8 = vld [vmem:[%s5133_s12 + $0xb4] sm:$0xf] }
 0x185   : > { %v763_v44 = vrot.slane %v762_v22, 4  ;;  %4753 = vmatprep.mubr.bf16.mxu1 %v3520_v14  ;;  %v875_v33 = vunpack.c.l.bf16 %v758_v3  ;;  %v1113_v6 = vsel %vm5166_vm4, %v1111_v34, %v1112_v46  ;;  %v1320_v11 = vunpack.c.l.bf16 %v4317_v36 }
 0x186   : > { %v4463_v25 = vmul.f32 -1.442695, %v6040_v19  ;;  %v1222_v7 = vmul.f32 %v5172_v37, %v1186_v18  ;;  %v6052_v38 = vadd.f32 %v5896_v42, %v3224_v63  ;;  %v1187_v5 = vunpack.c.l.bf16 %v1113_v6 }
 0x187   : > { %v768_v56 = vsel %vm5179_vm5, %v763_v44, %v767_v17  ;;  %v911_v51 = vmul.f32 %v5152_v15, %v875_v33  ;;  %v1355_v48 = vmul.f32 %v5197_v57, %v1319_v29  ;;  %v1356_v43 = vmul.f32 %v5197_v57, %v1320_v11 }
 0x188   : > { %4874 = vpow2.f32 %v4463_v25  ;;  %v876_v41 = vunpack.c.l.bf16 %v768_v56  ;;  %v4464_v55 = vmul.f32 -1.442695, %v6052_v38  ;;  %v1223_v12 = vmul.f32 %v5172_v37, %v1187_v5  ;;  %v4415_v5 = vld [vmem:[%s5133_s12 + $0xbc] sm:$0x1] }
 0x189   : > { %v1722_v50 = vshrl.u32 %v4316_v59, 16  ;;  %v943_v61 = vadd.f32 %v911_v51, %v6019_v4  ;;  %v1725_v30 = vshll.u32 %v4316_v59, 16  ;;  %v1731_v62 = vshll.u32 %v4317_v36, 16 }
 0x18a   : > { %v912_v52 = vmul.f32 %v5152_v15, %v876_v41  ;;  %4876 = vpow2.f32 %v4464_v55  ;;  %v1735_v2 = vshrl.u32 %v4317_v36, 16  ;;  %v1741_v54 = vshll.u32 %v4335_v45, 16 }
 0x18b   : > { %v1724_v1 = vrot.slane %v1722_v50, 4  ;;  %v1254_v23 = vadd.f32 %v1222_v7, %v943_v61  ;;  %v1727_v9 = vrot.slane %v1725_v30, 5  ;;  %v1733_v32 = vrot.slane %v1731_v62, 5  ;;  %v4431_v50 = vld [vmem:[%s5133_s12 + $0xb4] sm:$0xe] }
 0x18c   : > { %v944_v20 = vadd.f32 %v912_v52, %v6022_v39  ;;  %v1737_v27 = vrot.slane %v1735_v2, 4  ;;  %v1743_v35 = vrot.slane %v1741_v54, 5  ;;  %v4367_v16 = vrot.slane %v4351_v47, 9  ;;  %v4397_v39 = vld [vmem:[%s5133_s12 + $0xb8] sm:$0xf] }
 0x18d   : > { %v2082_v53 = vrot.slane %v4317_v36, 5  ;;  %v1387_v4 = vadd.f32 %v1355_v48, %v1254_v23  ;;  %v1728_v17 = vor.u32 %v1727_v9, %v1724_v1  ;;  %v2085_v46 = vrot.slane %v4335_v45, 5 }
 0x18e   : > { %v1255_v10 = vadd.f32 %v1223_v12, %v944_v20  ;;  %v1738_v21 = vor.u32 %v1737_v27, %v1733_v32  ;;  %v2292_v14 = vunpack.c.l.bf16 %v4396_v8  ;;  %v2293_v63 = vunpack.c.l.bf16 %v4397_v39 }
 0x18f   : > { %v2083_v22 = vsel %vm5166_vm4, %v4367_v16, %v2082_v53  ;;  %v2084_v60 = vrot.slane %v2082_v53, 4  ;;  %v1729_v18 = vrot.slane %v1728_v17, 4  ;;  %v2695_v25 = vshrl.u32 %v4396_v8, 16  ;;  %v294_v53 = vld [vmem:[%s5133_s12 + $0x48] sm:$0xf] }
 0x190   : > { %v1388_v34 = vadd.f32 %v1356_v43, %v1255_v10  ;;  %v2159_v59 = vunpack.c.l.bf16 %v2083_v22  ;;  %v1739_v3 = vrot.slane %v1738_v21, 4  ;;  %v2328_v29 = vmul.f32 %v5241_v58, %v2292_v14 }
 0x191   : > { %v2086_v44 = vsel %vm5166_vm4, %v2084_v60, %v2085_v46  ;;  %v1734_v6 = vsel %vm5179_vm5, %v1729_v18, %v1733_v32  ;;  %v2329_v56 = vmul.f32 %v5241_v58, %v2293_v63  ;;  %v2697_v48 = vrot.slane %v2695_v25, 4 }
 0x192   : > { %v4875_v33 = vpop.eup %4874  ;;  %v2160_v7 = vunpack.c.l.bf16 %v2086_v44  ;;  %v2195_v36 = vmul.f32 %v5235_v49, %v2159_v59  ;;  %v1744_v41 = vsel %vm5179_vm5, %v1739_v3, %v1743_v35  ;;  %v1851_v51 = vunpack.c.l.bf16 %v1734_v6 }
 0x193   : > { %v3390_v11 = vadd.f32 1.0, %v4875_v33  ;;  %v1852_v45 = vunpack.c.l.bf16 %v1744_v41  ;;  %v2698_v12 = vshll.u32 %v4396_v8, 16  ;;  %v2704_v43 = vshll.u32 %v4397_v39, 16 }
 0x194   : > { %v2196_v55 = vmul.f32 %v5235_v49, %v2160_v7  ;;  %v4877_v52 = vpop.eup %4876  ;;  %v1887_v61 = vmul.f32 %v5220_v26, %v1851_v51  ;;  %v2708_v30 = vshrl.u32 %v4397_v39, 16  ;;  %v2714_v62 = vshll.u32 %v4415_v5, 16 }
 0x195   : > { %4878 = vrcp.f32 %v3390_v11  ;;  %v3391_v47 = vadd.f32 1.0, %v4877_v52  ;;  %v1888_v1 = vmul.f32 %v5220_v26, %v1852_v45  ;;  %v2700_v2 = vrot.slane %v2698_v12, 5 }
 0x196   : > { %v2706_v54 = vrot.slane %v2704_v43, 5  ;;  %v1919_v20 = vadd.f32 %v1887_v61, %v1387_v4  ;;  %v2710_v23 = vrot.slane %v2708_v30, 4  ;;  %v2716_v9 = vrot.slane %v2714_v62, 5  ;;  %v295_v4 = vld [vmem:[%s5133_s12 + $0x4c] sm:$0xf] }
 0x197   : > { %v4447_v32 = vrot.slane %v4431_v50, 9  ;;  %4880 = vrcp.f32 %v3391_v47  ;;  %v1920_v27 = vadd.f32 %v1888_v1, %v1388_v34  ;;  %v2701_v35 = vor.u32 %v2700_v2, %v2697_v48  ;;  %v955_v43 = vld [vmem:[%s5133_s12 + $0x48] sm:$0xe] }
 0x198   : > { %v3055_v16 = vrot.slane %v4397_v39, 5  ;;  %v2227_v10 = vadd.f32 %v2195_v36, %v1919_v20  ;;  %v2711_v17 = vor.u32 %v2710_v23, %v2706_v54  ;;  %v3058_v46 = vrot.slane %v4415_v5, 5  ;;  %v420_v5 = vld [vmem:[%s5133_s12 + $0x50] sm:$0x1] }
 0x199   : > { %v326_v8 = vunpack.c.l.bf16 %v294_v53  ;;  %v2228_v21 = vadd.f32 %v2196_v55, %v1920_v27  ;;  %v2702_v22 = vrot.slane %v2701_v35, 4  ;;  %v327_v3 = vunpack.c.l.bf16 %v295_v4 }
 0x19a   : > { %v3056_v60 = vsel %vm5166_vm4, %v4447_v32, %v3055_v16  ;;  %v3057_v14 = vrot.slane %v3055_v16, 4  ;;  %v2360_v18 = vadd.f32 %v2328_v29, %v2227_v10  ;;  %v2712_v59 = vrot.slane %v2711_v17, 4 }
 0x19b   : > { %v3132_v63 = vunpack.c.l.bf16 %v3056_v60  ;;  %v2361_v34 = vadd.f32 %v2329_v56, %v2228_v21  ;;  %v2707_v39 = vsel %vm5179_vm5, %v2702_v22, %v2706_v54  ;;  %v6093_v25 = vmul.f32 %v5148_v13, %v326_v8  ;;  %v4302_v60 = vld [vmem:[%s5133_s12 + $0x54] sm:$0xf] }
 0x19c   : > { %v3059_v44 = vsel %vm5166_vm4, %v3057_v14, %v3058_v46  ;;  %v2717_v33 = vsel %vm5179_vm5, %v2712_v59, %v2716_v9  ;;  %v2824_v6 = vunpack.c.l.bf16 %v2707_v39  ;;  %v6099_v56 = vmul.f32 %v5148_v13, %v327_v3 }
 0x19d   : > { %v3133_v7 = vunpack.c.l.bf16 %v3059_v44  ;;  %v3168_v29 = vmul.f32 %v5872_v0, %v3132_v63  ;;  %v2825_v36 = vunpack.c.l.bf16 %v2717_v33  ;;  %v578_v11 = vshrl.u32 %v294_v53, 16 }
 0x19e   : > { %v581_v41 = vshll.u32 %v294_v53, 16  ;;  %v2860_v48 = vmul.f32 %v5255_v24, %v2824_v6  ;;  %v587_v55 = vshll.u32 %v295_v4, 16  ;;  %v591_v12 = vshrl.u32 %v295_v4, 16  ;;  %v4303_v6 = vld [vmem:[%s5133_s12 + $0x58] sm:$0xf] }
 0x19f   : > { %v4879_v51 = vpop.eup %4878  ;;  %v3169_v45 = vmul.f32 %v5872_v0, %v3133_v7  ;;  %v2861_v52 = vmul.f32 %v5255_v24, %v2825_v36  ;;  %v580_v61 = vrot.slane %v578_v11, 4  ;;  %v597_v2 = vshll.u32 %v420_v5, 16 }
 0x1a0   : > { %v3486_v50 = vmul.f32 %v4879_v51, %v6040_v19  ;;  %v583_v30 = vrot.slane %v581_v41, 5  ;;  %v2892_v62 = vadd.f32 %v2860_v48, %v2360_v18  ;;  %v589_v47 = vrot.slane %v587_v55, 5  ;;  %v4328_v51 = vld [vmem:[%s5133_s12 + $0x5c] sm:$0x1] }
 0x1a1   : > { %v593_v1 = vrot.slane %v591_v12, 4  ;;  %v4881_v54 = vpop.eup %4880  ;;  %v2893_v20 = vadd.f32 %v2861_v52, %v2361_v34  ;;  %v4280_v9 = vrot.slane %v955_v43, 9  ;;  %v1060_v32 = vrot.slane %v295_v4, 5  ;;  %v4344_v43 = vld [vmem:[%s5133_s12 + $0x54] sm:$0xe] }
 0x1a2   : > { %v584_v23 = vor.u32 %v583_v30, %v580_v61  ;;  %v3487_v0 = vmul.f32 %v4881_v54, %v6052_v38  ;;  %v3200_v27 = vadd.f32 %v3168_v29, %v2892_v62  ;;  %v599_v16 = vrot.slane %v597_v2, 5 }
 0x1a3   : > { %v594_v35 = vor.u32 %v593_v1, %v589_v47  ;;  %v3201_v19 = vadd.f32 %v3169_v45, %v2893_v20  ;;  %v1061_v10 = vsel %vm5166_vm4, %v4280_v9, %v1060_v32  ;;  %v1062_v17 = vrot.slane %v1060_v32, 4 }
 0x1a4   : > { %v585_v53 = vrot.slane %v584_v23, 4  ;;  %v3513_v46 = vpack.c.bf16 %v3487_v0, %v3486_v50  ;;  %v3239_v8 = vmul.f32 %v5887_v31, %v3200_v27  ;;  %v1063_v22 = vrot.slane %v420_v5, 5  ;;  %v4382_v27 = vld [vmem:[%s5133_s12 + $0x60] sm:$0xf] }
 0x1a5   : > { %v595_v21 = vrot.slane %v594_v35, 4  ;;  %v3240_v14 = vmul.f32 %v5887_v31, %v3201_v19  ;;  %v1172_v4 = vunpack.c.l.bf16 %v1061_v10  ;;  %v1305_v18 = vunpack.c.l.bf16 %v4302_v60 }
 0x1a6   : > { %v590_v38 = vsel %vm5179_vm5, %v585_v53, %v589_v47  ;;  %4738 = vmatmul.mubr.bf16.gmra.mrb[8].mxu0 %v3513_v46  ;;  %v6116_v59 = vadd.f32 %v5896_v42, %v3239_v8  ;;  %v1064_v34 = vsel %vm5166_vm4, %v1062_v17, %v1063_v22  ;;  %v1306_v36 = vunpack.c.l.bf16 %v4303_v6  ;;  %v4383_v46 = vld [vmem:[%s5133_s12 + $0x64] sm:$0xf] }
 0x1a7   : > { %v600_v63 = vsel %vm5179_vm5, %v595_v21, %v599_v16  ;;  %v861_v3 = vunpack.c.l.bf16 %v590_v38  ;;  %v6123_v39 = vadd.f32 %v5896_v42, %v3240_v14  ;;  %v1173_v44 = vunpack.c.l.bf16 %v1064_v34 }
 0x1a8   : > { %v862_v31 = vunpack.c.l.bf16 %v600_v63  ;;  %v1208_v33 = vmul.f32 %v5172_v37, %v1172_v4  ;;  %v4479_v7 = vmul.f32 -1.442695, %v6116_v59  ;;  %v1341_v5 = vmul.f32 %v5197_v57, %v1305_v18 }
 0x1a9   : > { %v897_v29 = vmul.f32 %v5152_v15, %v861_v3  ;;  %v4480_v11 = vmul.f32 -1.442695, %v6123_v39  ;;  %v1209_v42 = vmul.f32 %v5172_v37, %v1173_v44  ;;  %v1554_v48 = vshrl.u32 %v4302_v60, 16  ;;  %v4408_v44 = vld [vmem:[%s5133_s12 + $0x68] sm:$0x1] }
 0x1aa   : > { %v898_v41 = vmul.f32 %v5152_v15, %v862_v31  ;;  %4882 = vpow2.f32 %v4479_v7  ;;  %v1342_v55 = vmul.f32 %v5197_v57, %v1306_v36  ;;  %v1557_v12 = vshll.u32 %v4302_v60, 16 }
 0x1ab   : > { %v929_v45 = vadd.f32 %v897_v29, %v6093_v25  ;;  %4884 = vpow2.f32 %v4480_v11  ;;  %v1556_v52 = vrot.slane %v1554_v48, 4  ;;  %v1563_v61 = vshll.u32 %v4303_v6, 16 }
 0x1ac   : > { %v930_v50 = vadd.f32 %v898_v41, %v6099_v56  ;;  %v1559_v62 = vrot.slane %v1557_v12, 5  ;;  %v1567_v47 = vshrl.u32 %v4303_v6, 16  ;;  %v1573_v1 = vshll.u32 %v4328_v51, 16 }
 0x1ad   : > { %v1240_v30 = vadd.f32 %v1208_v33, %v929_v45  ;;  %v1565_v54 = vrot.slane %v1563_v61, 5  ;;  %v4360_v20 = vrot.slane %v4344_v43, 9  ;;  %v2033_v23 = vrot.slane %v4303_v6, 5  ;;  %v4424_v45 = vld [vmem:[%s5133_s12 + $0x60] sm:$0xe] }
 0x1ae   : > { %v1241_v2 = vadd.f32 %v1209_v42, %v930_v50  ;;  %v1560_v9 = vor.u32 %v1559_v62, %v1556_v52  ;;  %v1569_v32 = vrot.slane %v1567_v47, 4  ;;  %v1575_v0 = vrot.slane %v1573_v1, 5 }
 0x1af   : > { %v1373_v25 = vadd.f32 %v1341_v5, %v1240_v30  ;;  %v2034_v56 = vsel %vm5166_vm4, %v4360_v20, %v2033_v23  ;;  %v2035_v16 = vrot.slane %v2033_v23, 4  ;;  %v2036_v19 = vrot.slane %v4328_v51, 5 }
 0x1b0   : > { %v1374_v35 = vadd.f32 %v1342_v55, %v1241_v2  ;;  %v1561_v53 = vrot.slane %v1560_v9, 4  ;;  %v1570_v10 = vor.u32 %v1569_v32, %v1565_v54  ;;  %v2145_v17 = vunpack.c.l.bf16 %v2034_v56  ;;  %v310_v9 = vld [vmem:[%s5133_s12 + $0xa8] sm:$0xf]  ;;  %v6158_v32 = vld [vmem:[%s5133_s12 + $0xac] sm:$0xf] }
 0x1b1   : > { %v2278_v8 = vunpack.c.l.bf16 %v4382_v27  ;;  %v2037_v21 = vsel %vm5166_vm4, %v2035_v16, %v2036_v19  ;;  %v2279_v22 = vunpack.c.l.bf16 %v4383_v46  ;;  %v2527_v60 = vshrl.u32 %v4382_v27, 16 }
 0x1b2   : > { %v2530_v14 = vshll.u32 %v4382_v27, 16  ;;  %v1566_v38 = vsel %vm5179_vm5, %v1561_v53, %v1565_v54  ;;  %v1571_v4 = vrot.slane %v1570_v10, 4  ;;  %v2146_v18 = vunpack.c.l.bf16 %v2037_v21 }
 0x1b3   : > { %v2181_v63 = vmul.f32 %v5235_v49, %v2145_v17  ;;  %v1837_v3 = vunpack.c.l.bf16 %v1566_v38  ;;  %v2314_v34 = vmul.f32 %v5241_v58, %v2278_v8  ;;  %v2315_v31 = vmul.f32 %v5241_v58, %v2279_v22 }
 0x1b4   : > { %v2529_v33 = vrot.slane %v2527_v60, 4  ;;  %v4883_v6 = vpop.eup %4882  ;;  %v1576_v7 = vsel %vm5179_vm5, %v1571_v4, %v1575_v0  ;;  %v2182_v29 = vmul.f32 %v5235_v49, %v2146_v18  ;;  %v2532_v36 = vrot.slane %v2530_v14, 5  ;;  %v428_v18 = vld [vmem:[%s5133_s12 + $0xb0] sm:$0x1] }
 0x1b5   : > { %v2536_v5 = vshll.u32 %v4383_v46, 16  ;;  %v4885_v11 = vpop.eup %4884  ;;  %v3406_v41 = vadd.f32 1.0, %v4883_v6  ;;  %v1838_v42 = vunpack.c.l.bf16 %v1576_v7  ;;  %v1873_v51 = vmul.f32 %v5220_v26, %v1837_v3 }
 0x1b6   : > { %v2540_v48 = vshrl.u32 %v4383_v46, 16  ;;  %v3407_v55 = vadd.f32 1.0, %v4885_v11  ;;  %v2533_v12 = vor.u32 %v2532_v36, %v2529_v33  ;;  %v2546_v50 = vshll.u32 %v4408_v44, 16  ;;  %v963_v11 = vld [vmem:[%s5133_s12 + $0xa8] sm:$0xe] }
 0x1b7   : > { %v2538_v43 = vrot.slane %v2536_v5, 5  ;;  %4886 = vrcp.f32 %v3406_v41  ;;  %v1874_v52 = vmul.f32 %v5220_v26, %v1838_v42  ;;  %v1905_v61 = vadd.f32 %v1873_v51, %v1373_v25 }
 0x1b8   : > { %v2542_v30 = vrot.slane %v2540_v48, 4  ;;  %4888 = vrcp.f32 %v3407_v55  ;;  %v2534_v62 = vrot.slane %v2533_v12, 4  ;;  %v2548_v47 = vrot.slane %v2546_v50, 5 }
 0x1b9   : > { %v4440_v1 = vrot.slane %v4424_v45, 9  ;;  %v1906_v2 = vadd.f32 %v1874_v52, %v1374_v35  ;;  %v2213_v54 = vadd.f32 %v2181_v63, %v1905_v61  ;;  %v3006_v23 = vrot.slane %v4383_v46, 5 }
 0x1ba   : > { %v2543_v20 = vor.u32 %v2542_v30, %v2538_v43  ;;  %v2539_v0 = vsel %vm5179_vm5, %v2534_v62, %v2538_v43  ;;  %v3009_v27 = vrot.slane %v4408_v44, 5  ;;  %v342_v56 = vunpack.c.l.bf16 %v310_v9  ;;  %v6193_v30 = vld [vmem:[%s6632_s2] ss:$0 sm:$0xff] }
 0x1bb   : > { %v343_v25 = vunpack.c.l.bf16 %v6158_v32  ;;  %v2214_v16 = vadd.f32 %v2182_v29, %v1906_v2  ;;  %v2346_v19 = vadd.f32 %v2314_v34, %v2213_v54  ;;  %v2810_v10 = vunpack.c.l.bf16 %v2539_v0 }
 0x1bc   : > { %v2544_v53 = vrot.slane %v2543_v20, 4  ;;  %v3007_v35 = vsel %vm5166_vm4, %v4440_v1, %v3006_v23  ;;  %v3008_v17 = vrot.slane %v3006_v23, 4  ;;  %v6166_v46 = vmul.f32 %v5148_v13, %v342_v56 }
 0x1bd   : > { %v6169_v8 = vmul.f32 %v5148_v13, %v343_v25  ;;  %v2347_v21 = vadd.f32 %v2315_v31, %v2214_v16  ;;  %v2846_v60 = vmul.f32 %v5255_v24, %v2810_v10  ;;  %v3118_v14 = vunpack.c.l.bf16 %v3007_v35  ;;  %v6180_v31 = vld [vmem:[%s6631_s1 + $0x8] ss:$0 sm:$0xff] }
 0x1be   : > { %v2549_v22 = vsel %vm5179_vm5, %v2544_v53, %v2548_v47  ;;  %v3010_v4 = vsel %vm5166_vm4, %v3008_v17, %v3009_v27  ;;  %v770_v63 = vshrl.u32 %v310_v9, 16  ;;  %v773_v3 = vshll.u32 %v310_v9, 16 }
 0x1bf   : > { %v2811_v38 = vunpack.c.l.bf16 %v2549_v22  ;;  %v2878_v34 = vadd.f32 %v2846_v60, %v2346_v19  ;;  %v3119_v44 = vunpack.c.l.bf16 %v3010_v4  ;;  %v3154_v33 = vmul.f32 %v6180_v31, %v3118_v14 }
 0x1c0   : > { %v779_v6 = vshll.u32 %v6158_v32, 16  ;;  %v772_v29 = vrot.slane %v770_v63, 4  ;;  %v775_v36 = vrot.slane %v773_v3, 5  ;;  %v783_v5 = vshrl.u32 %v6158_v32, 16 }
 0x1c1   : > { %v2847_v7 = vmul.f32 %v5255_v24, %v2811_v38  ;;  %v4887_v41 = vpop.eup %4886  ;;  %v3155_v42 = vmul.f32 %v6180_v31, %v3119_v44  ;;  %v3186_v51 = vadd.f32 %v3154_v33, %v2878_v34  ;;  %v789_v45 = vshll.u32 %v428_v18, 16 }
 0x1c2   : > { %v781_v48 = vrot.slane %v779_v6, 5  ;;  %v4889_v55 = vpop.eup %4888  ;;  %v3502_v12 = vmul.f32 %v4887_v41, %v6116_v59  ;;  %v776_v50 = vor.u32 %v775_v36, %v772_v29  ;;  %v785_v52 = vrot.slane %v783_v5, 4  ;;  %v4318_v59 = vld [vmem:[%s5133_s12 + $0xb4] sm:$0xf]  ;;  %v4336_v29 = vld [vmem:[%s5133_s12 + $0xbc] sm:$0x1] }
 0x1c3   : > { %v2879_v43 = vadd.f32 %v2847_v7, %v2347_v21  ;;  %v3503_v61 = vmul.f32 %v4889_v55, %v6123_v39  ;;  %v3225_v62 = vmul.f32 %v6193_v30, %v3186_v51  ;;  %v791_v47 = vrot.slane %v789_v45, 5  ;;  %v6201_v39 = vld [vmem:[%s6633_s3] ss:$0 sm:$0xff]  ;;  %v4319_v21 = vld [vmem:[%s5133_s12 + $0xb8] sm:$0xf]  ;;  %v6232_v45 = vpop.f32.mrb[0].mxu1 }
 0x1c4   : > { %v4288_v1 = vrot.slane %v963_v11, 9  ;;  %v777_v54 = vrot.slane %v776_v50, 4  ;;  %v786_v20 = vor.u32 %v785_v52, %v781_v48  ;;  %v1116_v23 = vrot.slane %v6158_v32, 5  ;;  %v4352_v11 = vld [vmem:[%s5133_s12 + $0xb4] sm:$0xe]  ;;  %v6237_v52 = vpop.f32.mrb[1].mxu1 }
 0x1c5   : > { %v3187_v2 = vadd.f32 %v3155_v42, %v2879_v43  ;;  %v3521_v9 = vpack.c.bf16 %v3503_v61, %v3502_v12  ;;  %v6204_v0 = vadd.f32 %v6201_v39, %v3225_v62  ;;  %v1119_v27 = vrot.slane %v428_v18, 5 }
 0x1c6   : > { %v1321_v56 = vunpack.c.l.bf16 %v4318_v59  ;;  %v782_v16 = vsel %vm5179_vm5, %v777_v54, %v781_v48  ;;  %v787_v19 = vrot.slane %v786_v20, 4  ;;  %v1117_v32 = vsel %vm5166_vm4, %v4288_v1, %v1116_v23  ;;  %v6230_v48 = vpop.f32.mrb[0].mxu0 }
 0x1c7   : > { %v3226_v25 = vmul.f32 %v6193_v30, %v3187_v2  ;;  %4754 = vmatmul.mubr.bf16.gmra.mrb[8].mxu1 %v3521_v9  ;;  %v4465_v53 = vmul.f32 -1.442695, %v6204_v0  ;;  %v877_v10 = vunpack.c.l.bf16 %v782_v16  ;;  %v1118_v35 = vrot.slane %v1116_v23, 4  ;;  %v4398_v9 = vld [vmem:[%s5133_s12 + $0xc0] sm:$0xf] }
 0x1c8   : > { %v1188_v17 = vunpack.c.l.bf16 %v1117_v32  ;;  %v792_v60 = vsel %vm5179_vm5, %v787_v19, %v791_v47  ;;  %v1322_v14 = vunpack.c.l.bf16 %v4319_v21  ;;  %v1357_v38 = vmul.f32 %v5197_v57, %v1321_v56 }
 0x1c9   : > { %v6214_v22 = vadd.f32 %v6201_v39, %v3226_v25  ;;  %4890 = vpow2.f32 %v4465_v53  ;;  %v878_v4 = vunpack.c.l.bf16 %v792_v60  ;;  %v913_v18 = vmul.f32 %v5152_v15, %v877_v10  ;;  %v4399_v60 = vld [vmem:[%s5133_s12 + $0xc4] sm:$0xf] }
 0x1ca   : > { %v1120_v63 = vsel %vm5166_vm4, %v1118_v35, %v1119_v27  ;;  %v1224_v44 = vmul.f32 %v5172_v37, %v1188_v17  ;;  %v1358_v33 = vmul.f32 %v5197_v57, %v1322_v14  ;;  %v1746_v36 = vshrl.u32 %v4318_v59, 16 }
 0x1cb   : > { %v4466_v3 = vmul.f32 -1.442695, %v6214_v22  ;;  %v1189_v34 = vunpack.c.l.bf16 %v1120_v63  ;;  %v914_v6 = vmul.f32 %v5152_v15, %v878_v4  ;;  %v945_v7 = vadd.f32 %v913_v18, %v6166_v46  ;;  %v6235_v46 = vpop.f32.mrb[1].mxu0 }
 0x1cc   : > { %v1749_v5 = vshll.u32 %v4318_v59, 16  ;;  %v1755_v42 = vshll.u32 %v4319_v21, 16  ;;  %v1759_v51 = vshrl.u32 %v4319_v21, 16  ;;  %v1748_v43 = vrot.slane %v1746_v36, 4  ;;  %v6239_v2 = vpop.f32.mrb[2].mxu0 }
 0x1cd   : > { %4892 = vpow2.f32 %v4466_v3  ;;  %v1225_v41 = vmul.f32 %v5172_v37, %v1189_v34  ;;  %v946_v55 = vadd.f32 %v914_v6, %v6169_v8  ;;  %v1256_v12 = vadd.f32 %v1224_v44, %v945_v7  ;;  %v6242_v8 = vpop.f32.mrb[2].mxu1  ;;  %v6244_v27 = vpop.f32.mrb[3].mxu0 }
 0x1ce   : > { %v1751_v50 = vrot.slane %v1749_v5, 5  ;;  %v1757_v61 = vrot.slane %v1755_v42, 5  ;;  %v1761_v62 = vrot.slane %v1759_v51, 4  ;;  %v1765_v47 = vshll.u32 %v4336_v29, 16  ;;  %v6246_v32 = vpop.f32.mrb[3].mxu1 }
 0x1cf   : > { %v4368_v1 = vrot.slane %v4352_v11, 9  ;;  %v1257_v54 = vadd.f32 %v1225_v41, %v946_v55  ;;  %v1389_v20 = vadd.f32 %v1357_v38, %v1256_v12  ;;  %v2089_v59 = vrot.slane %v4319_v21, 5  ;;  %v4416_v41 = vld [vmem:[%s5133_s12 + $0xc8] sm:$0x1]  ;;  %v4432_v51 = vld [vmem:[%s5133_s12 + $0xc0] sm:$0xe] }
 0x1d0   : > { %v1752_v23 = vor.u32 %v1751_v50, %v1748_v43  ;;  %v1762_v56 = vor.u32 %v1761_v62, %v1757_v61  ;;  %v1767_v25 = vrot.slane %v1765_v47, 5  ;;  %v2092_v16 = vrot.slane %v4336_v29, 5 }
 0x1d1   : > { %v2294_v19 = vunpack.c.l.bf16 %v4398_v9  ;;  %v1390_v53 = vadd.f32 %v1358_v33, %v1257_v54  ;;  %v2090_v35 = vsel %vm5166_vm4, %v4368_v1, %v2089_v59  ;;  %v2091_v17 = vrot.slane %v2089_v59, 4 }
 0x1d2   : > { %v1753_v10 = vrot.slane %v1752_v23, 4  ;;  %v1763_v14 = vrot.slane %v1762_v56, 4  ;;  %v2161_v21 = vunpack.c.l.bf16 %v2090_v35  ;;  %v2295_v38 = vunpack.c.l.bf16 %v4399_v60 }
 0x1d3   : > { %v2330_v4 = vmul.f32 %v5241_v58, %v2294_v19  ;;  %v4891_v18 = vpop.eup %4890  ;;  %v2093_v3 = vsel %vm5166_vm4, %v2091_v17, %v2092_v16  ;;  %v2719_v34 = vshrl.u32 %v4398_v9, 16  ;;  %v2722_v44 = vshll.u32 %v4398_v9, 16 }
 0x1d4   : > { %v1758_v63 = vsel %vm5179_vm5, %v1753_v10, %v1757_v61  ;;  %v3392_v33 = vadd.f32 1.0, %v4891_v18  ;;  %v1768_v6 = vsel %vm5179_vm5, %v1763_v14, %v1767_v25  ;;  %v2162_v29 = vunpack.c.l.bf16 %v2093_v3  ;;  %v296_v14 = vld [vmem:[%s5133_s12 + $0x54] sm:$0xf] }
 0x1d5   : > { %v1853_v7 = vunpack.c.l.bf16 %v1758_v63  ;;  %v1854_v36 = vunpack.c.l.bf16 %v1768_v6  ;;  %v2197_v5 = vmul.f32 %v5235_v49, %v2161_v21  ;;  %v2331_v11 = vmul.f32 %v5241_v58, %v2295_v38 }
 0x1d6   : > { %v2721_v42 = vrot.slane %v2719_v34, 4  ;;  %4894 = vrcp.f32 %v3392_v33  ;;  %v2198_v43 = vmul.f32 %v5235_v49, %v2162_v29  ;;  %v2724_v50 = vrot.slane %v2722_v44, 5 }
 0x1d7   : > { %v4893_v55 = vpop.eup %4892  ;;  %v1889_v12 = vmul.f32 %v5220_v26, %v1853_v7  ;;  %v1890_v62 = vmul.f32 %v5220_v26, %v1854_v36  ;;  %v2728_v47 = vshll.u32 %v4399_v60, 16  ;;  %v2732_v1 = vshrl.u32 %v4399_v60, 16 }
 0x1d8   : > { %v3393_v61 = vadd.f32 1.0, %v4893_v55  ;;  %v2725_v23 = vor.u32 %v2724_v50, %v2721_v42  ;;  %v2738_v59 = vshll.u32 %v4416_v41, 16  ;;  %v4448_v9 = vrot.slane %v4432_v51, 9  ;;  %v421_v55 = vld [vmem:[%s5133_s12 + $0x5c] sm:$0x1] }
 0x1d9   : > { %v1921_v54 = vadd.f32 %v1889_v12, %v1389_v20  ;;  %v1922_v56 = vadd.f32 %v1890_v62, %v1390_v53  ;;  %v2730_v25 = vrot.slane %v2728_v47, 5  ;;  %v2734_v16 = vrot.slane %v2732_v1, 4  ;;  %v956_v47 = vld [vmem:[%s5133_s12 + $0x54] sm:$0xe] }
 0x1da   : > { %4896 = vrcp.f32 %v3393_v61  ;;  %v2726_v10 = vrot.slane %v2725_v23, 4  ;;  %v2740_v35 = vrot.slane %v2738_v59, 5  ;;  %v3062_v17 = vrot.slane %v4399_v60, 5  ;;  %v297_v60 = vld [vmem:[%s5133_s12 + $0x58] sm:$0xf] }
 0x1db   : > { %v2229_v19 = vadd.f32 %v2197_v5, %v1921_v54  ;;  %v2230_v21 = vadd.f32 %v2198_v43, %v1922_v56  ;;  %v2735_v38 = vor.u32 %v2734_v16, %v2730_v25  ;;  %v3065_v18 = vrot.slane %v4416_v41, 5 }
 0x1dc   : > { %v328_v63 = vunpack.c.l.bf16 %v296_v14  ;;  %v2731_v20 = vsel %vm5179_vm5, %v2726_v10, %v2730_v25  ;;  %v3063_v53 = vsel %vm5166_vm4, %v4448_v9, %v3062_v17  ;;  %v3064_v34 = vrot.slane %v3062_v17, 4 }
 0x1dd   : > { %v2362_v3 = vadd.f32 %v2330_v4, %v2229_v19  ;;  %v2363_v44 = vadd.f32 %v2331_v11, %v2230_v21  ;;  %v2736_v33 = vrot.slane %v2735_v38, 4  ;;  %v2826_v6 = vunpack.c.l.bf16 %v2731_v20 }
 0x1de   : > { %v3134_v7 = vunpack.c.l.bf16 %v3063_v53  ;;  %v3066_v29 = vsel %vm5166_vm4, %v3064_v34, %v3065_v18  ;;  %v329_v36 = vunpack.c.l.bf16 %v297_v60  ;;  %v6274_v4 = vmul.f32 %v5148_v13, %v328_v63 }
 0x1df   : > { %v602_v5 = vshrl.u32 %v296_v14, 16  ;;  %v2741_v41 = vsel %vm5179_vm5, %v2736_v33, %v2740_v35  ;;  %v2862_v42 = vmul.f32 %v5255_v24, %v2826_v6  ;;  %v3135_v51 = vunpack.c.l.bf16 %v3066_v29  ;;  %v4304_v29 = vld [vmem:[%s5133_s12 + $0x60] sm:$0xf] }
 0x1e0   : > { %v3170_v11 = vmul.f32 %v6180_v31, %v3134_v7  ;;  %v4895_v12 = vpop.eup %4894  ;;  %v2827_v43 = vunpack.c.l.bf16 %v2741_v41  ;;  %v6282_v50 = vmul.f32 %v5148_v13, %v329_v36  ;;  %v605_v62 = vshll.u32 %v296_v14, 16 }
 0x1e1   : > { %v604_v61 = vrot.slane %v602_v5, 4  ;;  %v3488_v1 = vmul.f32 %v4895_v12, %v6204_v0  ;;  %v2894_v54 = vadd.f32 %v2862_v42, %v2362_v3  ;;  %v3171_v23 = vmul.f32 %v6180_v31, %v3135_v51 }
 0x1e2   : > { %v611_v59 = vshll.u32 %v297_v60, 16  ;;  %v2863_v9 = vmul.f32 %v5255_v24, %v2827_v43  ;;  %v607_v56 = vrot.slane %v605_v62, 5  ;;  %v615_v25 = vshrl.u32 %v297_v60, 16 }
 0x1e3   : > { %v621_v16 = vshll.u32 %v421_v55, 16  ;;  %v3202_v10 = vadd.f32 %v3170_v11, %v2894_v54  ;;  %v4281_v17 = vrot.slane %v956_v47, 9  ;;  %v1067_v21 = vrot.slane %v297_v60, 5 }
 0x1e4   : > { %v4897_v19 = vpop.eup %4896  ;;  %v613_v35 = vrot.slane %v611_v59, 5  ;;  %v2895_v38 = vadd.f32 %v2863_v9, %v2363_v44  ;;  %v608_v0 = vor.u32 %v607_v56, %v604_v61  ;;  %v617_v18 = vrot.slane %v615_v25, 4  ;;  %v4305_v44 = vld [vmem:[%s5133_s12 + $0x64] sm:$0xf]  ;;  %v4329_v56 = vld [vmem:[%s5133_s12 + $0x68] sm:$0x1] }
 0x1e5   : > { %v3489_v14 = vmul.f32 %v4897_v19, %v6214_v22  ;;  %v3241_v63 = vmul.f32 %v6193_v30, %v3202_v10  ;;  %v623_v3 = vrot.slane %v621_v16, 5  ;;  %v1068_v20 = vsel %vm5166_vm4, %v4281_v17, %v1067_v21 }
 0x1e6   : > { %v1069_v53 = vrot.slane %v1067_v21, 4  ;;  %v3203_v33 = vadd.f32 %v3171_v23, %v2895_v38  ;;  %v609_v6 = vrot.slane %v608_v0, 4  ;;  %v618_v7 = vor.u32 %v617_v18, %v613_v35  ;;  %v4345_v38 = vld [vmem:[%s5133_s12 + $0x60] sm:$0xe] }
 0x1e7   : > { %v3514_v34 = vpack.c.bf16 %v3489_v14, %v3488_v1  ;;  %v6294_v60 = vadd.f32 %v6201_v39, %v3241_v63  ;;  %v1070_v22 = vrot.slane %v421_v55, 5  ;;  %v1174_v36 = vunpack.c.l.bf16 %v1068_v20 }
 0x1e8   : > { %v1307_v5 = vunpack.c.l.bf16 %v4304_v29  ;;  %v3242_v41 = vmul.f32 %v6193_v30, %v3203_v33  ;;  %v614_v42 = vsel %vm5179_vm5, %v609_v6, %v613_v35  ;;  %v619_v51 = vrot.slane %v618_v7, 4 }
 0x1e9   : > { %4741 = vmatprep.mubr.bf16.mxu0 %v3514_v34  ;;  %v1308_v11 = vunpack.c.l.bf16 %v4305_v44  ;;  %v4481_v12 = vmul.f32 -1.442695, %v6294_v60  ;;  %v863_v43 = vunpack.c.l.bf16 %v614_v42  ;;  %v1071_v61 = vsel %vm5166_vm4, %v1069_v53, %v1070_v22 }
 0x1ea   : > { %v1210_v55 = vmul.f32 %v5172_v37, %v1174_v36  ;;  %v6305_v62 = vadd.f32 %v6201_v39, %v3242_v41  ;;  %v624_v47 = vsel %vm5179_vm5, %v619_v51, %v623_v3  ;;  %v1175_v1 = vunpack.c.l.bf16 %v1071_v61  ;;  %v4384_v41 = vld [vmem:[%s5133_s12 + $0x6c] sm:$0xf] }
 0x1eb   : > { %v1343_v54 = vmul.f32 %v5197_v57, %v1307_v5  ;;  %4898 = vpow2.f32 %v4481_v12  ;;  %v864_v23 = vunpack.c.l.bf16 %v624_v47  ;;  %v899_v59 = vmul.f32 %v5152_v15, %v863_v43  ;;  %v4385_v12 = vld [vmem:[%s5133_s12 + $0x70] sm:$0xf] }
 0x1ec   : > { %v1344_v9 = vmul.f32 %v5197_v57, %v1308_v11  ;;  %v4482_v25 = vmul.f32 -1.442695, %v6305_v62  ;;  %v1211_v16 = vmul.f32 %v5172_v37, %v1175_v1  ;;  %v1578_v19 = vshrl.u32 %v4304_v29, 16 }
 0x1ed   : > { %v1581_v10 = vshll.u32 %v4304_v29, 16  ;;  %v900_v35 = vmul.f32 %v5152_v15, %v864_v23  ;;  %v931_v17 = vadd.f32 %v899_v59, %v6274_v4  ;;  %v1587_v21 = vshll.u32 %v4305_v44, 16 }
 0x1ee   : > { %v1591_v14 = vshrl.u32 %v4305_v44, 16  ;;  %4900 = vpow2.f32 %v4482_v25  ;;  %v1580_v0 = vrot.slane %v1578_v19, 4  ;;  %v1597_v63 = vshll.u32 %v4329_v56, 16 }
 0x1ef   : > { %v1583_v18 = vrot.slane %v1581_v10, 5  ;;  %v932_v3 = vadd.f32 %v900_v35, %v6282_v50  ;;  %v1242_v20 = vadd.f32 %v1210_v55, %v931_v17  ;;  %v1589_v53 = vrot.slane %v1587_v21, 5  ;;  %v4409_v10 = vld [vmem:[%s5133_s12 + $0x74] sm:$0x1] }
 0x1f0   : > { %v1593_v34 = vrot.slane %v1591_v14, 4  ;;  %v1599_v6 = vrot.slane %v1597_v63, 5  ;;  %v4361_v7 = vrot.slane %v4345_v38, 9  ;;  %v2040_v29 = vrot.slane %v4305_v44, 5 }
 0x1f1   : > { %v1584_v33 = vor.u32 %v1583_v18, %v1580_v0  ;;  %v1243_v22 = vadd.f32 %v1211_v16, %v932_v3  ;;  %v1375_v4 = vadd.f32 %v1343_v54, %v1242_v20  ;;  %v2043_v5 = vrot.slane %v4329_v56, 5 }
 0x1f2   : > { %v1594_v36 = vor.u32 %v1593_v34, %v1589_v53  ;;  %v2041_v51 = vsel %vm5166_vm4, %v4361_v7, %v2040_v29  ;;  %v2042_v11 = vrot.slane %v2040_v29, 4  ;;  %v2280_v50 = vunpack.c.l.bf16 %v4384_v41 }
 0x1f3   : > { %v1585_v42 = vrot.slane %v1584_v33, 4  ;;  %v1376_v43 = vadd.f32 %v1344_v9, %v1243_v22  ;;  %v2147_v55 = vunpack.c.l.bf16 %v2041_v51  ;;  %v2281_v47 = vunpack.c.l.bf16 %v4385_v12 }
 0x1f4   : > { %v1595_v61 = vrot.slane %v1594_v36, 4  ;;  %v2044_v1 = vsel %vm5166_vm4, %v2042_v11, %v2043_v5  ;;  %v2316_v54 = vmul.f32 %v5241_v58, %v2280_v50  ;;  %v2551_v23 = vshrl.u32 %v4384_v41, 16  ;;  %v6328_v59 = vpop.f32.mrb[4].mxu0 }
 0x1f5   : > { %v1590_v44 = vsel %vm5179_vm5, %v1585_v42, %v1589_v53  ;;  %v4899_v56 = vpop.eup %4898  ;;  %v2148_v16 = vunpack.c.l.bf16 %v2044_v1  ;;  %v2183_v19 = vmul.f32 %v5235_v49, %v2147_v55  ;;  %v6334_v35 = vpop.f32.mrb[5].mxu0  ;;  %v2317_v14 = vmul.f32 %v5241_v58, %v2281_v47  ;;  %v4425_v53 = vld [vmem:[%s5133_s12 + $0x6c] sm:$0xe] }
 0x1f6   : > { %v1600_v25 = vsel %vm5179_vm5, %v1595_v61, %v1599_v6  ;;  %v1839_v9 = vunpack.c.l.bf16 %v1590_v44  ;;  %v3408_v17 = vadd.f32 1.0, %v4899_v56  ;;  %v2553_v38 = vrot.slane %v2551_v23, 4  ;;  %v6337_v0 = vpop.f32.mrb[6].mxu0  ;;  %v312_v44 = vld [vmem:[%s5133_s12 + $0xb4] sm:$0xf] }
 0x1f7   : > { %v1840_v21 = vunpack.c.l.bf16 %v1600_v25  ;;  %v2184_v63 = vmul.f32 %v5235_v49, %v2148_v16  ;;  %v2554_v3 = vshll.u32 %v4384_v41, 16  ;;  %v2560_v20 = vshll.u32 %v4385_v12, 16  ;;  %v6342_v34 = vpop.f32.mrb[7].mxu0 }
 0x1f8   : > { %v1875_v18 = vmul.f32 %v5220_v26, %v1839_v9  ;;  %v4901_v33 = vpop.eup %4900  ;;  %4902 = vrcp.f32 %v3408_v17  ;;  %v2564_v7 = vshrl.u32 %v4385_v12, 16  ;;  %v2570_v29 = vshll.u32 %v4409_v10, 16  ;;  %v313_v17 = vld [vmem:[%s5133_s12 + $0xb8] sm:$0xf] }
 0x1f9   : > { %v1876_v6 = vmul.f32 %v5220_v26, %v1840_v21  ;;  %v3409_v22 = vadd.f32 1.0, %v4901_v33  ;;  %v2556_v5 = vrot.slane %v2554_v3, 5  ;;  %v2562_v42 = vrot.slane %v2560_v20, 5  ;;  %v429_v33 = vld [vmem:[%s5133_s12 + $0xbc] sm:$0x1] }
 0x1fa   : > { %v1907_v36 = vadd.f32 %v1875_v18, %v1375_v4  ;;  %v2566_v11 = vrot.slane %v2564_v7, 4  ;;  %v2572_v50 = vrot.slane %v2570_v29, 5  ;;  %v4441_v41 = vrot.slane %v4425_v53, 9 }
 0x1fb   : > { %v1908_v51 = vadd.f32 %v1876_v6, %v1376_v43  ;;  %4904 = vrcp.f32 %v3409_v22  ;;  %v2557_v55 = vor.u32 %v2556_v5, %v2553_v38  ;;  %v3013_v47 = vrot.slane %v4385_v12, 5 }
 0x1fc   : > { %v2215_v61 = vadd.f32 %v2183_v19, %v1907_v36  ;;  %v2567_v23 = vor.u32 %v2566_v11, %v2562_v42  ;;  %v3016_v56 = vrot.slane %v4409_v10, 5  ;;  %v344_v25 = vunpack.c.l.bf16 %v312_v44  ;;  %v964_v36 = vld [vmem:[%s5133_s12 + $0xb4] sm:$0xe] }
 0x1fd   : > { %v2216_v1 = vadd.f32 %v2184_v63, %v1908_v51  ;;  %v2558_v16 = vrot.slane %v2557_v55, 4  ;;  %v3014_v4 = vsel %vm5166_vm4, %v4441_v41, %v3013_v47  ;;  %v3015_v43 = vrot.slane %v3013_v47, 4 }
 0x1fe   : > { %v2348_v9 = vadd.f32 %v2316_v54, %v2215_v61  ;;  %v2568_v18 = vrot.slane %v2567_v23, 4  ;;  %v3120_v3 = vunpack.c.l.bf16 %v3014_v4  ;;  %v345_v19 = vunpack.c.l.bf16 %v313_v17 }
 0x1ff   : > { %v2349_v21 = vadd.f32 %v2317_v14, %v2216_v1  ;;  %v2563_v12 = vsel %vm5179_vm5, %v2558_v16, %v2562_v42  ;;  %v3017_v10 = vsel %vm5166_vm4, %v3015_v43, %v3016_v56  ;;  %v6354_v54 = vmul.f32 %v5148_v13, %v344_v25 }
 0x200   : > { %v794_v38 = vshrl.u32 %v312_v44, 16  ;;  %v2573_v63 = vsel %vm5179_vm5, %v2568_v18, %v2572_v50  ;;  %v2812_v20 = vunpack.c.l.bf16 %v2563_v12  ;;  %v3121_v53 = vunpack.c.l.bf16 %v3017_v10 }
 0x201   : > { %v3156_v14 = vmul.f32 %v6180_v31, %v3120_v3  ;;  %v2813_v6 = vunpack.c.l.bf16 %v2573_v63  ;;  %v6361_v7 = vmul.f32 %v5148_v13, %v345_v19  ;;  %v797_v22 = vshll.u32 %v312_v44, 16 }
 0x202   : > { %v796_v29 = vrot.slane %v794_v38, 4  ;;  %v4903_v5 = vpop.eup %4902  ;;  %v2848_v42 = vmul.f32 %v5255_v24, %v2812_v20  ;;  %v3157_v51 = vmul.f32 %v6180_v31, %v3121_v53  ;;  %v803_v11 = vshll.u32 %v313_v17, 16 }
 0x203   : > { %v807_v41 = vshrl.u32 %v313_v17, 16  ;;  %v3504_v50 = vmul.f32 %v4903_v5, %v6294_v60  ;;  %v2849_v61 = vmul.f32 %v5255_v24, %v2813_v6  ;;  %v799_v55 = vrot.slane %v797_v22, 5  ;;  %v4320_v6 = vld [vmem:[%s5133_s12 + $0xc0] sm:$0xf] }
 0x204   : > { %v813_v47 = vshll.u32 %v429_v33, 16  ;;  %v2880_v1 = vadd.f32 %v2848_v42, %v2348_v9  ;;  %v805_v23 = vrot.slane %v803_v11, 5  ;;  %v4289_v56 = vrot.slane %v964_v36, 9  ;;  %v4321_v42 = vld [vmem:[%s5133_s12 + $0xc4] sm:$0xf] }
 0x205   : > { %v809_v13 = vrot.slane %v807_v41, 4  ;;  %v4905_v25 = vpop.eup %4904  ;;  %v2881_v44 = vadd.f32 %v2849_v61, %v2349_v21  ;;  %v800_v16 = vor.u32 %v799_v55, %v796_v29  ;;  %v1123_v43 = vrot.slane %v313_v17, 5 }
 0x206   : > { %v815_v4 = vrot.slane %v813_v47, 5  ;;  %v3505_v18 = vmul.f32 %v4905_v25, %v6305_v62  ;;  %v3188_v3 = vadd.f32 %v3156_v14, %v2880_v1  ;;  %v1126_v12 = vrot.slane %v429_v33, 5  ;;  %v4337_v25 = vld [vmem:[%s5133_s12 + $0xc8] sm:$0x1] }
 0x207   : > { %v810_v19 = vor.u32 %v809_v13, %v805_v23  ;;  %v3189_v60 = vadd.f32 %v3157_v51, %v2881_v44  ;;  %v801_v10 = vrot.slane %v800_v16, 4  ;;  %v1124_v38 = vsel %vm5166_vm4, %v4289_v56, %v1123_v43 }
 0x208   : > { %v1125_v9 = vrot.slane %v1123_v43, 4  ;;  %v3522_v63 = vpack.c.bf16 %v3505_v18, %v3504_v50  ;;  %v3227_v20 = vmul.f32 %v6193_v30, %v3188_v3  ;;  %v1190_v53 = vunpack.c.l.bf16 %v1124_v38  ;;  %v4353_v18 = vld [vmem:[%s5133_s12 + $0xc0] sm:$0xe] }
 0x209   : > { %v811_v21 = vrot.slane %v810_v19, 4  ;;  %v3228_v17 = vmul.f32 %v6193_v30, %v3189_v60  ;;  %v806_v62 = vsel %vm5179_vm5, %v801_v10, %v805_v23  ;;  %v1323_v33 = vunpack.c.l.bf16 %v4320_v6 }
 0x20a   : > { %v1127_v14 = vsel %vm5166_vm4, %v1125_v9, %v1126_v12  ;;  %4757 = vmatprep.mubr.bf16.mxu1 %v3522_v63  ;;  %v6379_v29 = vadd.f32 %v6201_v39, %v3227_v20  ;;  %v879_v36 = vunpack.c.l.bf16 %v806_v62  ;;  %v1226_v41 = vmul.f32 %v5172_v37, %v1190_v53 }
 0x20b   : > { %v816_v22 = vsel %vm5179_vm5, %v811_v21, %v815_v4  ;;  %v1191_v5 = vunpack.c.l.bf16 %v1127_v14  ;;  %v6385_v51 = vadd.f32 %v6201_v39, %v3228_v17  ;;  %v1324_v50 = vunpack.c.l.bf16 %v4321_v42 }
 0x20c   : > { %v880_v11 = vunpack.c.l.bf16 %v816_v22  ;;  %v4467_v61 = vmul.f32 -1.442695, %v6379_v29  ;;  %v915_v55 = vmul.f32 %v5152_v15, %v879_v36  ;;  %v1359_v1 = vmul.f32 %v5197_v57, %v1323_v33  ;;  %v4401_v33 = vld [vmem:[%s5133_s12 + $0xd0] sm:$0xf] }
 0x20d   : > { %v1227_v47 = vmul.f32 %v5172_v37, %v1191_v5  ;;  %v4468_v23 = vmul.f32 -1.442695, %v6385_v51  ;;  %v1360_v56 = vmul.f32 %v5197_v57, %v1324_v50  ;;  %v1770_v44 = vshrl.u32 %v4320_v6, 16 }
 0x20e   : > { %v916_v13 = vmul.f32 %v5152_v15, %v880_v11  ;;  %4906 = vpow2.f32 %v4467_v61  ;;  %v947_v16 = vadd.f32 %v915_v55, %v6354_v54  ;;  %v1773_v4 = vshll.u32 %v4320_v6, 16  ;;  %v4400_v6 = vld [vmem:[%s5133_s12 + $0xcc] sm:$0xf] }
 0x20f   : > { %v1779_v43 = vshll.u32 %v4321_v42, 16  ;;  %4908 = vpow2.f32 %v4468_v23  ;;  %v1772_v3 = vrot.slane %v1770_v44, 4  ;;  %v1783_v19 = vshrl.u32 %v4321_v42, 16 }
 0x210   : > { %v948_v37 = vadd.f32 %v916_v13, %v6361_v7  ;;  %v1258_v12 = vadd.f32 %v1226_v41, %v947_v16  ;;  %v1775_v60 = vrot.slane %v1773_v4, 5  ;;  %v1789_v10 = vshll.u32 %v4337_v25, 16 }
 0x211   : > { %v1781_v15 = vrot.slane %v1779_v43, 5  ;;  %v1785_v38 = vrot.slane %v1783_v19, 4  ;;  %v4369_v9 = vrot.slane %v4353_v18, 9  ;;  %v2096_v63 = vrot.slane %v4321_v42, 5 }
 0x212   : > { %v1259_v57 = vadd.f32 %v1227_v47, %v948_v37  ;;  %v1391_v20 = vadd.f32 %v1359_v1, %v1258_v12  ;;  %v1776_v54 = vor.u32 %v1775_v60, %v1772_v3  ;;  %v1791_v21 = vrot.slane %v1789_v10, 5 }
 0x213   : > { %v2099_v53 = vrot.slane %v4337_v25, 5  ;;  %v1786_v62 = vor.u32 %v1785_v38, %v1781_v15  ;;  %v2097_v7 = vsel %vm5166_vm4, %v4369_v9, %v2096_v63  ;;  %v2098_v14 = vrot.slane %v2096_v63, 4 }
 0x214   : > { %v1392_v17 = vadd.f32 %v1360_v56, %v1259_v57  ;;  %v1777_v22 = vrot.slane %v1776_v54, 4  ;;  %v2163_v36 = vunpack.c.l.bf16 %v2097_v7  ;;  %v2296_v5 = vunpack.c.l.bf16 %v4400_v6  ;;  %v4417_v56 = vld [vmem:[%s5133_s12 + $0xd4] sm:$0x1]  ;;  %v4433_v54 = vld [vmem:[%s5133_s12 + $0xcc] sm:$0xe] }
 0x215   : > { %v2297_v11 = vunpack.c.l.bf16 %v4401_v33  ;;  %v1787_v41 = vrot.slane %v1786_v62, 4  ;;  %v2100_v42 = vsel %vm5166_vm4, %v2098_v14, %v2099_v53  ;;  %v2743_v50 = vshrl.u32 %v4400_v6, 16  ;;  %v6405_v55 = vpop.f32.mrb[4].mxu1  ;;  %v6428_v14 = vld [vmem:[%s6635_s5] ss:$0 sm:$0xff] }
 0x216   : > { %v2746_v61 = vshll.u32 %v4400_v6, 16  ;;  %v1782_v47 = vsel %vm5179_vm5, %v1777_v22, %v1781_v15  ;;  %v2164_v1 = vunpack.c.l.bf16 %v2100_v42  ;;  %v2199_v23 = vmul.f32 %v5235_v49, %v2163_v36  ;;  %v6412_v25 = vpop.f32.mrb[5].mxu1 }
 0x217   : > { %v2332_v13 = vmul.f32 %v5241_v58, %v2296_v5  ;;  %v1792_v44 = vsel %vm5179_vm5, %v1787_v41, %v1791_v21  ;;  %v1855_v16 = vunpack.c.l.bf16 %v1782_v47  ;;  %v2333_v4 = vmul.f32 %v5241_v58, %v2297_v11  ;;  %v6417_v18 = vpop.f32.mrb[6].mxu1 }
 0x218   : > { %v2745_v43 = vrot.slane %v2743_v50, 4  ;;  %v4907_v37 = vpop.eup %4906  ;;  %v1856_v3 = vunpack.c.l.bf16 %v1792_v44  ;;  %v2200_v19 = vmul.f32 %v5235_v49, %v2164_v1  ;;  %v2748_v12 = vrot.slane %v2746_v61, 5  ;;  %v6420_v15 = vpop.f32.mrb[7].mxu1 }
 0x219   : > { %v2752_v60 = vshll.u32 %v4401_v33, 16  ;;  %v4909_v10 = vpop.eup %4908  ;;  %v3394_v57 = vadd.f32 1.0, %v4907_v37  ;;  %v1891_v38 = vmul.f32 %v5220_v26, %v1855_v16  ;;  %v2756_v9 = vshrl.u32 %v4401_v33, 16 }
 0x21a   : > { %v2762_v63 = vshll.u32 %v4417_v56, 16  ;;  %v3395_v21 = vadd.f32 1.0, %v4909_v10  ;;  %v1892_v58 = vmul.f32 %v5220_v26, %v1856_v3  ;;  %v2749_v53 = vor.u32 %v2748_v12, %v2745_v43  ;;  %v6433_v26 = vld [vmem:[%s6636_s6] ss:$0 sm:$0xff] }
 0x21b   : > { %v2754_v6 = vrot.slane %v2752_v60, 5  ;;  %4910 = vrcp.f32 %v3394_v57  ;;  %v1923_v62 = vadd.f32 %v1891_v38, %v1391_v20  ;;  %v2758_v7 = vrot.slane %v2756_v9, 4 }
 0x21c   : > { %v2764_v49 = vrot.slane %v2762_v63, 5  ;;  %4912 = vrcp.f32 %v3395_v21  ;;  %v1924_v22 = vadd.f32 %v1892_v58, %v1392_v17  ;;  %v2750_v36 = vrot.slane %v2749_v53, 4 }
 0x21d   : > { %v4449_v5 = vrot.slane %v4433_v54, 9  ;;  %v2231_v11 = vadd.f32 %v2199_v23, %v1923_v62  ;;  %v2759_v41 = vor.u32 %v2758_v7, %v2754_v6  ;;  %v3069_v42 = vrot.slane %v4401_v33, 5 }
 0x21e   : > { %v3072_v50 = vrot.slane %v4417_v56, 5  ;;  %v2232_v20 = vadd.f32 %v2200_v19, %v1924_v22  ;;  %v2755_v61 = vsel %vm5179_vm5, %v2750_v36, %v2754_v6  ;;  %v3758_v47 = vmul.f32 %v6230_v48, %v6428_v14 }
 0x21f   : > { %v3774_v17 = vmul.f32 %v6232_v45, %v6428_v14  ;;  %v2364_v1 = vadd.f32 %v2332_v13, %v2231_v11  ;;  %v2760_v23 = vrot.slane %v2759_v41, 4  ;;  %v2828_v44 = vunpack.c.l.bf16 %v2755_v61 }
 0x220   : > { %v3070_v33 = vsel %vm5166_vm4, %v4449_v5, %v3069_v42  ;;  %v2365_v56 = vadd.f32 %v2333_v4, %v2232_v20  ;;  %v3071_v16 = vrot.slane %v3069_v42, 4  ;;  %v6444_v37 = vadd.f32 %v6433_v26, %v3758_v47 }
 0x221   : > { %v3136_v43 = vunpack.c.l.bf16 %v3070_v33  ;;  %v2765_v3 = vsel %vm5179_vm5, %v2760_v23, %v2764_v49  ;;  %v2864_v48 = vmul.f32 %v5255_v24, %v2828_v44  ;;  %v6450_v19 = vadd.f32 %v6433_v26, %v3774_v17 }
 0x222   : > { %v3756_v45 = vmul.f32 %v6428_v14, %v6235_v46  ;;  %v2829_v13 = vunpack.c.l.bf16 %v2765_v3  ;;  %v3073_v4 = vsel %vm5166_vm4, %v3071_v16, %v3072_v50  ;;  %v4497_v60 = vmul.f32 -1.442695, %v6444_v37 }
 0x223   : > { %v3172_v12 = vmul.f32 %v6180_v31, %v3136_v43  ;;  %v2896_v10 = vadd.f32 %v2864_v48, %v2364_v1  ;;  %v3137_v57 = vunpack.c.l.bf16 %v3073_v4  ;;  %v4513_v40 = vmul.f32 -1.442695, %v6450_v19 }
 0x224   : > { %v6460_v38 = vadd.f32 %v6433_v26, %v3756_v45  ;;  %v2865_v9 = vmul.f32 %v5255_v24, %v2829_v13  ;;  %4914 = vpow2.f32 %v4497_v60  ;;  %v3772_v46 = vmul.f32 %v6428_v14, %v6237_v52 }
 0x225   : > { %v3759_v28 = vmul.f32 %v6239_v2, %v6428_v14  ;;  %v4911_v63 = vpop.eup %4910  ;;  %v3173_v54 = vmul.f32 %v6180_v31, %v3137_v57  ;;  %v3204_v21 = vadd.f32 %v3172_v12, %v2896_v10  ;;  %4916 = vpow2.f32 %v4513_v40 }
 0x226   : > { %v4495_v58 = vmul.f32 -1.442695, %v6460_v38  ;;  %v4913_v53 = vpop.eup %4912  ;;  %v3490_v6 = vmul.f32 %v4911_v63, %v6379_v29  ;;  %v2897_v62 = vadd.f32 %v2865_v9, %v2365_v56  ;;  %v6471_v24 = vadd.f32 %v6433_v26, %v3772_v46 }
 0x227   : > { %v6474_v7 = vadd.f32 %v6433_v26, %v3759_v28  ;;  %v3491_v52 = vmul.f32 %v4913_v53, %v6385_v51  ;;  %v3243_v2 = vmul.f32 %v6193_v30, %v3204_v21  ;;  %v3775_v31 = vmul.f32 %v6242_v8, %v6428_v14 }
 0x228   : > { %4918 = vpow2.f32 %v4495_v58  ;;  %v3205_v49 = vadd.f32 %v3173_v54, %v2897_v62  ;;  %v4511_v22 = vmul.f32 -1.442695, %v6471_v24  ;;  %v3757_v36 = vmul.f32 %v6428_v14, %v6244_v27 }
 0x229   : > { %v4498_v29 = vmul.f32 -1.442695, %v6474_v7  ;;  %v3515_v5 = vpack.c.bf16 %v3491_v52, %v3490_v6  ;;  %v6485_v11 = vadd.f32 %v6201_v39, %v3243_v2  ;;  %v6488_v51 = vadd.f32 %v6433_v26, %v3775_v31 }
 0x22a   : > { %v3773_v41 = vmul.f32 %v6428_v14, %v6246_v32  ;;  %v3244_v8 = vmul.f32 %v6193_v30, %v3205_v49  ;;  %4920 = vpow2.f32 %v4511_v22  ;;  %v6494_v42 = vadd.f32 %v6433_v26, %v3757_v36 }
 0x22b   : > { %v3762_v50 = vmul.f32 %v6328_v59, %v6428_v14  ;;  %4742 = vmatmul.mubr.bf16.gmra.mrb[12].mxu0 %v3515_v5  ;;  %v4483_v27 = vmul.f32 -1.442695, %v6485_v11  ;;  %4922 = vpow2.f32 %v4498_v29  ;;  %v4514_v20 = vmul.f32 -1.442695, %v6488_v51 }
 0x22c   : > { %v6501_v61 = vadd.f32 %v6433_v26, %v3773_v41  ;;  %v6504_v32 = vadd.f32 %v6201_v39, %v3244_v8  ;;  %v4496_v30 = vmul.f32 -1.442695, %v6494_v42  ;;  %v3778_v47 = vmul.f32 %v6405_v55, %v6428_v14 }
 0x22d   : > { %4924 = vpow2.f32 %v4483_v27  ;;  %v6510_v59 = vadd.f32 %v6433_v26, %v3762_v50  ;;  %v3760_v17 = vmul.f32 %v6428_v14, %v6334_v35  ;;  %v3776_v45 = vmul.f32 %v6428_v14, %v6412_v25 }
 0x22e   : > { %v4915_v1 = vpop.eup %4914  ;;  %v4484_v23 = vmul.f32 -1.442695, %v6504_v32  ;;  %4926 = vpow2.f32 %v4514_v20  ;;  %v6516_v44 = vadd.f32 %v6433_v26, %v3778_v47  ;;  %v4512_v56 = vmul.f32 -1.442695, %v6501_v61 }
 0x22f   : > { %v4917_v39 = vpop.eup %4916  ;;  %v3925_v33 = vadd.f32 1.0, %v4915_v1  ;;  %4928 = vpow2.f32 %v4496_v30  ;;  %v4501_v43 = vmul.f32 -1.442695, %v6510_v59  ;;  %v6521_v35 = vadd.f32 %v6433_v26, %v3760_v17 }
 0x230   : > { %4930 = vpow2.f32 %v4484_v23  ;;  %v3941_v55 = vadd.f32 1.0, %v4917_v39  ;;  %v4517_v48 = vmul.f32 -1.442695, %v6516_v44  ;;  %v3763_v13 = vmul.f32 %v6337_v0, %v6428_v14 }
 0x231   : > { %4932 = vrcp.f32 %v3925_v33  ;;  %v4499_v10 = vmul.f32 -1.442695, %v6521_v35  ;;  %v3779_v57 = vmul.f32 %v6417_v18, %v6428_v14  ;;  %v6532_v9 = vadd.f32 %v6433_v26, %v3776_v45 }
 0x232   : > { %v4919_v16 = vpop.eup %4918  ;;  %4934 = vrcp.f32 %v3941_v55  ;;  %v6535_v46 = vadd.f32 %v6433_v26, %v3763_v13  ;;  %v3761_v63 = vmul.f32 %v6428_v14, %v6342_v34  ;;  %v3777_v58 = vmul.f32 %v6428_v14, %v6420_v15 }
 0x233   : > { %v3923_v3 = vadd.f32 1.0, %v4919_v16  ;;  %4936 = vpow2.f32 %v4512_v56  ;;  %v6540_v18 = vadd.f32 %v6433_v26, %v3779_v57  ;;  %v4515_v62 = vmul.f32 -1.442695, %v6532_v9 }
 0x234   : > { %v4921_v4 = vpop.eup %4920  ;;  %v4502_v31 = vmul.f32 -1.442695, %v6535_v46  ;;  %v6547_v49 = vadd.f32 %v6433_v26, %v3761_v63  ;;  %v6551_v29 = vadd.f32 %v6433_v26, %v3777_v58 }
 0x235   : > { %4938 = vrcp.f32 %v3923_v3  ;;  %v4923_v12 = vpop.eup %4922  ;;  %v3939_v60 = vadd.f32 1.0, %v4921_v4  ;;  %v4518_v15 = vmul.f32 -1.442695, %v6540_v18 }
 0x236   : > { %4940 = vpow2.f32 %v4501_v43  ;;  %v3926_v40 = vadd.f32 1.0, %v4923_v12  ;;  %v4500_v50 = vmul.f32 -1.442695, %v6547_v49  ;;  %v4516_v20 = vmul.f32 -1.442695, %v6551_v29 }
 0x237   : > { %4942 = vpow2.f32 %v4517_v48  ;;  %v4925_v25 = vpop.eup %4924 }
 0x238   : > { %4944 = vrcp.f32 %v3939_v60  ;;  %v4927_v0 = vpop.eup %4926  ;;  %v3410_v28 = vadd.f32 1.0, %v4925_v25 }
 0x239   : > { %4946 = vrcp.f32 %v3926_v40  ;;  %v4929_v54 = vpop.eup %4928  ;;  %v3942_v21 = vadd.f32 1.0, %v4927_v0 }
 0x23a   : > { %4948 = vpow2.f32 %v4499_v10  ;;  %v4931_v53 = vpop.eup %4930  ;;  %v3924_v6 = vadd.f32 1.0, %v4929_v54 }
 0x23b   : > { %4950 = vrcp.f32 %v3410_v28  ;;  %v4933_v52 = vpop.eup %4932  ;;  %v3411_v2 = vadd.f32 1.0, %v4931_v53 }
 0x23c   : > { %4952 = vrcp.f32 %v3942_v21  ;;  %v4935_v34 = vpop.eup %4934  ;;  %v4021_v17 = vmul.f32 %v4933_v52, %v6444_v37 }
 0x23d   : > { %4954 = vrcp.f32 %v3924_v6  ;;  %v4937_v22 = vpop.eup %4936  ;;  %v4037_v16 = vmul.f32 %v4935_v34, %v6450_v19 }
 0x23e   : > { %4956 = vrcp.f32 %v3411_v2  ;;  %v3940_v5 = vadd.f32 1.0, %v4937_v22 }
 0x23f   : > { %v4939_v36 = vpop.eup %4938  ;;  %4958 = vpow2.f32 %v4515_v62 }
 0x240   : > { %v4941_v41 = vpop.eup %4940  ;;  %4960 = vpow2.f32 %v4502_v31  ;;  %v4019_v3 = vmul.f32 %v4939_v36, %v6460_v38 }
 0x241   : > { %v4943_v8 = vpop.eup %4942  ;;  %4962 = vrcp.f32 %v3940_v5 }
 0x242   : > { %v4945_v27 = vpop.eup %4944  ;;  %4964 = vpow2.f32 %v4518_v15  ;;  %v3945_v45 = vadd.f32 1.0, %v4943_v8 }
 0x243   : > { %v4947_v30 = vpop.eup %4946  ;;  %4966 = vpow2.f32 %v4500_v50  ;;  %v4035_v38 = vmul.f32 %v4945_v27, %v6471_v24 }
 0x244   : > { %v4949_v47 = vpop.eup %4948  ;;  %v4022_v1 = vmul.f32 %v4947_v30, %v6474_v7  ;;  %4968 = vpow2.f32 %v4516_v20  ;;  %v3929_v7 = vadd.f32 1.0, %v4941_v41 }
 0x245   : > { %v4951_v23 = vpop.eup %4950 }
 0x246   : > { %v4953_v39 = vpop.eup %4952  ;;  %v4602_v33 = vpack.c.bf16 %v4022_v1, %v4021_v17  ;;  %v3506_v55 = vmul.f32 %v4951_v23, %v6485_v11  ;;  %4970 = vrcp.f32 %v3929_v7 }
 0x247   : > { %v4955_v56 = vpop.eup %4954  ;;  %v4038_v37 = vmul.f32 %v4953_v39, %v6488_v51  ;;  %4972 = vrcp.f32 %v3945_v45 }
 0x248   : > { %v4957_v43 = vpop.eup %4956  ;;  %4674 = vst [vmem:[%s6561_s15 + $0x8] sm:$0xff] %v4602_v33   ;;  %v4020_v48 = vmul.f32 %v4955_v56, %v6494_v42  ;;  %v3927_v42 = vadd.f32 1.0, %v4949_v47 }
 0x249   : > { %v4959_v13 = vpop.eup %4958  ;;  %v3507_v4 = vmul.f32 %v4957_v43, %v6504_v32  ;;  %v4642_v12 = vpack.c.bf16 %v4038_v37, %v4037_v16 }
 0x24a   : > { %v4961_v60 = vpop.eup %4960  ;;  %v4597_v11 = vpack.c.bf16 %v4020_v48, %v4019_v3  ;;  %v3943_v25 = vadd.f32 1.0, %v4959_v13 }
 0x24b   : > { %v4963_v10 = vpop.eup %4962  ;;  %v3523_v57 = vpack.c.bf16 %v3507_v4, %v3506_v55  ;;  %4682 = vst [vmem:[%s6561_s15 + $0x48] sm:$0xff] %v4642_v12   ;;  %v3930_v19 = vadd.f32 1.0, %v4961_v60 }
 0x24c   : > { %v4965_v51 = vpop.eup %4964  ;;  %4598 = vst [vmem:[%s6561_s15] sm:$0xff] %v4597_v11   ;;  %v4036_v40 = vmul.f32 %v4963_v10, %v6501_v61 }
 0x24d   : > { %4758 = vmatmul.mubr.bf16.gmra.mrb[12].mxu1 %v3523_v57  ;;  %4974 = vrcp.f32 %v3930_v19  ;;  %v3946_v32 = vadd.f32 1.0, %v4965_v51  ;;  %v4967_v28 = vpop.eup %4966 }
 0x24e   : > { %v4637_v0 = vpack.c.bf16 %v4036_v40, %v4035_v38  ;;  %v4969_v63 = vpop.eup %4968  ;;  %v3928_v54 = vadd.f32 1.0, %v4967_v28 }
 0x24f   : > { %4976 = vrcp.f32 %v3946_v32  ;;  %v3944_v21 = vadd.f32 1.0, %v4969_v63 }
 0x250   : > { %4681 = vst [vmem:[%s6561_s15 + $0x40] sm:$0xff] %v4637_v0   ;;  %4978 = vrcp.f32 %v3927_v42  ;;  %v4971_v24 = vpop.eup %4970 }
 0x251   : > { %4980 = vrcp.f32 %v3943_v25  ;;  %v4973_v61 = vpop.eup %4972  ;;  %v4025_v53 = vmul.f32 %v4971_v24, %v6510_v59 }
 0x252   : > { %4982 = vrcp.f32 %v3928_v54  ;;  %v4041_v2 = vmul.f32 %v4973_v61, %v6516_v44 }
 0x253   : > { %4984 = vrcp.f32 %v3944_v21 }
 0x257   : > { %v4975_v58 = vpop.eup %4974 }
 0x258   : > { %v4026_v6 = vmul.f32 %v4975_v58, %v6535_v46 }
 0x259   : > { %v4977_v62 = vpop.eup %4976 }
 0x25a   : > { %v4979_v52 = vpop.eup %4978  ;;  %v4612_v31 = vpack.c.bf16 %v4026_v6, %v4025_v53  ;;  %v4042_v34 = vmul.f32 %v4977_v62, %v6540_v18 }
 0x25b   : > { %v4981_v22 = vpop.eup %4980  ;;  %v4023_v41 = vmul.f32 %v4979_v52, %v6521_v35 }
 0x25c   : > { %v4983_v15 = vpop.eup %4982  ;;  %4676 = vst [vmem:[%s6561_s15 + $0x18] sm:$0xff] %v4612_v31   ;;  %v4652_v36 = vpack.c.bf16 %v4042_v34, %v4041_v2  ;;  %v4039_v46 = vmul.f32 %v4981_v22, %v6532_v9 }
 0x25d   : > { %v4985_v5 = vpop.eup %4984  ;;  %v4024_v59 = vmul.f32 %v4983_v15, %v6547_v49 }
 0x25e   : > { %4684 = vst [vmem:[%s6561_s15 + $0x58] sm:$0xff] %v4652_v36   ;;  %v4040_v8 = vmul.f32 %v4985_v5, %v6551_v29 }
 0x25f   : > { %v4607_v50 = vpack.c.bf16 %v4024_v59, %v4023_v41 }
 0x260   : > { %v4647_v44 = vpack.c.bf16 %v4040_v8, %v4039_v46 }
 0x261   : > { %4675 = vst [vmem:[%s6561_s15 + $0x10] sm:$0xff] %v4607_v50  }
 0x262   : > { %4683 = vst [vmem:[%s6561_s15 + $0x50] sm:$0xff] %v4647_v44  }
 0x279   : > { %v4739_v27 = vpop.f32.mrb[8].mxu0 }
 0x27a   : > { %v3766_v18 = vmul.f32 %v4739_v27, %v6428_v14  ;;  %v3654_v20 = vpop.f32.mrb[9].mxu0 }
 0x27b   : > { %v3764_v30 = vmul.f32 %v6428_v14, %v3654_v20  ;;  %v4740_v47 = vpop.f32.mrb[10].mxu0 }
 0x27c   : > { %v3805_v35 = vadd.f32 %v6433_v26, %v3766_v18  ;;  %v3767_v49 = vmul.f32 %v4740_v47, %v6428_v14  ;;  %v3657_v17 = vpop.f32.mrb[11].mxu0 }
 0x27d   : > { %v3803_v9 = vadd.f32 %v6433_v26, %v3764_v30  ;;  %v3765_v29 = vmul.f32 %v6428_v14, %v3657_v17 }
 0x27e   : > { %v4505_v1 = vmul.f32 -1.442695, %v3805_v35  ;;  %v3806_v23 = vadd.f32 %v6433_v26, %v3767_v49 }
 0x27f   : > { %v4503_v39 = vmul.f32 -1.442695, %v3803_v9  ;;  %v3804_v33 = vadd.f32 %v6433_v26, %v3765_v29 }
 0x280   : > { %4986 = vpow2.f32 %v4505_v1  ;;  %v4506_v56 = vmul.f32 -1.442695, %v3806_v23 }
 0x281   : > { %4988 = vpow2.f32 %v4503_v39  ;;  %v4504_v55 = vmul.f32 -1.442695, %v3804_v33 }
 0x282   : > { %4990 = vpow2.f32 %v4506_v56 }
 0x283   : > { %4992 = vpow2.f32 %v4504_v55 }
 0x28a   : > { %v4987_v16 = vpop.eup %4986 }
 0x28b   : > { %v4989_v37 = vpop.eup %4988  ;;  %v3933_v7 = vadd.f32 1.0, %v4987_v16 }
 0x28c   : > { %v4991_v43 = vpop.eup %4990  ;;  %v3931_v3 = vadd.f32 1.0, %v4989_v37 }
 0x28d   : > { %v4993_v48 = vpop.eup %4992  ;;  %4994 = vrcp.f32 %v3933_v7  ;;  %v3934_v45 = vadd.f32 1.0, %v4991_v43 }
 0x28e   : > { %4996 = vrcp.f32 %v3931_v3  ;;  %v3932_v13 = vadd.f32 1.0, %v4993_v48 }
 0x28f   : > { %4998 = vrcp.f32 %v3934_v45 }
 0x290   : > { %5000 = vrcp.f32 %v3932_v13 }
 0x297   : > { %v4995_v4 = vpop.eup %4994 }
 0x298   : > { %v4997_v12 = vpop.eup %4996  ;;  %v4029_v10 = vmul.f32 %v4995_v4, %v3805_v35 }
 0x299   : > { %v4999_v60 = vpop.eup %4998  ;;  %v4027_v38 = vmul.f32 %v4997_v12, %v3803_v9 }
 0x29a   : > { %v5001_v11 = vpop.eup %5000  ;;  %v4755_v57 = vpop.f32.mrb[8].mxu1  ;;  %v4030_v19 = vmul.f32 %v4999_v60, %v3806_v23 }
 0x29b   : > { %v3782_v51 = vmul.f32 %v4755_v57, %v6428_v14  ;;  %v3718_v40 = vpop.f32.mrb[9].mxu1  ;;  %v4028_v42 = vmul.f32 %v5001_v11, %v3804_v33 }
 0x29c   : > { %v3780_v25 = vmul.f32 %v6428_v14, %v3718_v40  ;;  %v4622_v32 = vpack.c.bf16 %v4030_v19, %v4029_v10  ;;  %v4756_v0 = vpop.f32.mrb[10].mxu1 }
 0x29d   : > { %v3821_v28 = vadd.f32 %v6433_v26, %v3782_v51  ;;  %v3783_v63 = vmul.f32 %v4756_v0, %v6428_v14  ;;  %v4617_v54 = vpack.c.bf16 %v4028_v42, %v4027_v38  ;;  %v3721_v21 = vpop.f32.mrb[11].mxu1 }
 0x29e   : > { %v3819_v24 = vadd.f32 %v6433_v26, %v3780_v25  ;;  %4678 = vst [vmem:[%s6561_s15 + $0x28] sm:$0xff] %v4622_v32   ;;  %v3781_v61 = vmul.f32 %v6428_v14, %v3721_v21 }
 0x29f   : > { %v4521_v58 = vmul.f32 -1.442695, %v3821_v28  ;;  %v3822_v53 = vadd.f32 %v6433_v26, %v3783_v63  ;;  %4677 = vst [vmem:[%s6561_s15 + $0x20] sm:$0xff] %v4617_v54  }
 0x2a0   : > { %v4519_v6 = vmul.f32 -1.442695, %v3819_v24  ;;  %v3820_v62 = vadd.f32 %v6433_v26, %v3781_v61 }
 0x2a1   : > { %5002 = vpow2.f32 %v4521_v58  ;;  %v4522_v52 = vmul.f32 -1.442695, %v3822_v53 }
 0x2a2   : > { %5004 = vpow2.f32 %v4519_v6  ;;  %v4520_v2 = vmul.f32 -1.442695, %v3820_v62 }
 0x2a3   : > { %5006 = vpow2.f32 %v4522_v52 }
 0x2a4   : > { %5008 = vpow2.f32 %v4520_v2 }
 0x2ab   : > { %v5003_v31 = vpop.eup %5002 }
 0x2ac   : > { %v5005_v34 = vpop.eup %5004  ;;  %v3949_v22 = vadd.f32 1.0, %v5003_v31 }
 0x2ad   : > { %v5007_v15 = vpop.eup %5006  ;;  %v3947_v36 = vadd.f32 1.0, %v5005_v34 }
 0x2ae   : > { %v5009_v5 = vpop.eup %5008  ;;  %5010 = vrcp.f32 %v3949_v22  ;;  %v3950_v41 = vadd.f32 1.0, %v5007_v15 }
 0x2af   : > { %5012 = vrcp.f32 %v3947_v36  ;;  %v3948_v59 = vadd.f32 1.0, %v5009_v5 }
 0x2b0   : > { %5014 = vrcp.f32 %v3950_v41 }
 0x2b1   : > { %5016 = vrcp.f32 %v3948_v59 }
 0x2b8   : > { %v5011_v46 = vpop.eup %5010 }
 0x2b9   : > { %v5013_v8 = vpop.eup %5012  ;;  %v4045_v27 = vmul.f32 %v5011_v46, %v3821_v28 }
 0x2ba   : > { %v5015_v50 = vpop.eup %5014  ;;  %v4043_v20 = vmul.f32 %v5013_v8, %v3819_v24 }
 0x2bb   : > { %v5017_v44 = vpop.eup %5016  ;;  %v4046_v18 = vmul.f32 %v5015_v50, %v3822_v53 }
 0x2bc   : > { %v4044_v30 = vmul.f32 %v5017_v44, %v3820_v62 }
 0x2bd   : > { %v4662_v47 = vpack.c.bf16 %v4046_v18, %v4045_v27 }
 0x2be   : > { %v4657_v35 = vpack.c.bf16 %v4044_v30, %v4043_v20 }
 0x2bf   : > { %4686 = vst [vmem:[%s6561_s15 + $0x68] sm:$0xff] %v4662_v47  }
 0x2c0   : > { %4685 = vst [vmem:[%s6561_s15 + $0x60] sm:$0xff] %v4657_v35  }
 0x2fe   : > { %v4743_v49 = vpop.f32.mrb[12].mxu0 }
 0x2ff   : > { %v3770_v17 = vmul.f32 %v4743_v49, %v6428_v14  ;;  %v3670_v9 = vpop.f32.mrb[13].mxu0 }
 0x300   : > { %v3768_v29 = vmul.f32 %v6428_v14, %v3670_v9  ;;  %v4744_v1 = vpop.f32.mrb[14].mxu0 }
 0x301   : > { %v3809_v23 = vadd.f32 %v6433_v26, %v3770_v17  ;;  %v3771_v39 = vmul.f32 %v4744_v1, %v6428_v14  ;;  %v3673_v33 = vpop.f32.mrb[15].mxu0 }
 0x302   : > { %v3807_v56 = vadd.f32 %v6433_v26, %v3768_v29  ;;  %v3769_v55 = vmul.f32 %v6428_v14, %v3673_v33 }
 0x303   : > { %v4509_v16 = vmul.f32 -1.442695, %v3809_v23  ;;  %v3810_v37 = vadd.f32 %v6433_v26, %v3771_v39 }
 0x304   : > { %v4507_v7 = vmul.f32 -1.442695, %v3807_v56  ;;  %v3808_v43 = vadd.f32 %v6433_v26, %v3769_v55 }
 0x305   : > { %5018 = vpow2.f32 %v4509_v16  ;;  %v4510_v3 = vmul.f32 -1.442695, %v3810_v37 }
 0x306   : > { %5020 = vpow2.f32 %v4507_v7  ;;  %v4508_v48 = vmul.f32 -1.442695, %v3808_v43 }
 0x307   : > { %5022 = vpow2.f32 %v4510_v3 }
 0x308   : > { %5024 = vpow2.f32 %v4508_v48 }
 0x30f   : > { %v5019_v45 = vpop.eup %5018 }
 0x310   : > { %v5021_v13 = vpop.eup %5020  ;;  %v3937_v4 = vadd.f32 1.0, %v5019_v45 }
 0x311   : > { %v5023_v12 = vpop.eup %5022  ;;  %v3935_v60 = vadd.f32 1.0, %v5021_v13 }
 0x312   : > { %v5025_v11 = vpop.eup %5024  ;;  %5026 = vrcp.f32 %v3937_v4  ;;  %v3938_v10 = vadd.f32 1.0, %v5023_v12 }
 0x313   : > { %5028 = vrcp.f32 %v3935_v60  ;;  %v3936_v57 = vadd.f32 1.0, %v5025_v11 }
 0x314   : > { %5030 = vrcp.f32 %v3938_v10 }
 0x315   : > { %5032 = vrcp.f32 %v3936_v57 }
 0x31c   : > { %v5027_v19 = vpop.eup %5026 }
 0x31d   : > { %v5029_v51 = vpop.eup %5028  ;;  %v4033_v42 = vmul.f32 %v5027_v19, %v3809_v23 }
 0x31e   : > { %v5031_v38 = vpop.eup %5030  ;;  %v4031_v28 = vmul.f32 %v5029_v51, %v3807_v56 }
 0x31f   : > { %v5033_v40 = vpop.eup %5032  ;;  %v4034_v32 = vmul.f32 %v5031_v38, %v3810_v37 }
 0x320   : > { %v4759_v25 = vpop.f32.mrb[12].mxu1  ;;  %v4032_v54 = vmul.f32 %v5033_v40, %v3808_v43 }
 0x321   : > { %v3786_v0 = vmul.f32 %v4759_v25, %v6428_v14  ;;  %v3734_v63 = vpop.f32.mrb[13].mxu1  ;;  %v4632_v24 = vpack.c.bf16 %v4034_v32, %v4033_v42 }
 0x322   : > { %v3784_v21 = vmul.f32 %v6428_v14, %v3734_v63  ;;  %v4760_v61 = vpop.f32.mrb[14].mxu1  ;;  %v4627_v6 = vpack.c.bf16 %v4032_v54, %v4031_v28 }
 0x323   : > { %v3825_v58 = vadd.f32 %v6433_v26, %v3786_v0  ;;  %v3787_v53 = vmul.f32 %v4760_v61, %v6428_v14  ;;  %v3737_v62 = vpop.f32.mrb[15].mxu1  ;;  %4680 = vst [vmem:[%s6561_s15 + $0x38] sm:$0xff] %v4632_v24  }
 0x324   : > { %v3823_v52 = vadd.f32 %v6433_v26, %v3784_v21  ;;  %v3785_v2 = vmul.f32 %v6428_v14, %v3737_v62  ;;  %4679 = vst [vmem:[%s6561_s15 + $0x30] sm:$0xff] %v4627_v6  }
 0x325   : > { %v4525_v31 = vmul.f32 -1.442695, %v3825_v58  ;;  %v3826_v34 = vadd.f32 %v6433_v26, %v3787_v53 }
 0x326   : > { %v4523_v22 = vmul.f32 -1.442695, %v3823_v52  ;;  %v3824_v15 = vadd.f32 %v6433_v26, %v3785_v2 }
 0x327   : > { %5034 = vpow2.f32 %v4525_v31  ;;  %v4526_v36 = vmul.f32 -1.442695, %v3826_v34 }
 0x328   : > { %5036 = vpow2.f32 %v4523_v22  ;;  %v4524_v5 = vmul.f32 -1.442695, %v3824_v15 }
 0x329   : > { %5038 = vpow2.f32 %v4526_v36 }
 0x32a   : > { %5040 = vpow2.f32 %v4524_v5 }
 0x331   : > { %v5035_v41 = vpop.eup %5034 }
 0x332   : > { %v5037_v59 = vpop.eup %5036  ;;  %v3953_v46 = vadd.f32 1.0, %v5035_v41 }
 0x333   : > { %v5039_v8 = vpop.eup %5038  ;;  %v3951_v50 = vadd.f32 1.0, %v5037_v59 }
 0x334   : > { %v5041_v44 = vpop.eup %5040  ;;  %5042 = vrcp.f32 %v3953_v46  ;;  %v3954_v14 = vadd.f32 1.0, %v5039_v8 }
 0x335   : > { %5044 = vrcp.f32 %v3951_v50  ;;  %v3952_v27 = vadd.f32 1.0, %v5041_v44 }
 0x336   : > { %5046 = vrcp.f32 %v3954_v14 }
 0x337   : > { %5048 = vrcp.f32 %v3952_v27 }
 0x33e   : > { %v5043_v26 = vpop.eup %5042 }
 0x33f   : > { %v5045_v18 = vpop.eup %5044  ;;  %v4049_v47 = vmul.f32 %v5043_v26, %v3825_v58 }
 0x340   : > { %v5047_v20 = vpop.eup %5046  ;;  %v4047_v49 = vmul.f32 %v5045_v18, %v3823_v52 }
 0x341   : > { %v5049_v30 = vpop.eup %5048  ;;  %v4050_v35 = vmul.f32 %v5047_v20, %v3826_v34 }
 0x342   : > { %v4048_v17 = vmul.f32 %v5049_v30, %v3824_v15 }
 0x343   : > { %v4672_v9 = vpack.c.bf16 %v4050_v35, %v4049_v47 }
 0x344   : > { %v4667_v29 = vpack.c.bf16 %v4048_v17, %v4047_v49 }
 0x345   : > { %4688 = vst [vmem:[%s6561_s15 + $0x78] sm:$0xff] %v4672_v9  }
 0x346   : > { %4687 = vst [vmem:[%s6561_s15 + $0x70] sm:$0xff] %v4667_v29  }
 0x347 PF: > { %s17_s24 = sadd.s32 1, %s5065_s24  }
 0x348   : > { %p14_p4 = scmp.ge.s32.totalorder %s17_s24, 4  }
 0x34a   :  { %16 = sbr.rel (!%p14_p4) target bundleno = 1 (0x1), region = 80 }

// kernel: encoder_forward.9
= control target key start
LH: loop header
LB: loop body
LE: loop exit
PB: predicated region body
PF: predicated region fallthrough
CT: control target
= control target key end

     0   :  { %s1235_s24 = smov 0   ;;  %s1438_s0 = inlined_call_operand.vmem [shape: bf16[2,5,5,512], index: 0, kind: input, shape index: {}]   ;;  %s1439_s1 = inlined_call_operand.vmem [shape: f32[9,128], index: 1, kind: input, shape index: {}]   ;;  %s1440_s2 = inlined_call_operand.vmem [shape: f32[1,128], index: 2, kind: input, shape index: {}]   ;;  %s1441_s3 = inlined_call_operand.vmem [shape: f32[1,128], index: 3, kind: input, shape index: {}]   ;;  %s1442_s4 = inlined_call_operand.vmem [shape: bf16[128,128], index: 4, kind: input, shape index: {}]   ;;  %s1443_s5 = inlined_call_operand.vmem [shape: f32[1,128], index: 5, kind: input, shape index: {}]   ;;  %s1444_s6 = inlined_call_operand.vmem [shape: f32[1,128], index: 6, kind: input, shape index: {}]   ;;  %s1445_s7 = inlined_call_operand.vmem [shape: bf16[2,16,128], index: 7, kind: output, shape index: {}]  }
   0x1 LB: > { %s1050_s25 = sadd.s32 4294967295, %s1191_s24   ;;  %p1054_p0 = scmp.ge.s32.totalorder %s1191_s24, 1  ;;  %s1191_s24 = sphi %s1235_s24, %s17_s24  }
   0x2   : > { %p237_p1 = scmp.lt.s32.totalorder %s1191_s24, 3 }
   0x4   : > { %p238_p2 = pnand %p1054_p0, %p237_p1 }
   0x5   : > { %v1153_v0 = vld [vmem:[%s1442_s4] sm:$0xff] (!%p238_p2)   ;;  %v290_v1 = vlaneseq (!%p238_p2)  ;;  %v1193_v2 = vmov (!%p238_p2), 0.0   ;;  %v1154_v3 = vld [vmem:[%s1442_s4 + $0x8] sm:$0xff] (!%p238_p2)   ;;  %vm1194_vm0 = vmmov (!%p238_p2), 0   ;;  %p269_p3 = scmp.lt.s32.totalorder (!%p238_p2), %s1050_s25, 1  ;;  %v1155_v6 = vld [vmem:[%s1442_s4 + $0x10] sm:$0xff] (!%p238_p2)  }
   0x6   : > { %241 = sbr.rel (%p238_p2) target bundleno = 364 (0x16c), region = 48  ;;  %1122 = vmatprep.subr.bf16.mxu0 (!%p238_p2), %v1193_v2  ;;  %1138 = vmatprep.mubr.msk.bf16.mxu0 (!%p238_p2), %vm1194_vm0, %v1193_v2  ;;  %v1156_v8 = vld [vmem:[%s1442_s4 + $0x18] sm:$0xff] (!%p238_p2)   ;;  %v1274_v9 = vld [vmem:[%s1439_s1] sm:$0xff] (!%p238_p2)  ;;  %v1279_v10 = vld [vmem:[%s1439_s1 + $0x8] ss:$0 sm:$0xff] (!%p238_p2) }
   0x7   : > { %1123 = vmatpush3.bf16.msra.mxu0 (!%p238_p2), %v1153_v0  ;;  %v1252_v4 = vshrl.u32 (!%p238_p2), %v290_v1, 7  ;;  %vm368_vm1 = vsmask.f32 (!%p238_p2), 1280  ;;  %v1300_v38 = vcombine.high (!%p238_p2), %v1279_v10, %v1279_v10  ;;  %v1157_v39 = vld [vmem:[%s1442_s4 + $0x20] sm:$0xff] (!%p238_p2)   ;;  %vm369_vm2 = vsmask.f32 (!%p238_p2), 3336 }
   0x8   : > { %1124 = vmatprep.subr.bf16.mxu0 (!%p238_p2), %v1193_v2  ;;  %vm370_vm3 = vmor (!%p238_p2), %vm368_vm1, %vm369_vm2  ;;  %vm371_vm4 = vsmask.f32 (!%p238_p2), 5392  ;;  %vm373_vm5 = vsmask.f32 (!%p238_p2), 7448  ;;  %v1158_v55 = vld [vmem:[%s1442_s4 + $0x28] sm:$0xff] (!%p238_p2)  }
   0x9   : > { %v292_v5 = vsub.s32 (!%p238_p2), 0, %v1252_v4  ;;  %v315_v7 = vsub.s32 (!%p238_p2), 1, %v1252_v4  ;;  %v441_v11 = vsub.s32 (!%p238_p2), 2, %v1252_v4  ;;  %vm1317_vm6 = vmor (!%p238_p2), %vm370_vm3, %vm371_vm4 }
   0xa   : > { %vm1327_vm7 = vmor (!%p238_p2), %vm1317_vm6, %vm373_vm5 }
   0xb   : > { %1125 = vmatpush3.bf16.msra.mxu0 (!%p238_p2), %v1154_v3  ;;  %v293_v15 = vrot.slane (!%p238_p2), %v1274_v9, %v292_v5  ;;  %v316_v16 = vrot.slane (!%p238_p2), %v1274_v9, %v315_v7  ;;  %v1296_v37 = vrot.slane (!%p238_p2), %v1274_v9, %v441_v11 }
   0xc   : > { %1126 = vmatprep.subr.bf16.mxu0 (!%p238_p2), %v1193_v2 }
   0xd   : > { %s1451_s25 = smov (!%p269_p3, %s1050_s25), 1  ;;  %v295_v24 = vcombine.high %v293_v15, %v293_v15  ;;  %v318_v34 = vcombine.high %v316_v16, %v316_v16 }
   0xe   : > { %s1142_s9 = smul.u32 80, %s1451_s25 }
   0xf   : > { %1127 = vmatpush3.bf16.msra.mxu0 %v1155_v6 }
  0x10   : > { %s1269_s14 = scalar_lea.vmem %s1438_s0, %s1142_s9  ;;  %1128 = vmatprep.subr.bf16.mxu0 %v1193_v2 }
  0x11   : > { %v282_v12 = vld [vmem:[%s1269_s14] sm:$0x3]  ;;  %v283_v13 = vld [vmem:[%s1269_s14 + $0x10] sm:$0x3]  ;;  %v305_v21 = vld [vmem:[%s1269_s14 + $0x4] sm:$0x3] }
  0x12   : > { %v284_v14 = vld [vmem:[%s1269_s14 + $0x20] sm:$0x3]  ;;  %v285_v17 = vld [vmem:[%s1269_s14 + $0x30] sm:$0x3]  ;;  %v286_v18 = vunpack.c.l.bf16 %v282_v12  ;;  %v287_v19 = vunpack.c.l.bf16 %v283_v13  ;;  %v306_v22 = vld [vmem:[%s1269_s14 + $0x14] sm:$0x3]  ;;  %v309_v27 = vunpack.c.l.bf16 %v305_v21 }
  0x13   : > { %v288_v20 = vunpack.c.l.bf16 %v284_v14  ;;  %v289_v23 = vunpack.c.l.bf16 %v285_v17  ;;  %v307_v25 = vld [vmem:[%s1269_s14 + $0x24] sm:$0x3]  ;;  %v308_v26 = vld [vmem:[%s1269_s14 + $0x34] sm:$0x3]  ;;  %v310_v28 = vunpack.c.l.bf16 %v306_v22  ;;  %1129 = vmatpush3.bf16.msra.mxu0 %v1156_v8 }
  0x14   : > { %v297_v29 = vmul.f32 %v293_v15, %v286_v18  ;;  %v311_v31 = vunpack.c.l.bf16 %v307_v25  ;;  %v312_v32 = vunpack.c.l.bf16 %v308_v26  ;;  %v1058_v33 = vld.sshfl [vmem:[%s1269_s14] sm:$0x13 pattern:$0x76325410]  ;;  %v320_v35 = vmul.f32 %v316_v16, %v309_v27  ;;  %1130 = vmatprep.subr.bf16.mxu0 %v1193_v2  ;;  %v1159_v13 = vld [vmem:[%s1442_s4 + $0x30] sm:$0xff]  }
  0x15   : > { %v299_v30 = vmul.f32 %v293_v15, %v288_v20  ;;  %v1059_v36 = vld.sshfl [vmem:[%s1269_s14 + $0x10] sm:$0x13 pattern:$0x76325410]  ;;  %v343_v41 = vcombine.high %v1058_v33, %v1058_v33  ;;  %v298_v43 = vmul.f32 %v295_v24, %v287_v19  ;;  %v300_v44 = vmul.f32 %v295_v24, %v289_v23  ;;  %v454_v23 = vld [vmem:[%s1269_s14 + $0x8] sm:$0x3] }
  0x16   : > { %v322_v40 = vmul.f32 %v316_v16, %v311_v31  ;;  %v351_v42 = vcombine.high %v1059_v36, %v1059_v36  ;;  %v321_v45 = vmul.f32 %v318_v34, %v310_v28  ;;  %v323_v46 = vmul.f32 %v318_v34, %v312_v32  ;;  %v1060_v47 = vld.sshfl [vmem:[%s1269_s14 + $0x20] sm:$0x13 pattern:$0x76325410]  ;;  %v455_v28 = vld [vmem:[%s1269_s14 + $0x18] sm:$0x3] }
  0x17   : > { %v1307_v48 = vadd.f32 %v320_v35, %v297_v29  ;;  %v1061_v50 = vld.sshfl [vmem:[%s1269_s14 + $0x30] sm:$0x13 pattern:$0x76325410]  ;;  %v359_v51 = vcombine.high %v1060_v47, %v1060_v47  ;;  %v376_v53 = vshrl.u32 %v1058_v33, 16  ;;  %v379_v54 = vshll.u32 %v1058_v33, 16  ;;  %1131 = vmatpush3.bf16.msra.mxu0 %v1157_v39 }
  0x18   : > { %v1309_v49 = vadd.f32 %v322_v40, %v299_v30  ;;  %v367_v52 = vcombine.high %v1061_v50, %v1061_v50  ;;  %v385_v56 = vshll.u32 %v343_v41, 16  ;;  %v390_v57 = vshrl.u32 %v1059_v36, 16  ;;  %1132 = vmatprep.subr.bf16.mxu0 %v1193_v2  ;;  %v456_v33 = vld [vmem:[%s1269_s14 + $0x28] sm:$0x3]  ;;  %v1160_v34 = vld [vmem:[%s1442_s4 + $0x38] sm:$0xff]  }
  0x19   : > { %v393_v58 = vshll.u32 %v1059_v36, 16  ;;  %v399_v59 = vshll.u32 %v351_v42, 16  ;;  %v378_v61 = vrot.slane %v376_v53, 6  ;;  %v381_v62 = vrot.slane %v379_v54, 7  ;;  %v457_v40 = vld [vmem:[%s1269_s14 + $0x38] sm:$0x3] }
  0x1a   : > { %v404_v63 = vshrl.u32 %v1060_v47, 16  ;;  %v407_v0 = vshll.u32 %v1060_v47, 16  ;;  %v387_v1 = vrot.slane %v385_v56, 7  ;;  %v392_v3 = vrot.slane %v390_v57, 6  ;;  %v477_v42 = vld [vmem:[%s1269_s14 + $0xc] sm:$0x3] }
  0x1b   : > { %v395_v5 = vrot.slane %v393_v58, 7  ;;  %v401_v6 = vrot.slane %v399_v59, 7  ;;  %v382_v7 = vor.u32 %v381_v62, %v378_v61  ;;  %v413_v12 = vshll.u32 %v359_v51, 16  ;;  %1133 = vmatpush3.bf16.msra.mxu0 %v1158_v55  ;;  %v478_v47 = vld [vmem:[%s1269_s14 + $0x1c] sm:$0x3] }
  0x1c   : > { %v406_v8 = vrot.slane %v404_v63, 6  ;;  %v409_v11 = vrot.slane %v407_v0, 7  ;;  %v418_v16 = vshrl.u32 %v1061_v50, 16  ;;  %v421_v17 = vshll.u32 %v1061_v50, 16  ;;  %1134 = vmatprep.subr.bf16.mxu0 %v1193_v2  ;;  %v479_v54 = vld [vmem:[%s1269_s14 + $0x2c] sm:$0x3] }
  0x1d   : > { %v396_v15 = vor.u32 %v395_v5, %v392_v3  ;;  %v427_v18 = vshll.u32 %v367_v52, 16  ;;  %v325_v19 = vadd.f32 %v321_v45, %v298_v43  ;;  %v383_v20 = vrot.slane %v382_v7, 2  ;;  %v480_v57 = vld [vmem:[%s1269_s14 + $0x3c] sm:$0x3] }
  0x1e   : > { %v410_v21 = vor.u32 %v409_v11, %v406_v8  ;;  %v415_v22 = vrot.slane %v413_v12, 7  ;;  %v327_v24 = vadd.f32 %v323_v46, %v300_v44  ;;  %v420_v26 = vrot.slane %v418_v16, 6  ;;  %v1062_v11 = vld.sshfl [vmem:[%s1269_s14 + $0x8] sm:$0x13 pattern:$0x76325410] }
  0x1f   : > { %v397_v25 = vrot.slane %v396_v15, 2  ;;  %v423_v27 = vrot.slane %v421_v17, 7  ;;  %v388_v29 = vsel %vm1327_vm7, %v383_v20, %v387_v1  ;;  %v429_v31 = vrot.slane %v427_v18, 7  ;;  %1135 = vmatpush3.bf16.msra.mxu0 %v1159_v13 }
  0x20   : > { %v411_v30 = vrot.slane %v410_v21, 2  ;;  %v444_v32 = vcombine.high %v1296_v37, %v1296_v37  ;;  %v435_v39 = vunpack.c.l.bf16 %v388_v29  ;;  %v458_v41 = vunpack.c.l.bf16 %v454_v23  ;;  %1136 = vmatprep.subr.bf16.mxu0 %v1193_v2  ;;  %v1063_v13 = vld.sshfl [vmem:[%s1269_s14 + $0x18] sm:$0x13 pattern:$0x76325410] }
  0x21   : > { %v1344_v35 = vsel %vm1327_vm7, %v397_v25, %v401_v6  ;;  %v424_v36 = vor.u32 %v423_v27, %v420_v26  ;;  %v459_v45 = vunpack.c.l.bf16 %v455_v28  ;;  %v464_v46 = vsub.s32 3, %v1252_v4  ;;  %v1064_v21 = vld.sshfl [vmem:[%s1269_s14 + $0x28] sm:$0x13 pattern:$0x76325410] }
  0x22   : > { %v1351_v43 = vsel %vm1327_vm7, %v411_v30, %v415_v22  ;;  %v436_v44 = vunpack.c.l.bf16 %v1344_v35  ;;  %v446_v52 = vmul.f32 %v1296_v37, %v435_v39  ;;  %v460_v53 = vunpack.c.l.bf16 %v456_v33  ;;  %v1065_v29 = vld.sshfl [vmem:[%s1269_s14 + $0x38] sm:$0x13 pattern:$0x76325410] }
  0x23   : > { %v425_v50 = vrot.slane %v424_v36, 2  ;;  %v437_v51 = vunpack.c.l.bf16 %v1351_v43  ;;  %v461_v55 = vunpack.c.l.bf16 %v457_v40  ;;  %v465_v56 = vrot.slane %v1274_v9, %v464_v46  ;;  %1137 = vmatpush3.bf16.msra.mxu0 %v1160_v34 }
  0x24   : > { %v447_v2 = vmul.f32 %v444_v32, %v436_v44  ;;  %v481_v58 = vunpack.c.l.bf16 %v477_v42  ;;  %v450_v61 = vadd.f32 %v446_v52, %v1307_v48  ;;  %v482_v62 = vunpack.c.l.bf16 %v478_v47 }
  0x25   : > { %v1365_v59 = vsel %vm1327_vm7, %v425_v50, %v429_v31  ;;  %v448_v60 = vmul.f32 %v1296_v37, %v437_v51  ;;  %v467_v0 = vcombine.high %v465_v56, %v465_v56  ;;  %v469_v1 = vmul.f32 %v465_v56, %v458_v41 }
  0x26   : > { %v438_v63 = vunpack.c.l.bf16 %v1365_v59  ;;  %v483_v3 = vunpack.c.l.bf16 %v479_v54  ;;  %v471_v6 = vmul.f32 %v465_v56, %v460_v53  ;;  %v484_v7 = vunpack.c.l.bf16 %v480_v57 }
  0x27   : > { %v452_v5 = vadd.f32 %v448_v60, %v1309_v49  ;;  %v487_v8 = vsub.s32 4, %v1252_v4  ;;  %v451_v37 = vadd.f32 %v447_v2, %v325_v19  ;;  %v470_v48 = vmul.f32 %v467_v0, %v459_v45 }
  0x28   : > { %v449_v12 = vmul.f32 %v444_v32, %v438_v63  ;;  %v515_v15 = vcombine.high %v1062_v11, %v1062_v11  ;;  %v472_v16 = vmul.f32 %v467_v0, %v461_v55  ;;  %v473_v17 = vadd.f32 %v469_v1, %v450_v61 }
  0x29   : > { %v475_v18 = vadd.f32 %v471_v6, %v452_v5  ;;  %v488_v20 = vrot.slane %v1274_v9, %v487_v8  ;;  %v523_v22 = vcombine.high %v1063_v13, %v1063_v13  ;;  %v531_v23 = vcombine.high %v1064_v21, %v1064_v21  ;;  %v1066_v8 = vld [vmem:[%s1269_s14 + $0x10] sm:$0x3] }
  0x2a   : > { %v453_v49 = vadd.f32 %v449_v12, %v327_v24  ;;  %v541_v25 = vshrl.u32 %v1062_v11, 16  ;;  %v544_v30 = vshll.u32 %v1062_v11, 16  ;;  %v474_v19 = vadd.f32 %v470_v48, %v451_v37 }
  0x2b   : > { %v490_v26 = vcombine.high %v488_v20, %v488_v20  ;;  %v492_v27 = vmul.f32 %v488_v20, %v481_v58  ;;  %v494_v28 = vmul.f32 %v488_v20, %v483_v3  ;;  %v550_v32 = vshll.u32 %v515_v15, 16  ;;  %v1068_v20 = vld [vmem:[%s1269_s14 + $0x30] sm:$0x3] }
  0x2c   : > { %v543_v31 = vrot.slane %v541_v25, 6  ;;  %v555_v33 = vshrl.u32 %v1063_v13, 16  ;;  %v476_v34 = vadd.f32 %v472_v16, %v453_v49  ;;  %v539_v40 = vcombine.high %v1065_v29, %v1065_v29 }
  0x2d   : > { %v493_v36 = vmul.f32 %v490_v26, %v482_v62  ;;  %v495_v39 = vmul.f32 %v490_v26, %v484_v7  ;;  %v496_v41 = vadd.f32 %v492_v27, %v473_v17  ;;  %v546_v42 = vrot.slane %v544_v30, 7  ;;  %v1070_v30 = vld [vmem:[%s1269_s14 + $0x14] sm:$0x3] }
  0x2e   : > { %v557_v45 = vrot.slane %v555_v33, 6  ;;  %v558_v24 = vshll.u32 %v1063_v13, 16  ;;  %v1381_v46 = vadd.f32 %v494_v28, %v475_v18  ;;  %v552_v47 = vrot.slane %v550_v32, 7  ;;  %v1067_v18 = vld [vmem:[%s1269_s14 + $0x20] sm:$0x3] }
  0x2f   : > { %v564_v50 = vshll.u32 %v523_v22, 16  ;;  %v569_v52 = vshrl.u32 %v1064_v21, 16  ;;  %v547_v53 = vor.u32 %v546_v42, %v543_v31  ;;  %v572_v2 = vshll.u32 %v1064_v21, 16 }
  0x30   : > { %v560_v54 = vrot.slane %v558_v24, 7  ;;  %v578_v55 = vshll.u32 %v531_v23, 16  ;;  %v497_v56 = vadd.f32 %v493_v36, %v474_v19  ;;  %v583_v58 = vshrl.u32 %v1065_v29, 16  ;;  %v1069_v23 = vld [vmem:[%s1269_s14 + $0x40] sm:$0x3] }
  0x31   : > { %v571_v57 = vrot.slane %v569_v52, 6  ;;  %v586_v60 = vshll.u32 %v1065_v29, 16  ;;  %v548_v61 = vrot.slane %v547_v53, 2  ;;  %v566_v0 = vrot.slane %v564_v50, 7  ;;  %v1071_v50 = vld [vmem:[%s1269_s14 + $0x24] sm:$0x3] }
  0x32   : > { %v561_v62 = vor.u32 %v560_v54, %v557_v45  ;;  %v574_v1 = vrot.slane %v572_v2, 7  ;;  %v585_v3 = vrot.slane %v583_v58, 6  ;;  %v592_v6 = vshll.u32 %v539_v40, 16 }
  0x33   : > { %v588_v5 = vrot.slane %v586_v60, 7  ;;  %v606_v7 = vsub.s32 5, %v1252_v4  ;;  %v553_v11 = vsel %vm1327_vm7, %v548_v61, %v552_v47  ;;  %v580_v48 = vrot.slane %v578_v55, 7 }
  0x34   : > { %v562_v12 = vrot.slane %v561_v62, 2  ;;  %v575_v37 = vor.u32 %v574_v1, %v571_v57  ;;  %v594_v15 = vrot.slane %v592_v6, 7  ;;  %v600_v16 = vunpack.c.l.bf16 %v553_v11  ;;  %v1081_v53 = vld.sshfl [vmem:[%s1269_s14 + $0x40] sm:$0x13 pattern:$0x76325410] }
  0x35   : > { %v589_v13 = vor.u32 %v588_v5, %v585_v3  ;;  %v607_v17 = vrot.slane %v1274_v9, %v606_v7  ;;  %v499_v21 = vadd.f32 %v495_v39, %v476_v34  ;;  %v624_v25 = vunpack.c.l.bf16 %v1066_v8  ;;  %v1072_v34 = vld [vmem:[%s1269_s14 + $0x34] sm:$0x3]  ;;  %v1073_v8 = vld [vmem:[%s1269_s14 + $0x44] sm:$0x3]  ;;  %s1105_s14 = sshll.u32 %s1451_s25, 3 }
  0x36   : > { %v567_v49 = vsel %vm1327_vm7, %v562_v12, %v566_v0  ;;  %v576_v22 = vrot.slane %v575_v37, 2  ;;  %v625_v31 = vunpack.c.l.bf16 %v1067_v18  ;;  %v626_v32 = vunpack.c.l.bf16 %v1068_v20  ;;  %s278_s17 = scalar_lea.vmem %s1445_s7, %s1105_s14 }
  0x37   : > { %v590_v26 = vrot.slane %v589_v13, 2  ;;  %v601_v27 = vunpack.c.l.bf16 %v567_v49  ;;  %v609_v28 = vcombine.high %v607_v17, %v607_v17  ;;  %v611_v29 = vmul.f32 %v607_v17, %v600_v16 }
  0x38   : > { %v581_v19 = vsel %vm1327_vm7, %v576_v22, %v580_v48  ;;  %v630_v33 = vsub.s32 6, %v1252_v4  ;;  %v627_v42 = vunpack.c.l.bf16 %v1069_v23  ;;  %v647_v52 = vunpack.c.l.bf16 %v1070_v30 }
  0x39   : > { %v595_v36 = vsel %vm1327_vm7, %v590_v26, %v594_v15  ;;  %v602_v39 = vunpack.c.l.bf16 %v581_v19  ;;  %v612_v40 = vmul.f32 %v609_v28, %v601_v27  ;;  %v615_v24 = vadd.f32 %v611_v29, %v496_v41 }
  0x3a   : > { %v603_v45 = vunpack.c.l.bf16 %v595_v36  ;;  %v631_v47 = vrot.slane %v1274_v9, %v630_v33  ;;  %v649_v55 = vunpack.c.l.bf16 %v1072_v34  ;;  %v653_v57 = vsub.s32 7, %v1252_v4 }
  0x3b   : > { %v613_v54 = vmul.f32 %v607_v17, %v602_v39  ;;  %v616_v2 = vadd.f32 %v612_v40, %v497_v56  ;;  %v648_v1 = vunpack.c.l.bf16 %v1071_v50  ;;  %v749_v3 = vshrl.u32 %v1081_v53, 16 }
  0x3c   : > { %v614_v58 = vmul.f32 %v609_v28, %v603_v45  ;;  %v633_v60 = vcombine.high %v631_v47, %v631_v47  ;;  %v635_v61 = vmul.f32 %v631_v47, %v624_v25  ;;  %v637_v62 = vmul.f32 %v631_v47, %v626_v32  ;;  %v1084_v25 = vld [vmem:[%s1441_s3] ss:$0 sm:$0xff] }
  0x3d   : > { %v617_v0 = vadd.f32 %v613_v54, %v1381_v46  ;;  %v654_v41 = vrot.slane %v1274_v9, %v653_v57  ;;  %v705_v11 = vcombine.high %v1081_v53, %v1081_v53  ;;  %v751_v15 = vrot.slane %v749_v3, 6  ;;  %v1083_v46 = vld [vmem:[%s1440_s2] ss:$0 sm:$0xff] }
  0x3e   : > { %v618_v5 = vadd.f32 %v614_v58, %v499_v21  ;;  %v636_v6 = vmul.f32 %v633_v60, %v625_v31  ;;  %v639_v7 = vadd.f32 %v635_v61, %v615_v24  ;;  %v638_v4 = vmul.f32 %v633_v60, %v627_v42 }
  0x3f   : > { %v641_v12 = vadd.f32 %v637_v62, %v617_v0  ;;  %v656_v56 = vcombine.high %v654_v41, %v654_v41  ;;  %v658_v37 = vmul.f32 %v654_v41, %v647_v52  ;;  %v660_v48 = vmul.f32 %v654_v41, %v649_v55 }
  0x40   : > { %v640_v13 = vadd.f32 %v636_v6, %v616_v2  ;;  %v752_v16 = vshll.u32 %v1081_v53, 16  ;;  %v650_v17 = vunpack.c.l.bf16 %v1073_v8  ;;  %v758_v49 = vshll.u32 %v705_v11, 16 }
  0x41   : > { %v659_v9 = vmul.f32 %v656_v56, %v648_v1  ;;  %v662_v18 = vadd.f32 %v658_v37, %v639_v7  ;;  %v664_v20 = vadd.f32 %v660_v48, %v641_v12  ;;  %v777_v22 = vmul.f32 %v1279_v10, %v436_v44  ;;  %v1097_v37 = vld [vmem:[%s1443_s5] ss:$0 sm:$0xff] }
  0x42   : > { %v754_v21 = vrot.slane %v752_v16, 7  ;;  %v778_v23 = vmul.f32 %v1300_v38, %v437_v51  ;;  %v779_v27 = vmul.f32 %v1279_v10, %v438_v63  ;;  %v792_v28 = vcombine.high %v1083_v46, %v1083_v46 }
  0x43   : > { %v663_v26 = vadd.f32 %v659_v9, %v640_v13  ;;  %v642_v29 = vadd.f32 %v638_v4, %v618_v5  ;;  %v760_v19 = vrot.slane %v758_v49, 7  ;;  %v781_v35 = vadd.f32 %v777_v22, %v662_v18  ;;  %v1098_v4 = vld [vmem:[%s1444_s6] ss:$0 sm:$0xff] }
  0x44   : > { %v755_v30 = vor.u32 %v754_v21, %v751_v15  ;;  %v661_v31 = vmul.f32 %v656_v56, %v650_v17  ;;  %v783_v32 = vadd.f32 %v779_v27, %v664_v20  ;;  %v805_v43 = vcombine.high %v1084_v25, %v1084_v25 }
  0x45   : > { %v782_v44 = vadd.f32 %v778_v23, %v663_v26  ;;  %v794_v51 = vmul.f32 %v1083_v46, %v781_v35 }
  0x46   : > { %v756_v33 = vrot.slane %v755_v30, 2  ;;  %v796_v36 = vmul.f32 %v1083_v46, %v783_v32  ;;  %v665_v59 = vadd.f32 %v661_v31, %v642_v29 }
  0x47   : > { %v795_v34 = vmul.f32 %v792_v28, %v782_v44  ;;  %v807_v40 = vadd.f32 %v1084_v25, %v794_v51 }
  0x48   : > { %v761_v39 = vsel %vm1327_vm7, %v756_v33, %v760_v19  ;;  %v809_v63 = vadd.f32 %v1084_v25, %v796_v36 }
  0x49   : > { %v769_v42 = vunpack.c.l.bf16 %v761_v39  ;;  %v808_v10 = vadd.f32 %v805_v43, %v795_v34  ;;  %v1085_v45 = vmul.f32 -1.442695, %v807_v40 }
  0x4a   : > { %v1087_v50 = vmul.f32 -1.442695, %v809_v63 }
  0x4b   : > { %v780_v24 = vmul.f32 %v1300_v38, %v769_v42  ;;  %v1086_v47 = vmul.f32 -1.442695, %v808_v10  ;;  %1161 = vpow2.f32 %v1085_v45 }
  0x4d   : > { %v784_v52 = vadd.f32 %v780_v24, %v665_v59  ;;  %1163 = vpow2.f32 %v1086_v47 }
  0x4e   : > { %1165 = vpow2.f32 %v1087_v50 }
  0x4f   : > { %v797_v53 = vmul.f32 %v792_v28, %v784_v52 }
  0x51   : > { %v810_v54 = vadd.f32 %v805_v43, %v797_v53 }
  0x53   : > { %v1088_v2 = vmul.f32 -1.442695, %v810_v54 }
  0x55   : > { %1167 = vpow2.f32 %v1088_v2  ;;  %v1162_v14 = vpop.eup %1161 }
  0x56   : > { %v823_v57 = vadd.f32 1.0, %v1162_v14 }
  0x57   : > { %v1164_v55 = vpop.eup %1163 }
  0x58   : > { %v1166_v58 = vpop.eup %1165  ;;  %v824_v60 = vadd.f32 1.0, %v1164_v55  ;;  %1169 = vrcp.f32 %v823_v57 }
  0x59   : > { %v825_v61 = vadd.f32 1.0, %v1166_v58 }
  0x5a   : > { %1171 = vrcp.f32 %v824_v60 }
  0x5b   : > { %1173 = vrcp.f32 %v825_v61 }
  0x5f   : > { %v1168_v38 = vpop.eup %1167 }
  0x60   : > { %v826_v62 = vadd.f32 1.0, %v1168_v38 }
  0x62   : > { %1175 = vrcp.f32 %v826_v62  ;;  %v1170_v0 = vpop.eup %1169 }
  0x63   : > { %v835_v3 = vmul.f32 %v1170_v0, %v807_v40 }
  0x64   : > { %v1172_v1 = vpop.eup %1171 }
  0x65   : > { %v1174_v41 = vpop.eup %1173  ;;  %v836_v5 = vmul.f32 %v1172_v1, %v808_v10 }
  0x66   : > { %v837_v6 = vmul.f32 %v1174_v41, %v809_v63 }
  0x67   : > { %v843_v11 = vcombine.low %v835_v3, %v836_v5 }
  0x6c   : > { %v1176_v7 = vpop.eup %1175 }
  0x6d   : > { %v838_v8 = vmul.f32 %v1176_v7, %v810_v54 }
  0x6f   : > { %v844_v12 = vcombine.low %v837_v6, %v838_v8 }
  0x71   : > { %v847_v56 = vpack.c.bf16 %v844_v12, %v843_v11 }
  0x73   : > { %1139 = vmatmul.mubr.bf16.vlgmr.msra.gmra.mrb[0].mxu0 %v847_v56 }
 0x146   : > { %v946_v48 = vpop.f32.mrb[0].mxu0 }
 0x147   : > { %v960_v13 = vmul.f32 %v1097_v37, %v946_v48  ;;  %v1140_v15 = vpop.f32.mrb[1].mxu0 }
 0x148   : > { %v949_v16 = vpop.f32.mrb[2].mxu0 }
 0x149   : > { %v969_v46 = vadd.f32 %v1098_v4, %v960_v13  ;;  %v961_v17 = vmul.f32 %v1097_v37, %v949_v16  ;;  %v1141_v9 = vpop.f32.mrb[3].mxu0 }
 0x14b   : > { %v1099_v18 = vmul.f32 -1.442695, %v969_v46  ;;  %v970_v20 = vadd.f32 %v1098_v4, %v961_v17 }
 0x14d   : > { %1177 = vpow2.f32 %v1099_v18  ;;  %v1100_v21 = vmul.f32 -1.442695, %v970_v20 }
 0x14f   : > { %1179 = vpow2.f32 %v1100_v21 }
 0x157   : > { %v1178_v49 = vpop.eup %1177 }
 0x158   : > { %v977_v22 = vadd.f32 1.0, %v1178_v49 }
 0x159   : > { %v1180_v23 = vpop.eup %1179 }
 0x15a   : > { %1181 = vrcp.f32 %v977_v22  ;;  %v978_v25 = vadd.f32 1.0, %v1180_v23 }
 0x15c   : > { %1183 = vrcp.f32 %v978_v25 }
 0x164   : > { %v1182_v26 = vpop.eup %1181 }
 0x165   : > { %v983_v28 = vmul.f32 %v1182_v26, %v969_v46 }
 0x166   : > { %v1184_v27 = vpop.eup %1183 }
 0x167   : > { %v984_v29 = vmul.f32 %v1184_v27, %v970_v20 }
 0x169   : > { %v1111_v30 = vpack.c.bf16 %v984_v29, %v983_v28 }
 0x16b   : > { %1112 = vst [vmem:[%s278_s17] sm:$0xff] %v1111_v30  }
 0x16c PF: > { %s17_s24 = sadd.s32 1, %s1191_s24  }
 0x16d   : > { %p14_p4 = scmp.ge.s32.totalorder %s17_s24, 4  }
 0x16f   :  { %16 = sbr.rel (!%p14_p4) target bundleno = 1 (0x1), region = 79 }

// kernel: encoder_forward.10
= control target key start
LH: loop header
LB: loop body
LE: loop exit
PB: predicated region body
PF: predicated region fallthrough
CT: control target
= control target key end

     0   :  { %s1022_s24 = smov 0   ;;  %s1177_s0 = inlined_call_operand.vmem [shape: bf16[2,3,3,512], index: 0, kind: input, shape index: {}]   ;;  %s1178_s1 = inlined_call_operand.vmem [shape: f32[9,128], index: 1, kind: input, shape index: {}]   ;;  %s1179_s2 = inlined_call_operand.vmem [shape: f32[1,128], index: 2, kind: input, shape index: {}]   ;;  %s1180_s3 = inlined_call_operand.vmem [shape: f32[1,128], index: 3, kind: input, shape index: {}]   ;;  %s1181_s4 = inlined_call_operand.vmem [shape: bf16[128,128], index: 4, kind: input, shape index: {}]   ;;  %s1182_s5 = inlined_call_operand.vmem [shape: f32[1,128], index: 5, kind: input, shape index: {}]   ;;  %s1183_s6 = inlined_call_operand.vmem [shape: f32[1,128], index: 6, kind: input, shape index: {}]   ;;  %s1184_s7 = inlined_call_operand.vmem [shape: bf16[2,4,128], index: 7, kind: output, shape index: {}]  }
   0x1 LB: > { %s866_s25 = sadd.s32 4294967295, %s977_s24   ;;  %p870_p0 = scmp.ge.s32.totalorder %s977_s24, 1  ;;  %s977_s24 = sphi %s1022_s24, %s17_s24  }
   0x2   : > { %p237_p1 = scmp.lt.s32.totalorder %s977_s24, 3 }
   0x4   : > { %p238_p2 = pnand %p870_p0, %p237_p1 }
   0x5   : > { %v951_v0 = vld [vmem:[%s1181_s4] sm:$0xff] (!%p238_p2)   ;;  %v284_v1 = vlaneseq (!%p238_p2)  ;;  %v979_v2 = vmov (!%p238_p2), 0.0   ;;  %v952_v3 = vld [vmem:[%s1181_s4 + $0x8] sm:$0xff] (!%p238_p2)   ;;  %vm980_vm0 = vmmov (!%p238_p2), 0   ;;  %p268_p3 = scmp.lt.s32.totalorder (!%p238_p2), %s866_s25, 1  ;;  %v953_v6 = vld [vmem:[%s1181_s4 + $0x10] sm:$0xff] (!%p238_p2)  }
   0x6   : > { %241 = sbr.rel (%p238_p2) target bundleno = 331 (0x14b), region = 48  ;;  %919 = vmatprep.subr.bf16.mxu0 (!%p238_p2), %v979_v2  ;;  %935 = vmatprep.mubr.msk.bf16.mxu0 (!%p238_p2), %vm980_vm0, %v979_v2  ;;  %v954_v8 = vld [vmem:[%s1181_s4 + $0x18] sm:$0xff] (!%p238_p2)   ;;  %v1061_v9 = vld [vmem:[%s1178_s1] sm:$0xff] (!%p238_p2)  ;;  %v981_v14 = vmov (!%p238_p2), 1983009808   ;;  %v956_v49 = vld [vmem:[%s1181_s4 + $0x28] sm:$0xff] (!%p238_p2)  }
   0x7   : > { %920 = vmatpush3.bf16.msra.mxu0 (!%p238_p2), %v951_v0  ;;  %v1039_v4 = vshrl.u32 (!%p238_p2), %v284_v1, 7  ;;  %v290_v15 = vunpack.c.l.s4 (!%p238_p2), %v981_v14  ;;  %vm346_vm1 = vsmask.f32 (!%p238_p2), 256  ;;  %vm347_vm2 = vsmask.f32 (!%p238_p2), 1284  ;;  %v955_v28 = vld [vmem:[%s1181_s4 + $0x20] sm:$0xff] (!%p238_p2)  }
   0x8   : > { %921 = vmatprep.subr.bf16.mxu0 (!%p238_p2), %v979_v2  ;;  %vm349_vm3 = vsmask.f32 (!%p238_p2), 2312  ;;  %vm351_vm4 = vsmask.f32 (!%p238_p2), 3340  ;;  %vm348_vm5 = vmor (!%p238_p2), %vm346_vm1, %vm347_vm2  ;;  %vm353_vm6 = vsmask.f32 (!%p238_p2), 4368 }
   0x9   : > { %v286_v5 = vsub.s32 (!%p238_p2), 0, %v1039_v4  ;;  %v309_v7 = vsub.s32 (!%p238_p2), 1, %v1039_v4  ;;  %v385_v10 = vsub.s32 (!%p238_p2), 2, %v1039_v4  ;;  %v291_v23 = vunpack.c.0.s8 (!%p238_p2), %v290_v15  ;;  %vm350_vm8 = vmor (!%p238_p2), %vm348_vm5, %vm349_vm3 }
   0xa   : > { %vm355_vm7 = vsmask.f32 (!%p238_p2), 5396  ;;  %vm357_vm9 = vsmask.f32 (!%p238_p2), 6424  ;;  %vm359_vm10 = vsmask.f32 (!%p238_p2), 7452  ;;  %vm352_vm11 = vmor (!%p238_p2), %vm350_vm8, %vm351_vm4 }
   0xb   : > { %922 = vmatpush3.bf16.msra.mxu0 (!%p238_p2), %v952_v3  ;;  %v287_v13 = vrot.slane (!%p238_p2), %v1061_v9, %v286_v5  ;;  %v310_v21 = vrot.slane (!%p238_p2), %v1061_v9, %v309_v7  ;;  %v386_v26 = vrot.slane (!%p238_p2), %v1061_v9, %v385_v10  ;;  %v1081_v29 = vsub.s32 (!%p238_p2), %v291_v23, %v1039_v4  ;;  %vm354_vm12 = vmor (!%p238_p2), %vm352_vm11, %vm353_vm6  ;;  %v957_v7 = vld [vmem:[%s1181_s4 + $0x30] sm:$0xff] (!%p238_p2)  }
   0xc   : > { %923 = vmatprep.subr.bf16.mxu0 (!%p238_p2), %v979_v2  ;;  %v408_v41 = vsub.s32 (!%p238_p2), 3, %v1039_v4  ;;  %v431_v43 = vsub.s32 (!%p238_p2), 4, %v1039_v4  ;;  %vm356_vm13 = vmor (!%p238_p2), %vm354_vm12, %vm355_vm7  ;;  %vm679_vm0 = vcmask (!%p238_p2), 1041408  }
   0xd   : > { %s1188_s25 = smov (!%p268_p3, %s866_s25), 1  ;;  %v295_v33 = vrot.slane %v287_v13, %v1081_v29  ;;  %v318_v34 = vrot.slane %v310_v21, %v1081_v29  ;;  %v394_v36 = vrot.slane %v386_v26, %v1081_v29  ;;  %vm358_vm14 = vmor %vm356_vm13, %vm357_vm9  ;;  %v958_v26 = vld [vmem:[%s1181_s4 + $0x38] sm:$0xff]  }
   0xe   : > { %s939_s9 = smul.u32 24, %s1188_s25  ;;  %v409_v52 = vrot.slane %v1061_v9, %v408_v41  ;;  %vm1103_vm15 = vmor %vm358_vm14, %vm359_vm10  ;;  %v432_v59 = vrot.slane %v1061_v9, %v431_v43 }
   0xf   : > { %924 = vmatpush3.bf16.msra.mxu0 %v953_v6  ;;  %v296_v44 = vcombine.high %v295_v33, %v295_v33  ;;  %v319_v46 = vcombine.high %v318_v34, %v318_v34  ;;  %v395_v50 = vcombine.high %v394_v36, %v394_v36 }
  0x10   : > { %s1056_s14 = scalar_lea.vmem %s1177_s0, %s939_s9  ;;  %925 = vmatprep.subr.bf16.mxu0 %v979_v2  ;;  %v417_v63 = vrot.slane %v409_v52, %v1081_v29  ;;  %v440_v6 = vrot.slane %v432_v59, %v1081_v29 }
  0x11   : > { %v280_v11 = vld [vmem:[%s1056_s14] sm:$0x1]  ;;  %v1066_v12 = vld [vmem:[%s1056_s14 + $0x8] sm:$0x1]  ;;  %v303_v16 = vld [vmem:[%s1056_s14 + $0x2] sm:$0x1] }
  0x12   : > { %v282_v17 = vunpack.c.l.bf16 %v280_v11  ;;  %v283_v18 = vunpack.c.l.bf16 %v1066_v12  ;;  %v304_v19 = vld [vmem:[%s1056_s14 + $0xa] sm:$0x1]  ;;  %v305_v20 = vunpack.c.l.bf16 %v303_v16  ;;  %v873_v22 = vld.sshfl [vmem:[%s1056_s14] sm:$0x11 pattern:$0x75316420]  ;;  %v441_v16 = vcombine.high %v440_v6, %v440_v6 }
  0x13   : > { %v874_v24 = vld.sshfl [vmem:[%s1056_s14 + $0x8] sm:$0x11 pattern:$0x75316420]  ;;  %v337_v25 = vcombine.high %v873_v22, %v873_v22  ;;  %v306_v30 = vunpack.c.l.bf16 %v304_v19  ;;  %926 = vmatpush3.bf16.msra.mxu0 %v954_v8  ;;  %v362_v31 = vshrl.u32 %v873_v22, 16  ;;  %v418_v8 = vcombine.high %v417_v63, %v417_v63 }
  0x14   : > { %v345_v27 = vcombine.high %v874_v24, %v874_v24  ;;  %927 = vmatprep.subr.bf16.mxu0 %v979_v2  ;;  %v371_v35 = vshrl.u32 %v874_v24, 16  ;;  %v402_v37 = vld [vmem:[%s1056_s14 + $0x4] sm:$0x1]  ;;  %v403_v38 = vld [vmem:[%s1056_s14 + $0xc] sm:$0x1]  ;;  %v299_v45 = vmul.f32 %v295_v33, %v282_v17  ;;  %v322_v47 = vmul.f32 %v318_v34, %v305_v20 }
  0x15   : > { %v367_v32 = vshll.u32 %v337_v25, 16  ;;  %v404_v40 = vunpack.c.l.bf16 %v402_v37  ;;  %v425_v42 = vld [vmem:[%s1056_s14 + $0x6] sm:$0x1]  ;;  %v405_v51 = vunpack.c.l.bf16 %v403_v38  ;;  %v300_v54 = vmul.f32 %v296_v44, %v283_v18  ;;  %v426_v58 = vld [vmem:[%s1056_s14 + $0xe] sm:$0x1] }
  0x16   : > { %v376_v39 = vshll.u32 %v345_v27, 16  ;;  %v877_v48 = vld.sshfl [vmem:[%s1056_s14 + $0x4] sm:$0x11 pattern:$0x75316420]  ;;  %v427_v53 = vunpack.c.l.bf16 %v425_v42  ;;  %v323_v55 = vmul.f32 %v319_v46, %v306_v30  ;;  %v324_v56 = vadd.f32 %v322_v47, %v299_v45 }
  0x17   : > { %928 = vmatpush3.bf16.msra.mxu0 %v955_v28  ;;  %v878_v60 = vld.sshfl [vmem:[%s1056_s14 + $0xc] sm:$0x11 pattern:$0x75316420]  ;;  %v369_v61 = vsel %vm1103_vm15, %v362_v31, %v367_v32  ;;  %v459_v0 = vcombine.high %v877_v48, %v877_v48  ;;  %v428_v10 = vunpack.c.l.bf16 %v426_v58  ;;  %v469_v12 = vshrl.u32 %v877_v48, 16 }
  0x18   : > { %929 = vmatprep.subr.bf16.mxu0 %v979_v2  ;;  %v1114_v62 = vsel %vm1103_vm15, %v371_v35, %v376_v39  ;;  %v325_v1 = vadd.f32 %v323_v55, %v300_v54  ;;  %v381_v3 = vunpack.c.l.bf16 %v369_v61  ;;  %v467_v11 = vcombine.high %v878_v60, %v878_v60  ;;  %v881_v21 = vld [vmem:[%s1056_s14 + $0x8] sm:$0x1]  ;;  %v888_v30 = vld.sshfl [vmem:[%s1056_s14 + $0x10] sm:$0x11 pattern:$0x75316420] }
  0x19   : > { %v382_v5 = vunpack.c.l.bf16 %v1114_v62  ;;  %v421_v15 = vmul.f32 %v417_v63, %v404_v40  ;;  %v422_v17 = vmul.f32 %v418_v8, %v405_v51  ;;  %v474_v18 = vshll.u32 %v459_v0, 16  ;;  %v891_v31 = vld [vmem:[%s1178_s1 + $0x8] ss:$0 sm:$0xff]  ;;  %v882_v38 = vld [vmem:[%s1056_s14 + $0x10] sm:$0x1] }
  0x1a   : > { %v398_v13 = vmul.f32 %v394_v36, %v381_v3  ;;  %v478_v19 = vshrl.u32 %v878_v60, 16  ;;  %v483_v20 = vshll.u32 %v467_v11, 16  ;;  %v444_v24 = vmul.f32 %v440_v6, %v427_v53  ;;  %v883_v40 = vld [vmem:[%s1056_s14 + $0xa] sm:$0x1]  ;;  %v884_v46 = vld [vmem:[%s1056_s14 + $0x12] sm:$0x1] }
  0x1b   : > { %930 = vmatpush3.bf16.msra.mxu0 %v956_v49  ;;  %v399_v14 = vmul.f32 %v395_v50, %v382_v5  ;;  %v492_v25 = vsub.s32 5, %v1039_v4  ;;  %v476_v27 = vsel %vm1103_vm15, %v469_v12, %v474_v18  ;;  %v445_v33 = vmul.f32 %v441_v16, %v428_v10  ;;  %v893_v10 = vld [vmem:[%s1180_s3] ss:$0 sm:$0xff]  ;;  %s872_s14 = sshll.u32 %s1188_s25, 1 }
  0x1c   : > { %931 = vmatprep.subr.bf16.mxu0 %v979_v2  ;;  %v400_v22 = vadd.f32 %v398_v13, %v324_v56  ;;  %v485_v28 = vsel %vm1103_vm15, %v478_v19, %v483_v20  ;;  %v512_v34 = vunpack.c.l.bf16 %v881_v21  ;;  %v488_v36 = vunpack.c.l.bf16 %v476_v27  ;;  %v892_v56 = vld [vmem:[%s1179_s2] ss:$0 sm:$0xff]  ;;  %s276_s17 = scalar_lea.vmem %s1184_s7, %s872_s14 }
  0x1d   : > { %v401_v23 = vadd.f32 %v399_v14, %v325_v1  ;;  %v493_v37 = vrot.slane %v1061_v9, %v492_v25  ;;  %v516_v39 = vsub.s32 6, %v1039_v4  ;;  %v489_v42 = vunpack.c.l.bf16 %v485_v28 }
  0x1e   : > { %v423_v32 = vadd.f32 %v421_v15, %v400_v22  ;;  %v575_v43 = vcombine.high %v888_v30, %v888_v30  ;;  %v586_v47 = vshrl.u32 %v888_v30, 16  ;;  %v609_v48 = vrot.slane %v891_v31, %v1081_v29 }
  0x1f   : > { %932 = vmatpush3.bf16.msra.mxu0 %v957_v7  ;;  %v424_v35 = vadd.f32 %v422_v17, %v401_v23  ;;  %v501_v44 = vrot.slane %v493_v37, %v1081_v29  ;;  %v517_v45 = vrot.slane %v1061_v9, %v516_v39  ;;  %v513_v49 = vunpack.c.l.bf16 %v882_v38 }
  0x20   : > { %933 = vmatprep.subr.bf16.mxu0 %v979_v2  ;;  %v446_v41 = vadd.f32 %v444_v24, %v423_v32  ;;  %v539_v2 = vsub.s32 7, %v1039_v4  ;;  %v535_v50 = vunpack.c.l.bf16 %v883_v40  ;;  %v591_v52 = vshll.u32 %v575_v43, 16  ;;  %v905_v40 = vld [vmem:[%s1182_s5] ss:$0 sm:$0xff] }
  0x21   : > { %v447_v53 = vadd.f32 %v445_v33, %v424_v35  ;;  %v502_v54 = vcombine.high %v501_v44, %v501_v44  ;;  %v505_v55 = vmul.f32 %v501_v44, %v488_v36  ;;  %v525_v4 = vrot.slane %v517_v45, %v1081_v29 }
  0x22   : > { %v540_v51 = vrot.slane %v1061_v9, %v539_v2  ;;  %v536_v58 = vunpack.c.l.bf16 %v884_v46  ;;  %v593_v60 = vsel %vm1103_vm15, %v586_v47, %v591_v52  ;;  %v610_v61 = vcombine.high %v609_v48, %v609_v48 }
  0x23   : > { %934 = vmatpush3.bf16.msra.mxu0 %v958_v26  ;;  %v506_v63 = vmul.f32 %v502_v54, %v489_v42  ;;  %v507_v0 = vadd.f32 %v505_v55, %v446_v41  ;;  %v526_v9 = vcombine.high %v525_v4, %v525_v4  ;;  %v529_v1 = vmul.f32 %v525_v4, %v512_v34  ;;  %v906_v42 = vld [vmem:[%s1183_s6] ss:$0 sm:$0xff] }
  0x24   : > { %v548_v59 = vrot.slane %v540_v51, %v1081_v29  ;;  %v597_v7 = vunpack.c.l.bf16 %v593_v60  ;;  %v629_v8 = vrot.slane %v892_v56, %v1081_v29  ;;  %v613_v57 = vmul.f32 %v609_v48, %v382_v5 }
  0x25   : > { %v508_v11 = vadd.f32 %v506_v63, %v447_v53  ;;  %v530_v12 = vmul.f32 %v526_v9, %v513_v49  ;;  %v531_v13 = vadd.f32 %v529_v1, %v507_v0  ;;  %v647_v18 = vrot.slane %v893_v10, %v1081_v29 }
  0x26   : > { %v549_v3 = vcombine.high %v548_v59, %v548_v59  ;;  %v552_v6 = vmul.f32 %v548_v59, %v535_v50  ;;  %v614_v17 = vmul.f32 %v610_v61, %v597_v7  ;;  %v630_v21 = vcombine.high %v629_v8, %v629_v8 }
  0x27   : > { %v532_v15 = vadd.f32 %v530_v12, %v508_v11  ;;  %v648_v24 = vcombine.high %v647_v18, %v647_v18 }
  0x28   : > { %v553_v14 = vmul.f32 %v549_v3, %v536_v58  ;;  %v554_v16 = vadd.f32 %v552_v6, %v531_v13 }
  0x2a   : > { %v555_v19 = vadd.f32 %v553_v14, %v532_v15  ;;  %v615_v20 = vadd.f32 %v613_v57, %v554_v16 }
  0x2c   : > { %v616_v22 = vadd.f32 %v614_v17, %v555_v19  ;;  %v633_v23 = vmul.f32 %v629_v8, %v615_v20 }
  0x2e   : > { %v634_v25 = vmul.f32 %v630_v21, %v616_v22  ;;  %v651_v26 = vadd.f32 %v647_v18, %v633_v23 }
  0x30   : > { %v652_v27 = vadd.f32 %v648_v24, %v634_v25  ;;  %v894_v28 = vmul.f32 -1.442695, %v651_v26 }
  0x32   : > { %959 = vpow2.f32 %v894_v28  ;;  %v895_v30 = vmul.f32 -1.442695, %v652_v27 }
  0x34   : > { %961 = vpow2.f32 %v895_v30 }
  0x3c   : > { %v960_v62 = vpop.eup %959 }
  0x3d   : > { %v659_v5 = vadd.f32 1.0, %v960_v62 }
  0x3e   : > { %v962_v31 = vpop.eup %961 }
  0x3f   : > { %v660_v32 = vadd.f32 1.0, %v962_v31  ;;  %963 = vrcp.f32 %v659_v5 }
  0x41   : > { %965 = vrcp.f32 %v660_v32 }
  0x49   : > { %v964_v33 = vpop.eup %963 }
  0x4a   : > { %v665_v34 = vmul.f32 %v964_v33, %v651_v26 }
  0x4b   : > { %v966_v35 = vpop.eup %965 }
  0x4c   : > { %v666_v36 = vmul.f32 %v966_v35, %v652_v27 }
  0x4e   : > { %v669_v37 = vcombine.low %v665_v34, %v666_v36 }
  0x50   : > { %v676_v38 = vrot.slane %v669_v37, %v1081_v29 }
  0x52   : > { %v678_v39 = vpack.c.bf16 %v676_v38, %v676_v38 }
  0x54   : > { %936 = vmatmul.mubr.msk.bf16.vlgmr.msra.gmra.mrb[0].mxu0 %vm679_vm0, %v678_v39 }
 0x127   : > { %v782_v41 = vpop.f32.mrb[0].mxu0 }
 0x128   : > { %v795_v2 = vmul.f32 %v905_v40, %v782_v41  ;;  %v937_v43 = vpop.f32.mrb[1].mxu0 }
 0x129   : > { %v785_v44 = vpop.f32.mrb[2].mxu0 }
 0x12a   : > { %v803_v45 = vadd.f32 %v906_v42, %v795_v2  ;;  %v938_v46 = vpop.f32.mrb[3].mxu0 }
 0x12c   : > { %v907_v47 = vmul.f32 -1.442695, %v803_v45 }
 0x12e   : > { %967 = vpow2.f32 %v907_v47 }
 0x138   : > { %v968_v29 = vpop.eup %967 }
 0x139   : > { %v807_v48 = vadd.f32 1.0, %v968_v29 }
 0x13b   : > { %969 = vrcp.f32 %v807_v48 }
 0x145   : > { %v970_v49 = vpop.eup %969 }
 0x146   : > { %v810_v50 = vmul.f32 %v970_v49, %v803_v45 }
 0x148   : > { %v811_v51 = vpack.c.bf16 %v810_v50, %v810_v50 }
 0x14a   : > { %812 = vst [vmem:[%s276_s17] sm:$0x3] %v811_v51 }
 0x14b PF: > { %s17_s24 = sadd.s32 1, %s977_s24  }
 0x14c   : > { %p14_p4 = scmp.ge.s32.totalorder %s17_s24, 4  }
 0x14e   :  { %16 = sbr.rel (!%p14_p4) target bundleno = 1 (0x1), region = 79 }

// kernel: encoder_forward.11
= control target key start
LH: loop header
LB: loop body
LE: loop exit
PB: predicated region body
PF: predicated region fallthrough
CT: control target
= control target key end

     0   :  { %s962_s24 = smov 0   ;;  %s1109_s0 = inlined_call_operand.vmem [shape: bf16[2,2,2,512], index: 0, kind: input, shape index: {}]   ;;  %s1110_s1 = inlined_call_operand.vmem [shape: f32[9,128], index: 1, kind: input, shape index: {}]   ;;  %s1111_s2 = inlined_call_operand.vmem [shape: f32[1,128], index: 2, kind: input, shape index: {}]   ;;  %s1112_s3 = inlined_call_operand.vmem [shape: f32[1,128], index: 3, kind: input, shape index: {}]   ;;  %s1113_s4 = inlined_call_operand.vmem [shape: bf16[128,384], index: 4, kind: input, shape index: {}]   ;;  %s1114_s5 = inlined_call_operand.vmem [shape: f32[1,384], index: 5, kind: input, shape index: {}]   ;;  %s1115_s6 = inlined_call_operand.vmem [shape: f32[1,384], index: 6, kind: input, shape index: {}]   ;;  %s1116_s7 = inlined_call_operand.vmem [shape: bf16[2,1,384], index: 7, kind: output, shape index: {}]  }
   0x1 LB: > { %s772_s25 = sadd.s32 4294967295, %s915_s24   ;;  %p776_p0 = scmp.ge.s32.totalorder %s915_s24, 1  ;;  %s915_s24 = sphi %s962_s24, %s17_s24  }
   0x2   : > { %p236_p1 = scmp.lt.s32.totalorder %s915_s24, 3 }
   0x4   : > { %p237_p2 = pnand %p776_p0, %p236_p1 }
   0x5   : > { %v860_v0 = vld [vmem:[%s1113_s4 + $0x4] ss:$12 sps:$4 sm:$0xff] (!%p237_p2)   ;;  %v917_v1 = vmov (!%p237_p2), 0.0   ;;  %v862_v2 = vld [vmem:[%s1113_s4] ss:$12 sps:$4 sm:$0xff] (!%p237_p2)   ;;  %v918_v3 = vmov (!%p237_p2), 0   ;;  %v287_v11 = vlaneseq (!%p237_p2) }
   0x6   : > { %240 = sbr.rel (%p237_p2) target bundleno = 331 (0x14b), region = 48  ;;  %826 = vmatprep.subr.bf16.mxu1 (!%p237_p2), %v917_v1  ;;  %568 = vmatprep.mubr.bf16.mxu0 (!%p237_p2), %v918_v3  ;;  %v863_v4 = vld [vmem:[%s1113_s4 + $0x8] ss:$12 sps:$4 sm:$0xff] (!%p237_p2)   ;;  %v866_v6 = vld [vmem:[%s1113_s4 + $0x18] ss:$12 sps:$4 sm:$0xff] (!%p237_p2)   ;;  %vm919_vm0 = vmmov (!%p237_p2), 0  }
   0x7   : > { %536 = vmatprep.subr.bf16.mxu0 (!%p237_p2), %v860_v0  ;;  %v864_v5 = vld [vmem:[%s1113_s4 + $0x1c] ss:$12 sps:$4 sm:$0xff] (!%p237_p2)   ;;  %842 = vmatprep.mubr.msk.bf16.mxu1 (!%p237_p2), %vm919_vm0, %v917_v1  ;;  %v867_v7 = vld [vmem:[%s1113_s4 + $0x20] ss:$12 sps:$4 sm:$0xff] (!%p237_p2)   ;;  %p266_p3 = scmp.lt.s32.totalorder (!%p237_p2), %s772_s25, 1  ;;  %v1013_v16 = vshrl.u32 (!%p237_p2), %v287_v11, 7 }
   0x8   : > { %537 = vmatpush1.bf16.msra.mxu0 (!%p237_p2), %v862_v2  ;;  %827 = vmatpush3.bf16.msra.mxu1 (!%p237_p2), %v863_v4  ;;  %v868_v8 = vld [vmem:[%s1113_s4 + $0x34] ss:$12 sps:$4 sm:$0xff] (!%p237_p2)   ;;  %v870_v9 = vld [vmem:[%s1113_s4 + $0x30] ss:$12 sps:$4 sm:$0xff] (!%p237_p2)   ;;  %v871_v10 = vld [vmem:[%s1113_s4 + $0x38] ss:$12 sps:$4 sm:$0xff] (!%p237_p2)  }
   0x9   : > { %538 = vmatprep.subr.bf16.mxu0 (!%p237_p2), %v864_v5  ;;  %828 = vmatprep.subr.bf16.mxu1 (!%p237_p2), %v917_v1  ;;  %v872_v12 = vld [vmem:[%s1113_s4 + $0x4c] ss:$12 sps:$4 sm:$0xff] (!%p237_p2)   ;;  %v920_v13 = vmov (!%p237_p2), 1983009808   ;;  %v874_v15 = vld [vmem:[%s1113_s4 + $0x48] ss:$12 sps:$4 sm:$0xff] (!%p237_p2)  }
   0xa   : > { %v285_v14 = vunpack.c.l.s4 (!%p237_p2), %v920_v13  ;;  %v875_v17 = vld [vmem:[%s1113_s4 + $0x50] ss:$12 sps:$4 sm:$0xff] (!%p237_p2)   ;;  %v878_v20 = vld [vmem:[%s1113_s4 + $0x60] ss:$12 sps:$4 sm:$0xff] (!%p237_p2)   ;;  %v879_v21 = vld [vmem:[%s1113_s4 + $0x68] ss:$12 sps:$4 sm:$0xff] (!%p237_p2)  }
   0xb   : > { %v876_v18 = vld [vmem:[%s1113_s4 + $0x64] ss:$12 sps:$4 sm:$0xff] (!%p237_p2)   ;;  %v880_v23 = vld [vmem:[%s1113_s4 + $0x7c] ss:$12 sps:$4 sm:$0xff] (!%p237_p2)   ;;  %v883_v26 = vld [vmem:[%s1113_s4 + $0x80] ss:$12 sps:$4 sm:$0xff] (!%p237_p2)  }
   0xc   : > { %539 = vmatpush1.bf16.msra.mxu0 (!%p237_p2), %v866_v6  ;;  %829 = vmatpush3.bf16.msra.mxu1 (!%p237_p2), %v867_v7  ;;  %v286_v19 = vunpack.c.0.s8 (!%p237_p2), %v285_v14  ;;  %v275_v24 = vld [vmem:[%s1110_s1] sm:$0xff] (!%p237_p2)  ;;  %v886_v39 = vld [vmem:[%s1113_s4 + $0x90] ss:$12 sps:$4 sm:$0xff] (!%p237_p2)   ;;  %v888_v45 = vld [vmem:[%s1113_s4 + $0xac] ss:$12 sps:$4 sm:$0xff] (!%p237_p2)   ;;  %vm372_vm1 = vcmask (!%p237_p2), 1040384  }
   0xd   : > { %540 = vmatprep.subr.bf16.mxu0 %v868_v8  ;;  %830 = vmatprep.subr.bf16.mxu1 %v917_v1  ;;  %s1120_s25 = smov (!%p266_p3, %s772_s25), 1  ;;  %v882_v25 = vld [vmem:[%s1113_s4 + $0x78] ss:$12 sps:$4 sm:$0xff]   ;;  %v313_v29 = vcombine.high %v275_v24, %v275_v24  ;;  %v884_v30 = vld [vmem:[%s1113_s4 + $0x94] ss:$12 sps:$4 sm:$0xff]   ;;  %vm708_vm4 = vcmask 1041409  }
   0xe   : > { %s777_s8 = sshll.u32 %s1120_s25, 3  ;;  %v289_v22 = vsub.s32 %v286_v19, %v1013_v16  ;;  %v887_v44 = vld [vmem:[%s1113_s4 + $0x98] ss:$12 sps:$4 sm:$0xff]   ;;  %v890_v52 = vld [vmem:[%s1113_s4 + $0xa8] ss:$12 sps:$4 sm:$0xff]   ;;  %s846_s27 = smul.u32 3, %s1120_s25 }
   0xf   : > { %s1036_s17 = scalar_lea.vmem %s1109_s0, %s777_s8  ;;  %v784_v50 = vld.sshfl [vmem:[%s1110_s1 + $0x8] sm:$0x1 pattern:$0x76325410]  ;;  %v891_v57 = vld [vmem:[%s1113_s4 + $0xb0] ss:$12 sps:$4 sm:$0xff]  }
  0x10   : > { %541 = vmatpush1.bf16.msra.mxu0 %v870_v9  ;;  %831 = vmatpush3.bf16.msra.mxu1 %v871_v10  ;;  %v277_v27 = vld [vmem:[%s1036_s17] sm:$0x1]  ;;  %v290_v28 = vrot.slane %v275_v24, %v289_v22  ;;  %v281_v32 = vld [vmem:[%s1036_s17 + $0x1] sm:$0x1]  ;;  %v305_v33 = vld [vmem:[%s1036_s17 + $0x2] sm:$0x1]  ;;  %v320_v43 = vrot.slane %v313_v29, %v289_v22  ;;  %s273_s30 = scalar_lea.vmem %s1116_s7, %s846_s27 }
  0x11   : > { %542 = vmatprep.subr.bf16.mxu0 %v872_v12  ;;  %832 = vmatprep.subr.bf16.mxu1 %v917_v1  ;;  %v278_v31 = vunpack.c.l.bf16 %v277_v27  ;;  %v282_v34 = vunpack.c.l.bf16 %v281_v32  ;;  %v311_v38 = vld [vmem:[%s1036_s17 + $0x3] sm:$0x1]  ;;  %v306_v42 = vunpack.c.l.bf16 %v305_v33  ;;  %v781_v51 = vld [vmem:[%s1036_s17 + $0x4] sm:$0x1]  ;;  %v782_v58 = vld [vmem:[%s1036_s17 + $0x5] sm:$0x1] }
  0x12   : > { %v778_v35 = vrot.slane %v290_v28, 9  ;;  %v296_v36 = vcombine.high %v290_v28, %v290_v28  ;;  %v312_v49 = vunpack.c.l.bf16 %v311_v38  ;;  %v333_v56 = vcombine.high %v320_v43, %v320_v43  ;;  %v362_v13 = vld [vmem:[%s1112_s3] sm:$0x1] }
  0x13   : > { %v279_v37 = vmul.f32 %v278_v31, %v275_v24  ;;  %v324_v55 = vmul.f32 %v320_v43, %v306_v42  ;;  %v332_v61 = vunpack.c.l.bf16 %v781_v51  ;;  %v352_v62 = vrot.slane %v784_v50, 7  ;;  %v617_v27 = vld [vmem:[%s1114_s5] sm:$0x7] }
  0x14   : > { %543 = vmatpush1.bf16.msra.mxu0 %v874_v15  ;;  %833 = vmatpush3.bf16.msra.mxu1 %v875_v17  ;;  %v294_v40 = vmul.f32 %v778_v35, %v282_v34  ;;  %v297_v41 = vrot.slane %v296_v36, 7  ;;  %v322_v60 = vmul.f32 %v320_v43, %v312_v49  ;;  %v338_v2 = vunpack.c.l.bf16 %v782_v58  ;;  %v637_v29 = vld [vmem:[%s1115_s6] sm:$0x7] }
  0x15   : > { %544 = vmatprep.subr.bf16.mxu0 %v876_v18  ;;  %834 = vmatprep.subr.bf16.mxu1 %v917_v1  ;;  %v780_v0 = vrot.slane %v324_v55, 9  ;;  %v783_v3 = vrot.slane %v333_v56, 9  ;;  %v335_v5 = vmul.f32 %v333_v56, %v332_v61  ;;  %v354_v6 = vmul.f32 %v352_v62, %v332_v61 }
  0x16   : > { %v295_v46 = vadd.f32 %v294_v40, %v279_v37  ;;  %v299_v47 = vmul.f32 %v297_v41, %v278_v31  ;;  %v307_v48 = vrot.slane %v297_v41, 2  ;;  %vm373_vm2 = vsmask.f32 256 }
  0x17   : > { %v342_v8 = vmul.f32 %v783_v3, %v338_v2  ;;  %v785_v10 = vrot.slane %v354_v6, 9  ;;  %vm1084_vm3 = vmand %vm372_vm1, %vm373_vm2  ;;  %v625_v28 = vsub.s32 1, %v1013_v16  ;;  %vm709_vm5 = vsmask.f32 1280 }
  0x18   : > { %545 = vmatpush1.bf16.msra.mxu0 %v878_v20  ;;  %835 = vmatpush3.bf16.msra.mxu1 %v879_v21  ;;  %v779_v53 = vrot.slane %v299_v47, 9  ;;  %v309_v54 = vmul.f32 %v307_v48, %v306_v42  ;;  %vm710_vm6 = vmand %vm708_vm4, %vm709_vm5  ;;  %vm712_vm7 = vcmask 1042434   ;;  %vm713_vm8 = vsmask.f32 2304 }
  0x19   : > { %546 = vmatprep.subr.bf16.mxu0 %v880_v23  ;;  %836 = vmatprep.subr.bf16.mxu1 %v917_v1  ;;  %v626_v32 = vrot.slane %v617_v27, %v625_v28  ;;  %v646_v37 = vrot.slane %v637_v29, %v625_v28  ;;  %vm711_vm9 = vmor %vm710_vm6, %vm1084_vm3 }
  0x1a   : > { %v304_v59 = vadd.f32 %v779_v53, %v295_v46  ;;  %vm714_vm10 = vmand %vm712_vm7, %vm713_vm8 }
  0x1b   : > { %vm715_vm11 = vmor %vm714_vm10, %vm711_vm9 }
  0x1c   : > { %547 = vmatpush1.bf16.msra.mxu0 %v882_v25  ;;  %837 = vmatpush3.bf16.msra.mxu1 %v883_v26  ;;  %v310_v63 = vadd.f32 %v309_v54, %v304_v59  ;;  %v621_v25 = vsub.s32 0, %v1013_v16  ;;  %v629_v26 = vsub.s32 2, %v1013_v16  ;;  %v921_v59 = vmov 1966171168  }
  0x1d   : > { %548 = vmatprep.subr.bf16.mxu0 %v884_v30  ;;  %838 = vmatprep.subr.bf16.mxu1 %v917_v1 }
  0x1e   : > { %v323_v4 = vadd.f32 %v322_v60, %v310_v63  ;;  %v622_v30 = vrot.slane %v617_v27, %v621_v25  ;;  %v630_v31 = vrot.slane %v617_v27, %v629_v26  ;;  %v642_v33 = vrot.slane %v637_v29, %v621_v25 }
  0x1f   : > { %v650_v34 = vrot.slane %v637_v29, %v629_v26  ;;  %v686_v60 = vunpack.c.l.s4 %v921_v59 }
  0x20   : > { %549 = vmatpush1.bf16.msra.mxu0 %v886_v39  ;;  %839 = vmatpush3.bf16.msra.mxu1 %v887_v44  ;;  %v329_v7 = vadd.f32 %v780_v0, %v323_v4 }
  0x21   : > { %550 = vmatprep.subr.bf16.mxu0 %v888_v45  ;;  %840 = vmatprep.subr.bf16.mxu1 %v917_v1  ;;  %v360_v1 = vld [vmem:[%s1111_s2] sm:$0x1]  ;;  %v687_v61 = vunpack.c.0.s8 %v686_v60 }
  0x22   : > { %v336_v9 = vadd.f32 %v335_v5, %v329_v7 }
  0x23   : > { %v690_v4 = vsub.s32 %v687_v61, %v1013_v16  ;;  %v716_v16 = vld [vmem:[%s273_s30] sm:$0x7] }
  0x24   : > { %551 = vmatpush1.bf16.msra.mxu0 %v890_v52  ;;  %841 = vmatpush3.bf16.msra.mxu1 %v891_v57  ;;  %v343_v11 = vadd.f32 %v342_v8, %v336_v9 }
  0x26   : > { %v359_v12 = vadd.f32 %v785_v10, %v343_v11 }
  0x28   : > { %v361_v14 = vmul.f32 %v360_v1, %v359_v12 }
  0x2a   : > { %v363_v15 = vadd.f32 %v362_v13, %v361_v14 }
  0x2c   : > { %v786_v17 = vmul.f32 -1.442695, %v363_v15 }
  0x2e   : > { %893 = vpow2.f32 %v786_v17 }
  0x38   : > { %v894_v18 = vpop.eup %893 }
  0x39   : > { %v367_v19 = vadd.f32 1.0, %v894_v18 }
  0x3b   : > { %895 = vrcp.f32 %v367_v19 }
  0x45   : > { %v896_v20 = vpop.eup %895 }
  0x46   : > { %v370_v21 = vmul.f32 %v896_v20, %v363_v15 }
  0x48   : > { %v371_v23 = vpack.c.bf16 %v370_v21, %v370_v21 }
  0x4a   : > { %v375_v24 = vsel %vm1084_vm3, %v371_v23, 0 }
  0x4b   : > { %569 = vmatmul.mubr.bf16.vlgmr.msra.gmra.mrb[0].mxu0 %v375_v24  ;;  %843 = vmatmul.mubr.bf16.vlgmr.msra.gmra.mrb[0].mxu1 %v375_v24 }
 0x11e   : > { %v570_v35 = vpop.f32.mrb[0].mxu0  ;;  %v611_v36 = vpop.f32.mrb[0].mxu1 }
 0x11f   : > { %v634_v38 = vmul.f32 %v622_v30, %v570_v35  ;;  %v636_v39 = vmul.f32 %v630_v31, %v611_v36  ;;  %v572_v40 = vpop.f32.mrb[1].mxu0  ;;  %v844_v41 = vpop.f32.mrb[1].mxu1 }
 0x120   : > { %v635_v42 = vmul.f32 %v626_v32, %v572_v40  ;;  %v574_v43 = vpop.f32.mrb[2].mxu0  ;;  %v614_v44 = vpop.f32.mrb[2].mxu1 }
 0x121   : > { %v654_v45 = vadd.f32 %v642_v33, %v634_v38  ;;  %v656_v46 = vadd.f32 %v650_v34, %v636_v39  ;;  %v575_v47 = vpop.f32.mrb[3].mxu0  ;;  %v845_v48 = vpop.f32.mrb[3].mxu1 }
 0x122   : > { %v655_v49 = vadd.f32 %v646_v37, %v635_v42 }
 0x123   : > { %v811_v50 = vmul.f32 -1.442695, %v654_v45  ;;  %v813_v51 = vmul.f32 -1.442695, %v656_v46 }
 0x124   : > { %v812_v52 = vmul.f32 -1.442695, %v655_v49 }
 0x125   : > { %897 = vpow2.f32 %v811_v50 }
 0x126   : > { %899 = vpow2.f32 %v813_v51 }
 0x127   : > { %901 = vpow2.f32 %v812_v52 }
 0x12f   : > { %v898_v53 = vpop.eup %897 }
 0x130   : > { %v900_v54 = vpop.eup %899  ;;  %v666_v55 = vadd.f32 1.0, %v898_v53 }
 0x131   : > { %v902_v56 = vpop.eup %901  ;;  %v668_v57 = vadd.f32 1.0, %v900_v54 }
 0x132   : > { %903 = vrcp.f32 %v666_v55  ;;  %v667_v58 = vadd.f32 1.0, %v902_v56 }
 0x133   : > { %905 = vrcp.f32 %v668_v57 }
 0x134   : > { %907 = vrcp.f32 %v667_v58 }
 0x13c   : > { %v904_v62 = vpop.eup %903 }
 0x13d   : > { %v906_v63 = vpop.eup %905  ;;  %v675_v0 = vmul.f32 %v904_v62, %v654_v45 }
 0x13e   : > { %v908_v2 = vpop.eup %907  ;;  %v677_v3 = vmul.f32 %v906_v63, %v656_v46 }
 0x13f   : > { %v676_v5 = vmul.f32 %v908_v2, %v655_v49 }
 0x140   : > { %v680_v6 = vpack.c.bf16 %v677_v3, %v677_v3 }
 0x141   : > { %v814_v7 = vpack.c.bf16 %v676_v5, %v675_v0 }
 0x142   : > { %v698_v8 = vrot.slane %v680_v6, %v690_v4 }
 0x143   : > { %v691_v9 = vrot.slane %v814_v7, %v690_v4 }
 0x145   : > { %v699_v10 = vcombine.low %v691_v9, %v698_v8 }
 0x147   : > { %v706_v11 = vrot.slane %v699_v10, %v690_v4 }
 0x149   : > { %v717_v1 = vsel %vm715_vm11, %v706_v11, %v716_v16 }
 0x14a   : > { %718 = vst [vmem:[%s273_s30] sm:$0x7] %v717_v1 }
 0x14b PF: > { %s17_s24 = sadd.s32 1, %s915_s24  }
 0x14c   : > { %p14_p4 = scmp.ge.s32.totalorder %s17_s24, 4  }
 0x14e   :  { %16 = sbr.rel (!%p14_p4) target bundleno = 1 (0x1), region = 79 }

</bundles_post_ra>
